<compile_context>
chip_gen: v5e
topology: v5e:2x2
jax: 0.10.0
libtpu: 0.0.40
codegen_flags: <defaults>
</compile_context>

<pallas_src>
import jax
import jax.numpy as jnp
from jax.experimental import pallas as pl
from jax.experimental.pallas import tpu as pltpu


H1_UNITS = 512
H2_UNITS = 256


def _default_flags():
    """Returns (out_on_mxu, bf16_epilogue).

    v6e/v7x: VALU-bound epilogue with MXU slack -> 256->1 projection on the MXU, bf16 epilogue.
    v5e (and older): MXU-bound, no bf16 VALU    -> f32 VPU/XLU layer 3, f32 epilogue.
    """
    try:
        kind = jax.devices()[0].device_kind.lower()
    except Exception:  # pragma: no cover - defensive; default to the modern path
        kind = ""
    old_gen = any(t in kind for t in ("v2", "v3", "v4", "v5"))
    return (not old_gen), (not old_gen)


def _make_kernel(out_on_mxu, bf16_epilogue):
    def kernel(x_ref, w1_ref, w2_ref, b2_ref, w3_ref, o_ref):
        # Layer 1: (512, K) contracted with (tb, K) along K (transposed-RHS / NT matmul)
        # -> (512, tb).  b1 is already folded in via the ones column of x / extra W1 column.
        h1 = jax.lax.dot_general(
            w1_ref[...], x_ref[...],
            dimension_numbers=(((1,), (1,)), ((), ())),
            preferred_element_type=jnp.float32)
        if bf16_epilogue:
            h1 = jnp.maximum(h1.astype(jnp.bfloat16), 0)      # ReLU in bf16 (v6e/v7x VALU)
        else:
            h1 = jnp.maximum(h1, 0.0).astype(jnp.bfloat16)    # f32 ReLU (v5e), cast for MXU

        # Layer 2: (256, 512) @ (512, tb) -> (256, tb), f32 accumulation on the MXU.
        h2 = jnp.dot(w2_ref[...], h1, preferred_element_type=jnp.float32)

        if out_on_mxu:
            # v6e/v7x: bias + ReLU in the narrow dtype, then 256->1 on the (idle) MXU.
            if bf16_epilogue:
                h2 = jnp.maximum(h2.astype(jnp.bfloat16) + b2_ref[...], 0)
            else:
                h2 = jnp.maximum(h2 + b2_ref[...], 0.0).astype(jnp.bfloat16)
            out = jnp.dot(w3_ref[...], h2, preferred_element_type=jnp.float32)   # (8, tb)
            o_ref[...] = out[0:1, :].astype(o_ref.dtype)                          # row 0
        else:
            # v5e: MXU is the binding unit -> layer 3 on the VPU/XLU in f32.
            h2 = jnp.maximum(h2 + b2_ref[...], 0.0)
            o_ref[...] = jnp.sum(h2 * w3_ref[...], axis=0, keepdims=True).astype(o_ref.dtype)

    return kernel


def _choose_tb(b, max_tb=2048):
    """Largest batch tile (multiple of 128) that keeps the grid short.

    Single tile up to 2048; above that, tiles <= 2048 with an even grid length so v7x's two
    TensorCores ("parallel" grid axis) get equal work.  On v5e/v6e fewer steps is all that
    matters (per-step overhead ~0.35 us dominates this tiny MLP's per-tile compute).
    """
    b128 = pl.cdiv(b, 128) * 128
    if b128 <= max_tb:
        return b128
    n = pl.cdiv(b128, max_tb)
    if n % 2:
        n += 1                      # even grid -> even split across v7x's two TensorCores
    return pl.cdiv(pl.cdiv(b128, n), 128) * 128


def lambdarank_forward(x, w1, b1, w2, b2, w3, b3, *, tb=None,
                       out_on_mxu=None, bf16_epilogue=None):
    """x: (B, F) float32. Weights in PyTorch (out, in) convention; biases 1-D."""
    B, F = x.shape
    d_mxu, d_bf16 = _default_flags()
    if out_on_mxu is None:
        out_on_mxu = d_mxu
    if bf16_epilogue is None:
        bf16_epilogue = d_bf16
    if tb is None:
        tb = _choose_tb(B)

    n_tiles = pl.cdiv(B, tb)
    b_pad = n_tiles * tb
    k_pad = pl.cdiv(F + 1, 128) * 128     # fold b1 (ones column) then pad K to the MXU's 128

    bf = jnp.bfloat16

    # One fused, row-major XLA pass over x: bf16 cast + ones column (bias fold) + zero pad.
    # No transpose / feature-major relayout of the activations.
    x_aug = jnp.concatenate([x.astype(bf), jnp.ones((B, 1), bf)], axis=1)       # (B, F+1)
    x_aug = jnp.pad(x_aug, ((0, b_pad - B), (0, k_pad - (F + 1))))              # (b_pad, k_pad)

    # Weight prep (tiny, one-time): fold b1 as column F of W1, zero-pad K to k_pad.
    w1_aug = jnp.concatenate([w1, b1[:, None]], axis=1)                         # (512, F+1)
    w1_aug = jnp.pad(w1_aug, ((0, 0), (0, k_pad - (F + 1)))).astype(bf)         # (512, k_pad)
    w2_bf = w2.astype(bf)                                                       # (256, 512)

    if out_on_mxu and bf16_epilogue:
        b2_c = b2.reshape(-1, 1).astype(bf)                                     # (256, 1)
    else:
        b2_c = b2.reshape(-1, 1).astype(jnp.float32)
    if out_on_mxu:
        # (8, 256) bf16, row 0 = w3, rows 1..7 zero -> MXU-friendly 256->1 projection.
        w3_in = jnp.zeros((8, H2_UNITS), bf).at[0, :].set(w3.reshape(-1).astype(bf))
        w3_shape = (8, H2_UNITS)
    else:
        w3_in = w3.reshape(-1, 1).astype(jnp.float32)                           # (256, 1)
        w3_shape = (H2_UNITS, 1)

    out_row = pl.pallas_call(
        _make_kernel(out_on_mxu, bf16_epilogue),
        out_shape=jax.ShapeDtypeStruct((1, b_pad), jnp.float32),
        grid_spec=pltpu.PrefetchScalarGridSpec(
            num_scalar_prefetch=0,
            grid=(n_tiles,),
            in_specs=[
                pl.BlockSpec((tb, k_pad), lambda i: (i, 0)),             # x rows (pipelined)
                pl.BlockSpec((H1_UNITS, k_pad), lambda i: (0, 0)),       # W1|b1 (resident)
                pl.BlockSpec((H2_UNITS, H1_UNITS), lambda i: (0, 0)),    # W2 (resident)
                pl.BlockSpec((H2_UNITS, 1), lambda i: (0, 0)),           # b2
                pl.BlockSpec(w3_shape, lambda i: (0, 0)),                # w3
            ],
            out_specs=pl.BlockSpec((1, tb), lambda i: (0, i)),           # lane-dense scores row
        ),
        compiler_params=pltpu.CompilerParams(
            # Batch tiles are independent -> megacore-shard across v7x's 2 TensorCores.
            dimension_semantics=("parallel",),
        ),
    )(x_aug, w1_aug, w2_bf, b2_c, w3_in)

    # Strip batch padding, restore (B, 1), fold in the scalar output bias (free in XLA).
    return (out_row.reshape(-1)[:B, None] + b3).astype(x.dtype)


def _init_params(key, n_feature):
    """Deterministic synthetic init, PyTorch nn.Linear-style uniform(-1/sqrt(in), 1/sqrt(in))."""
    ks = jax.random.split(key, 6)

    def lin(kw, kb, fan_in, fan_out):
        bound = 1.0 / jnp.sqrt(fan_in)
        w = jax.random.uniform(kw, (fan_out, fan_in), jnp.float32, -bound, bound)
        b = jax.random.uniform(kb, (fan_out,), jnp.float32, -bound, bound)
        return w, b

    w1, b1 = lin(ks[0], ks[1], n_feature, H1_UNITS)
    w2, b2 = lin(ks[2], ks[3], H1_UNITS, H2_UNITS)
    w3, b3 = lin(ks[4], ks[5], H2_UNITS, 1)
    return w1, b1, w2, b2, w3, b3


def _ref_forward(x, w1, b1, w2, b2, w3, b3, *, out_on_mxu, bf16_epilogue):
    """Pure-JAX reference mirroring the kernel's precision policy exactly:
    bf16 matmul inputs / f32 accumulation, b1 folded in bf16, and the same
    bf16-vs-f32 epilogue and MXU-vs-VPU layer-3 choices."""
    bf = jnp.bfloat16
    h = jnp.dot(x.astype(bf), w1.astype(bf).T, preferred_element_type=jnp.float32)
    h = h + b1.astype(bf).astype(jnp.float32)          # b1 folded as a bf16 W1 column
    if bf16_epilogue:
        h = jnp.maximum(h.astype(bf), 0)
    else:
        h = jnp.maximum(h, 0.0).astype(bf)
    h = jnp.dot(h, w2.astype(bf).T, preferred_element_type=jnp.float32)
    if out_on_mxu:
        if bf16_epilogue:
            h = jnp.maximum(h.astype(bf) + b2.astype(bf), 0)
        else:
            h = jnp.maximum(h + b2, 0.0).astype(bf)
        out = jnp.dot(h, w3.astype(bf).T, preferred_element_type=jnp.float32)
    else:
        h = jnp.maximum(h + b2, 0.0)
        out = jnp.dot(h, w3.T.astype(jnp.float32))
    return out + b3


if __name__ == "__main__":
    key = jax.random.PRNGKey(0)
    k_data, k_params, k_x = jax.random.split(key, 3)

    # training_data has shape (N, n_feature + 2) -> n_feature = 32 here.
    n_feature = 32
    training_data = jax.random.normal(k_data, (16, n_feature + 2), jnp.float32)
    assert training_data.shape[1] - 2 == n_feature

    w1, b1, w2, b2, w3, b3 = _init_params(k_params, n_feature)

    # Non-multiple-of-128 batch exercises the pad + slice path; B=1000 -> a single 1024-wide
    # tile (grid=(1,)), per the perf review's guidance for small batches.
    batch = 1000
    x = jax.random.normal(k_x, (batch, n_feature), jnp.float32)

    out = lambdarank_forward(x, w1, b1, w2, b2, w3, b3)
    out = jax.block_until_ready(out)
    assert out.shape == (batch, 1)

    out_on_mxu, bf16_epilogue = _default_flags()
    ref = _ref_forward(x, w1, b1, w2, b2, w3, b3,
                       out_on_mxu=out_on_mxu, bf16_epilogue=bf16_epilogue)
    max_err = float(jnp.max(jnp.abs(out - ref)))
    assert jnp.allclose(out, ref, atol=1e-2, rtol=1e-2), max_err

    print("KERNEL_OK")
</pallas_src>

<mosaic_0001>
module attributes {stable_mosaic.version = 11 : i64} {
  func.func @kernel(%arg0: i32, %arg1: memref<1024x128xbf16, #tpu.memory_space<vmem>>, %arg2: memref<512x128xbf16, #tpu.memory_space<vmem>>, %arg3: memref<256x512xbf16, #tpu.memory_space<vmem>>, %arg4: memref<256x1xbf16, #tpu.memory_space<vmem>>, %arg5: memref<8x256xbf16, #tpu.memory_space<vmem>>, %arg6: memref<1x1024xf32, #tpu.memory_space<vmem>>) attributes {dimension_semantics = [#tpu.dimension_semantics<parallel>], iteration_bounds = array<i64: 1>, scalar_prefetch = 0 : i64, scratch_operands = 0 : i64, tpu.core_type = #tpu.core_type<tc>, window_params = [{transform_indices = @transform_0, window_bounds = array<i64: 1024, 128>}, {pipeline_mode = #tpu.pipeline_mode<synchronous>, transform_indices = @transform_1, window_bounds = array<i64: 512, 128>}, {pipeline_mode = #tpu.pipeline_mode<synchronous>, transform_indices = @transform_2, window_bounds = array<i64: 256, 512>}, {pipeline_mode = #tpu.pipeline_mode<synchronous>, transform_indices = @transform_3, window_bounds = array<i64: 256, 1>}, {pipeline_mode = #tpu.pipeline_mode<synchronous>, transform_indices = @transform_4, window_bounds = array<i64: 8, 256>}, {transform_indices = @transform_5, window_bounds = array<i64: 1, 1024>}]} {
    %c0 = arith.constant 0 : index
    %c0_0 = arith.constant 0 : index
    %0 = vector.load %arg2[%c0, %c0_0] : memref<512x128xbf16, #tpu.memory_space<vmem>>, vector<512x128xbf16>
    %c0_1 = arith.constant 0 : index
    %c0_2 = arith.constant 0 : index
    %1 = vector.load %arg1[%c0_1, %c0_2] : memref<1024x128xbf16, #tpu.memory_space<vmem>>, vector<1024x128xbf16>
    %cst = arith.constant dense<0.000000e+00> : vector<512x1024xf32>
    %2 = tpu.matmul %0, %1, %cst {dimension_numbers = #tpu.dot_dimension_numbers<[1], [1], [0], [0], [0, 0, 1, 0], [], []>} : vector<512x128xbf16>, vector<1024x128xbf16>, vector<512x1024xf32> -> vector<512x1024xf32>
    %3 = arith.truncf %2 : vector<512x1024xf32> to vector<512x1024xbf16>
    %cst_3 = arith.constant 0.000000e+00 : bf16
    %4 = vector.broadcast %cst_3 : bf16 to vector<512x1024xbf16>
    %5 = arith.maximumf %3, %4 : vector<512x1024xbf16>
    %c0_4 = arith.constant 0 : index
    %c0_5 = arith.constant 0 : index
    %6 = vector.load %arg3[%c0_4, %c0_5] : memref<256x512xbf16, #tpu.memory_space<vmem>>, vector<256x512xbf16>
    %cst_6 = arith.constant dense<0.000000e+00> : vector<256x1024xf32>
    %7 = tpu.matmul %6, %5, %cst_6 {dimension_numbers = #tpu.dot_dimension_numbers<[1], [0], [0], [1], [0, 0, 1, 1], [], []>} : vector<256x512xbf16>, vector<512x1024xbf16>, vector<256x1024xf32> -> vector<256x1024xf32>
    %8 = arith.truncf %7 : vector<256x1024xf32> to vector<256x1024xbf16>
    %c0_7 = arith.constant 0 : index
    %c0_8 = arith.constant 0 : index
    %9 = vector.load %arg4[%c0_7, %c0_8] : memref<256x1xbf16, #tpu.memory_space<vmem>>, vector<256x1xbf16>
    %10 = vector.broadcast %9 : vector<256x1xbf16> to vector<256x1024xbf16>
    %11 = arith.addf %8, %10 : vector<256x1024xbf16>
    %cst_9 = arith.constant 0.000000e+00 : bf16
    %12 = vector.broadcast %cst_9 : bf16 to vector<256x1024xbf16>
    %13 = arith.maximumf %11, %12 : vector<256x1024xbf16>
    %c0_10 = arith.constant 0 : index
    %c0_11 = arith.constant 0 : index
    %14 = vector.load %arg5[%c0_10, %c0_11] : memref<8x256xbf16, #tpu.memory_space<vmem>>, vector<8x256xbf16>
    %cst_12 = arith.constant dense<0.000000e+00> : vector<8x1024xf32>
    %15 = tpu.matmul %14, %13, %cst_12 {dimension_numbers = #tpu.dot_dimension_numbers<[1], [0], [0], [1], [0, 0, 1, 1], [], []>} : vector<8x256xbf16>, vector<256x1024xbf16>, vector<8x1024xf32> -> vector<8x1024xf32>
    %16 = vector.extract_strided_slice %15 {offsets = [0, 0], sizes = [1, 1024], strides = [1, 1]} : vector<8x1024xf32> to vector<1x1024xf32>
    %c0_13 = arith.constant 0 : index
    %c0_14 = arith.constant 0 : index
    %17 = vector.load %arg6[%c0_13, %c0_14] : memref<1x1024xf32, #tpu.memory_space<vmem>>, vector<1x1024xf32>
    tpu.vector_store %arg6[%c0_13, %c0_14], %16 {strides = array<i32>} : memref<1x1024xf32, #tpu.memory_space<vmem>>, vector<1x1024xf32>,
    return
  }
  func.func @transform_0(%arg0: i32) -> (i32, i32) {
    %c0_i32 = arith.constant 0 : i32
    %c0_i32_0 = arith.constant 0 : i32
    return %arg0, %c0_i32 : i32, i32
  }
  func.func @transform_1(%arg0: i32) -> (i32, i32) {
    %c0_i32 = arith.constant 0 : i32
    %c0_i32_0 = arith.constant 0 : i32
    %c0_i32_1 = arith.constant 0 : i32
    return %c0_i32, %c0_i32_0 : i32, i32
  }
  func.func @transform_2(%arg0: i32) -> (i32, i32) {
    %c0_i32 = arith.constant 0 : i32
    %c0_i32_0 = arith.constant 0 : i32
    %c0_i32_1 = arith.constant 0 : i32
    return %c0_i32, %c0_i32_0 : i32, i32
  }
  func.func @transform_3(%arg0: i32) -> (i32, i32) {
    %c0_i32 = arith.constant 0 : i32
    %c0_i32_0 = arith.constant 0 : i32
    %c0_i32_1 = arith.constant 0 : i32
    return %c0_i32, %c0_i32_0 : i32, i32
  }
  func.func @transform_4(%arg0: i32) -> (i32, i32) {
    %c0_i32 = arith.constant 0 : i32
    %c0_i32_0 = arith.constant 0 : i32
    %c0_i32_1 = arith.constant 0 : i32
    return %c0_i32, %c0_i32_0 : i32, i32
  }
  func.func @transform_5(%arg0: i32) -> (i32, i32) {
    %c0_i32 = arith.constant 0 : i32
    %c0_i32_0 = arith.constant 0 : i32
    return %c0_i32, %arg0 : i32, i32
  }
}

</mosaic_0001>

<bundles_post_ra>
// kernel: tpu_custom_call.1
= control target key start
LH: loop header
LB: loop body
LE: loop exit
PB: predicated region body
PF: predicated region fallthrough
CT: control target
= control target key end

     0   :  { %10 = vsyncpa [#allocation3], 0  ;;  %s12710_s0 = inlined_call_operand.hbm [shape: bf16[1024,128], index: 0, kind: input, shape index: {}]   ;;  %s12711_s1 = inlined_call_operand.hbm [shape: bf16[512,128], index: 1, kind: input, shape index: {}]   ;;  %s12712_s2 = inlined_call_operand.hbm [shape: bf16[256,512], index: 2, kind: input, shape index: {}]   ;;  %s12713_s3 = inlined_call_operand.vmem [shape: bf16[256,1], index: 3, kind: input, shape index: {}]   ;;  %s12714_s4 = inlined_call_operand.vmem [shape: bf16[8,256], index: 4, kind: input, shape index: {}]   ;;  %s12715_s5 = inlined_call_operand.hbm [shape: f32[1,1024], index: 5, kind: output, shape index: {}]  }
   0x1   :  { %11 = vsyncpa [#allocation6], 0 }
   0x2   :  { %12 = vsyncpa [#allocation4], 0  ;;  %s30_s20 = sshll.u32 %s12711_s1, 4  ;;  %s9928_s21 = smov [#allocation5]   ;;  %s31_s20 = int_to_ptr.hbm [resolvable:$true] %s30_s20 }
   0x3   :  { %s32_s22 = sshll.u32 %s9928_s21, 4  ;;  %s17_s25 = sshll.u32 %s12710_s0, 4  ;;  %s33_s22 = int_to_ptr.vmem [resolvable:$true] %s32_s22  ;;  %s18_s25 = int_to_ptr.hbm [resolvable:$true] %s17_s25 }
   0x4   :  { %s9929_s26 = smov 64   ;;  %s9930_s27 = smov 4  }
   0x5   :  { %38 = dma.hbm_to_vmem [thread:$0]  %s31_s20, 4096, %s33_s22, [#allocation6], %s9929_s26, %s9929_s26, %s9930_s27  }
   0x6   :  { %s9931_s28 = smov [#allocation2]   ;;  %s43_s7 = sshll.u32 %s12712_s2, 4  ;;  %s44_s7 = int_to_ptr.hbm [resolvable:$true] %s43_s7 }
   0x7   :  { %s19_s29 = sshll.u32 %s9931_s28, 4  ;;  %s9932_s1 = smov [#allocation7]   ;;  %s20_s29 = int_to_ptr.vmem [resolvable:$true] %s19_s29 }
   0x8   :  { %25 = dma.hbm_to_vmem [thread:$0]  %s18_s25, 8192, %s20_s29, [#allocation3], %s9929_s26, %s9929_s26, %s9930_s27  }
   0x9   :  { %s45_s8 = sshll.u32 %s9932_s1, 4  ;;  %s9933_s9 = smov 256   ;;  %s46_s8 = int_to_ptr.vmem [resolvable:$true] %s45_s8 }
   0xa   :  { %s9934_s10 = smov 16  }
   0xb   :  { %51 = dma.hbm_to_vmem [thread:$0]  %s44_s7, 8192, %s46_s8, [#allocation6], %s9933_s9, %s9933_s9, %s9934_s10  }
   0xc   :  { %9922 = dma.done.wait [#allocation3], 8192  }
   0xd   :  { %9923 = vsyncadd [#allocation3], 4294959104 }
   0xe   :  { %9924 = dma.done.wait [#allocation6], 12288  }
   0xf   :  { %9925 = vsyncadd [#allocation6], 4294955008  ;;  %v9660_v0 = vld [vmem:[#allocation2 + $0x38] sm:$0xff]  ;;  %v9659_v4 = vld [vmem:[#allocation2 + $0x30] sm:$0xff]  ;;  %vm8947_vm0 = vcmask 1040384   ;;  %vm8949_vm1 = vcmask 1042434  }
  0x10   :  { %v9668_v1 = vld [vmem:[#allocation2 + $0x78] sm:$0xff]  ;;  %836 = vmatpush.bf16.xpose.msra.mxu0 %v9660_v0  ;;  %v9667_v5 = vld [vmem:[#allocation2 + $0x70] sm:$0xff]  ;;  %v9658_v8 = vld [vmem:[#allocation2 + $0x28] sm:$0xff]  ;;  %vm8953_vm2 = vcmask 1044484   ;;  %vm8951_vm3 = vcmask 1041408   ;;  %vm8955_vm4 = vcmask 1046534  }
  0x11   :  { %v9676_v2 = vld [vmem:[#allocation2 + $0xb8] sm:$0xff]  ;;  %1005 = vmatpush.bf16.xpose.msra.mxu1 %v9668_v1  ;;  %v9675_v6 = vld [vmem:[#allocation2 + $0xb0] sm:$0xff]  ;;  %v9666_v9 = vld [vmem:[#allocation2 + $0x68] sm:$0xff]  ;;  %vm8957_vm5 = vcmask 1045508   ;;  %s8970_s21 = sshll.u32 %s12715_s5, 4  ;;  %vm8959_vm6 = vcmask 1043456   ;;  %s8971_s21 = int_to_ptr.hbm [resolvable:$true] %s8970_s21 }
  0x12   :  { %v9684_v3 = vld [vmem:[#allocation2 + $0xf8] sm:$0xff]  ;;  %1174 = vmatpush.bf16.xpose.msra.mxu2 %v9676_v2  ;;  %v9683_v7 = vld [vmem:[#allocation2 + $0xf0] sm:$0xff]  ;;  %v9674_v10 = vld [vmem:[#allocation2 + $0xa8] sm:$0xff] }
  0x13   :  { %1343 = vmatpush.bf16.xpose.msra.mxu3 %v9684_v3  ;;  %v9682_v11 = vld [vmem:[#allocation2 + $0xe8] sm:$0xff]  ;;  %v9657_v12 = vld [vmem:[#allocation2 + $0x20] sm:$0xff]  ;;  %v9656_v16 = vld [vmem:[#allocation2 + $0x18] sm:$0xff] }
  0x14   :  { %v9665_v13 = vld [vmem:[#allocation2 + $0x60] sm:$0xff]  ;;  %v9664_v17 = vld [vmem:[#allocation2 + $0x58] sm:$0xff]  ;;  %v9655_v20 = vld [vmem:[#allocation2 + $0x10] sm:$0xff] }
  0x15   :  { %v9673_v14 = vld [vmem:[#allocation2 + $0xa0] sm:$0xff]  ;;  %v9672_v18 = vld [vmem:[#allocation2 + $0x98] sm:$0xff]  ;;  %v9663_v21 = vld [vmem:[#allocation2 + $0x50] sm:$0xff] }
  0x16   :  { %v9681_v15 = vld [vmem:[#allocation2 + $0xe0] sm:$0xff]  ;;  %v9680_v19 = vld [vmem:[#allocation2 + $0xd8] sm:$0xff]  ;;  %v9671_v22 = vld [vmem:[#allocation2 + $0x90] sm:$0xff] }
  0x17   :  { %v9679_v23 = vld [vmem:[#allocation2 + $0xd0] sm:$0xff]  ;;  %v9654_v24 = vld [vmem:[#allocation2 + $0x8] sm:$0xff]  ;;  %v9653_v28 = vld [vmem:[#allocation2] sm:$0xff] }
  0x18   :  { %837 = vmatpush.bf16.xpose.msra.mxu0 %v9659_v4  ;;  %v9662_v25 = vld [vmem:[#allocation2 + $0x48] sm:$0xff]  ;;  %v9661_v29 = vld [vmem:[#allocation2 + $0x40] sm:$0xff]  ;;  %v9623_v34 = vld [vmem:[#allocation5 + $0x10] sm:$0xff] }
  0x19   :  { %1006 = vmatpush.bf16.xpose.msra.mxu1 %v9667_v5  ;;  %v9670_v26 = vld [vmem:[#allocation2 + $0x88] sm:$0xff]  ;;  %v9669_v30 = vld [vmem:[#allocation2 + $0x80] sm:$0xff]  ;;  %v9624_v35 = vld [vmem:[#allocation5 + $0x18] sm:$0xff] }
  0x1a   :  { %1175 = vmatpush.bf16.xpose.msra.mxu2 %v9675_v6  ;;  %v9678_v27 = vld [vmem:[#allocation2 + $0xc8] sm:$0xff]  ;;  %v9677_v31 = vld [vmem:[#allocation2 + $0xc0] sm:$0xff]  ;;  %v9708_v38 = vld [vmem:[#allocation2 + $0x1b8] sm:$0xff] }
  0x1b   :  { %1344 = vmatpush.bf16.xpose.msra.mxu3 %v9683_v7  ;;  %v9621_v32 = vld [vmem:[#allocation5] sm:$0xff]  ;;  %v9622_v33 = vld [vmem:[#allocation5 + $0x8] sm:$0xff]  ;;  %v9716_v39 = vld [vmem:[#allocation2 + $0x1f8] sm:$0xff] }
  0x1c   :  { %v9625_v36 = vld [vmem:[#allocation5 + $0x20] sm:$0xff]  ;;  %v9626_v37 = vld [vmem:[#allocation5 + $0x28] sm:$0xff]  ;;  %v9692_v40 = vld [vmem:[#allocation2 + $0x138] sm:$0xff] }
  0x1d   :  { %v9700_v41 = vld [vmem:[#allocation2 + $0x178] sm:$0xff]  ;;  %v9627_v42 = vld [vmem:[#allocation5 + $0x30] sm:$0xff]  ;;  %v9629_v44 = vld [vmem:[#allocation5 + $0x40] sm:$0xff] }
  0x1e   :  { %v9628_v43 = vld [vmem:[#allocation5 + $0x38] sm:$0xff]  ;;  %v9630_v59 = vld [vmem:[#allocation5 + $0x48] sm:$0xff] }
  0x20   :  { %838 = vmatpush.bf16.xpose.msra.mxu0 %v9658_v8 }
  0x21   :  { %1007 = vmatpush.bf16.xpose.msra.mxu1 %v9666_v9 }
  0x22   :  { %1176 = vmatpush.bf16.xpose.msra.mxu2 %v9674_v10 }
  0x23   :  { %1345 = vmatpush.bf16.xpose.msra.mxu3 %v9682_v11 }
  0x28   :  { %839 = vmatpush.bf16.xpose.msra.mxu0 %v9657_v12 }
  0x29   :  { %1008 = vmatpush.bf16.xpose.msra.mxu1 %v9665_v13 }
  0x2a   :  { %1177 = vmatpush.bf16.xpose.msra.mxu2 %v9673_v14  ;;  %v9707_v14 = vld [vmem:[#allocation2 + $0x1b0] sm:$0xff] }
  0x2b   :  { %1346 = vmatpush.bf16.xpose.msra.mxu3 %v9681_v15  ;;  %v9715_v15 = vld [vmem:[#allocation2 + $0x1f0] sm:$0xff] }
  0x30   :  { %840 = vmatpush.bf16.xpose.msra.mxu0 %v9656_v16 }
  0x31   :  { %1009 = vmatpush.bf16.xpose.msra.mxu1 %v9664_v17 }
  0x32   :  { %1178 = vmatpush.bf16.xpose.msra.mxu2 %v9672_v18  ;;  %v9631_v18 = vld [vmem:[#allocation5 + $0x50] sm:$0xff] }
  0x33   :  { %1347 = vmatpush.bf16.xpose.msra.mxu3 %v9680_v19 }
  0x38   :  { %841 = vmatpush.bf16.xpose.msra.mxu0 %v9655_v20 }
  0x39   :  { %1010 = vmatpush.bf16.xpose.msra.mxu1 %v9663_v21 }
  0x3a   :  { %1179 = vmatpush.bf16.xpose.msra.mxu2 %v9671_v22 }
  0x3b   :  { %1348 = vmatpush.bf16.xpose.msra.mxu3 %v9679_v23 }
  0x40   :  { %842 = vmatpush.bf16.xpose.msra.mxu0 %v9654_v24 }
  0x41   :  { %1011 = vmatpush.bf16.xpose.msra.mxu1 %v9662_v25 }
  0x42   :  { %1180 = vmatpush.bf16.xpose.msra.mxu2 %v9670_v26 }
  0x43   :  { %1349 = vmatpush.bf16.xpose.msra.mxu3 %v9678_v27  ;;  %v9691_v27 = vld [vmem:[#allocation2 + $0x130] sm:$0xff] }
  0x48   :  { %843 = vmatpush.bf16.xpose.msra.mxu0 %v9653_v28  ;;  %v9699_v28 = vld [vmem:[#allocation2 + $0x170] sm:$0xff] }
  0x49   :  { %1012 = vmatpush.bf16.xpose.msra.mxu1 %v9661_v29 }
  0x4a   :  { %1181 = vmatpush.bf16.xpose.msra.mxu2 %v9669_v30 }
  0x4b   :  { %1350 = vmatpush.bf16.xpose.msra.mxu3 %v9677_v31 }
  0x4f   :  { %844 = vmatmul.bf16.vlgmr.msra.gmra.mxu0 %v9621_v32 }
  0x50   :  { %1013 = vmatmul.bf16.vlgmr.msra.gmra.mxu1 %v9621_v32  ;;  %1512 = vmatpush.bf16.xpose.msrb.mxu0 %v9692_v40 }
  0x51   :  { %1182 = vmatmul.bf16.vlgmr.msra.gmra.mxu2 %v9621_v32  ;;  %1681 = vmatpush.bf16.xpose.msrb.mxu1 %v9700_v41  ;;  %v9632_v41 = vld [vmem:[#allocation5 + $0x58] sm:$0xff] }
  0x52   :  { %1351 = vmatmul.bf16.vlgmr.msra.gmra.mxu3 %v9621_v32  ;;  %1850 = vmatpush.bf16.xpose.msrb.mxu2 %v9708_v38 }
  0x53   :  { %2019 = vmatpush.bf16.xpose.msrb.mxu3 %v9716_v39 }
  0x58   :  { %1513 = vmatpush.bf16.xpose.msrb.mxu0 %v9691_v27 }
  0x59   :  { %1682 = vmatpush.bf16.xpose.msrb.mxu1 %v9699_v28  ;;  %v9634_v28 = vld [vmem:[#allocation5 + $0x68] sm:$0xff] }
  0x5a   :  { %1851 = vmatpush.bf16.xpose.msrb.mxu2 %v9707_v14 }
  0x5b   :  { %2020 = vmatpush.bf16.xpose.msrb.mxu3 %v9715_v15  ;;  %v9688_v15 = vld [vmem:[#allocation2 + $0x118] sm:$0xff] }
  0x5f   :  { %849 = vmatmul.bf16.gmra.mxu0 %v9622_v33 }
  0x60   :  { %1018 = vmatmul.bf16.gmra.mxu1 %v9622_v33 }
  0x61   :  { %1187 = vmatmul.bf16.gmra.mxu2 %v9622_v33 }
  0x62   :  { %1356 = vmatmul.bf16.gmra.mxu3 %v9622_v33 }
  0x6f   :  { %854 = vmatmul.bf16.gmra.mxu0 %v9623_v34 }
  0x70   :  { %1023 = vmatmul.bf16.gmra.mxu1 %v9623_v34 }
  0x71   :  { %1192 = vmatmul.bf16.gmra.mxu2 %v9623_v34 }
  0x72   :  { %1361 = vmatmul.bf16.gmra.mxu3 %v9623_v34 }
  0x7f   :  { %859 = vmatmul.bf16.gmra.mxu0 %v9624_v35 }
  0x80   :  { %1028 = vmatmul.bf16.gmra.mxu1 %v9624_v35 }
  0x81   :  { %1197 = vmatmul.bf16.gmra.mxu2 %v9624_v35 }
  0x82   :  { %1366 = vmatmul.bf16.gmra.mxu3 %v9624_v35 }
  0x8f   :  { %864 = vmatmul.bf16.gmra.mxu0 %v9625_v36 }
  0x90   :  { %1033 = vmatmul.bf16.gmra.mxu1 %v9625_v36 }
  0x91   :  { %1202 = vmatmul.bf16.gmra.mxu2 %v9625_v36 }
  0x92   :  { %1371 = vmatmul.bf16.gmra.mxu3 %v9625_v36 }
  0x9f   :  { %869 = vmatmul.bf16.gmra.mxu0 %v9626_v37 }
  0xa0   :  { %1038 = vmatmul.bf16.gmra.mxu1 %v9626_v37 }
  0xa1   :  { %1207 = vmatmul.bf16.gmra.mxu2 %v9626_v37 }
  0xa2   :  { %1376 = vmatmul.bf16.gmra.mxu3 %v9626_v37 }
  0xaf   :  { %874 = vmatmul.bf16.gmra.mxu0 %v9627_v42 }
  0xb0   :  { %1043 = vmatmul.bf16.gmra.mxu1 %v9627_v42 }
  0xb1   :  { %1212 = vmatmul.bf16.gmra.mxu2 %v9627_v42 }
  0xb2   :  { %1381 = vmatmul.bf16.gmra.mxu3 %v9627_v42 }
  0xbf   :  { %879 = vmatmul.bf16.gmra.mxu0 %v9628_v43 }
  0xc0   :  { %1048 = vmatmul.bf16.gmra.mxu1 %v9628_v43 }
  0xc1   :  { %1217 = vmatmul.bf16.gmra.mxu2 %v9628_v43 }
  0xc2   :  { %1386 = vmatmul.bf16.gmra.mxu3 %v9628_v43 }
  0xcc   :  { %v845_v45 = vpop.f32.mrf.mxu0 }
  0xcd   :  { %v1014_v46 = vpop.f32.mrf.mxu1  ;;  %v2956_v51 = vmax.f32 %v845_v45, 0.0 }
  0xce   :  { %v2957_v52 = vmax.f32 %v1014_v46, 0.0 }
  0xcf   :  { %884 = vmatmul.bf16.gmra.mxu0 %v9629_v44 }
  0xd0   :  { %1053 = vmatmul.bf16.gmra.mxu1 %v9629_v44 }
  0xd1   :  { %1222 = vmatmul.bf16.gmra.mxu2 %v9629_v44 }
  0xd2   :  { %1391 = vmatmul.bf16.gmra.mxu3 %v9629_v44 }
  0xd4   :  { %v1183_v47 = vpop.f32.mrf.mxu2  ;;  %v847_v49 = vpop.f32.mrf.mxu0 }
  0xd5   :  { %v1352_v48 = vpop.f32.mrf.mxu3  ;;  %v1016_v50 = vpop.f32.mrf.mxu1  ;;  %v2964_v53 = vmax.f32 %v847_v49, 0.0  ;;  %v2958_v60 = vmax.f32 %v1183_v47, 0.0 }
  0xd6   :  { %v2965_v54 = vmax.f32 %v1016_v50, 0.0  ;;  %v2959_v61 = vmax.f32 %v1352_v48, 0.0  ;;  %v9690_v50 = vld [vmem:[#allocation2 + $0x128] sm:$0xff] }
  0xd7   :  { %v9977_v55 = vpack.c.bf16 %v2964_v53, %v2956_v51  ;;  %1514 = vmatpush.bf16.xpose.msrb.mxu0 %v9690_v50  ;;  %v9685_v50 = vld [vmem:[#allocation2 + $0x100] sm:$0xff] }
  0xd8   :  { %v9979_v56 = vpack.c.bf16 %v2965_v54, %v2957_v52 }
  0xdc   :  { %v1185_v57 = vpop.f32.mrf.mxu2  ;;  %v850_v63 = vpop.f32.mrf.mxu0 }
  0xdd   :  { %v1354_v58 = vpop.f32.mrf.mxu3  ;;  %v2966_v62 = vmax.f32 %v1185_v57, 0.0  ;;  %v1019_v1 = vpop.f32.mrf.mxu1  ;;  %v2972_v8 = vmax.f32 %v850_v63, 0.0  ;;  %v9689_v63 = vld [vmem:[#allocation2 + $0x120] sm:$0xff] }
  0xde   :  { %v2967_v0 = vmax.f32 %v1354_v58, 0.0  ;;  %v2973_v9 = vmax.f32 %v1019_v1, 0.0 }
  0xdf   :  { %v9981_v2 = vpack.c.bf16 %v2966_v62, %v2958_v60  ;;  %889 = vmatmul.bf16.gmra.mxu0 %v9630_v59 }
  0xe0   :  { %v9983_v3 = vpack.c.bf16 %v2967_v0, %v2959_v61  ;;  %1058 = vmatmul.bf16.gmra.mxu1 %v9630_v59  ;;  %1515 = vmatpush.bf16.xpose.msrb.mxu0 %v9689_v63 }
  0xe1   :  { %13000 = vst [vmem:[#allocation12_spill] sm:$0xff] %v9981_v2  ;;  %1227 = vmatmul.bf16.gmra.mxu2 %v9630_v59 }
  0xe2   :  { %13001 = vst [vmem:[#allocation13_spill] sm:$0xff] %v9983_v3  ;;  %1396 = vmatmul.bf16.gmra.mxu3 %v9630_v59 }
  0xe4   :  { %v1188_v4 = vpop.f32.mrf.mxu2  ;;  %v852_v6 = vpop.f32.mrf.mxu0 }
  0xe5   :  { %v1357_v5 = vpop.f32.mrf.mxu3  ;;  %v1021_v7 = vpop.f32.mrf.mxu1  ;;  %v2980_v10 = vmax.f32 %v852_v6, 0.0  ;;  %v2974_v19 = vmax.f32 %v1188_v4, 0.0  ;;  %v9633_v4 = vld [vmem:[#allocation5 + $0x60] sm:$0xff] }
  0xe6   :  { %v2981_v11 = vmax.f32 %v1021_v7, 0.0  ;;  %v2975_v20 = vmax.f32 %v1357_v5, 0.0 }
  0xe7   :  { %v9985_v12 = vpack.c.bf16 %v2980_v10, %v2972_v8 }
  0xe8   :  { %v9987_v13 = vpack.c.bf16 %v2981_v11, %v2973_v9  ;;  %1516 = vmatpush.bf16.xpose.msrb.mxu0 %v9688_v15 }
  0xec   :  { %v1190_v16 = vpop.f32.mrf.mxu2  ;;  %v855_v22 = vpop.f32.mrf.mxu0 }
  0xed   :  { %v1359_v17 = vpop.f32.mrf.mxu3  ;;  %v2982_v21 = vmax.f32 %v1190_v16, 0.0  ;;  %v1024_v24 = vpop.f32.mrf.mxu1  ;;  %v2988_v33 = vmax.f32 %v855_v22, 0.0 }
  0xee   :  { %v2983_v23 = vmax.f32 %v1359_v17, 0.0  ;;  %v2989_v34 = vmax.f32 %v1024_v24, 0.0 }
  0xef   :  { %v9989_v25 = vpack.c.bf16 %v2982_v21, %v2974_v19  ;;  %894 = vmatmul.bf16.gmra.mxu0 %v9631_v18 }
  0xf0   :  { %v9991_v26 = vpack.c.bf16 %v2983_v23, %v2975_v20  ;;  %1063 = vmatmul.bf16.gmra.mxu1 %v9631_v18  ;;  %v9687_v23 = vld [vmem:[#allocation2 + $0x110] sm:$0xff] }
  0xf1   :  { %13002 = vst [vmem:[#allocation14_spill] sm:$0xff] %v9989_v25  ;;  %1232 = vmatmul.bf16.gmra.mxu2 %v9631_v18  ;;  %1517 = vmatpush.bf16.xpose.msrb.mxu0 %v9687_v23 }
  0xf2   :  { %13003 = vst [vmem:[#allocation15_spill] sm:$0xff] %v9991_v26  ;;  %1401 = vmatmul.bf16.gmra.mxu3 %v9631_v18 }
  0xf4   :  { %v1193_v29 = vpop.f32.mrf.mxu2  ;;  %v857_v31 = vpop.f32.mrf.mxu0 }
  0xf5   :  { %v1362_v30 = vpop.f32.mrf.mxu3  ;;  %v1026_v32 = vpop.f32.mrf.mxu1  ;;  %v2996_v35 = vmax.f32 %v857_v31, 0.0  ;;  %v2990_v42 = vmax.f32 %v1193_v29, 0.0 }
  0xf6   :  { %v2997_v36 = vmax.f32 %v1026_v32, 0.0  ;;  %v2991_v43 = vmax.f32 %v1362_v30, 0.0 }
  0xf7   :  { %v9993_v37 = vpack.c.bf16 %v2996_v35, %v2988_v33 }
  0xf8   :  { %v9995_v38 = vpack.c.bf16 %v2997_v36, %v2989_v34 }
  0xfc   :  { %v1195_v39 = vpop.f32.mrf.mxu2  ;;  %v860_v45 = vpop.f32.mrf.mxu0 }
  0xfd   :  { %v1364_v40 = vpop.f32.mrf.mxu3  ;;  %v2998_v44 = vmax.f32 %v1195_v39, 0.0  ;;  %v1029_v47 = vpop.f32.mrf.mxu1  ;;  %v3004_v57 = vmax.f32 %v860_v45, 0.0  ;;  %v9686_v39 = vld [vmem:[#allocation2 + $0x108] sm:$0xff] }
  0xfe   :  { %v2999_v46 = vmax.f32 %v1364_v40, 0.0  ;;  %v3005_v58 = vmax.f32 %v1029_v47, 0.0  ;;  %1518 = vmatpush.bf16.xpose.msrb.mxu0 %v9686_v39  ;;  %v9706_v47 = vld [vmem:[#allocation2 + $0x1a8] sm:$0xff] }
  0xff   :  { %v9997_v48 = vpack.c.bf16 %v2998_v44, %v2990_v42  ;;  %899 = vmatmul.bf16.gmra.mxu0 %v9632_v41  ;;  %1852 = vmatpush.bf16.xpose.msrb.mxu2 %v9706_v47 }
 0x100   :  { %v9999_v49 = vpack.c.bf16 %v2999_v46, %v2991_v43  ;;  %1068 = vmatmul.bf16.gmra.mxu1 %v9632_v41 }
 0x101   :  { %13004 = vst [vmem:[#allocation16_spill] sm:$0xff] %v9997_v48  ;;  %1237 = vmatmul.bf16.gmra.mxu2 %v9632_v41 }
 0x102   :  { %13005 = vst [vmem:[#allocation17_spill] sm:$0xff] %v9999_v49  ;;  %1406 = vmatmul.bf16.gmra.mxu3 %v9632_v41 }
 0x104   :  { %v1198_v51 = vpop.f32.mrf.mxu2  ;;  %v862_v53 = vpop.f32.mrf.mxu0 }
 0x105   :  { %v1367_v52 = vpop.f32.mrf.mxu3  ;;  %v1031_v54 = vpop.f32.mrf.mxu1  ;;  %v3012_v59 = vmax.f32 %v862_v53, 0.0  ;;  %v3006_v5 = vmax.f32 %v1198_v51, 0.0  ;;  %v9714_v51 = vld [vmem:[#allocation2 + $0x1e8] sm:$0xff] }
 0x106   :  { %v3013_v60 = vmax.f32 %v1031_v54, 0.0  ;;  %v3007_v6 = vmax.f32 %v1367_v52, 0.0  ;;  %1519 = vmatpush.bf16.xpose.msrb.mxu0 %v9685_v50  ;;  %2021 = vmatpush.bf16.xpose.msrb.mxu3 %v9714_v51  ;;  %v9635_v54 = vld [vmem:[#allocation5 + $0x70] sm:$0xff] }
 0x107   :  { %v10001_v61 = vpack.c.bf16 %v3012_v59, %v3004_v57 }
 0x108   :  { %v10003_v62 = vpack.c.bf16 %v3013_v60, %v3005_v58 }
 0x10c   :  { %v1200_v0 = vpop.f32.mrf.mxu2  ;;  %v10005_v8 = vpop.f32.mrf.mxu0 }
 0x10d   :  { %v1369_v1 = vpop.f32.mrf.mxu3  ;;  %v3014_v7 = vmax.f32 %v1200_v0, 0.0  ;;  %v1034_v10 = vpop.f32.mrf.mxu1 }
 0x10e   :  { %v3015_v9 = vmax.f32 %v1369_v1, 0.0  ;;  %v3021_v20 = vmax.f32 %v1034_v10, 0.0 }
 0x10f   :  { %v10007_v11 = vpack.c.bf16 %v3014_v7, %v3006_v5  ;;  %904 = vmatmul.bf16.gmra.mxu0 %v9633_v4  ;;  %v9698_v5 = vld [vmem:[#allocation2 + $0x168] sm:$0xff] }
 0x110   :  { %v10009_v14 = vpack.c.bf16 %v3015_v9, %v3007_v6  ;;  %1073 = vmatmul.bf16.gmra.mxu1 %v9633_v4 }
 0x111   :  { %13006 = vst [vmem:[#allocation18_spill] sm:$0xff] %v10007_v11  ;;  %1242 = vmatmul.bf16.gmra.mxu2 %v9633_v4  ;;  %1683 = vmatpush.bf16.xpose.msrb.mxu1 %v9698_v5 }
 0x112   :  { %13007 = vst [vmem:[#allocation19_spill] sm:$0xff] %v10009_v14  ;;  %1411 = vmatmul.bf16.gmra.mxu3 %v9633_v4 }
 0x114   :  { %v1203_v16 = vpop.f32.mrf.mxu2  ;;  %v10011_v18 = vpop.f32.mrf.mxu0 }
 0x115   :  { %v1372_v17 = vpop.f32.mrf.mxu3  ;;  %v1036_v19 = vpop.f32.mrf.mxu1  ;;  %v3022_v29 = vmax.f32 %v1203_v16, 0.0 }
 0x116   :  { %v3029_v21 = vmax.f32 %v1036_v19, 0.0  ;;  %v3023_v30 = vmax.f32 %v1372_v17, 0.0 }
 0x118   :  { %v10013_v22 = vpack.c.bf16 %v3029_v21, %v3021_v20  ;;  %v9636_v21 = vld [vmem:[#allocation5 + $0x78] sm:$0xff] }
 0x11c   :  { %v1205_v24 = vpop.f32.mrf.mxu2  ;;  %v10015_v32 = vpop.f32.mrf.mxu0 }
 0x11d   :  { %v1374_v27 = vpop.f32.mrf.mxu3  ;;  %v3030_v31 = vmax.f32 %v1205_v24, 0.0  ;;  %v1039_v34 = vpop.f32.mrf.mxu1 }
 0x11e   :  { %v3031_v33 = vmax.f32 %v1374_v27, 0.0  ;;  %v3037_v44 = vmax.f32 %v1039_v34, 0.0 }
 0x11f   :  { %v10017_v35 = vpack.c.bf16 %v3030_v31, %v3022_v29  ;;  %909 = vmatmul.bf16.gmra.mxu0 %v9634_v28 }
 0x120   :  { %v10019_v36 = vpack.c.bf16 %v3031_v33, %v3023_v30  ;;  %1078 = vmatmul.bf16.gmra.mxu1 %v9634_v28 }
 0x121   :  { %13008 = vst [vmem:[#allocation20_spill] sm:$0xff] %v10017_v35  ;;  %1247 = vmatmul.bf16.gmra.mxu2 %v9634_v28 }
 0x122   :  { %13009 = vst [vmem:[#allocation21_spill] sm:$0xff] %v10019_v36  ;;  %1416 = vmatmul.bf16.gmra.mxu3 %v9634_v28 }
 0x124   :  { %v1208_v40 = vpop.f32.mrf.mxu2  ;;  %v10021_v42 = vpop.f32.mrf.mxu0 }
 0x125   :  { %v1377_v41 = vpop.f32.mrf.mxu3  ;;  %v1041_v43 = vpop.f32.mrf.mxu1  ;;  %v3038_v57 = vmax.f32 %v1208_v40, 0.0 }
 0x126   :  { %v3045_v45 = vmax.f32 %v1041_v43, 0.0  ;;  %v3039_v58 = vmax.f32 %v1377_v41, 0.0 }
 0x128   :  { %v10023_v46 = vpack.c.bf16 %v3045_v45, %v3037_v44 }
 0x12c   :  { %v1210_v52 = vpop.f32.mrf.mxu2  ;;  %v875_v60 = vpop.f32.mrf.mxu0 }
 0x12d   :  { %v1379_v53 = vpop.f32.mrf.mxu3  ;;  %v3046_v59 = vmax.f32 %v1210_v52, 0.0  ;;  %v1044_v0 = vpop.f32.mrf.mxu1 }
 0x12e   :  { %v3047_v63 = vmax.f32 %v1379_v53, 0.0  ;;  %v3053_v15 = vmax.f32 %v1044_v0, 0.0  ;;  %v3052_v53 = vmax.f32 %v875_v60, 0.0  ;;  %v3028_v60 = vmax.f32 %v10011_v18, 0.0 }
 0x12f   :  { %v10025_v1 = vpack.c.bf16 %v3046_v59, %v3038_v57  ;;  %914 = vmatmul.bf16.gmra.mxu0 %v9635_v54 }
 0x130   :  { %v10027_v4 = vpack.c.bf16 %v3047_v63, %v3039_v58  ;;  %1083 = vmatmul.bf16.gmra.mxu1 %v9635_v54  ;;  %v9637_v63 = vld [vmem:[#allocation5 + $0x80] sm:$0xff] }
 0x131   :  { %1252 = vmatmul.bf16.gmra.mxu2 %v9635_v54 }
 0x132   :  { %13010 = vst [vmem:[#allocation22_spill] sm:$0xff] %v10027_v4  ;;  %1421 = vmatmul.bf16.gmra.mxu3 %v9635_v54  ;;  %v3044_v54 = vmax.f32 %v10021_v42, 0.0 }
 0x134   :  { %v1213_v6 = vpop.f32.mrf.mxu2  ;;  %v877_v9 = vpop.f32.mrf.mxu0 }
 0x135   :  { %v1382_v7 = vpop.f32.mrf.mxu3  ;;  %v1046_v10 = vpop.f32.mrf.mxu1  ;;  %v3054_v23 = vmax.f32 %v1213_v6, 0.0  ;;  %v3060_v50 = vmax.f32 %v877_v9, 0.0 }
 0x136   :  { %v3061_v16 = vmax.f32 %v1046_v10, 0.0  ;;  %v3055_v24 = vmax.f32 %v1382_v7, 0.0 }
 0x137   :  { %v3516_v57 = vpack.c.bf16 %v3060_v50, %v3052_v53 }
 0x138   :  { %v10029_v17 = vpack.c.bf16 %v3061_v16, %v3053_v15  ;;  %v3036_v16 = vmax.f32 %v10015_v32, 0.0 }
 0x13a   :  { %v3508_v42 = vpack.c.bf16 %v3044_v54, %v3036_v16 }
 0x13c   :  { %v1215_v19 = vpop.f32.mrf.mxu2  ;;  %v880_v28 = vpop.f32.mrf.mxu0 }
 0x13d   :  { %v1384_v20 = vpop.f32.mrf.mxu3  ;;  %v3062_v27 = vmax.f32 %v1215_v19, 0.0  ;;  %v1049_v30 = vpop.f32.mrf.mxu1  ;;  %v3068_v43 = vmax.f32 %v880_v28, 0.0 }
 0x13e   :  { %v3063_v29 = vmax.f32 %v1384_v20, 0.0  ;;  %v3069_v44 = vmax.f32 %v1049_v30, 0.0  ;;  %v3020_v20 = vmax.f32 %v10005_v8, 0.0  ;;  %v9638_v8 = vld [vmem:[#allocation5 + $0x88] sm:$0xff] }
 0x13f   :  { %v10031_v31 = vpack.c.bf16 %v3062_v27, %v3054_v23  ;;  %919 = vmatmul.bf16.gmra.mxu0 %v9636_v21 }
 0x140   :  { %v10033_v33 = vpack.c.bf16 %v3063_v29, %v3055_v24  ;;  %1088 = vmatmul.bf16.gmra.mxu1 %v9636_v21 }
 0x141   :  { %1257 = vmatmul.bf16.gmra.mxu2 %v9636_v21 }
 0x142   :  { %13011 = vst [vmem:[#allocation23_spill] sm:$0xff] %v10033_v33  ;;  %1426 = vmatmul.bf16.gmra.mxu3 %v9636_v21  ;;  %v3500_v21 = vpack.c.bf16 %v3028_v60, %v3020_v20  ;;  %v9639_v60 = vld [vmem:[#allocation5 + $0x90] sm:$0xff] }
 0x144   :  { %v1218_v34 = vpop.f32.mrf.mxu2  ;;  %v882_v40 = vpop.f32.mrf.mxu0 }
 0x145   :  { %v1387_v39 = vpop.f32.mrf.mxu3  ;;  %v1051_v41 = vpop.f32.mrf.mxu1  ;;  %v3076_v45 = vmax.f32 %v882_v40, 0.0  ;;  %v3070_v0 = vmax.f32 %v1218_v34, 0.0 }
 0x146   :  { %v3077_v47 = vmax.f32 %v1051_v41, 0.0  ;;  %v3071_v5 = vmax.f32 %v1387_v39, 0.0 }
 0x147   :  { %v3524_v51 = vpack.c.bf16 %v3076_v45, %v3068_v43 }
 0x148   :  { %v10035_v52 = vpack.c.bf16 %v3077_v47, %v3069_v44 }
 0x149   :  { %4108 = vmatpush.bf16.msra.mxu0 %v3524_v51 }
 0x14c   :  { %v1220_v58 = vpop.f32.mrf.mxu2  ;;  %v885_v7 = vpop.f32.mrf.mxu0 }
 0x14d   :  { %v1389_v59 = vpop.f32.mrf.mxu3  ;;  %v3078_v6 = vmax.f32 %v1220_v58, 0.0  ;;  %v1054_v15 = vpop.f32.mrf.mxu1  ;;  %4109 = vmatpush.bf16.msra.mxu0 %v3516_v57  ;;  %v3084_v28 = vmax.f32 %v885_v7, 0.0 }
 0x14e   :  { %v3079_v10 = vmax.f32 %v1389_v59, 0.0  ;;  %v3085_v29 = vmax.f32 %v1054_v15, 0.0  ;;  %v9713_v15 = vld [vmem:[#allocation2 + $0x1e0] sm:$0xff] }
 0x14f   :  { %v10039_v9 = vpack.c.bf16 %v3078_v6, %v3070_v0  ;;  %924 = vmatmul.bf16.gmra.mxu0 %v9637_v63  ;;  %2022 = vmatpush.bf16.xpose.msrb.mxu3 %v9713_v15 }
 0x150   :  { %v10041_v19 = vpack.c.bf16 %v3079_v10, %v3071_v5  ;;  %1093 = vmatmul.bf16.gmra.mxu1 %v9637_v63  ;;  %v9705_v10 = vld [vmem:[#allocation2 + $0x1a0] sm:$0xff] }
 0x151   :  { %1262 = vmatmul.bf16.gmra.mxu2 %v9637_v63  ;;  %4110 = vmatpush.bf16.msra.mxu0 %v3508_v42 }
 0x152   :  { %13012 = vst [vmem:[#allocation24_spill] sm:$0xff] %v10041_v19  ;;  %1431 = vmatmul.bf16.gmra.mxu3 %v9637_v63  ;;  %1853 = vmatpush.bf16.xpose.msrb.mxu2 %v9705_v10 }
 0x154   :  { %v1223_v23 = vpop.f32.mrf.mxu2  ;;  %v887_v27 = vpop.f32.mrf.mxu0 }
 0x155   :  { %v1392_v24 = vpop.f32.mrf.mxu3  ;;  %v1056_v32 = vpop.f32.mrf.mxu1  ;;  %v3092_v30 = vmax.f32 %v887_v27, 0.0  ;;  %4111 = vmatpush.bf16.msra.mxu0 %v3500_v21  ;;  %v3086_v43 = vmax.f32 %v1223_v23, 0.0 }
 0x156   :  { %v3093_v34 = vmax.f32 %v1056_v32, 0.0  ;;  %v3087_v44 = vmax.f32 %v1392_v24, 0.0 }
 0x157   :  { %v10045_v39 = vpack.c.bf16 %v3092_v30, %v3084_v28  ;;  %v9697_v28 = vld [vmem:[#allocation2 + $0x160] sm:$0xff] }
 0x158   :  { %v10047_v18 = vpack.c.bf16 %v3093_v34, %v3085_v29  ;;  %1684 = vmatpush.bf16.xpose.msrb.mxu1 %v9697_v28 }
 0x159   :  { %4112 = vmatpush.bf16.msra.mxu0 %v10001_v61 }
 0x15c   :  { %v1225_v40 = vpop.f32.mrf.mxu2  ;;  %v890_v47 = vpop.f32.mrf.mxu0 }
 0x15d   :  { %v1394_v41 = vpop.f32.mrf.mxu3  ;;  %v3094_v45 = vmax.f32 %v1225_v40, 0.0  ;;  %v1059_v51 = vpop.f32.mrf.mxu1  ;;  %4113 = vmatpush.bf16.msra.mxu0 %v9993_v37  ;;  %v3100_v63 = vmax.f32 %v890_v47, 0.0 }
 0x15e   :  { %v3095_v50 = vmax.f32 %v1394_v41, 0.0  ;;  %v3101_v0 = vmax.f32 %v1059_v51, 0.0 }
 0x15f   :  { %v10051_v53 = vpack.c.bf16 %v3094_v45, %v3086_v43  ;;  %929 = vmatmul.bf16.gmra.mxu0 %v9638_v8 }
 0x160   :  { %v10053_v54 = vpack.c.bf16 %v3095_v50, %v3087_v44  ;;  %1098 = vmatmul.bf16.gmra.mxu1 %v9638_v8 }
 0x161   :  { %13013 = vst [vmem:[#allocation25_spill] sm:$0xff] %v10051_v53  ;;  %1267 = vmatmul.bf16.gmra.mxu2 %v9638_v8  ;;  %4114 = vmatpush.bf16.msra.mxu0 %v9985_v12 }
 0x162   :  { %13014 = vst [vmem:[#allocation26_spill] sm:$0xff] %v10053_v54  ;;  %1436 = vmatmul.bf16.gmra.mxu3 %v9638_v8 }
 0x164   :  { %v1228_v61 = vpop.f32.mrf.mxu2  ;;  %v892_v58 = vpop.f32.mrf.mxu0 }
 0x165   :  { %v1397_v57 = vpop.f32.mrf.mxu3  ;;  %v1061_v59 = vpop.f32.mrf.mxu1  ;;  %v3108_v5 = vmax.f32 %v892_v58, 0.0  ;;  %4115 = vmatpush.bf16.msra.mxu0 %v9977_v55  ;;  %v3102_v42 = vmax.f32 %v1228_v61, 0.0  ;;  %v9640_v61 = vld [vmem:[#allocation5 + $0x98] sm:$0xff] }
 0x166   :  { %v3109_v37 = vmax.f32 %v1061_v59, 0.0  ;;  %v3103_v20 = vmax.f32 %v1397_v57, 0.0 }
 0x167   :  { %v10057_v6 = vpack.c.bf16 %v3108_v5, %v3100_v63 }
 0x168   :  { %v10059_v7 = vpack.c.bf16 %v3109_v37, %v3101_v0 }
 0x16c   :  { %v1230_v16 = vpop.f32.mrf.mxu2  ;;  %v895_v23 = vpop.f32.mrf.mxu0 }
 0x16d   :  { %v1399_v12 = vpop.f32.mrf.mxu3  ;;  %v3110_v21 = vmax.f32 %v1230_v16, 0.0  ;;  %v1064_v27 = vpop.f32.mrf.mxu1  ;;  %v3116_v41 = vmax.f32 %v895_v23, 0.0 }
 0x16e   :  { %v3111_v24 = vmax.f32 %v1399_v12, 0.0  ;;  %v3117_v8 = vmax.f32 %v1064_v27, 0.0 }
 0x16f   :  { %v10061_v32 = vpack.c.bf16 %v3110_v21, %v3102_v42  ;;  %934 = vmatmul.bf16.gmra.mxu0 %v9639_v60 }
 0x170   :  { %v10063_v55 = vpack.c.bf16 %v3111_v24, %v3103_v20  ;;  %1103 = vmatmul.bf16.gmra.mxu1 %v9639_v60 }
 0x171   :  { %13015 = vst [vmem:[#allocation27_spill] sm:$0xff] %v10061_v32  ;;  %1272 = vmatmul.bf16.gmra.mxu2 %v9639_v60 }
 0x172   :  { %13016 = vst [vmem:[#allocation28_spill] sm:$0xff] %v10063_v55  ;;  %1441 = vmatmul.bf16.gmra.mxu3 %v9639_v60 }
 0x174   :  { %v1233_v29 = vpop.f32.mrf.mxu2  ;;  %v897_v34 = vpop.f32.mrf.mxu0 }
 0x175   :  { %v1402_v30 = vpop.f32.mrf.mxu3  ;;  %v1066_v40 = vpop.f32.mrf.mxu1  ;;  %v3124_v43 = vmax.f32 %v897_v34, 0.0  ;;  %v3118_v57 = vmax.f32 %v1233_v29, 0.0 }
 0x176   :  { %v3125_v44 = vmax.f32 %v1066_v40, 0.0  ;;  %v3119_v58 = vmax.f32 %v1402_v30, 0.0  ;;  %v9641_v30 = vld [vmem:[#allocation5 + $0xa0] sm:$0xff] }
 0x177   :  { %v10065_v45 = vpack.c.bf16 %v3124_v43, %v3116_v41 }
 0x178   :  { %v10067_v47 = vpack.c.bf16 %v3125_v44, %v3117_v8 }
 0x17c   :  { %v1235_v50 = vpop.f32.mrf.mxu2  ;;  %v900_v63 = vpop.f32.mrf.mxu0 }
 0x17d   :  { %v1404_v51 = vpop.f32.mrf.mxu3  ;;  %v3126_v59 = vmax.f32 %v1235_v50, 0.0  ;;  %v1069_v5 = vpop.f32.mrf.mxu1  ;;  %v3132_v42 = vmax.f32 %v900_v63, 0.0 }
 0x17e   :  { %v3127_v0 = vmax.f32 %v1404_v51, 0.0  ;;  %v3133_v20 = vmax.f32 %v1069_v5, 0.0 }
 0x17f   :  { %v10069_v37 = vpack.c.bf16 %v3126_v59, %v3118_v57  ;;  %939 = vmatmul.bf16.gmra.mxu0 %v9640_v61 }
 0x180   :  { %v10071_v10 = vpack.c.bf16 %v3127_v0, %v3119_v58  ;;  %1108 = vmatmul.bf16.gmra.mxu1 %v9640_v61 }
 0x181   :  { %13017 = vst [vmem:[#allocation29_spill] sm:$0xff] %v10069_v37  ;;  %1277 = vmatmul.bf16.gmra.mxu2 %v9640_v61 }
 0x182   :  { %13018 = vst [vmem:[#allocation30_spill] sm:$0xff] %v10071_v10  ;;  %1446 = vmatmul.bf16.gmra.mxu3 %v9640_v61  ;;  %v9696_v61 = vld [vmem:[#allocation2 + $0x158] sm:$0xff] }
 0x183   :  { %1685 = vmatpush.bf16.xpose.msrb.mxu1 %v9696_v61 }
 0x184   :  { %v1238_v15 = vpop.f32.mrf.mxu2  ;;  %v902_v12 = vpop.f32.mrf.mxu0 }
 0x185   :  { %v1407_v16 = vpop.f32.mrf.mxu3  ;;  %v1071_v60 = vpop.f32.mrf.mxu1  ;;  %v3140_v21 = vmax.f32 %v902_v12, 0.0  ;;  %v3134_v34 = vmax.f32 %v1238_v15, 0.0 }
 0x186   :  { %v3141_v23 = vmax.f32 %v1071_v60, 0.0  ;;  %v3135_v40 = vmax.f32 %v1407_v16, 0.0  ;;  %v9695_v16 = vld [vmem:[#allocation2 + $0x150] sm:$0xff] }
 0x187   :  { %v10073_v24 = vpack.c.bf16 %v3140_v21, %v3132_v42  ;;  %v9642_v42 = vld [vmem:[#allocation5 + $0xa8] sm:$0xff] }
 0x188   :  { %v10075_v27 = vpack.c.bf16 %v3141_v23, %v3133_v20 }
 0x18b   :  { %1686 = vmatpush.bf16.xpose.msrb.mxu1 %v9695_v16  ;;  %v9693_v16 = vld [vmem:[#allocation2 + $0x140] sm:$0xff] }
 0x18c   :  { %v1240_v28 = vpop.f32.mrf.mxu2  ;;  %v10077_v8 = vpop.f32.mrf.mxu0 }
 0x18d   :  { %v1409_v29 = vpop.f32.mrf.mxu3  ;;  %v3142_v41 = vmax.f32 %v1240_v28, 0.0  ;;  %v1074_v44 = vpop.f32.mrf.mxu1 }
 0x18e   :  { %v3143_v43 = vmax.f32 %v1409_v29, 0.0  ;;  %v3149_v0 = vmax.f32 %v1074_v44, 0.0 }
 0x18f   :  { %v10079_v50 = vpack.c.bf16 %v3142_v41, %v3134_v34  ;;  %944 = vmatmul.bf16.gmra.mxu0 %v9641_v30  ;;  %v9694_v41 = vld [vmem:[#allocation2 + $0x148] sm:$0xff] }
 0x190   :  { %v10081_v51 = vpack.c.bf16 %v3143_v43, %v3135_v40  ;;  %1113 = vmatmul.bf16.gmra.mxu1 %v9641_v30 }
 0x191   :  { %13019 = vst [vmem:[#allocation31_spill] sm:$0xff] %v10079_v50  ;;  %1282 = vmatmul.bf16.gmra.mxu2 %v9641_v30 }
 0x192   :  { %13020 = vst [vmem:[#allocation32_spill] sm:$0xff] %v10081_v51  ;;  %1451 = vmatmul.bf16.gmra.mxu3 %v9641_v30 }
 0x193   :  { %1687 = vmatpush.bf16.xpose.msrb.mxu1 %v9694_v41 }
 0x194   :  { %v1243_v57 = vpop.f32.mrf.mxu2  ;;  %v10083_v59 = vpop.f32.mrf.mxu0 }
 0x195   :  { %v1412_v58 = vpop.f32.mrf.mxu3  ;;  %v1076_v63 = vpop.f32.mrf.mxu1  ;;  %v3150_v20 = vmax.f32 %v1243_v57, 0.0 }
 0x196   :  { %v3157_v5 = vmax.f32 %v1076_v63, 0.0  ;;  %v3151_v21 = vmax.f32 %v1412_v58, 0.0 }
 0x198   :  { %v10085_v15 = vpack.c.bf16 %v3157_v5, %v3149_v0  ;;  %v9704_v5 = vld [vmem:[#allocation2 + $0x198] sm:$0xff] }
 0x199   :  { %1854 = vmatpush.bf16.xpose.msrb.mxu2 %v9704_v5 }
 0x19b   :  { %1688 = vmatpush.bf16.xpose.msrb.mxu1 %v9693_v16 }
 0x19c   :  { %v1245_v12 = vpop.f32.mrf.mxu2  ;;  %v10087_v28 = vpop.f32.mrf.mxu0 }
 0x19d   :  { %v1414_v60 = vpop.f32.mrf.mxu3  ;;  %v3158_v23 = vmax.f32 %v1245_v12, 0.0  ;;  %v1079_v30 = vpop.f32.mrf.mxu1  ;;  %v9712_v12 = vld [vmem:[#allocation2 + $0x1d8] sm:$0xff] }
 0x19e   :  { %v3159_v29 = vmax.f32 %v1414_v60, 0.0  ;;  %v3165_v58 = vmax.f32 %v1079_v30, 0.0  ;;  %2023 = vmatpush.bf16.xpose.msrb.mxu3 %v9712_v12 }
 0x19f   :  { %v10089_v34 = vpack.c.bf16 %v3158_v23, %v3150_v20  ;;  %949 = vmatmul.bf16.gmra.mxu0 %v9642_v42 }
 0x1a0   :  { %v10091_v40 = vpack.c.bf16 %v3159_v29, %v3151_v21  ;;  %1118 = vmatmul.bf16.gmra.mxu1 %v9642_v42  ;;  %v9643_v21 = vld [vmem:[#allocation5 + $0xb0] sm:$0xff] }
 0x1a1   :  { %13021 = vst [vmem:[#allocation33_spill] sm:$0xff] %v10089_v34  ;;  %1287 = vmatmul.bf16.gmra.mxu2 %v9642_v42 }
 0x1a2   :  { %13022 = vst [vmem:[#allocation34_spill] sm:$0xff] %v10091_v40  ;;  %1456 = vmatmul.bf16.gmra.mxu3 %v9642_v42 }
 0x1a4   :  { %v1248_v43 = vpop.f32.mrf.mxu2  ;;  %v10093_v61 = vpop.f32.mrf.mxu0 }
 0x1a5   :  { %v1417_v44 = vpop.f32.mrf.mxu3  ;;  %v1081_v57 = vpop.f32.mrf.mxu1  ;;  %v3166_v42 = vmax.f32 %v1248_v43, 0.0 }
 0x1a6   :  { %v3173_v63 = vmax.f32 %v1081_v57, 0.0  ;;  %v3167_v23 = vmax.f32 %v1417_v44, 0.0 }
 0x1a8   :  { %v10095_v0 = vpack.c.bf16 %v3173_v63, %v3165_v58 }
 0x1ac   :  { %v1250_v60 = vpop.f32.mrf.mxu2  ;;  %v915_v41 = vpop.f32.mrf.mxu0 }
 0x1ad   :  { %v1419_v20 = vpop.f32.mrf.mxu3  ;;  %v3174_v29 = vmax.f32 %v1250_v60, 0.0  ;;  %v1084_v3 = vpop.f32.mrf.mxu1 }
 0x1ae   :  { %v3175_v54 = vmax.f32 %v1419_v20, 0.0  ;;  %v3181_v16 = vmax.f32 %v1084_v3, 0.0  ;;  %v9644_v20 = vld [vmem:[#allocation5 + $0xb8] sm:$0xff] }
 0x1af   :  { %v10097_v55 = vpack.c.bf16 %v3174_v29, %v3166_v42  ;;  %954 = vmatmul.bf16.gmra.mxu0 %v9643_v21 }
 0x1b0   :  { %v10099_v30 = vpack.c.bf16 %v3175_v54, %v3167_v23  ;;  %1123 = vmatmul.bf16.gmra.mxu1 %v9643_v21 }
 0x1b1   :  { %1292 = vmatmul.bf16.gmra.mxu2 %v9643_v21 }
 0x1b2   :  { %13023 = vst [vmem:[#allocation35_spill] sm:$0xff] %v10099_v30  ;;  %1461 = vmatmul.bf16.gmra.mxu3 %v9643_v21 }
 0x1b4   :  { %v1253_v57 = vpop.f32.mrf.mxu2  ;;  %v917_v63 = vpop.f32.mrf.mxu0 }
 0x1b5   :  { %v1422_v58 = vpop.f32.mrf.mxu3  ;;  %v1086_v5 = vpop.f32.mrf.mxu1  ;;  %v3182_v26 = vmax.f32 %v1253_v57, 0.0 }
 0x1b6   :  { %v3189_v12 = vmax.f32 %v1086_v5, 0.0  ;;  %v3183_v42 = vmax.f32 %v1422_v58, 0.0 }
 0x1b8   :  { %v10101_v43 = vpack.c.bf16 %v3189_v12, %v3181_v16 }
 0x1bc   :  { %v1255_v44 = vpop.f32.mrf.mxu2  ;;  %v920_v54 = vpop.f32.mrf.mxu0 }
 0x1bd   :  { %v1424_v60 = vpop.f32.mrf.mxu3  ;;  %v3190_v29 = vmax.f32 %v1255_v44, 0.0  ;;  %v1089_v10 = vpop.f32.mrf.mxu1  ;;  %v3196_v51 = vmax.f32 %v920_v54, 0.0  ;;  %v3188_v44 = vmax.f32 %v917_v63, 0.0 }
 0x1be   :  { %v3191_v23 = vmax.f32 %v1424_v60, 0.0  ;;  %v3197_v14 = vmax.f32 %v1089_v10, 0.0 }
 0x1bf   :  { %v10103_v49 = vpack.c.bf16 %v3190_v29, %v3182_v26  ;;  %959 = vmatmul.bf16.gmra.mxu0 %v9644_v20  ;;  %v3180_v26 = vmax.f32 %v915_v41, 0.0  ;;  %v3148_v41 = vmax.f32 %v10077_v8, 0.0  ;;  %v9646_v8 = vld [vmem:[#allocation5 + $0xc8] sm:$0xff] }
 0x1c0   :  { %v10105_v21 = vpack.c.bf16 %v3191_v23, %v3183_v42  ;;  %1128 = vmatmul.bf16.gmra.mxu1 %v9644_v20  ;;  %v3172_v42 = vmax.f32 %v10093_v61, 0.0 }
 0x1c1   :  { %1297 = vmatmul.bf16.gmra.mxu2 %v9644_v20  ;;  %v3580_v29 = vpack.c.bf16 %v3188_v44, %v3180_v26 }
 0x1c2   :  { %13024 = vst [vmem:[#allocation36_spill] sm:$0xff] %v10105_v21  ;;  %1466 = vmatmul.bf16.gmra.mxu3 %v9644_v20  ;;  %v9645_v20 = vld [vmem:[#allocation5 + $0xc0] sm:$0xff] }
 0x1c4   :  { %v1258_v3 = vpop.f32.mrf.mxu2  ;;  %v922_v16 = vpop.f32.mrf.mxu0 }
 0x1c5   :  { %v1427_v5 = vpop.f32.mrf.mxu3  ;;  %v1091_v12 = vpop.f32.mrf.mxu1  ;;  %v3204_v57 = vmax.f32 %v922_v16, 0.0  ;;  %v3198_v30 = vmax.f32 %v1258_v3, 0.0  ;;  %v3164_v16 = vmax.f32 %v10087_v28, 0.0 }
 0x1c6   :  { %v3205_v58 = vmax.f32 %v1091_v12, 0.0  ;;  %v3199_v4 = vmax.f32 %v1427_v5, 0.0 }
 0x1c7   :  { %v3588_v40 = vpack.c.bf16 %v3204_v57, %v3196_v51  ;;  %v3572_v61 = vpack.c.bf16 %v3172_v42, %v3164_v16 }
 0x1c8   :  { %v10107_v60 = vpack.c.bf16 %v3205_v58, %v3197_v14 }
 0x1c9   :  { %4197 = vmatpush.bf16.msra.mxu1 %v3588_v40  ;;  %v3156_v40 = vmax.f32 %v10083_v59, 0.0 }
 0x1cb   :  { %v3564_v63 = vpack.c.bf16 %v3156_v40, %v3148_v41 }
 0x1cc   :  { %v1260_v23 = vpop.f32.mrf.mxu2  ;;  %v925_v33 = vpop.f32.mrf.mxu0 }
 0x1cd   :  { %v1429_v36 = vpop.f32.mrf.mxu3  ;;  %v3206_v21 = vmax.f32 %v1260_v23, 0.0  ;;  %v1094_v10 = vpop.f32.mrf.mxu1  ;;  %4198 = vmatpush.bf16.msra.mxu1 %v3580_v29  ;;  %v3212_v12 = vmax.f32 %v925_v33, 0.0 }
 0x1ce   :  { %v3207_v54 = vmax.f32 %v1429_v36, 0.0 }
 0x1cf   :  { %v10111_v51 = vpack.c.bf16 %v3206_v21, %v3198_v30  ;;  %964 = vmatmul.bf16.gmra.mxu0 %v9645_v20  ;;  %v3213_v30 = vmax.f32 %v1094_v10, 0.0 }
 0x1d0   :  { %v10113_v14 = vpack.c.bf16 %v3207_v54, %v3199_v4  ;;  %1133 = vmatmul.bf16.gmra.mxu1 %v9645_v20 }
 0x1d1   :  { %1302 = vmatmul.bf16.gmra.mxu2 %v9645_v20  ;;  %4199 = vmatpush.bf16.msra.mxu1 %v3572_v61 }
 0x1d2   :  { %13025 = vst [vmem:[#allocation37_spill] sm:$0xff] %v10113_v14  ;;  %1471 = vmatmul.bf16.gmra.mxu3 %v9645_v20 }
 0x1d4   :  { %v1263_v36 = vpop.f32.mrf.mxu2  ;;  %v927_v5 = vpop.f32.mrf.mxu0 }
 0x1d5   :  { %v1432_v3 = vpop.f32.mrf.mxu3  ;;  %v1096_v28 = vpop.f32.mrf.mxu1  ;;  %v3220_v21 = vmax.f32 %v927_v5, 0.0  ;;  %4200 = vmatpush.bf16.msra.mxu1 %v3564_v63  ;;  %v3214_v26 = vmax.f32 %v1263_v36, 0.0 }
 0x1d6   :  { %v3221_v4 = vmax.f32 %v1096_v28, 0.0  ;;  %v3215_v42 = vmax.f32 %v1432_v3, 0.0  ;;  %v9703_v28 = vld [vmem:[#allocation2 + $0x190] sm:$0xff] }
 0x1d7   :  { %v10117_v57 = vpack.c.bf16 %v3220_v21, %v3212_v12  ;;  %v9711_v12 = vld [vmem:[#allocation2 + $0x1d0] sm:$0xff]  ;;  %1855 = vmatpush.bf16.xpose.msrb.mxu2 %v9703_v28 }
 0x1d8   :  { %v10119_v59 = vpack.c.bf16 %v3221_v4, %v3213_v30  ;;  %2024 = vmatpush.bf16.xpose.msrb.mxu3 %v9711_v12  ;;  %v9647_v21 = vld [vmem:[#allocation5 + $0xd0] sm:$0xff]  ;;  %v9648_v12 = vld [vmem:[#allocation5 + $0xd8] sm:$0xff] }
 0x1d9   :  { %4201 = vmatpush.bf16.msra.mxu1 %v10073_v24 }
 0x1dc   :  { %v1265_v58 = vpop.f32.mrf.mxu2  ;;  %v930_v23 = vpop.f32.mrf.mxu0 }
 0x1dd   :  { %v1434_v44 = vpop.f32.mrf.mxu3  ;;  %v3222_v29 = vmax.f32 %v1265_v58, 0.0  ;;  %v1099_v54 = vpop.f32.mrf.mxu1  ;;  %4202 = vmatpush.bf16.msra.mxu1 %v10065_v45  ;;  %v3228_v41 = vmax.f32 %v930_v23, 0.0 }
 0x1de   :  { %v3223_v20 = vmax.f32 %v1434_v44, 0.0  ;;  %v3229_v63 = vmax.f32 %v1099_v54, 0.0 }
 0x1df   :  { %v10123_v33 = vpack.c.bf16 %v3222_v29, %v3214_v26  ;;  %969 = vmatmul.bf16.gmra.mxu0 %v9646_v8 }
 0x1e0   :  { %v10125_v10 = vpack.c.bf16 %v3223_v20, %v3215_v42  ;;  %1138 = vmatmul.bf16.gmra.mxu1 %v9646_v8 }
 0x1e1   :  { %13026 = vst [vmem:[#allocation38_spill] sm:$0xff] %v10123_v33  ;;  %1307 = vmatmul.bf16.gmra.mxu2 %v9646_v8  ;;  %4203 = vmatpush.bf16.msra.mxu1 %v10057_v6 }
 0x1e2   :  { %13027 = vst [vmem:[#allocation39_spill] sm:$0xff] %v10125_v10  ;;  %1476 = vmatmul.bf16.gmra.mxu3 %v9646_v8 }
 0x1e4   :  { %v1268_v24 = vpop.f32.mrf.mxu2  ;;  %v932_v40 = vpop.f32.mrf.mxu0 }
 0x1e5   :  { %v1437_v16 = vpop.f32.mrf.mxu3  ;;  %v1101_v61 = vpop.f32.mrf.mxu1  ;;  %v3236_v36 = vmax.f32 %v932_v40, 0.0  ;;  %4204 = vmatpush.bf16.msra.mxu1 %v10045_v39  ;;  %v3230_v4 = vmax.f32 %v1268_v24, 0.0 }
 0x1e6   :  { %v3237_v45 = vmax.f32 %v1101_v61, 0.0  ;;  %v3231_v58 = vmax.f32 %v1437_v16, 0.0 }
 0x1e7   :  { %v10129_v3 = vpack.c.bf16 %v3236_v36, %v3228_v41 }
 0x1e8   :  { %v10131_v5 = vpack.c.bf16 %v3237_v45, %v3229_v63 }
 0x1ec   :  { %v1270_v30 = vpop.f32.mrf.mxu2  ;;  %v935_v8 = vpop.f32.mrf.mxu0 }
 0x1ed   :  { %v1439_v6 = vpop.f32.mrf.mxu3  ;;  %v3238_v44 = vmax.f32 %v1270_v30, 0.0  ;;  %v1104_v42 = vpop.f32.mrf.mxu1  ;;  %v3244_v61 = vmax.f32 %v935_v8, 0.0 }
 0x1ee   :  { %v3239_v26 = vmax.f32 %v1439_v6, 0.0  ;;  %v3245_v41 = vmax.f32 %v1104_v42, 0.0 }
 0x1ef   :  { %v10133_v29 = vpack.c.bf16 %v3238_v44, %v3230_v4  ;;  %974 = vmatmul.bf16.gmra.mxu0 %v9647_v21 }
 0x1f0   :  { %v10135_v39 = vpack.c.bf16 %v3239_v26, %v3231_v58  ;;  %1143 = vmatmul.bf16.gmra.mxu1 %v9647_v21 }
 0x1f1   :  { %13028 = vst [vmem:[#allocation40_spill] sm:$0xff] %v10133_v29  ;;  %1312 = vmatmul.bf16.gmra.mxu2 %v9647_v21 }
 0x1f2   :  { %13029 = vst [vmem:[#allocation41_spill] sm:$0xff] %v10135_v39  ;;  %1481 = vmatmul.bf16.gmra.mxu3 %v9647_v21 }
 0x1f4   :  { %v1273_v23 = vpop.f32.mrf.mxu2  ;;  %v937_v54 = vpop.f32.mrf.mxu0 }
 0x1f5   :  { %v1442_v20 = vpop.f32.mrf.mxu3  ;;  %v1106_v40 = vpop.f32.mrf.mxu1  ;;  %v3252_v24 = vmax.f32 %v937_v54, 0.0  ;;  %v3246_v30 = vmax.f32 %v1273_v23, 0.0 }
 0x1f6   :  { %v3253_v16 = vmax.f32 %v1106_v40, 0.0  ;;  %v3247_v6 = vmax.f32 %v1442_v20, 0.0 }
 0x1f7   :  { %v10137_v63 = vpack.c.bf16 %v3252_v24, %v3244_v61 }
 0x1f8   :  { %v10139_v36 = vpack.c.bf16 %v3253_v16, %v3245_v41 }
 0x1fc   :  { %v1275_v45 = vpop.f32.mrf.mxu2  ;;  %v940_v58 = vpop.f32.mrf.mxu0 }
 0x1fd   :  { %v1444_v28 = vpop.f32.mrf.mxu3  ;;  %v3254_v4 = vmax.f32 %v1275_v45, 0.0  ;;  %v1109_v44 = vpop.f32.mrf.mxu1  ;;  %v3260_v61 = vmax.f32 %v940_v58, 0.0 }
 0x1fe   :  { %v3255_v21 = vmax.f32 %v1444_v28, 0.0  ;;  %v3261_v41 = vmax.f32 %v1109_v44, 0.0 }
 0x1ff   :  { %v10141_v26 = vpack.c.bf16 %v3254_v4, %v3246_v30  ;;  %979 = vmatmul.bf16.gmra.mxu0 %v9648_v12  ;;  %v9649_v30 = vld [vmem:[#allocation5 + $0xe0] sm:$0xff] }
 0x200   :  { %v10143_v10 = vpack.c.bf16 %v3255_v21, %v3247_v6  ;;  %1148 = vmatmul.bf16.gmra.mxu1 %v9648_v12 }
 0x201   :  { %13030 = vst [vmem:[#allocation42_spill] sm:$0xff] %v10141_v26  ;;  %1317 = vmatmul.bf16.gmra.mxu2 %v9648_v12 }
 0x202   :  { %13031 = vst [vmem:[#allocation43_spill] sm:$0xff] %v10143_v10  ;;  %1486 = vmatmul.bf16.gmra.mxu3 %v9648_v12 }
 0x204   :  { %v1278_v8 = vpop.f32.mrf.mxu2  ;;  %v942_v54 = vpop.f32.mrf.mxu0 }
 0x205   :  { %v1447_v42 = vpop.f32.mrf.mxu3  ;;  %v1111_v40 = vpop.f32.mrf.mxu1  ;;  %v3268_v23 = vmax.f32 %v942_v54, 0.0  ;;  %v3262_v6 = vmax.f32 %v1278_v8, 0.0 }
 0x206   :  { %v3269_v20 = vmax.f32 %v1111_v40, 0.0  ;;  %v3263_v4 = vmax.f32 %v1447_v42, 0.0 }
 0x207   :  { %v10145_v24 = vpack.c.bf16 %v3268_v23, %v3260_v61 }
 0x208   :  { %v10147_v16 = vpack.c.bf16 %v3269_v20, %v3261_v41 }
 0x20c   :  { %v1280_v45 = vpop.f32.mrf.mxu2  ;;  %v10149_v39 = vpop.f32.mrf.mxu0 }
 0x20d   :  { %v1449_v28 = vpop.f32.mrf.mxu3  ;;  %v3270_v21 = vmax.f32 %v1280_v45, 0.0  ;;  %v1114_v10 = vpop.f32.mrf.mxu1  ;;  %v9650_v45 = vld [vmem:[#allocation5 + $0xe8] sm:$0xff] }
 0x20e   :  { %v3271_v12 = vmax.f32 %v1449_v28, 0.0  ;;  %v3277_v8 = vmax.f32 %v1114_v10, 0.0  ;;  %v9702_v10 = vld [vmem:[#allocation2 + $0x188] sm:$0xff] }
 0x20f   :  { %v10151_v14 = vpack.c.bf16 %v3270_v21, %v3262_v6  ;;  %984 = vmatmul.bf16.gmra.mxu0 %v9649_v30  ;;  %1856 = vmatpush.bf16.xpose.msrb.mxu2 %v9702_v10 }
 0x210   :  { %v10153_v58 = vpack.c.bf16 %v3271_v12, %v3263_v4  ;;  %1153 = vmatmul.bf16.gmra.mxu1 %v9649_v30 }
 0x211   :  { %13032 = vst [vmem:[#allocation44_spill] sm:$0xff] %v10151_v14  ;;  %1322 = vmatmul.bf16.gmra.mxu2 %v9649_v30 }
 0x212   :  { %13033 = vst [vmem:[#allocation45_spill] sm:$0xff] %v10153_v58  ;;  %1491 = vmatmul.bf16.gmra.mxu3 %v9649_v30 }
 0x214   :  { %v1283_v44 = vpop.f32.mrf.mxu2  ;;  %v10155_v40 = vpop.f32.mrf.mxu0 }
 0x215   :  { %v1452_v54 = vpop.f32.mrf.mxu3  ;;  %v1116_v61 = vpop.f32.mrf.mxu1  ;;  %v3278_v28 = vmax.f32 %v1283_v44, 0.0 }
 0x216   :  { %v3285_v42 = vmax.f32 %v1116_v61, 0.0  ;;  %v3279_v6 = vmax.f32 %v1452_v54, 0.0  ;;  %v9710_v61 = vld [vmem:[#allocation2 + $0x1c8] sm:$0xff] }
 0x217   :  { %2025 = vmatpush.bf16.xpose.msrb.mxu3 %v9710_v61 }
 0x218   :  { %v10157_v41 = vpack.c.bf16 %v3285_v42, %v3277_v8 }
 0x21c   :  { %v1285_v23 = vpop.f32.mrf.mxu2  ;;  %v10159_v21 = vpop.f32.mrf.mxu0 }
 0x21d   :  { %v1454_v20 = vpop.f32.mrf.mxu3  ;;  %v3286_v4 = vmax.f32 %v1285_v23, 0.0  ;;  %v1119_v58 = vpop.f32.mrf.mxu1  ;;  %v3292_v35 = vmax.f32 %v10159_v21, 0.0 }
 0x21e   :  { %v3287_v12 = vmax.f32 %v1454_v20, 0.0  ;;  %v3293_v23 = vmax.f32 %v1119_v58, 0.0 }
 0x21f   :  { %v10161_v30 = vpack.c.bf16 %v3286_v4, %v3278_v28  ;;  %989 = vmatmul.bf16.gmra.mxu0 %v9650_v45  ;;  %v9701_v28 = vld [vmem:[#allocation2 + $0x180] sm:$0xff] }
 0x220   :  { %v10163_v19 = vpack.c.bf16 %v3287_v12, %v3279_v6  ;;  %1158 = vmatmul.bf16.gmra.mxu1 %v9650_v45  ;;  %v9709_v6 = vld [vmem:[#allocation2 + $0x1c0] sm:$0xff]  ;;  %1857 = vmatpush.bf16.xpose.msrb.mxu2 %v9701_v28 }
 0x221   :  { %13034 = vst [vmem:[#allocation46_spill] sm:$0xff] %v10161_v30  ;;  %1327 = vmatmul.bf16.gmra.mxu2 %v9650_v45  ;;  %2026 = vmatpush.bf16.xpose.msrb.mxu3 %v9709_v6  ;;  %v9652_v6 = vld [vmem:[#allocation5 + $0xf8] sm:$0xff] }
 0x222   :  { %13035 = vst [vmem:[#allocation47_spill] sm:$0xff] %v10163_v19  ;;  %1496 = vmatmul.bf16.gmra.mxu3 %v9650_v45  ;;  %v9651_v19 = vld [vmem:[#allocation5 + $0xf0] sm:$0xff] }
 0x224   :  { %v1288_v8 = vpop.f32.mrf.mxu2  ;;  %v10165_v54 = vpop.f32.mrf.mxu0 }
 0x225   :  { %v1457_v44 = vpop.f32.mrf.mxu3  ;;  %v1121_v42 = vpop.f32.mrf.mxu1  ;;  %v3294_v53 = vmax.f32 %v1288_v8, 0.0 }
 0x226   :  { %v3301_v20 = vmax.f32 %v1121_v42, 0.0  ;;  %v3295_v45 = vmax.f32 %v1457_v44, 0.0 }
 0x228   :  { %v10167_v33 = vpack.c.bf16 %v3301_v20, %v3293_v23 }
 0x22c   :  { %v1290_v4 = vpop.f32.mrf.mxu2  ;;  %v955_v61 = vpop.f32.mrf.mxu0 }
 0x22d   :  { %v1459_v12 = vpop.f32.mrf.mxu3  ;;  %v3302_v10 = vmax.f32 %v1290_v4, 0.0  ;;  %v10169_v29 = vpop.f32.mrf.mxu1 }
 0x22e   :  { %v3303_v2 = vmax.f32 %v1459_v12, 0.0 }
 0x22f   :  { %v10171_v32 = vpack.c.bf16 %v3302_v10, %v3294_v53  ;;  %994 = vmatmul.bf16.gmra.mxu0 %v9651_v19 }
 0x230   :  { %v10173_v58 = vpack.c.bf16 %v3303_v2, %v3295_v45  ;;  %1163 = vmatmul.bf16.gmra.mxu1 %v9651_v19 }
 0x231   :  { %1332 = vmatmul.bf16.gmra.mxu2 %v9651_v19 }
 0x232   :  { %13036 = vst [vmem:[#allocation48_spill] sm:$0xff] %v10173_v58  ;;  %1501 = vmatmul.bf16.gmra.mxu3 %v9651_v19 }
 0x234   :  { %v1293_v42 = vpop.f32.mrf.mxu2  ;;  %v957_v20 = vpop.f32.mrf.mxu0 }
 0x235   :  { %v1462_v23 = vpop.f32.mrf.mxu3  ;;  %v10175_v28 = vpop.f32.mrf.mxu1  ;;  %v3310_v4 = vmax.f32 %v1293_v42, 0.0 }
 0x236   :  { %v3311_v12 = vmax.f32 %v1462_v23, 0.0 }
 0x23c   :  { %v1295_v8 = vpop.f32.mrf.mxu2  ;;  %v960_v26 = vpop.f32.mrf.mxu0 }
 0x23d   :  { %v1464_v44 = vpop.f32.mrf.mxu3  ;;  %v3318_v25 = vmax.f32 %v1295_v8, 0.0  ;;  %v10177_v10 = vpop.f32.mrf.mxu1  ;;  %v3324_v42 = vmax.f32 %v960_v26, 0.0  ;;  %v3316_v8 = vmax.f32 %v957_v20, 0.0 }
 0x23e   :  { %v3319_v53 = vmax.f32 %v1464_v44, 0.0  ;;  %v3308_v44 = vmax.f32 %v955_v61, 0.0  ;;  %v9794_v61 = vld [vmem:[#allocation5] sm:$0xff] }
 0x23f   :  { %v10179_v2 = vpack.c.bf16 %v3318_v25, %v3310_v4  ;;  %999 = vmatmul.bf16.gmra.mxu0 %v9652_v6  ;;  %v3300_v25 = vmax.f32 %v10165_v54, 0.0 }
 0x240   :  { %v10181_v45 = vpack.c.bf16 %v3319_v53, %v3311_v12  ;;  %1168 = vmatmul.bf16.gmra.mxu1 %v9652_v6  ;;  %v3644_v4 = vpack.c.bf16 %v3316_v8, %v3308_v44 }
 0x241   :  { %1337 = vmatmul.bf16.gmra.mxu2 %v9652_v6  ;;  %v3636_v54 = vpack.c.bf16 %v3300_v25, %v3292_v35 }
 0x242   :  { %13037 = vst [vmem:[#allocation49_spill] sm:$0xff] %v10181_v45  ;;  %1506 = vmatmul.bf16.gmra.mxu3 %v9652_v6 }
 0x244   :  { %v1298_v19 = vpop.f32.mrf.mxu2  ;;  %v962_v37 = vpop.f32.mrf.mxu0 }
 0x245   :  { %v1467_v58 = vpop.f32.mrf.mxu3  ;;  %v10183_v48 = vpop.f32.mrf.mxu1  ;;  %v3332_v23 = vmax.f32 %v962_v37, 0.0  ;;  %v3326_v45 = vmax.f32 %v1298_v19, 0.0 }
 0x246   :  { %v3327_v50 = vmax.f32 %v1467_v58, 0.0  ;;  %v3276_v58 = vmax.f32 %v10149_v39, 0.0 }
 0x247   :  { %v3652_v14 = vpack.c.bf16 %v3332_v23, %v3324_v42 }
 0x249   :  { %4286 = vmatpush.bf16.msra.mxu2 %v3652_v14  ;;  %v3284_v14 = vmax.f32 %v10155_v40, 0.0 }
 0x24b   :  { %v3628_v20 = vpack.c.bf16 %v3284_v14, %v3276_v58 }
 0x24c   :  { %v1300_v12 = vpop.f32.mrf.mxu2  ;;  %v965_v6 = vpop.f32.mrf.mxu0 }
 0x24d   :  { %v1469_v53 = vpop.f32.mrf.mxu3  ;;  %v3334_v11 = vmax.f32 %v1300_v12, 0.0  ;;  %v1134_v34 = vpop.f32.mrf.mxu1  ;;  %4287 = vmatpush.bf16.msra.mxu2 %v3644_v4  ;;  %v3317_v12 = vmax.f32 %v10175_v28, 0.0 }
 0x24e   :  { %v3335_v30 = vmax.f32 %v1469_v53, 0.0  ;;  %v3341_v19 = vmax.f32 %v1134_v34, 0.0 }
 0x24f   :  { %v10187_v26 = vpack.c.bf16 %v3334_v11, %v3326_v45  ;;  %1520 = vmatmul.bf16.vlgmr.msrb.gmra.mxu0 %v9794_v61  ;;  %v3340_v45 = vmax.f32 %v965_v6, 0.0 }
 0x250   :  { %v10189_v37 = vpack.c.bf16 %v3335_v30, %v3327_v50  ;;  %1689 = vmatmul.bf16.vlgmr.msrb.gmra.mxu1 %v9794_v61  ;;  %4464 = vmatpush.bf16.msrb.mxu0 %v10035_v52 }
 0x251   :  { %1858 = vmatmul.bf16.vlgmr.msrb.gmra.mxu2 %v9794_v61  ;;  %4553 = vmatpush.bf16.msrb.mxu1 %v10107_v60 }
 0x252   :  { %2027 = vmatmul.bf16.vlgmr.msrb.gmra.mxu3 %v9794_v61  ;;  %4288 = vmatpush.bf16.msra.mxu2 %v3636_v54 }
 0x254   :  { %v1303_v21 = vpop.f32.mrf.mxu2  ;;  %v967_v50 = vpop.f32.mrf.mxu0  ;;  %4465 = vmatpush.bf16.msrb.mxu0 %v10029_v17 }
 0x255   :  { %v1472_v11 = vpop.f32.mrf.mxu3  ;;  %v1136_v30 = vpop.f32.mrf.mxu1  ;;  %4554 = vmatpush.bf16.msrb.mxu1 %v10101_v43  ;;  %v3348_v35 = vmax.f32 %v967_v50, 0.0  ;;  %v3342_v34 = vmax.f32 %v1303_v21, 0.0 }
 0x256   :  { %v3349_v40 = vmax.f32 %v1136_v30, 0.0  ;;  %4289 = vmatpush.bf16.msra.mxu2 %v3628_v20  ;;  %v3343_v23 = vmax.f32 %v1472_v11, 0.0 }
 0x257   :  { %v10197_v52 = vpack.c.bf16 %v3348_v35, %v3340_v45 }
 0x258   :  { %v10199_v60 = vpack.c.bf16 %v3349_v40, %v3341_v19  ;;  %4466 = vmatpush.bf16.msrb.mxu0 %v10023_v46  ;;  %v9795_v46 = vld [vmem:[#allocation5 + $0x8] sm:$0xff] }
 0x259   :  { %4555 = vmatpush.bf16.msrb.mxu1 %v10095_v0  ;;  %v3333_v0 = vmax.f32 %v10183_v48, 0.0 }
 0x25a   :  { %4290 = vmatpush.bf16.msra.mxu2 %v10145_v24 }
 0x25c   :  { %v1305_v39 = vpop.f32.mrf.mxu2  ;;  %v970_v8 = vpop.f32.mrf.mxu0  ;;  %4467 = vmatpush.bf16.msrb.mxu0 %v10013_v22  ;;  %v3325_v22 = vmax.f32 %v10177_v10, 0.0 }
 0x25d   :  { %v1474_v42 = vpop.f32.mrf.mxu3  ;;  %v3350_v17 = vmax.f32 %v1305_v39, 0.0  ;;  %v1139_v44 = vpop.f32.mrf.mxu1  ;;  %4556 = vmatpush.bf16.msrb.mxu1 %v10085_v15  ;;  %v3356_v61 = vmax.f32 %v970_v8, 0.0 }
 0x25e   :  { %v3351_v43 = vmax.f32 %v1474_v42, 0.0  ;;  %4291 = vmatpush.bf16.msra.mxu2 %v10137_v63  ;;  %v3653_v63 = vpack.c.bf16 %v3333_v0, %v3325_v22  ;;  %v3357_v14 = vmax.f32 %v1139_v44, 0.0  ;;  %v9797_v22 = vld [vmem:[#allocation5 + $0x18] sm:$0xff] }
 0x25f   :  { %v10206_v25 = vpack.c.bf16 %v3350_v17, %v3342_v34  ;;  %1525 = vmatmul.bf16.gmra.mxu0 %v9795_v46 }
 0x260   :  { %v10208_v4 = vpack.c.bf16 %v3351_v43, %v3343_v23  ;;  %1694 = vmatmul.bf16.gmra.mxu1 %v9795_v46  ;;  %4468 = vmatpush.bf16.msrb.mxu0 %v10003_v62 }
 0x261   :  { %1863 = vmatmul.bf16.gmra.mxu2 %v9795_v46  ;;  %4557 = vmatpush.bf16.msrb.mxu1 %v10075_v27  ;;  %v3309_v27 = vmax.f32 %v10169_v29, 0.0 }
 0x262   :  { %2032 = vmatmul.bf16.gmra.mxu3 %v9795_v46  ;;  %4292 = vmatpush.bf16.msra.mxu2 %v10129_v3 }
 0x263   :  { %v3645_v28 = vpack.c.bf16 %v3317_v12, %v3309_v27 }
 0x264   :  { %v1308_v15 = vpop.f32.mrf.mxu2  ;;  %v972_v53 = vpop.f32.mrf.mxu0  ;;  %4469 = vmatpush.bf16.msrb.mxu0 %v9995_v38 }
 0x265   :  { %v1477_v24 = vpop.f32.mrf.mxu3  ;;  %v1141_v6 = vpop.f32.mrf.mxu1  ;;  %4558 = vmatpush.bf16.msrb.mxu1 %v10067_v47  ;;  %v3364_v48 = vmax.f32 %v972_v53, 0.0  ;;  %v3358_v47 = vmax.f32 %v1308_v15, 0.0 }
 0x266   :  { %v3365_v62 = vmax.f32 %v1141_v6, 0.0  ;;  %4293 = vmatpush.bf16.msra.mxu2 %v10117_v57  ;;  %v3359_v58 = vmax.f32 %v1477_v24, 0.0 }
 0x267   :  { %v10221_v3 = vpack.c.bf16 %v3364_v48, %v3356_v61 }
 0x268   :  { %v10223_v10 = vpack.c.bf16 %v3365_v62, %v3357_v14  ;;  %4470 = vmatpush.bf16.msrb.mxu0 %v9987_v13  ;;  %v9796_v13 = vld [vmem:[#allocation5 + $0x10] sm:$0xff] }
 0x269   :  { %4559 = vmatpush.bf16.msrb.mxu1 %v10059_v7 }
 0x26a   :  { %4642 = vmatpush.bf16.msrb.mxu2 %v3653_v63 }
 0x26c   :  { %v1310_v54 = vpop.f32.mrf.mxu2  ;;  %v975_v11 = vpop.f32.mrf.mxu0  ;;  %4471 = vmatpush.bf16.msrb.mxu0 %v9979_v56 }
 0x26d   :  { %v1479_v38 = vpop.f32.mrf.mxu3  ;;  %v3366_v21 = vmax.f32 %v1310_v54, 0.0  ;;  %v1144_v20 = vpop.f32.mrf.mxu1  ;;  %4560 = vmatpush.bf16.msrb.mxu1 %v10047_v18  ;;  %v3372_v56 = vmax.f32 %v975_v11, 0.0 }
 0x26e   :  { %4643 = vmatpush.bf16.msrb.mxu2 %v3645_v28  ;;  %v3367_v57 = vmax.f32 %v1479_v38, 0.0  ;;  %v3373_v35 = vmax.f32 %v1144_v20, 0.0 }
 0x26f   :  { %v10229_v29 = vpack.c.bf16 %v3366_v21, %v3358_v47  ;;  %1530 = vmatmul.bf16.gmra.mxu0 %v9796_v13  ;;  %v9798_v21 = vld [vmem:[#allocation5 + $0x20] sm:$0xff] }
 0x270   :  { %v10231_v50 = vpack.c.bf16 %v3367_v57, %v3359_v58  ;;  %1699 = vmatmul.bf16.gmra.mxu1 %v9796_v13 }
 0x271   :  { %1868 = vmatmul.bf16.gmra.mxu2 %v9796_v13 }
 0x272   :  { %4644 = vmatpush.bf16.msrb.mxu2 %v10167_v33  ;;  %2037 = vmatmul.bf16.gmra.mxu3 %v9796_v13 }
 0x274   :  { %v1313_v7 = vpop.f32.mrf.mxu2  ;;  %v977_v45 = vpop.f32.mrf.mxu0 }
 0x275   :  { %v1482_v30 = vpop.f32.mrf.mxu3  ;;  %v1146_v19 = vpop.f32.mrf.mxu1  ;;  %v3380_v18 = vmax.f32 %v977_v45, 0.0  ;;  %v3374_v23 = vmax.f32 %v1313_v7, 0.0 }
 0x276   :  { %4645 = vmatpush.bf16.msrb.mxu2 %v10157_v41  ;;  %v3381_v40 = vmax.f32 %v1146_v19, 0.0  ;;  %v3375_v17 = vmax.f32 %v1482_v30, 0.0 }
 0x277   :  { %v10235_v39 = vpack.c.bf16 %v3380_v18, %v3372_v56 }
 0x278   :  { %v10238_v33 = vpack.c.bf16 %v3381_v40, %v3373_v35 }
 0x27a   :  { %4646 = vmatpush.bf16.msrb.mxu2 %v10147_v16 }
 0x27c   :  { %v1315_v42 = vpop.f32.mrf.mxu2  ;;  %v980_v8 = vpop.f32.mrf.mxu0 }
 0x27d   :  { %v1484_v34 = vpop.f32.mrf.mxu3  ;;  %v3382_v41 = vmax.f32 %v1315_v42, 0.0  ;;  %v1149_v44 = vpop.f32.mrf.mxu1  ;;  %v3388_v12 = vmax.f32 %v980_v8, 0.0  ;;  %v9799_v8 = vld [vmem:[#allocation5 + $0x28] sm:$0xff] }
 0x27e   :  { %4647 = vmatpush.bf16.msrb.mxu2 %v10139_v36  ;;  %v3383_v43 = vmax.f32 %v1484_v34, 0.0  ;;  %v3389_v63 = vmax.f32 %v1149_v44, 0.0 }
 0x27f   :  { %v10241_v46 = vpack.c.bf16 %v3382_v41, %v3374_v23  ;;  %1535 = vmatmul.bf16.gmra.mxu0 %v9797_v22 }
 0x280   :  { %v10243_v0 = vpack.c.bf16 %v3383_v43, %v3375_v17  ;;  %1704 = vmatmul.bf16.gmra.mxu1 %v9797_v22 }
 0x281   :  { %1873 = vmatmul.bf16.gmra.mxu2 %v9797_v22 }
 0x282   :  { %4648 = vmatpush.bf16.msrb.mxu2 %v10131_v5  ;;  %2042 = vmatmul.bf16.gmra.mxu3 %v9797_v22 }
 0x284   :  { %v1318_v16 = vpop.f32.mrf.mxu2  ;;  %v982_v15 = vpop.f32.mrf.mxu0 }
 0x285   :  { %v1487_v36 = vpop.f32.mrf.mxu3  ;;  %v1151_v24 = vpop.f32.mrf.mxu1  ;;  %v3396_v53 = vmax.f32 %v982_v15, 0.0  ;;  %v3390_v62 = vmax.f32 %v1318_v16, 0.0 }
 0x286   :  { %4649 = vmatpush.bf16.msrb.mxu2 %v10119_v59  ;;  %v3397_v6 = vmax.f32 %v1151_v24, 0.0  ;;  %v3391_v27 = vmax.f32 %v1487_v36, 0.0 }
 0x287   :  { %v10247_v61 = vpack.c.bf16 %v3396_v53, %v3388_v12 }
 0x288   :  { %v10249_v14 = vpack.c.bf16 %v3397_v6, %v3389_v63 }
 0x28c   :  { %v1320_v5 = vpop.f32.mrf.mxu2  ;;  %v10251_v54 = vpop.f32.mrf.mxu0 }
 0x28d   :  { %v1489_v48 = vpop.f32.mrf.mxu3  ;;  %v3398_v28 = vmax.f32 %v1320_v5, 0.0  ;;  %v1154_v59 = vpop.f32.mrf.mxu1 }
 0x28e   :  { %v3399_v38 = vmax.f32 %v1489_v48, 0.0  ;;  %v3405_v7 = vmax.f32 %v1154_v59, 0.0  ;;  %v9800_v59 = vld [vmem:[#allocation5 + $0x30] sm:$0xff] }
 0x28f   :  { %v10253_v47 = vpack.c.bf16 %v3398_v28, %v3390_v62  ;;  %1540 = vmatmul.bf16.gmra.mxu0 %v9798_v21 }
 0x290   :  { %v10255_v58 = vpack.c.bf16 %v3399_v38, %v3391_v27  ;;  %1709 = vmatmul.bf16.gmra.mxu1 %v9798_v21 }
 0x291   :  { %1878 = vmatmul.bf16.gmra.mxu2 %v9798_v21 }
 0x292   :  { %2047 = vmatmul.bf16.gmra.mxu3 %v9798_v21 }
 0x294   :  { %v1323_v11 = vpop.f32.mrf.mxu2  ;;  %v10257_v20 = vpop.f32.mrf.mxu0 }
 0x295   :  { %v1492_v57 = vpop.f32.mrf.mxu3  ;;  %v1156_v13 = vpop.f32.mrf.mxu1  ;;  %v3406_v35 = vmax.f32 %v1323_v11, 0.0 }
 0x296   :  { %v3413_v30 = vmax.f32 %v1156_v13, 0.0  ;;  %v3407_v18 = vmax.f32 %v1492_v57, 0.0 }
 0x298   :  { %v10259_v45 = vpack.c.bf16 %v3413_v30, %v3405_v7 }
 0x29c   :  { %v1325_v19 = vpop.f32.mrf.mxu2  ;;  %v10261_v42 = vpop.f32.mrf.mxu0 }
 0x29d   :  { %v1494_v56 = vpop.f32.mrf.mxu3  ;;  %v3414_v40 = vmax.f32 %v1325_v19, 0.0  ;;  %v1159_v23 = vpop.f32.mrf.mxu1 }
 0x29e   :  { %v3415_v34 = vmax.f32 %v1494_v56, 0.0  ;;  %v3421_v36 = vmax.f32 %v1159_v23, 0.0 }
 0x29f   :  { %v10263_v17 = vpack.c.bf16 %v3414_v40, %v3406_v35  ;;  %1545 = vmatmul.bf16.gmra.mxu0 %v9799_v8 }
 0x2a0   :  { %v10265_v41 = vpack.c.bf16 %v3415_v34, %v3407_v18  ;;  %1714 = vmatmul.bf16.gmra.mxu1 %v9799_v8 }
 0x2a1   :  { %1883 = vmatmul.bf16.gmra.mxu2 %v9799_v8 }
 0x2a2   :  { %2052 = vmatmul.bf16.gmra.mxu3 %v9799_v8 }
 0x2a4   :  { %v1328_v43 = vpop.f32.mrf.mxu2  ;;  %v10267_v22 = vpop.f32.mrf.mxu0 }
 0x2a5   :  { %v1497_v44 = vpop.f32.mrf.mxu3  ;;  %v1161_v16 = vpop.f32.mrf.mxu1  ;;  %v3422_v53 = vmax.f32 %v1328_v43, 0.0  ;;  %v9801_v43 = vld [vmem:[#allocation5 + $0x38] sm:$0xff] }
 0x2a6   :  { %v3429_v15 = vmax.f32 %v1161_v16, 0.0  ;;  %v3423_v6 = vmax.f32 %v1497_v44, 0.0 }
 0x2a8   :  { %v10269_v24 = vpack.c.bf16 %v3429_v15, %v3421_v36 }
 0x2ac   :  { %v1330_v12 = vpop.f32.mrf.mxu2  ;;  %v995_v48 = vpop.f32.mrf.mxu0 }
 0x2ad   :  { %v1499_v63 = vpop.f32.mrf.mxu3  ;;  %v3430_v5 = vmax.f32 %v1330_v12, 0.0  ;;  %v10271_v27 = vpop.f32.mrf.mxu1 }
 0x2ae   :  { %v3431_v62 = vmax.f32 %v1499_v63, 0.0 }
 0x2af   :  { %v10273_v28 = vpack.c.bf16 %v3430_v5, %v3422_v53  ;;  %1550 = vmatmul.bf16.gmra.mxu0 %v9800_v59  ;;  %v3436_v5 = vmax.f32 %v995_v48, 0.0  ;;  %v9802_v48 = vld [vmem:[#allocation5 + $0x40] sm:$0xff] }
 0x2b0   :  { %v10275_v38 = vpack.c.bf16 %v3431_v62, %v3423_v6  ;;  %1719 = vmatmul.bf16.gmra.mxu1 %v9800_v59  ;;  %v3428_v62 = vmax.f32 %v10267_v22, 0.0  ;;  %v3412_v22 = vmax.f32 %v10257_v20, 0.0 }
 0x2b1   :  { %1888 = vmatmul.bf16.gmra.mxu2 %v9800_v59 }
 0x2b2   :  { %2057 = vmatmul.bf16.gmra.mxu3 %v9800_v59 }
 0x2b4   :  { %v1333_v21 = vpop.f32.mrf.mxu2  ;;  %v997_v57 = vpop.f32.mrf.mxu0 }
 0x2b5   :  { %v1502_v11 = vpop.f32.mrf.mxu3  ;;  %v10277_v13 = vpop.f32.mrf.mxu1  ;;  %v3438_v19 = vmax.f32 %v1333_v21, 0.0  ;;  %v3444_v53 = vmax.f32 %v997_v57, 0.0 }
 0x2b6   :  { %v3439_v56 = vmax.f32 %v1502_v11, 0.0 }
 0x2b7   :  { %v3708_v59 = vpack.c.bf16 %v3444_v53, %v3436_v5 }
 0x2bc   :  { %v1335_v7 = vpop.f32.mrf.mxu2  ;;  %v1000_v18 = vpop.f32.mrf.mxu0 }
 0x2bd   :  { %v1504_v30 = vpop.f32.mrf.mxu3  ;;  %v3446_v35 = vmax.f32 %v1335_v7, 0.0  ;;  %v10279_v34 = vpop.f32.mrf.mxu1  ;;  %v3452_v12 = vmax.f32 %v1000_v18, 0.0 }
 0x2be   :  { %v3447_v40 = vmax.f32 %v1504_v30, 0.0 }
 0x2bf   :  { %v10281_v23 = vpack.c.bf16 %v3446_v35, %v3438_v19  ;;  %1555 = vmatmul.bf16.gmra.mxu0 %v9801_v43 }
 0x2c0   :  { %v10283_v8 = vpack.c.bf16 %v3447_v40, %v3439_v56  ;;  %1724 = vmatmul.bf16.gmra.mxu1 %v9801_v43 }
 0x2c1   :  { %1893 = vmatmul.bf16.gmra.mxu2 %v9801_v43 }
 0x2c2   :  { %2062 = vmatmul.bf16.gmra.mxu3 %v9801_v43  ;;  %v3420_v43 = vmax.f32 %v10261_v42, 0.0 }
 0x2c4   :  { %v1338_v44 = vpop.f32.mrf.mxu2  ;;  %v1002_v36 = vpop.f32.mrf.mxu0 }
 0x2c5   :  { %v1507_v16 = vpop.f32.mrf.mxu3  ;;  %v10285_v15 = vpop.f32.mrf.mxu1  ;;  %v3460_v63 = vmax.f32 %v1002_v36, 0.0  ;;  %v3454_v7 = vmax.f32 %v1338_v44, 0.0  ;;  %v3700_v36 = vpack.c.bf16 %v3428_v62, %v3420_v43  ;;  %v3404_v44 = vmax.f32 %v10251_v54, 0.0 }
 0x2c6   :  { %v3455_v30 = vmax.f32 %v1507_v16, 0.0 }
 0x2c7   :  { %v3716_v6 = vpack.c.bf16 %v3460_v63, %v3452_v12  ;;  %v3692_v63 = vpack.c.bf16 %v3412_v22, %v3404_v44 }
 0x2c9   :  { %4375 = vmatpush.bf16.msra.mxu3 %v3716_v6 }
 0x2cc   :  { %v1340_v21 = vpop.f32.mrf.mxu2  ;;  %v1521_v35 = vpop.f32.mrf.mxu0 }
 0x2cd   :  { %v1509_v11 = vpop.f32.mrf.mxu3  ;;  %v3462_v19 = vmax.f32 %v1340_v21, 0.0  ;;  %v1690_v40 = vpop.f32.mrf.mxu1  ;;  %4376 = vmatpush.bf16.msra.mxu3 %v3708_v59  ;;  %v2960_v6 = vmax.f32 %v1521_v35, 0.0 }
 0x2ce   :  { %v3463_v56 = vmax.f32 %v1509_v11, 0.0  ;;  %v2961_v5 = vmax.f32 %v1690_v40, 0.0  ;;  %v9803_v40 = vld [vmem:[#allocation5 + $0x48] sm:$0xff] }
 0x2cf   :  { %v10289_v18 = vpack.c.bf16 %v3462_v19, %v3454_v7  ;;  %1560 = vmatmul.bf16.gmra.mxu0 %v9802_v48 }
 0x2d0   :  { %v10291_v57 = vpack.c.bf16 %v3463_v56, %v3455_v30  ;;  %1729 = vmatmul.bf16.gmra.mxu1 %v9802_v48 }
 0x2d1   :  { %1898 = vmatmul.bf16.gmra.mxu2 %v9802_v48  ;;  %4377 = vmatpush.bf16.msra.mxu3 %v3700_v36  ;;  %v3461_v36 = vmax.f32 %v10285_v15, 0.0  ;;  %v3437_v15 = vmax.f32 %v10271_v27, 0.0  ;;  %v9804_v27 = vld [vmem:[#allocation5 + $0x50] sm:$0xff] }
 0x2d2   :  { %2067 = vmatmul.bf16.gmra.mxu3 %v9802_v48 }
 0x2d4   :  { %v1859_v16 = vpop.f32.mrf.mxu2  ;;  %v1523_v53 = vpop.f32.mrf.mxu0 }
 0x2d5   :  { %v2028_v12 = vpop.f32.mrf.mxu3  ;;  %v1692_v42 = vpop.f32.mrf.mxu1  ;;  %v2968_v59 = vmax.f32 %v1523_v53, 0.0  ;;  %4378 = vmatpush.bf16.msra.mxu3 %v3692_v63  ;;  %v2962_v54 = vmax.f32 %v1859_v16, 0.0 }
 0x2d6   :  { %v2969_v21 = vmax.f32 %v1692_v42, 0.0  ;;  %v2963_v30 = vmax.f32 %v2028_v12, 0.0  ;;  %v3445_v12 = vmax.f32 %v10277_v13, 0.0 }
 0x2d7   :  { %v10295_v11 = vpack.c.bf16 %v2968_v59, %v2960_v6 }
 0x2d8   :  { %v10297_v20 = vpack.c.bf16 %v2969_v21, %v2961_v5 }
 0x2d9   :  { %13038 = vst [vmem:[#allocation50_spill] sm:$0xff] %v10295_v11  ;;  %4379 = vmatpush.bf16.msra.mxu3 %v10247_v61  ;;  %v3453_v61 = vmax.f32 %v10279_v34, 0.0 }
 0x2da   :  { %13039 = vst [vmem:[#allocation51_spill] sm:$0xff] %v10297_v20 }
 0x2db   :  { %v3717_v63 = vpack.c.bf16 %v3461_v36, %v3453_v61 }
 0x2dc   :  { %v1861_v62 = vpop.f32.mrf.mxu2  ;;  %v1526_v43 = vpop.f32.mrf.mxu0 }
 0x2dd   :  { %v2030_v7 = vpop.f32.mrf.mxu3  ;;  %v2970_v19 = vmax.f32 %v1861_v62, 0.0  ;;  %v1695_v48 = vpop.f32.mrf.mxu1  ;;  %4380 = vmatpush.bf16.msra.mxu3 %v10235_v39  ;;  %v2976_v6 = vmax.f32 %v1526_v43, 0.0 }
 0x2de   :  { %v2971_v56 = vmax.f32 %v2030_v7, 0.0  ;;  %v2977_v39 = vmax.f32 %v1695_v48, 0.0 }
 0x2df   :  { %v10300_v22 = vpack.c.bf16 %v2970_v19, %v2962_v54  ;;  %1565 = vmatmul.bf16.gmra.mxu0 %v9803_v40 }
 0x2e0   :  { %v10302_v35 = vpack.c.bf16 %v2971_v56, %v2963_v30  ;;  %1734 = vmatmul.bf16.gmra.mxu1 %v9803_v40 }
 0x2e1   :  { %13040 = vst [vmem:[#allocation52_spill] sm:$0xff] %v10300_v22  ;;  %1903 = vmatmul.bf16.gmra.mxu2 %v9803_v40  ;;  %4381 = vmatpush.bf16.msra.mxu3 %v10221_v3  ;;  %v3709_v3 = vpack.c.bf16 %v3445_v12, %v3437_v15 }
 0x2e2   :  { %13041 = vst [vmem:[#allocation53_spill] sm:$0xff] %v10302_v35  ;;  %2072 = vmatmul.bf16.gmra.mxu3 %v9803_v40 }
 0x2e4   :  { %v1864_v44 = vpop.f32.mrf.mxu2  ;;  %v1528_v53 = vpop.f32.mrf.mxu0 }
 0x2e5   :  { %v2033_v16 = vpop.f32.mrf.mxu3  ;;  %v1697_v42 = vpop.f32.mrf.mxu1  ;;  %v2984_v5 = vmax.f32 %v1528_v53, 0.0  ;;  %4382 = vmatpush.bf16.msra.mxu3 %v10197_v52  ;;  %v2978_v7 = vmax.f32 %v1864_v44, 0.0 }
 0x2e6   :  { %v2985_v59 = vmax.f32 %v1697_v42, 0.0  ;;  %v2979_v54 = vmax.f32 %v2033_v16, 0.0 }
 0x2e7   :  { %v10311_v21 = vpack.c.bf16 %v2984_v5, %v2976_v6 }
 0x2e8   :  { %v10313_v34 = vpack.c.bf16 %v2985_v59, %v2977_v39 }
 0x2e9   :  { %4731 = vmatpush.bf16.msrb.mxu3 %v3717_v63  ;;  %13042 = vst [vmem:[#allocation54_spill] sm:$0xff] %v10311_v21 }
 0x2ea   :  { %13043 = vst [vmem:[#allocation55_spill] sm:$0xff] %v10313_v34 }
 0x2ec   :  { %v1866_v62 = vpop.f32.mrf.mxu2  ;;  %v1531_v56 = vpop.f32.mrf.mxu0 }
 0x2ed   :  { %4732 = vmatpush.bf16.msrb.mxu3 %v3709_v3  ;;  %v2035_v13 = vpop.f32.mrf.mxu3  ;;  %v2986_v30 = vmax.f32 %v1866_v62, 0.0  ;;  %v1700_v43 = vpop.f32.mrf.mxu1  ;;  %v2992_v44 = vmax.f32 %v1531_v56, 0.0 }
 0x2ee   :  { %v2987_v19 = vmax.f32 %v2035_v13, 0.0  ;;  %v2993_v63 = vmax.f32 %v1700_v43, 0.0 }
 0x2ef   :  { %v10315_v48 = vpack.c.bf16 %v2986_v30, %v2978_v7  ;;  %1570 = vmatmul.bf16.gmra.mxu0 %v9804_v27 }
 0x2f0   :  { %v10317_v52 = vpack.c.bf16 %v2987_v19, %v2979_v54  ;;  %1739 = vmatmul.bf16.gmra.mxu1 %v9804_v27 }
 0x2f1   :  { %13044 = vst [vmem:[#allocation56_spill] sm:$0xff] %v10315_v48  ;;  %4733 = vmatpush.bf16.msrb.mxu3 %v10269_v24  ;;  %1908 = vmatmul.bf16.gmra.mxu2 %v9804_v27 }
 0x2f2   :  { %13045 = vst [vmem:[#allocation57_spill] sm:$0xff] %v10317_v52  ;;  %2077 = vmatmul.bf16.gmra.mxu3 %v9804_v27 }
 0x2f4   :  { %v1869_v40 = vpop.f32.mrf.mxu2  ;;  %v1533_v61 = vpop.f32.mrf.mxu0 }
 0x2f5   :  { %4734 = vmatpush.bf16.msrb.mxu3 %v10259_v45  ;;  %v2038_v36 = vpop.f32.mrf.mxu3  ;;  %v3000_v16 = vmax.f32 %v1533_v61, 0.0  ;;  %v1702_v12 = vpop.f32.mrf.mxu1  ;;  %v2994_v39 = vmax.f32 %v1869_v40, 0.0 }
 0x2f6   :  { %v3001_v53 = vmax.f32 %v1702_v12, 0.0  ;;  %v2995_v15 = vmax.f32 %v2038_v36, 0.0 }
 0x2f7   :  { %v10322_v42 = vpack.c.bf16 %v3000_v16, %v2992_v44 }
 0x2f8   :  { %v10324_v24 = vpack.c.bf16 %v3001_v53, %v2993_v63 }
 0x2f9   :  { %4735 = vmatpush.bf16.msrb.mxu3 %v10249_v14  ;;  %13046 = vst [vmem:[#allocation58_spill] sm:$0xff] %v10322_v42  ;;  %v9805_v14 = vld [vmem:[#allocation5 + $0x58] sm:$0xff] }
 0x2fa   :  { %13047 = vst [vmem:[#allocation59_spill] sm:$0xff] %v10324_v24 }
 0x2fc   :  { %v1871_v6 = vpop.f32.mrf.mxu2  ;;  %v1536_v45 = vpop.f32.mrf.mxu0 }
 0x2fd   :  { %4736 = vmatpush.bf16.msrb.mxu3 %v10238_v33  ;;  %v3002_v5 = vmax.f32 %v1871_v6, 0.0  ;;  %v2040_v59 = vpop.f32.mrf.mxu3  ;;  %v1705_v62 = vpop.f32.mrf.mxu1  ;;  %v3008_v19 = vmax.f32 %v1536_v45, 0.0 }
 0x2fe   :  { %v3003_v3 = vmax.f32 %v2040_v59, 0.0  ;;  %v3009_v27 = vmax.f32 %v1705_v62, 0.0  ;;  %v9806_v59 = vld [vmem:[#allocation5 + $0x60] sm:$0xff] }
 0x2ff   :  { %v10327_v13 = vpack.c.bf16 %v3002_v5, %v2994_v39  ;;  %1575 = vmatmul.bf16.gmra.mxu0 %v9805_v14 }
 0x300   :  { %v10329_v7 = vpack.c.bf16 %v3003_v3, %v2995_v15  ;;  %1744 = vmatmul.bf16.gmra.mxu1 %v9805_v14 }
 0x301   :  { %13048 = vst [vmem:[#allocation60_spill] sm:$0xff] %v10327_v13  ;;  %4737 = vmatpush.bf16.msrb.mxu3 %v10223_v10  ;;  %1913 = vmatmul.bf16.gmra.mxu2 %v9805_v14 }
 0x302   :  { %13049 = vst [vmem:[#allocation61_spill] sm:$0xff] %v10329_v7  ;;  %2082 = vmatmul.bf16.gmra.mxu3 %v9805_v14 }
 0x304   :  { %v1874_v54 = vpop.f32.mrf.mxu2  ;;  %v1538_v30 = vpop.f32.mrf.mxu0 }
 0x305   :  { %4738 = vmatpush.bf16.msrb.mxu3 %v10199_v60  ;;  %v2043_v33 = vpop.f32.mrf.mxu3  ;;  %v3016_v56 = vmax.f32 %v1538_v30, 0.0  ;;  %v1707_v43 = vpop.f32.mrf.mxu1  ;;  %v3010_v44 = vmax.f32 %v1874_v54, 0.0 }
 0x306   :  { %v3017_v40 = vmax.f32 %v1707_v43, 0.0  ;;  %v3011_v53 = vmax.f32 %v2043_v33, 0.0 }
 0x307   :  { %v10333_v36 = vpack.c.bf16 %v3016_v56, %v3008_v19 }
 0x308   :  { %v10335_v61 = vpack.c.bf16 %v3017_v40, %v3009_v27 }
 0x309   :  { %13050 = vst [vmem:[#allocation62_spill] sm:$0xff] %v10333_v36 }
 0x30a   :  { %13051 = vst [vmem:[#allocation63_spill] sm:$0xff] %v10335_v61 }
 0x30c   :  { %v1876_v10 = vpop.f32.mrf.mxu2  ;;  %v1541_v63 = vpop.f32.mrf.mxu0 }
 0x30d   :  { %v3018_v16 = vmax.f32 %v1876_v10, 0.0  ;;  %v2045_v12 = vpop.f32.mrf.mxu3  ;;  %v1710_v39 = vpop.f32.mrf.mxu1  ;;  %v3024_v62 = vmax.f32 %v1541_v63, 0.0  ;;  %v9807_v63 = vld [vmem:[#allocation5 + $0x68] sm:$0xff] }
 0x30e   :  { %v3019_v6 = vmax.f32 %v2045_v12, 0.0  ;;  %v3025_v30 = vmax.f32 %v1710_v39, 0.0 }
 0x30f   :  { %v10337_v60 = vpack.c.bf16 %v3018_v16, %v3010_v44  ;;  %1580 = vmatmul.bf16.gmra.mxu0 %v9806_v59 }
 0x310   :  { %v10339_v5 = vpack.c.bf16 %v3019_v6, %v3011_v53  ;;  %1749 = vmatmul.bf16.gmra.mxu1 %v9806_v59 }
 0x311   :  { %13052 = vst [vmem:[#allocation64_spill] sm:$0xff] %v10337_v60  ;;  %1918 = vmatmul.bf16.gmra.mxu2 %v9806_v59 }
 0x312   :  { %13053 = vst [vmem:[#allocation65_spill] sm:$0xff] %v10339_v5  ;;  %2087 = vmatmul.bf16.gmra.mxu3 %v9806_v59 }
 0x314   :  { %v1879_v45 = vpop.f32.mrf.mxu2  ;;  %v1543_v3 = vpop.f32.mrf.mxu0 }
 0x315   :  { %v2048_v15 = vpop.f32.mrf.mxu3  ;;  %v3032_v14 = vmax.f32 %v1543_v3, 0.0  ;;  %v1712_v54 = vpop.f32.mrf.mxu1  ;;  %v3026_v27 = vmax.f32 %v1879_v45, 0.0 }
 0x316   :  { %v3033_v19 = vmax.f32 %v1712_v54, 0.0  ;;  %v3027_v16 = vmax.f32 %v2048_v15, 0.0 }
 0x317   :  { %v10341_v33 = vpack.c.bf16 %v3032_v14, %v3024_v62 }
 0x318   :  { %v10343_v56 = vpack.c.bf16 %v3033_v19, %v3025_v30 }
 0x319   :  { %13054 = vst [vmem:[#allocation66_spill] sm:$0xff] %v10341_v33 }
 0x31a   :  { %13055 = vst [vmem:[#allocation67_spill] sm:$0xff] %v10343_v56 }
 0x31c   :  { %v1881_v43 = vpop.f32.mrf.mxu2  ;;  %v1546_v44 = vpop.f32.mrf.mxu0 }
 0x31d   :  { %v3034_v40 = vmax.f32 %v1881_v43, 0.0  ;;  %v2050_v10 = vpop.f32.mrf.mxu3  ;;  %v1715_v53 = vpop.f32.mrf.mxu1  ;;  %v3040_v14 = vmax.f32 %v1546_v44, 0.0  ;;  %v9808_v44 = vld [vmem:[#allocation5 + $0x70] sm:$0xff] }
 0x31e   :  { %v3035_v12 = vmax.f32 %v2050_v10, 0.0  ;;  %v3041_v30 = vmax.f32 %v1715_v53, 0.0 }
 0x31f   :  { %v10345_v6 = vpack.c.bf16 %v3034_v40, %v3026_v27  ;;  %1585 = vmatmul.bf16.gmra.mxu0 %v9807_v63 }
 0x320   :  { %v10347_v59 = vpack.c.bf16 %v3035_v12, %v3027_v16  ;;  %1754 = vmatmul.bf16.gmra.mxu1 %v9807_v63 }
 0x321   :  { %13056 = vst [vmem:[#allocation68_spill] sm:$0xff] %v10345_v6  ;;  %1923 = vmatmul.bf16.gmra.mxu2 %v9807_v63 }
 0x322   :  { %13057 = vst [vmem:[#allocation69_spill] sm:$0xff] %v10347_v59  ;;  %2092 = vmatmul.bf16.gmra.mxu3 %v9807_v63 }
 0x324   :  { %v1884_v39 = vpop.f32.mrf.mxu2  ;;  %v1548_v62 = vpop.f32.mrf.mxu0 }
 0x325   :  { %v2053_v3 = vpop.f32.mrf.mxu3  ;;  %v3048_v45 = vmax.f32 %v1548_v62, 0.0  ;;  %v1717_v54 = vpop.f32.mrf.mxu1  ;;  %v3042_v40 = vmax.f32 %v1884_v39, 0.0 }
 0x326   :  { %v3049_v19 = vmax.f32 %v1717_v54, 0.0  ;;  %v3043_v35 = vmax.f32 %v2053_v3, 0.0 }
 0x327   :  { %v10349_v15 = vpack.c.bf16 %v3048_v45, %v3040_v14 }
 0x328   :  { %v10351_v43 = vpack.c.bf16 %v3049_v19, %v3041_v30 }
 0x329   :  { %13058 = vst [vmem:[#allocation70_spill] sm:$0xff] %v10349_v15 }
 0x32a   :  { %13059 = vst [vmem:[#allocation71_spill] sm:$0xff] %v10351_v43 }
 0x32c   :  { %v1886_v27 = vpop.f32.mrf.mxu2  ;;  %v1551_v12 = vpop.f32.mrf.mxu0 }
 0x32d   :  { %v3050_v10 = vmax.f32 %v1886_v27, 0.0  ;;  %v2055_v16 = vpop.f32.mrf.mxu3  ;;  %v1720_v63 = vpop.f32.mrf.mxu1  ;;  %v3056_v45 = vmax.f32 %v1551_v12, 0.0  ;;  %v9809_v12 = vld [vmem:[#allocation5 + $0x78] sm:$0xff] }
 0x32e   :  { %v3051_v52 = vmax.f32 %v2055_v16, 0.0  ;;  %v3057_v30 = vmax.f32 %v1720_v63, 0.0 }
 0x32f   :  { %v10353_v7 = vpack.c.bf16 %v3050_v10, %v3042_v40  ;;  %1590 = vmatmul.bf16.gmra.mxu0 %v9808_v44 }
 0x330   :  { %v10355_v5 = vpack.c.bf16 %v3051_v52, %v3043_v35  ;;  %1759 = vmatmul.bf16.gmra.mxu1 %v9808_v44 }
 0x331   :  { %13060 = vst [vmem:[#allocation72_spill] sm:$0xff] %v10353_v7  ;;  %1928 = vmatmul.bf16.gmra.mxu2 %v9808_v44 }
 0x332   :  { %13061 = vst [vmem:[#allocation73_spill] sm:$0xff] %v10355_v5  ;;  %2097 = vmatmul.bf16.gmra.mxu3 %v9808_v44 }
 0x334   :  { %v1889_v53 = vpop.f32.mrf.mxu2  ;;  %v1553_v14 = vpop.f32.mrf.mxu0 }
 0x335   :  { %v2058_v62 = vpop.f32.mrf.mxu3  ;;  %v3064_v39 = vmax.f32 %v1553_v14, 0.0  ;;  %v1722_v54 = vpop.f32.mrf.mxu1  ;;  %v3058_v35 = vmax.f32 %v1889_v53, 0.0 }
 0x336   :  { %v3065_v19 = vmax.f32 %v1722_v54, 0.0  ;;  %v3059_v59 = vmax.f32 %v2058_v62, 0.0 }
 0x337   :  { %v10357_v3 = vpack.c.bf16 %v3064_v39, %v3056_v45 }
 0x338   :  { %v10359_v27 = vpack.c.bf16 %v3065_v19, %v3057_v30 }
 0x339   :  { %13062 = vst [vmem:[#allocation74_spill] sm:$0xff] %v10357_v3 }
 0x33a   :  { %13063 = vst [vmem:[#allocation75_spill] sm:$0xff] %v10359_v27 }
 0x33c   :  { %v1891_v40 = vpop.f32.mrf.mxu2  ;;  %v1556_v16 = vpop.f32.mrf.mxu0 }
 0x33d   :  { %v3066_v52 = vmax.f32 %v1891_v40, 0.0  ;;  %v2060_v10 = vpop.f32.mrf.mxu3  ;;  %v1725_v44 = vpop.f32.mrf.mxu1  ;;  %v3072_v39 = vmax.f32 %v1556_v16, 0.0  ;;  %v9810_v16 = vld [vmem:[#allocation5 + $0x80] sm:$0xff] }
 0x33e   :  { %v3067_v5 = vmax.f32 %v2060_v10, 0.0  ;;  %v3073_v30 = vmax.f32 %v1725_v44, 0.0 }
 0x33f   :  { %v10361_v22 = vpack.c.bf16 %v3066_v52, %v3058_v35  ;;  %1595 = vmatmul.bf16.gmra.mxu0 %v9809_v12 }
 0x340   :  { %v10363_v48 = vpack.c.bf16 %v3067_v5, %v3059_v59  ;;  %1764 = vmatmul.bf16.gmra.mxu1 %v9809_v12 }
 0x341   :  { %13064 = vst [vmem:[#allocation76_spill] sm:$0xff] %v10361_v22  ;;  %1933 = vmatmul.bf16.gmra.mxu2 %v9809_v12 }
 0x342   :  { %13065 = vst [vmem:[#allocation77_spill] sm:$0xff] %v10363_v48  ;;  %2102 = vmatmul.bf16.gmra.mxu3 %v9809_v12 }
 0x344   :  { %v1894_v63 = vpop.f32.mrf.mxu2  ;;  %v1558_v45 = vpop.f32.mrf.mxu0 }
 0x345   :  { %v2063_v14 = vpop.f32.mrf.mxu3  ;;  %v3080_v53 = vmax.f32 %v1558_v45, 0.0  ;;  %v1727_v54 = vpop.f32.mrf.mxu1  ;;  %v3074_v5 = vmax.f32 %v1894_v63, 0.0 }
 0x346   :  { %v3081_v19 = vmax.f32 %v1727_v54, 0.0  ;;  %v3075_v48 = vmax.f32 %v2063_v14, 0.0 }
 0x347   :  { %v10365_v62 = vpack.c.bf16 %v3080_v53, %v3072_v39 }
 0x348   :  { %v10367_v40 = vpack.c.bf16 %v3081_v19, %v3073_v30 }
 0x349   :  { %13066 = vst [vmem:[#allocation78_spill] sm:$0xff] %v10365_v62 }
 0x34a   :  { %13067 = vst [vmem:[#allocation79_spill] sm:$0xff] %v10367_v40 }
 0x34c   :  { %v1896_v35 = vpop.f32.mrf.mxu2  ;;  %v1561_v10 = vpop.f32.mrf.mxu0 }
 0x34d   :  { %v3082_v59 = vmax.f32 %v1896_v35, 0.0  ;;  %v2065_v52 = vpop.f32.mrf.mxu3  ;;  %v1730_v12 = vpop.f32.mrf.mxu1  ;;  %v3088_v53 = vmax.f32 %v1561_v10, 0.0  ;;  %v9811_v10 = vld [vmem:[#allocation5 + $0x88] sm:$0xff] }
 0x34e   :  { %v3083_v13 = vmax.f32 %v2065_v52, 0.0  ;;  %v3089_v30 = vmax.f32 %v1730_v12, 0.0 }
 0x34f   :  { %v10369_v60 = vpack.c.bf16 %v3082_v59, %v3074_v5  ;;  %1600 = vmatmul.bf16.gmra.mxu0 %v9810_v16 }
 0x350   :  { %v10371_v6 = vpack.c.bf16 %v3083_v13, %v3075_v48  ;;  %1769 = vmatmul.bf16.gmra.mxu1 %v9810_v16 }
 0x351   :  { %13068 = vst [vmem:[#allocation80_spill] sm:$0xff] %v10369_v60  ;;  %1938 = vmatmul.bf16.gmra.mxu2 %v9810_v16 }
 0x352   :  { %13069 = vst [vmem:[#allocation81_spill] sm:$0xff] %v10371_v6  ;;  %2107 = vmatmul.bf16.gmra.mxu3 %v9810_v16 }
 0x354   :  { %v1899_v44 = vpop.f32.mrf.mxu2  ;;  %v1563_v39 = vpop.f32.mrf.mxu0 }
 0x355   :  { %v2068_v45 = vpop.f32.mrf.mxu3  ;;  %v3096_v63 = vmax.f32 %v1563_v39, 0.0  ;;  %v1732_v54 = vpop.f32.mrf.mxu1  ;;  %v3090_v48 = vmax.f32 %v1899_v44, 0.0 }
 0x356   :  { %v3097_v19 = vmax.f32 %v1732_v54, 0.0  ;;  %v3091_v6 = vmax.f32 %v2068_v45, 0.0 }
 0x357   :  { %v10373_v14 = vpack.c.bf16 %v3096_v63, %v3088_v53 }
 0x358   :  { %v10375_v35 = vpack.c.bf16 %v3097_v19, %v3089_v30 }
 0x359   :  { %13070 = vst [vmem:[#allocation82_spill] sm:$0xff] %v10373_v14 }
 0x35a   :  { %13071 = vst [vmem:[#allocation83_spill] sm:$0xff] %v10375_v35 }
 0x35c   :  { %v1901_v5 = vpop.f32.mrf.mxu2  ;;  %v1566_v52 = vpop.f32.mrf.mxu0 }
 0x35d   :  { %v3098_v13 = vmax.f32 %v1901_v5, 0.0  ;;  %v2070_v59 = vpop.f32.mrf.mxu3  ;;  %v1735_v16 = vpop.f32.mrf.mxu1  ;;  %v3104_v63 = vmax.f32 %v1566_v52, 0.0  ;;  %v9812_v52 = vld [vmem:[#allocation5 + $0x90] sm:$0xff] }
 0x35e   :  { %v3099_v7 = vmax.f32 %v2070_v59, 0.0  ;;  %v3105_v30 = vmax.f32 %v1735_v16, 0.0 }
 0x35f   :  { %v10377_v22 = vpack.c.bf16 %v3098_v13, %v3090_v48  ;;  %1605 = vmatmul.bf16.gmra.mxu0 %v9811_v10 }
 0x360   :  { %v10379_v60 = vpack.c.bf16 %v3099_v7, %v3091_v6  ;;  %1774 = vmatmul.bf16.gmra.mxu1 %v9811_v10 }
 0x361   :  { %13072 = vst [vmem:[#allocation84_spill] sm:$0xff] %v10377_v22  ;;  %1943 = vmatmul.bf16.gmra.mxu2 %v9811_v10 }
 0x362   :  { %13073 = vst [vmem:[#allocation85_spill] sm:$0xff] %v10379_v60  ;;  %2112 = vmatmul.bf16.gmra.mxu3 %v9811_v10 }
 0x364   :  { %v1904_v12 = vpop.f32.mrf.mxu2  ;;  %v1568_v53 = vpop.f32.mrf.mxu0 }
 0x365   :  { %v2073_v39 = vpop.f32.mrf.mxu3  ;;  %v3112_v44 = vmax.f32 %v1568_v53, 0.0  ;;  %v1737_v54 = vpop.f32.mrf.mxu1  ;;  %v3106_v7 = vmax.f32 %v1904_v12, 0.0 }
 0x366   :  { %v3113_v19 = vmax.f32 %v1737_v54, 0.0  ;;  %v3107_v60 = vmax.f32 %v2073_v39, 0.0 }
 0x367   :  { %v10381_v45 = vpack.c.bf16 %v3112_v44, %v3104_v63 }
 0x368   :  { %v10383_v5 = vpack.c.bf16 %v3113_v19, %v3105_v30 }
 0x369   :  { %13074 = vst [vmem:[#allocation86_spill] sm:$0xff] %v10381_v45 }
 0x36a   :  { %13075 = vst [vmem:[#allocation87_spill] sm:$0xff] %v10383_v5 }
 0x36c   :  { %v1906_v48 = vpop.f32.mrf.mxu2  ;;  %v1571_v59 = vpop.f32.mrf.mxu0 }
 0x36d   :  { %v3114_v6 = vmax.f32 %v1906_v48, 0.0  ;;  %v2075_v13 = vpop.f32.mrf.mxu3  ;;  %v1740_v10 = vpop.f32.mrf.mxu1  ;;  %v3120_v44 = vmax.f32 %v1571_v59, 0.0  ;;  %v9813_v59 = vld [vmem:[#allocation5 + $0x98] sm:$0xff] }
 0x36e   :  { %v3115_v22 = vmax.f32 %v2075_v13, 0.0  ;;  %v3121_v30 = vmax.f32 %v1740_v10, 0.0 }
 0x36f   :  { %v10385_v35 = vpack.c.bf16 %v3114_v6, %v3106_v7  ;;  %1610 = vmatmul.bf16.gmra.mxu0 %v9812_v52 }
 0x370   :  { %v10387_v20 = vpack.c.bf16 %v3115_v22, %v3107_v60  ;;  %1779 = vmatmul.bf16.gmra.mxu1 %v9812_v52 }
 0x371   :  { %13076 = vst [vmem:[#allocation88_spill] sm:$0xff] %v10385_v35  ;;  %1948 = vmatmul.bf16.gmra.mxu2 %v9812_v52 }
 0x372   :  { %13077 = vst [vmem:[#allocation89_spill] sm:$0xff] %v10387_v20  ;;  %2117 = vmatmul.bf16.gmra.mxu3 %v9812_v52 }
 0x374   :  { %v1909_v16 = vpop.f32.mrf.mxu2  ;;  %v1573_v63 = vpop.f32.mrf.mxu0 }
 0x375   :  { %v2078_v53 = vpop.f32.mrf.mxu3  ;;  %v3128_v12 = vmax.f32 %v1573_v63, 0.0  ;;  %v1742_v54 = vpop.f32.mrf.mxu1  ;;  %v3122_v22 = vmax.f32 %v1909_v16, 0.0 }
 0x376   :  { %v3129_v19 = vmax.f32 %v1742_v54, 0.0  ;;  %v3123_v20 = vmax.f32 %v2078_v53, 0.0 }
 0x377   :  { %v10389_v39 = vpack.c.bf16 %v3128_v12, %v3120_v44 }
 0x378   :  { %v10391_v48 = vpack.c.bf16 %v3129_v19, %v3121_v30 }
 0x379   :  { %13078 = vst [vmem:[#allocation90_spill] sm:$0xff] %v10389_v39 }
 0x37a   :  { %13079 = vst [vmem:[#allocation91_spill] sm:$0xff] %v10391_v48 }
 0x37c   :  { %v1911_v7 = vpop.f32.mrf.mxu2  ;;  %v1576_v13 = vpop.f32.mrf.mxu0 }
 0x37d   :  { %v3130_v60 = vmax.f32 %v1911_v7, 0.0  ;;  %v2080_v6 = vpop.f32.mrf.mxu3  ;;  %v1745_v52 = vpop.f32.mrf.mxu1  ;;  %v3136_v12 = vmax.f32 %v1576_v13, 0.0  ;;  %v9814_v13 = vld [vmem:[#allocation5 + $0xa0] sm:$0xff] }
 0x37e   :  { %v3131_v35 = vmax.f32 %v2080_v6, 0.0  ;;  %v3137_v30 = vmax.f32 %v1745_v52, 0.0 }
 0x37f   :  { %v10393_v5 = vpack.c.bf16 %v3130_v60, %v3122_v22  ;;  %1615 = vmatmul.bf16.gmra.mxu0 %v9813_v59 }
 0x380   :  { %v10395_v34 = vpack.c.bf16 %v3131_v35, %v3123_v20  ;;  %1784 = vmatmul.bf16.gmra.mxu1 %v9813_v59 }
 0x381   :  { %13080 = vst [vmem:[#allocation92_spill] sm:$0xff] %v10393_v5  ;;  %1953 = vmatmul.bf16.gmra.mxu2 %v9813_v59 }
 0x382   :  { %13081 = vst [vmem:[#allocation93_spill] sm:$0xff] %v10395_v34  ;;  %2122 = vmatmul.bf16.gmra.mxu3 %v9813_v59 }
 0x384   :  { %v1914_v10 = vpop.f32.mrf.mxu2  ;;  %v1578_v44 = vpop.f32.mrf.mxu0 }
 0x385   :  { %v2083_v63 = vpop.f32.mrf.mxu3  ;;  %v3144_v16 = vmax.f32 %v1578_v44, 0.0  ;;  %v1747_v54 = vpop.f32.mrf.mxu1  ;;  %v3138_v20 = vmax.f32 %v1914_v10, 0.0 }
 0x386   :  { %v3145_v19 = vmax.f32 %v1747_v54, 0.0  ;;  %v3139_v34 = vmax.f32 %v2083_v63, 0.0 }
 0x387   :  { %v10397_v53 = vpack.c.bf16 %v3144_v16, %v3136_v12 }
 0x388   :  { %v10399_v7 = vpack.c.bf16 %v3145_v19, %v3137_v30 }
 0x389   :  { %13082 = vst [vmem:[#allocation94_spill] sm:$0xff] %v10397_v53 }
 0x38a   :  { %13083 = vst [vmem:[#allocation95_spill] sm:$0xff] %v10399_v7 }
 0x38c   :  { %v1916_v22 = vpop.f32.mrf.mxu2  ;;  %v1581_v6 = vpop.f32.mrf.mxu0 }
 0x38d   :  { %v3146_v35 = vmax.f32 %v1916_v22, 0.0  ;;  %v2085_v60 = vpop.f32.mrf.mxu3  ;;  %v1750_v59 = vpop.f32.mrf.mxu1  ;;  %v3152_v16 = vmax.f32 %v1581_v6, 0.0  ;;  %v9815_v6 = vld [vmem:[#allocation5 + $0xa8] sm:$0xff] }
 0x38e   :  { %v3147_v5 = vmax.f32 %v2085_v60, 0.0  ;;  %v3153_v30 = vmax.f32 %v1750_v59, 0.0 }
 0x38f   :  { %v10401_v48 = vpack.c.bf16 %v3146_v35, %v3138_v20  ;;  %1620 = vmatmul.bf16.gmra.mxu0 %v9814_v13 }
 0x390   :  { %v10403_v24 = vpack.c.bf16 %v3147_v5, %v3139_v34  ;;  %1789 = vmatmul.bf16.gmra.mxu1 %v9814_v13 }
 0x391   :  { %13084 = vst [vmem:[#allocation96_spill] sm:$0xff] %v10401_v48  ;;  %1958 = vmatmul.bf16.gmra.mxu2 %v9814_v13 }
 0x392   :  { %13085 = vst [vmem:[#allocation97_spill] sm:$0xff] %v10403_v24  ;;  %2127 = vmatmul.bf16.gmra.mxu3 %v9814_v13 }
 0x394   :  { %v1919_v52 = vpop.f32.mrf.mxu2  ;;  %v1583_v12 = vpop.f32.mrf.mxu0 }
 0x395   :  { %v2088_v44 = vpop.f32.mrf.mxu3  ;;  %v3160_v10 = vmax.f32 %v1583_v12, 0.0  ;;  %v1752_v54 = vpop.f32.mrf.mxu1  ;;  %v3154_v34 = vmax.f32 %v1919_v52, 0.0 }
 0x396   :  { %v3161_v19 = vmax.f32 %v1752_v54, 0.0  ;;  %v3155_v24 = vmax.f32 %v2088_v44, 0.0 }
 0x397   :  { %v10405_v63 = vpack.c.bf16 %v3160_v10, %v3152_v16 }
 0x398   :  { %v10407_v22 = vpack.c.bf16 %v3161_v19, %v3153_v30 }
 0x399   :  { %13086 = vst [vmem:[#allocation98_spill] sm:$0xff] %v10405_v63 }
 0x39a   :  { %13087 = vst [vmem:[#allocation99_spill] sm:$0xff] %v10407_v22 }
 0x39c   :  { %v1921_v20 = vpop.f32.mrf.mxu2  ;;  %v1586_v60 = vpop.f32.mrf.mxu0 }
 0x39d   :  { %v3162_v5 = vmax.f32 %v1921_v20, 0.0  ;;  %v2090_v35 = vpop.f32.mrf.mxu3  ;;  %v1755_v13 = vpop.f32.mrf.mxu1  ;;  %v3168_v10 = vmax.f32 %v1586_v60, 0.0  ;;  %v9816_v60 = vld [vmem:[#allocation5 + $0xb0] sm:$0xff] }
 0x39e   :  { %v3163_v48 = vmax.f32 %v2090_v35, 0.0  ;;  %v3169_v30 = vmax.f32 %v1755_v13, 0.0 }
 0x39f   :  { %v10409_v7 = vpack.c.bf16 %v3162_v5, %v3154_v34  ;;  %1625 = vmatmul.bf16.gmra.mxu0 %v9815_v6 }
 0x3a0   :  { %v10411_v61 = vpack.c.bf16 %v3163_v48, %v3155_v24  ;;  %1794 = vmatmul.bf16.gmra.mxu1 %v9815_v6 }
 0x3a1   :  { %13088 = vst [vmem:[#allocation100_spill] sm:$0xff] %v10409_v7  ;;  %1963 = vmatmul.bf16.gmra.mxu2 %v9815_v6 }
 0x3a2   :  { %13089 = vst [vmem:[#allocation101_spill] sm:$0xff] %v10411_v61  ;;  %2132 = vmatmul.bf16.gmra.mxu3 %v9815_v6 }
 0x3a4   :  { %v1924_v59 = vpop.f32.mrf.mxu2  ;;  %v1588_v16 = vpop.f32.mrf.mxu0 }
 0x3a5   :  { %v2093_v12 = vpop.f32.mrf.mxu3  ;;  %v3176_v52 = vmax.f32 %v1588_v16, 0.0  ;;  %v1757_v54 = vpop.f32.mrf.mxu1  ;;  %v3170_v24 = vmax.f32 %v1924_v59, 0.0 }
 0x3a6   :  { %v3177_v19 = vmax.f32 %v1757_v54, 0.0  ;;  %v3171_v61 = vmax.f32 %v2093_v12, 0.0 }
 0x3a7   :  { %v10413_v44 = vpack.c.bf16 %v3176_v52, %v3168_v10 }
 0x3a8   :  { %v10415_v20 = vpack.c.bf16 %v3177_v19, %v3169_v30 }
 0x3a9   :  { %13090 = vst [vmem:[#allocation102_spill] sm:$0xff] %v10413_v44 }
 0x3aa   :  { %13091 = vst [vmem:[#allocation103_spill] sm:$0xff] %v10415_v20 }
 0x3ac   :  { %v1926_v34 = vpop.f32.mrf.mxu2  ;;  %v1591_v35 = vpop.f32.mrf.mxu0 }
 0x3ad   :  { %v3178_v48 = vmax.f32 %v1926_v34, 0.0  ;;  %v2095_v5 = vpop.f32.mrf.mxu3  ;;  %v1760_v6 = vpop.f32.mrf.mxu1  ;;  %v3184_v52 = vmax.f32 %v1591_v35, 0.0  ;;  %v9817_v35 = vld [vmem:[#allocation5 + $0xb8] sm:$0xff] }
 0x3ae   :  { %v3179_v7 = vmax.f32 %v2095_v5, 0.0  ;;  %v3185_v30 = vmax.f32 %v1760_v6, 0.0 }
 0x3af   :  { %v10417_v22 = vpack.c.bf16 %v3178_v48, %v3170_v24  ;;  %1630 = vmatmul.bf16.gmra.mxu0 %v9816_v60 }
 0x3b0   :  { %v10419_v56 = vpack.c.bf16 %v3179_v7, %v3171_v61  ;;  %1799 = vmatmul.bf16.gmra.mxu1 %v9816_v60 }
 0x3b1   :  { %13092 = vst [vmem:[#allocation104_spill] sm:$0xff] %v10417_v22  ;;  %1968 = vmatmul.bf16.gmra.mxu2 %v9816_v60 }
 0x3b2   :  { %13093 = vst [vmem:[#allocation105_spill] sm:$0xff] %v10419_v56  ;;  %2137 = vmatmul.bf16.gmra.mxu3 %v9816_v60 }
 0x3b4   :  { %v1929_v13 = vpop.f32.mrf.mxu2  ;;  %v1593_v10 = vpop.f32.mrf.mxu0 }
 0x3b5   :  { %v2098_v16 = vpop.f32.mrf.mxu3  ;;  %v3192_v59 = vmax.f32 %v1593_v10, 0.0  ;;  %v1762_v54 = vpop.f32.mrf.mxu1  ;;  %v3186_v61 = vmax.f32 %v1929_v13, 0.0 }
 0x3b6   :  { %v3193_v19 = vmax.f32 %v1762_v54, 0.0  ;;  %v3187_v56 = vmax.f32 %v2098_v16, 0.0 }
 0x3b7   :  { %v10421_v12 = vpack.c.bf16 %v3192_v59, %v3184_v52 }
 0x3b8   :  { %v10423_v34 = vpack.c.bf16 %v3193_v19, %v3185_v30 }
 0x3b9   :  { %13094 = vst [vmem:[#allocation106_spill] sm:$0xff] %v10421_v12 }
 0x3ba   :  { %13095 = vst [vmem:[#allocation107_spill] sm:$0xff] %v10423_v34 }
 0x3bc   :  { %v1931_v24 = vpop.f32.mrf.mxu2  ;;  %v1596_v5 = vpop.f32.mrf.mxu0 }
 0x3bd   :  { %v3194_v7 = vmax.f32 %v1931_v24, 0.0  ;;  %v2100_v48 = vpop.f32.mrf.mxu3  ;;  %v1765_v60 = vpop.f32.mrf.mxu1  ;;  %v3200_v59 = vmax.f32 %v1596_v5, 0.0  ;;  %v9818_v5 = vld [vmem:[#allocation5 + $0xc0] sm:$0xff] }
 0x3be   :  { %v3195_v22 = vmax.f32 %v2100_v48, 0.0  ;;  %v3201_v30 = vmax.f32 %v1765_v60, 0.0 }
 0x3bf   :  { %v10425_v20 = vpack.c.bf16 %v3194_v7, %v3186_v61  ;;  %1635 = vmatmul.bf16.gmra.mxu0 %v9817_v35 }
 0x3c0   :  { %v10427_v43 = vpack.c.bf16 %v3195_v22, %v3187_v56  ;;  %1804 = vmatmul.bf16.gmra.mxu1 %v9817_v35 }
 0x3c1   :  { %13096 = vst [vmem:[#allocation108_spill] sm:$0xff] %v10425_v20  ;;  %1973 = vmatmul.bf16.gmra.mxu2 %v9817_v35 }
 0x3c2   :  { %13097 = vst [vmem:[#allocation109_spill] sm:$0xff] %v10427_v43  ;;  %2142 = vmatmul.bf16.gmra.mxu3 %v9817_v35 }
 0x3c4   :  { %v1934_v6 = vpop.f32.mrf.mxu2  ;;  %v1598_v52 = vpop.f32.mrf.mxu0 }
 0x3c5   :  { %v2103_v10 = vpop.f32.mrf.mxu3  ;;  %v3208_v13 = vmax.f32 %v1598_v52, 0.0  ;;  %v1767_v54 = vpop.f32.mrf.mxu1  ;;  %v3202_v56 = vmax.f32 %v1934_v6, 0.0 }
 0x3c6   :  { %v3209_v19 = vmax.f32 %v1767_v54, 0.0  ;;  %v3203_v43 = vmax.f32 %v2103_v10, 0.0 }
 0x3c7   :  { %v10429_v16 = vpack.c.bf16 %v3208_v13, %v3200_v59 }
 0x3c8   :  { %v10431_v24 = vpack.c.bf16 %v3209_v19, %v3201_v30 }
 0x3c9   :  { %13098 = vst [vmem:[#allocation110_spill] sm:$0xff] %v10429_v16 }
 0x3ca   :  { %13099 = vst [vmem:[#allocation111_spill] sm:$0xff] %v10431_v24 }
 0x3cc   :  { %v1936_v61 = vpop.f32.mrf.mxu2  ;;  %v1601_v48 = vpop.f32.mrf.mxu0 }
 0x3cd   :  { %v3210_v22 = vmax.f32 %v1936_v61, 0.0  ;;  %v2105_v7 = vpop.f32.mrf.mxu3  ;;  %v1770_v35 = vpop.f32.mrf.mxu1  ;;  %v3216_v13 = vmax.f32 %v1601_v48, 0.0  ;;  %v9819_v48 = vld [vmem:[#allocation5 + $0xc8] sm:$0xff] }
 0x3ce   :  { %v3211_v20 = vmax.f32 %v2105_v7, 0.0  ;;  %v3217_v30 = vmax.f32 %v1770_v35, 0.0 }
 0x3cf   :  { %v10433_v34 = vpack.c.bf16 %v3210_v22, %v3202_v56  ;;  %1640 = vmatmul.bf16.gmra.mxu0 %v9818_v5 }
 0x3d0   :  { %v10435_v27 = vpack.c.bf16 %v3211_v20, %v3203_v43  ;;  %1809 = vmatmul.bf16.gmra.mxu1 %v9818_v5 }
 0x3d1   :  { %13100 = vst [vmem:[#allocation112_spill] sm:$0xff] %v10433_v34  ;;  %1978 = vmatmul.bf16.gmra.mxu2 %v9818_v5 }
 0x3d2   :  { %13101 = vst [vmem:[#allocation113_spill] sm:$0xff] %v10435_v27  ;;  %2147 = vmatmul.bf16.gmra.mxu3 %v9818_v5 }
 0x3d4   :  { %v1939_v60 = vpop.f32.mrf.mxu2  ;;  %v1603_v59 = vpop.f32.mrf.mxu0 }
 0x3d5   :  { %v2108_v52 = vpop.f32.mrf.mxu3  ;;  %v3224_v6 = vmax.f32 %v1603_v59, 0.0  ;;  %v1772_v54 = vpop.f32.mrf.mxu1  ;;  %v3218_v43 = vmax.f32 %v1939_v60, 0.0 }
 0x3d6   :  { %v3225_v19 = vmax.f32 %v1772_v54, 0.0  ;;  %v3219_v27 = vmax.f32 %v2108_v52, 0.0 }
 0x3d7   :  { %v10437_v10 = vpack.c.bf16 %v3224_v6, %v3216_v13 }
 0x3d8   :  { %v10439_v61 = vpack.c.bf16 %v3225_v19, %v3217_v30 }
 0x3d9   :  { %13102 = vst [vmem:[#allocation114_spill] sm:$0xff] %v10437_v10 }
 0x3da   :  { %13103 = vst [vmem:[#allocation115_spill] sm:$0xff] %v10439_v61 }
 0x3dc   :  { %v1941_v56 = vpop.f32.mrf.mxu2  ;;  %v1606_v7 = vpop.f32.mrf.mxu0 }
 0x3dd   :  { %v3226_v20 = vmax.f32 %v1941_v56, 0.0  ;;  %v2110_v22 = vpop.f32.mrf.mxu3  ;;  %v1775_v5 = vpop.f32.mrf.mxu1  ;;  %v3232_v6 = vmax.f32 %v1606_v7, 0.0  ;;  %v9820_v7 = vld [vmem:[#allocation5 + $0xd0] sm:$0xff] }
 0x3de   :  { %v3227_v34 = vmax.f32 %v2110_v22, 0.0  ;;  %v3233_v30 = vmax.f32 %v1775_v5, 0.0 }
 0x3df   :  { %v10441_v24 = vpack.c.bf16 %v3226_v20, %v3218_v43  ;;  %1645 = vmatmul.bf16.gmra.mxu0 %v9819_v48 }
 0x3e0   :  { %v10443_v40 = vpack.c.bf16 %v3227_v34, %v3219_v27  ;;  %1814 = vmatmul.bf16.gmra.mxu1 %v9819_v48 }
 0x3e1   :  { %13104 = vst [vmem:[#allocation116_spill] sm:$0xff] %v10441_v24  ;;  %1983 = vmatmul.bf16.gmra.mxu2 %v9819_v48 }
 0x3e2   :  { %13105 = vst [vmem:[#allocation117_spill] sm:$0xff] %v10443_v40  ;;  %2152 = vmatmul.bf16.gmra.mxu3 %v9819_v48 }
 0x3e4   :  { %v1944_v35 = vpop.f32.mrf.mxu2  ;;  %v1608_v13 = vpop.f32.mrf.mxu0 }
 0x3e5   :  { %v2113_v59 = vpop.f32.mrf.mxu3  ;;  %v3240_v60 = vmax.f32 %v1608_v13, 0.0  ;;  %v1777_v54 = vpop.f32.mrf.mxu1  ;;  %v3234_v27 = vmax.f32 %v1944_v35, 0.0 }
 0x3e6   :  { %v3241_v19 = vmax.f32 %v1777_v54, 0.0  ;;  %v3235_v40 = vmax.f32 %v2113_v59, 0.0 }
 0x3e7   :  { %v10445_v52 = vpack.c.bf16 %v3240_v60, %v3232_v6 }
 0x3e8   :  { %v10447_v56 = vpack.c.bf16 %v3241_v19, %v3233_v30 }
 0x3e9   :  { %13106 = vst [vmem:[#allocation118_spill] sm:$0xff] %v10445_v52 }
 0x3ea   :  { %13107 = vst [vmem:[#allocation119_spill] sm:$0xff] %v10447_v56 }
 0x3ec   :  { %v1946_v43 = vpop.f32.mrf.mxu2  ;;  %v1611_v22 = vpop.f32.mrf.mxu0 }
 0x3ed   :  { %v3242_v34 = vmax.f32 %v1946_v43, 0.0  ;;  %v2115_v20 = vpop.f32.mrf.mxu3  ;;  %v1780_v48 = vpop.f32.mrf.mxu1  ;;  %v3248_v60 = vmax.f32 %v1611_v22, 0.0  ;;  %v9821_v22 = vld [vmem:[#allocation5 + $0xd8] sm:$0xff] }
 0x3ee   :  { %v3243_v24 = vmax.f32 %v2115_v20, 0.0  ;;  %v3249_v30 = vmax.f32 %v1780_v48, 0.0 }
 0x3ef   :  { %v10449_v61 = vpack.c.bf16 %v3242_v34, %v3234_v27  ;;  %1650 = vmatmul.bf16.gmra.mxu0 %v9820_v7 }
 0x3f0   :  { %v10451_v10 = vpack.c.bf16 %v3243_v24, %v3235_v40  ;;  %1819 = vmatmul.bf16.gmra.mxu1 %v9820_v7 }
 0x3f1   :  { %13108 = vst [vmem:[#allocation120_spill] sm:$0xff] %v10449_v61  ;;  %1988 = vmatmul.bf16.gmra.mxu2 %v9820_v7 }
 0x3f2   :  { %13109 = vst [vmem:[#allocation121_spill] sm:$0xff] %v10451_v10  ;;  %2157 = vmatmul.bf16.gmra.mxu3 %v9820_v7 }
 0x3f4   :  { %v1949_v5 = vpop.f32.mrf.mxu2  ;;  %v1613_v6 = vpop.f32.mrf.mxu0 }
 0x3f5   :  { %v2118_v13 = vpop.f32.mrf.mxu3  ;;  %v3256_v35 = vmax.f32 %v1613_v6, 0.0  ;;  %v1782_v54 = vpop.f32.mrf.mxu1  ;;  %v3250_v40 = vmax.f32 %v1949_v5, 0.0 }
 0x3f6   :  { %v3257_v19 = vmax.f32 %v1782_v54, 0.0  ;;  %v3251_v10 = vmax.f32 %v2118_v13, 0.0 }
 0x3f7   :  { %v10453_v59 = vpack.c.bf16 %v3256_v35, %v3248_v60 }
 0x3f8   :  { %v10455_v43 = vpack.c.bf16 %v3257_v19, %v3249_v30 }
 0x3f9   :  { %13110 = vst [vmem:[#allocation122_spill] sm:$0xff] %v10453_v59 }
 0x3fa   :  { %13111 = vst [vmem:[#allocation123_spill] sm:$0xff] %v10455_v43 }
 0x3fc   :  { %v1951_v27 = vpop.f32.mrf.mxu2  ;;  %v1616_v20 = vpop.f32.mrf.mxu0 }
 0x3fd   :  { %v3258_v24 = vmax.f32 %v1951_v27, 0.0  ;;  %v2120_v34 = vpop.f32.mrf.mxu3  ;;  %v1785_v7 = vpop.f32.mrf.mxu1  ;;  %v3264_v35 = vmax.f32 %v1616_v20, 0.0  ;;  %v9822_v20 = vld [vmem:[#allocation5 + $0xe0] sm:$0xff] }
 0x3fe   :  { %v3259_v61 = vmax.f32 %v2120_v34, 0.0  ;;  %v3265_v30 = vmax.f32 %v1785_v7, 0.0 }
 0x3ff   :  { %v10457_v56 = vpack.c.bf16 %v3258_v24, %v3250_v40  ;;  %1655 = vmatmul.bf16.gmra.mxu0 %v9821_v22 }
 0x400   :  { %v10459_v14 = vpack.c.bf16 %v3259_v61, %v3251_v10  ;;  %1824 = vmatmul.bf16.gmra.mxu1 %v9821_v22 }
 0x401   :  { %13112 = vst [vmem:[#allocation124_spill] sm:$0xff] %v10457_v56  ;;  %1993 = vmatmul.bf16.gmra.mxu2 %v9821_v22 }
 0x402   :  { %13113 = vst [vmem:[#allocation125_spill] sm:$0xff] %v10459_v14  ;;  %2162 = vmatmul.bf16.gmra.mxu3 %v9821_v22 }
 0x404   :  { %v1954_v48 = vpop.f32.mrf.mxu2  ;;  %v1618_v60 = vpop.f32.mrf.mxu0 }
 0x405   :  { %v2123_v6 = vpop.f32.mrf.mxu3  ;;  %v3272_v5 = vmax.f32 %v1618_v60, 0.0  ;;  %v1787_v54 = vpop.f32.mrf.mxu1  ;;  %v3266_v10 = vmax.f32 %v1954_v48, 0.0 }
 0x406   :  { %v3273_v19 = vmax.f32 %v1787_v54, 0.0  ;;  %v3267_v14 = vmax.f32 %v2123_v6, 0.0 }
 0x407   :  { %v10461_v13 = vpack.c.bf16 %v3272_v5, %v3264_v35 }
 0x408   :  { %v10463_v27 = vpack.c.bf16 %v3273_v19, %v3265_v30 }
 0x409   :  { %13114 = vst [vmem:[#allocation126_spill] sm:$0xff] %v10461_v13 }
 0x40a   :  { %13115 = vst [vmem:[#allocation127_spill] sm:$0xff] %v10463_v27 }
 0x40c   :  { %v1956_v40 = vpop.f32.mrf.mxu2  ;;  %v1621_v34 = vpop.f32.mrf.mxu0 }
 0x40d   :  { %v3274_v61 = vmax.f32 %v1956_v40, 0.0  ;;  %v2125_v24 = vpop.f32.mrf.mxu3  ;;  %v1790_v22 = vpop.f32.mrf.mxu1  ;;  %v3280_v5 = vmax.f32 %v1621_v34, 0.0  ;;  %v9823_v34 = vld [vmem:[#allocation5 + $0xe8] sm:$0xff] }
 0x40e   :  { %v3275_v56 = vmax.f32 %v2125_v24, 0.0  ;;  %v3281_v30 = vmax.f32 %v1790_v22, 0.0 }
 0x40f   :  { %v10465_v43 = vpack.c.bf16 %v3274_v61, %v3266_v10  ;;  %1660 = vmatmul.bf16.gmra.mxu0 %v9822_v20 }
 0x410   :  { %v10467_v11 = vpack.c.bf16 %v3275_v56, %v3267_v14  ;;  %1829 = vmatmul.bf16.gmra.mxu1 %v9822_v20 }
 0x411   :  { %13116 = vst [vmem:[#allocation128_spill] sm:$0xff] %v10465_v43  ;;  %1998 = vmatmul.bf16.gmra.mxu2 %v9822_v20 }
 0x412   :  { %13117 = vst [vmem:[#allocation129_spill] sm:$0xff] %v10467_v11  ;;  %2167 = vmatmul.bf16.gmra.mxu3 %v9822_v20 }
 0x414   :  { %v1959_v7 = vpop.f32.mrf.mxu2  ;;  %v1623_v35 = vpop.f32.mrf.mxu0 }
 0x415   :  { %v2128_v60 = vpop.f32.mrf.mxu3  ;;  %v3288_v48 = vmax.f32 %v1623_v35, 0.0  ;;  %v1792_v54 = vpop.f32.mrf.mxu1  ;;  %v3282_v14 = vmax.f32 %v1959_v7, 0.0 }
 0x416   :  { %v3289_v19 = vmax.f32 %v1792_v54, 0.0  ;;  %v3283_v11 = vmax.f32 %v2128_v60, 0.0 }
 0x417   :  { %v10469_v6 = vpack.c.bf16 %v3288_v48, %v3280_v5 }
 0x418   :  { %v10471_v40 = vpack.c.bf16 %v3289_v19, %v3281_v30 }
 0x419   :  { %13118 = vst [vmem:[#allocation130_spill] sm:$0xff] %v10469_v6 }
 0x41a   :  { %13119 = vst [vmem:[#allocation131_spill] sm:$0xff] %v10471_v40 }
 0x41c   :  { %v1961_v10 = vpop.f32.mrf.mxu2  ;;  %v1626_v24 = vpop.f32.mrf.mxu0 }
 0x41d   :  { %v3290_v56 = vmax.f32 %v1961_v10, 0.0  ;;  %v2130_v61 = vpop.f32.mrf.mxu3  ;;  %v1795_v20 = vpop.f32.mrf.mxu1  ;;  %v3296_v48 = vmax.f32 %v1626_v24, 0.0  ;;  %v9824_v24 = vld [vmem:[#allocation5 + $0xf0] sm:$0xff] }
 0x41e   :  { %v3291_v43 = vmax.f32 %v2130_v61, 0.0  ;;  %v3297_v30 = vmax.f32 %v1795_v20, 0.0 }
 0x41f   :  { %v10473_v27 = vpack.c.bf16 %v3290_v56, %v3282_v14  ;;  %1665 = vmatmul.bf16.gmra.mxu0 %v9823_v34 }
 0x420   :  { %v10475_v52 = vpack.c.bf16 %v3291_v43, %v3283_v11  ;;  %1834 = vmatmul.bf16.gmra.mxu1 %v9823_v34 }
 0x421   :  { %13120 = vst [vmem:[#allocation132_spill] sm:$0xff] %v10473_v27  ;;  %2003 = vmatmul.bf16.gmra.mxu2 %v9823_v34 }
 0x422   :  { %13121 = vst [vmem:[#allocation133_spill] sm:$0xff] %v10475_v52  ;;  %2172 = vmatmul.bf16.gmra.mxu3 %v9823_v34 }
 0x424   :  { %v1964_v22 = vpop.f32.mrf.mxu2  ;;  %v1628_v5 = vpop.f32.mrf.mxu0 }
 0x425   :  { %v2133_v35 = vpop.f32.mrf.mxu3  ;;  %v3304_v7 = vmax.f32 %v1628_v5, 0.0  ;;  %v1797_v54 = vpop.f32.mrf.mxu1  ;;  %v3298_v11 = vmax.f32 %v1964_v22, 0.0 }
 0x426   :  { %v3305_v19 = vmax.f32 %v1797_v54, 0.0  ;;  %v3299_v52 = vmax.f32 %v2133_v35, 0.0 }
 0x427   :  { %v10477_v60 = vpack.c.bf16 %v3304_v7, %v3296_v48 }
 0x428   :  { %v10479_v10 = vpack.c.bf16 %v3305_v19, %v3297_v30 }
 0x429   :  { %13122 = vst [vmem:[#allocation134_spill] sm:$0xff] %v10477_v60 }
 0x42a   :  { %13123 = vst [vmem:[#allocation135_spill] sm:$0xff] %v10479_v10 }
 0x42c   :  { %v1966_v14 = vpop.f32.mrf.mxu2  ;;  %v1631_v61 = vpop.f32.mrf.mxu0 }
 0x42d   :  { %v3306_v43 = vmax.f32 %v1966_v14, 0.0  ;;  %v2135_v56 = vpop.f32.mrf.mxu3  ;;  %v1800_v34 = vpop.f32.mrf.mxu1  ;;  %v3312_v7 = vmax.f32 %v1631_v61, 0.0  ;;  %v9825_v61 = vld [vmem:[#allocation5 + $0xf8] sm:$0xff] }
 0x42e   :  { %v3307_v27 = vmax.f32 %v2135_v56, 0.0  ;;  %v3313_v30 = vmax.f32 %v1800_v34, 0.0 }
 0x42f   :  { %v10481_v40 = vpack.c.bf16 %v3306_v43, %v3298_v11  ;;  %1670 = vmatmul.bf16.gmra.mxu0 %v9824_v24 }
 0x430   :  { %v10483_v45 = vpack.c.bf16 %v3307_v27, %v3299_v52  ;;  %1839 = vmatmul.bf16.gmra.mxu1 %v9824_v24 }
 0x431   :  { %13124 = vst [vmem:[#allocation136_spill] sm:$0xff] %v10481_v40  ;;  %2008 = vmatmul.bf16.gmra.mxu2 %v9824_v24 }
 0x432   :  { %13125 = vst [vmem:[#allocation137_spill] sm:$0xff] %v10483_v45  ;;  %2177 = vmatmul.bf16.gmra.mxu3 %v9824_v24 }
 0x434   :  { %v1969_v20 = vpop.f32.mrf.mxu2  ;;  %v1633_v48 = vpop.f32.mrf.mxu0 }
 0x435   :  { %v2138_v5 = vpop.f32.mrf.mxu3  ;;  %v3320_v22 = vmax.f32 %v1633_v48, 0.0  ;;  %v1802_v54 = vpop.f32.mrf.mxu1  ;;  %v3314_v52 = vmax.f32 %v1969_v20, 0.0 }
 0x436   :  { %v3321_v19 = vmax.f32 %v1802_v54, 0.0  ;;  %v3315_v45 = vmax.f32 %v2138_v5, 0.0 }
 0x437   :  { %v10485_v35 = vpack.c.bf16 %v3320_v22, %v3312_v7 }
 0x438   :  { %v10487_v14 = vpack.c.bf16 %v3321_v19, %v3313_v30 }
 0x439   :  { %13126 = vst [vmem:[#allocation138_spill] sm:$0xff] %v10485_v35 }
 0x43a   :  { %13127 = vst [vmem:[#allocation139_spill] sm:$0xff] %v10487_v14 }
 0x43c   :  { %v1971_v11 = vpop.f32.mrf.mxu2  ;;  %v1636_v56 = vpop.f32.mrf.mxu0 }
 0x43d   :  { %v3322_v27 = vmax.f32 %v1971_v11, 0.0  ;;  %v2140_v43 = vpop.f32.mrf.mxu3  ;;  %v1805_v24 = vpop.f32.mrf.mxu1  ;;  %v3328_v22 = vmax.f32 %v1636_v56, 0.0 }
 0x43e   :  { %v3323_v40 = vmax.f32 %v2140_v43, 0.0  ;;  %v3329_v30 = vmax.f32 %v1805_v24, 0.0  ;;  %v9375_v43 = vld [vmem:[#allocation7 + $0x8] sm:$0xf] }
 0x43f   :  { %v10489_v10 = vpack.c.bf16 %v3322_v27, %v3314_v52  ;;  %1675 = vmatmul.bf16.gmra.mxu0 %v9825_v61  ;;  %v9367_v52 = vld [vmem:[#allocation7] sm:$0xf]  ;;  %v9369_v27 = vld [vmem:[#allocation7 + $0x10] sm:$0xf0] }
 0x440   :  { %v10491_v21 = vpack.c.bf16 %v3323_v40, %v3315_v45  ;;  %1844 = vmatmul.bf16.gmra.mxu1 %v9825_v61  ;;  %v9719_v45 = vld [vmem:[#allocation7 + $0xc] sm:$0xf0]  ;;  %v9717_v40 = vld [vmem:[#allocation7 + $0x4] sm:$0xf] }
 0x441   :  { %13128 = vst [vmem:[#allocation140_spill] sm:$0xff] %v10489_v10  ;;  %2013 = vmatmul.bf16.gmra.mxu2 %v9825_v61  ;;  %v9718_v10 = vld [vmem:[#allocation7 + $0xc] sm:$0xf]  ;;  %v10497_v59 = vor.u32 %v9719_v45, %v9367_v52  ;;  %v10499_v24 = vor.u32 %v9717_v40, %v9369_v27  ;;  %v9723_v45 = vld [vmem:[#allocation7 + $0x2c] sm:$0xf0] }
 0x442   :  { %13129 = vst [vmem:[#allocation141_spill] sm:$0xff] %v10491_v21  ;;  %2182 = vmatmul.bf16.gmra.mxu3 %v9825_v61  ;;  %v9720_v21 = vld [vmem:[#allocation7 + $0x14] sm:$0xf0]  ;;  %v9377_v61 = vld [vmem:[#allocation7 + $0x18] sm:$0xf0] }
 0x443   :  { %13132 = vst [vmem:[#allocation144_spill] sm:$0xff] %v10499_v24  ;;  %v9721_v40 = vld [vmem:[#allocation7 + $0x24] sm:$0xf]  ;;  %v9391_v27 = vld [vmem:[#allocation7 + $0x28] sm:$0xf] }
 0x444   :  { %v1974_v34 = vpop.f32.mrf.mxu2  ;;  %v1638_v7 = vpop.f32.mrf.mxu0 }
 0x445   :  { %v2143_v48 = vpop.f32.mrf.mxu3  ;;  %v3336_v20 = vmax.f32 %v1638_v7, 0.0  ;;  %v1807_v54 = vpop.f32.mrf.mxu1  ;;  %v3330_v56 = vmax.f32 %v1974_v34, 0.0 }
 0x446   :  { %v3337_v19 = vmax.f32 %v1807_v54, 0.0  ;;  %v3331_v54 = vmax.f32 %v2143_v48, 0.0 }
 0x447   :  { %v10493_v5 = vpack.c.bf16 %v3336_v20, %v3328_v22  ;;  %v10501_v22 = vor.u32 %v9720_v21, %v9375_v43  ;;  %v9724_v43 = vld [vmem:[#allocation7 + $0x34] sm:$0xf0] }
 0x448   :  { %v10495_v11 = vpack.c.bf16 %v3337_v19, %v3329_v30  ;;  %v10503_v19 = vor.u32 %v9718_v10, %v9377_v61 }
 0x449   :  { %13130 = vst [vmem:[#allocation142_spill] sm:$0xff] %v10493_v5 }
 0x44a   :  { %13131 = vst [vmem:[#allocation143_spill] sm:$0xff] %v10495_v11 }
 0x44b   :  { %13133 = vst [vmem:[#allocation145_spill] sm:$0xff] %v10501_v22 }
 0x44c   :  { %v1976_v14 = vpop.f32.mrf.mxu2  ;;  %v1641_v20 = vpop.f32.mrf.mxu0  ;;  %13134 = vst [vmem:[#allocation146_spill] sm:$0xff] %v10503_v19 }
 0x44d   :  { %v3338_v7 = vmax.f32 %v1976_v14, 0.0  ;;  %v2145_v39 = vpop.f32.mrf.mxu3  ;;  %v1810_v11 = vpop.f32.mrf.mxu1  ;;  %v3344_v14 = vmax.f32 %v1641_v20, 0.0 }
 0x44e   :  { %v3339_v30 = vmax.f32 %v2145_v39, 0.0  ;;  %v3345_v52 = vmax.f32 %v1810_v11, 0.0 }
 0x44f   :  { %v10505_v42 = vpack.c.bf16 %v3338_v7, %v3330_v56  ;;  %4116 = vmatmul.bf16.vlgmr.msra.gmra.mxu0 %v10497_v59 }
 0x450   :  { %v10507_v13 = vpack.c.bf16 %v3339_v30, %v3331_v54  ;;  %4205 = vmatmul.bf16.vlgmr.msra.gmra.mxu1 %v10499_v24  ;;  %4820 = vmatpush.bf16.msra.mxu0 %v10039_v9 }
 0x451   :  { %13135 = vst [vmem:[#allocation147_spill] sm:$0xff] %v10505_v42  ;;  %4294 = vmatmul.bf16.vlgmr.msra.gmra.mxu2 %v10501_v22  ;;  %4909 = vmatpush.bf16.msra.mxu1 %v10111_v51 }
 0x452   :  { %13136 = vst [vmem:[#allocation148_spill] sm:$0xff] %v10507_v13  ;;  %4383 = vmatmul.bf16.vlgmr.msra.gmra.mxu3 %v10503_v19  ;;  %4998 = vmatpush.bf16.msra.mxu2 %v10187_v26 }
 0x453   :  { %5087 = vmatpush.bf16.msra.mxu3 %v10289_v18  ;;  %v9383_v18 = vld [vmem:[#allocation7 + $0x20] sm:$0xf] }
 0x454   :  { %v1979_v21 = vpop.f32.mrf.mxu2  ;;  %v1643_v10 = vpop.f32.mrf.mxu0  ;;  %4821 = vmatpush.bf16.msra.mxu0 %v10031_v31  ;;  %v9385_v31 = vld [vmem:[#allocation7 + $0x30] sm:$0xf0]  ;;  %v10529_v11 = vor.u32 %v9723_v45, %v9383_v18 }
 0x455   :  { %v2148_v39 = vpop.f32.mrf.mxu3  ;;  %v3352_v34 = vmax.f32 %v1643_v10, 0.0  ;;  %v1812_v48 = vpop.f32.mrf.mxu1  ;;  %4910 = vmatpush.bf16.msra.mxu1 %v10103_v49  ;;  %v9722_v49 = vld [vmem:[#allocation7 + $0x2c] sm:$0xf]  ;;  %v3346_v61 = vmax.f32 %v1979_v21, 0.0  ;;  %v10531_v20 = vor.u32 %v9721_v40, %v9385_v31 }
 0x456   :  { %4999 = vmatpush.bf16.msra.mxu2 %v10179_v2  ;;  %v3353_v9 = vmax.f32 %v1812_v48, 0.0  ;;  %v9393_v2 = vld [vmem:[#allocation7 + $0x38] sm:$0xf0]  ;;  %v3347_v30 = vmax.f32 %v2148_v39, 0.0  ;;  %v13140_v10 = vld [vmem:[#allocation20_spill] sm:$0xff] }
 0x457   :  { %5088 = vmatpush.bf16.msra.mxu3 %v10281_v23  ;;  %v10521_v51 = vpack.c.bf16 %v3352_v34, %v3344_v14  ;;  %v13144_v48 = vld [vmem:[#allocation46_spill] sm:$0xff]  ;;  %v13149_v31 = vld [vmem:[#allocation16_spill] sm:$0xff] }
 0x458   :  { %v10523_v26 = vpack.c.bf16 %v3353_v9, %v3345_v52  ;;  %4822 = vmatpush.bf16.msra.mxu0 %v10025_v1  ;;  %v10533_v1 = vor.u32 %v9724_v43, %v9391_v27  ;;  %v13146_v39 = vld [vmem:[#allocation18_spill] sm:$0xff]  ;;  %v13147_v52 = vld [vmem:[#allocation31_spill] sm:$0xff]  ;;  %v13148_v9 = vld [vmem:[#allocation44_spill] sm:$0xff] }
 0x459   :  { %13137 = vst [vmem:[#allocation149_spill] sm:$0xff] %v10521_v51  ;;  %4911 = vmatpush.bf16.msra.mxu1 %v10097_v55 }
 0x45a   :  { %13138 = vst [vmem:[#allocation150_spill] sm:$0xff] %v10523_v26  ;;  %5000 = vmatpush.bf16.msra.mxu2 %v10171_v32  ;;  %v10536_v32 = vor.u32 %v9722_v49, %v9393_v2  ;;  %v13150_v2 = vld [vmem:[#allocation29_spill] sm:$0xff] }
 0x45b   :  { %5089 = vmatpush.bf16.msra.mxu3 %v10273_v28  ;;  %13139 = vst [vmem:[#allocation151_spill] sm:$0xff] %v10533_v1  ;;  %v13143_v28 = vld [vmem:[#allocation33_spill] sm:$0xff] }
 0x45c   :  { %v1981_v23 = vpop.f32.mrf.mxu2  ;;  %v1646_v54 = vpop.f32.mrf.mxu0  ;;  %4823 = vmatpush.bf16.msra.mxu0 %v13140_v10  ;;  %13141 = vst [vmem:[#allocation20_spill] sm:$0xff] %v10536_v32  ;;  %v9725_v10 = vld [vmem:[#allocation7 + $0x44] sm:$0xf] }
 0x45d   :  { %v3354_v56 = vmax.f32 %v1981_v23, 0.0  ;;  %v2150_v7 = vpop.f32.mrf.mxu3  ;;  %v1815_v14 = vpop.f32.mrf.mxu1  ;;  %4912 = vmatpush.bf16.msra.mxu1 %v13143_v28  ;;  %v3360_v40 = vmax.f32 %v1646_v54, 0.0  ;;  %v13151_v23 = vld [vmem:[#allocation42_spill] sm:$0xff]  ;;  %v9407_v28 = vld [vmem:[#allocation7 + $0x48] sm:$0xf] }
 0x45e   :  { %v3355_v55 = vmax.f32 %v2150_v7, 0.0  ;;  %5001 = vmatpush.bf16.msra.mxu2 %v13144_v48  ;;  %v3361_v49 = vmax.f32 %v1815_v14, 0.0  ;;  %v13154_v54 = vld [vmem:[#allocation14_spill] sm:$0xff]  ;;  %v13155_v14 = vld [vmem:[#allocation27_spill] sm:$0xff] }
 0x45f   :  { %v10538_v34 = vpack.c.bf16 %v3354_v56, %v3346_v61  ;;  %5090 = vmatpush.bf16.msra.mxu3 %v10263_v17  ;;  %4121 = vmatmul.bf16.gmra.mxu0 %v10529_v11  ;;  %v9728_v48 = vld [vmem:[#allocation7 + $0x54] sm:$0xf0] }
 0x460   :  { %v10543_v21 = vpack.c.bf16 %v3355_v55, %v3347_v30  ;;  %4210 = vmatmul.bf16.gmra.mxu1 %v10531_v20  ;;  %4824 = vmatpush.bf16.msra.mxu0 %v13146_v39  ;;  %v9727_v30 = vld [vmem:[#allocation7 + $0x4c] sm:$0xf0]  ;;  %v9401_v55 = vld [vmem:[#allocation7 + $0x50] sm:$0xf0]  ;;  %v13156_v39 = vld [vmem:[#allocation40_spill] sm:$0xff] }
 0x461   :  { %13142 = vst [vmem:[#allocation152_spill] sm:$0xff] %v10538_v34  ;;  %4299 = vmatmul.bf16.gmra.mxu2 %v10533_v1  ;;  %4913 = vmatpush.bf16.msra.mxu1 %v13147_v52  ;;  %v9726_v52 = vld [vmem:[#allocation7 + $0x4c] sm:$0xf] }
 0x462   :  { %13145 = vst [vmem:[#allocation33_spill] sm:$0xff] %v10543_v21  ;;  %4388 = vmatmul.bf16.gmra.mxu3 %v10536_v32  ;;  %5002 = vmatpush.bf16.msra.mxu2 %v13148_v9  ;;  %v9409_v9 = vld [vmem:[#allocation7 + $0x58] sm:$0xf0] }
 0x463   :  { %5091 = vmatpush.bf16.msra.mxu3 %v10253_v47  ;;  %v9399_v47 = vld [vmem:[#allocation7 + $0x40] sm:$0xf] }
 0x464   :  { %v1984_v18 = vpop.f32.mrf.mxu2  ;;  %v1648_v45 = vpop.f32.mrf.mxu0  ;;  %4825 = vmatpush.bf16.msra.mxu0 %v13149_v31 }
 0x465   :  { %v2153_v17 = vpop.f32.mrf.mxu3  ;;  %v3368_v27 = vmax.f32 %v1648_v45, 0.0  ;;  %v1817_v43 = vpop.f32.mrf.mxu1  ;;  %4914 = vmatpush.bf16.msra.mxu1 %v13150_v2  ;;  %v10565_v45 = vor.u32 %v9727_v30, %v9399_v47  ;;  %v13160_v47 = vld [vmem:[#allocation38_spill] sm:$0xff] }
 0x466   :  { %5003 = vmatpush.bf16.msra.mxu2 %v13151_v23  ;;  %v3369_v61 = vmax.f32 %v1817_v43, 0.0  ;;  %v10567_v43 = vor.u32 %v9725_v10, %v9401_v55  ;;  %v3363_v23 = vmax.f32 %v2153_v17, 0.0 }
 0x467   :  { %5092 = vmatpush.bf16.msra.mxu3 %v10241_v46  ;;  %v10557_v56 = vpack.c.bf16 %v3368_v27, %v3360_v40  ;;  %v3362_v40 = vmax.f32 %v1984_v18, 0.0 }
 0x468   :  { %v10559_v7 = vpack.c.bf16 %v3369_v61, %v3361_v49  ;;  %4826 = vmatpush.bf16.msra.mxu0 %v13154_v54  ;;  %v10569_v49 = vor.u32 %v9728_v48, %v9407_v28  ;;  %v13157_v61 = vld [vmem:[#allocation12_spill] sm:$0xff] }
 0x469   :  { %13152 = vst [vmem:[#allocation46_spill] sm:$0xff] %v10557_v56  ;;  %4915 = vmatpush.bf16.msra.mxu1 %v13155_v14  ;;  %v10572_v14 = vor.u32 %v9726_v52, %v9409_v9 }
 0x46a   :  { %13153 = vst [vmem:[#allocation18_spill] sm:$0xff] %v10559_v7  ;;  %5004 = vmatpush.bf16.msra.mxu2 %v13156_v39 }
 0x46b   :  { %5093 = vmatpush.bf16.msra.mxu3 %v10229_v29  ;;  %v13159_v29 = vld [vmem:[#allocation25_spill] sm:$0xff] }
 0x46c   :  { %v1986_v46 = vpop.f32.mrf.mxu2  ;;  %v1651_v2 = vpop.f32.mrf.mxu0  ;;  %4827 = vmatpush.bf16.msra.mxu0 %v13157_v61  ;;  %v9423_v61 = vld [vmem:[#allocation7 + $0x68] sm:$0xf] }
 0x46d   :  { %v3370_v31 = vmax.f32 %v1986_v46, 0.0  ;;  %v2155_v27 = vpop.f32.mrf.mxu3  ;;  %v1820_v39 = vpop.f32.mrf.mxu1  ;;  %4916 = vmatpush.bf16.msra.mxu1 %v13159_v29  ;;  %v3376_v55 = vmax.f32 %v1651_v2, 0.0  ;;  %v9730_v29 = vld [vmem:[#allocation7 + $0x6c] sm:$0xf] }
 0x46e   :  { %v3371_v54 = vmax.f32 %v2155_v27, 0.0  ;;  %5005 = vmatpush.bf16.msra.mxu2 %v13160_v47  ;;  %v3377_v52 = vmax.f32 %v1820_v39, 0.0  ;;  %v9729_v27 = vld [vmem:[#allocation7 + $0x64] sm:$0xf]  ;;  %v9425_v47 = vld [vmem:[#allocation7 + $0x78] sm:$0xf0] }
 0x46f   :  { %v10574_v21 = vpack.c.bf16 %v3370_v31, %v3362_v40  ;;  %5094 = vmatpush.bf16.msra.mxu3 %v10206_v25  ;;  %4126 = vmatmul.bf16.gmra.mxu0 %v10565_v45  ;;  %v9415_v40 = vld [vmem:[#allocation7 + $0x60] sm:$0xf]  ;;  %v9731_v31 = vld [vmem:[#allocation7 + $0x6c] sm:$0xf0] }
 0x470   :  { %v10579_v18 = vpack.c.bf16 %v3371_v54, %v3363_v23  ;;  %4215 = vmatmul.bf16.gmra.mxu1 %v10567_v43  ;;  %v9417_v23 = vld [vmem:[#allocation7 + $0x70] sm:$0xf0]  ;;  %v9732_v54 = vld [vmem:[#allocation7 + $0x74] sm:$0xf0]  ;;  %v10589_v13 = vor.u32 %v9731_v31, %v9415_v40 }
 0x471   :  { %13158 = vst [vmem:[#allocation31_spill] sm:$0xff] %v10574_v21  ;;  %4304 = vmatmul.bf16.gmra.mxu2 %v10569_v49  ;;  %v10591_v39 = vor.u32 %v9729_v27, %v9417_v23 }
 0x472   :  { %13161 = vst [vmem:[#allocation44_spill] sm:$0xff] %v10579_v18  ;;  %4393 = vmatmul.bf16.gmra.mxu3 %v10572_v14 }
 0x473   :  { %13164 = vst [vmem:[#allocation42_spill] sm:$0xff] %v10589_v13 }
 0x474   :  { %v1989_v17 = vpop.f32.mrf.mxu2  ;;  %v1653_v10 = vpop.f32.mrf.mxu0  ;;  %13165 = vst [vmem:[#allocation14_spill] sm:$0xff] %v10591_v39 }
 0x475   :  { %v2158_v30 = vpop.f32.mrf.mxu3  ;;  %v3384_v28 = vmax.f32 %v1653_v10, 0.0  ;;  %v1822_v48 = vpop.f32.mrf.mxu1  ;;  %v3378_v2 = vmax.f32 %v1989_v17, 0.0 }
 0x476   :  { %v3385_v9 = vmax.f32 %v1822_v48, 0.0  ;;  %v3379_v48 = vmax.f32 %v2158_v30, 0.0 }
 0x477   :  { %v10585_v46 = vpack.c.bf16 %v3384_v28, %v3376_v55  ;;  %v10593_v55 = vor.u32 %v9732_v54, %v9423_v61 }
 0x478   :  { %v10587_v25 = vpack.c.bf16 %v3385_v9, %v3377_v52  ;;  %v10595_v9 = vor.u32 %v9730_v29, %v9425_v47  ;;  %v9431_v29 = vld [vmem:[#allocation7 + $0x80] sm:$0xf]  ;;  %v9735_v47 = vld [vmem:[#allocation7 + $0x8c] sm:$0xf0] }
 0x479   :  { %13162 = vst [vmem:[#allocation16_spill] sm:$0xff] %v10585_v46 }
 0x47a   :  { %13163 = vst [vmem:[#allocation29_spill] sm:$0xff] %v10587_v25  ;;  %v10609_v25 = vor.u32 %v9735_v47, %v9431_v29 }
 0x47b   :  { %13166 = vst [vmem:[#allocation27_spill] sm:$0xff] %v10593_v55 }
 0x47c   :  { %v1991_v18 = vpop.f32.mrf.mxu2  ;;  %v1656_v28 = vpop.f32.mrf.mxu0  ;;  %13167 = vst [vmem:[#allocation40_spill] sm:$0xff] %v10595_v9 }
 0x47d   :  { %v3386_v10 = vmax.f32 %v1991_v18, 0.0  ;;  %v2160_v34 = vpop.f32.mrf.mxu3  ;;  %v1825_v21 = vpop.f32.mrf.mxu1  ;;  %v3392_v30 = vmax.f32 %v1656_v28, 0.0  ;;  %13172 = vst [vmem:[#allocation154_spill] sm:$0xff] %v10609_v25 }
 0x47e   :  { %v3387_v52 = vmax.f32 %v2160_v34, 0.0  ;;  %v3393_v27 = vmax.f32 %v1825_v21, 0.0 }
 0x47f   :  { %v10597_v42 = vpack.c.bf16 %v3386_v10, %v3378_v2  ;;  %4131 = vmatmul.bf16.gmra.mxu0 %v10589_v13  ;;  %v9733_v2 = vld [vmem:[#allocation7 + $0x84] sm:$0xf]  ;;  %v9433_v10 = vld [vmem:[#allocation7 + $0x90] sm:$0xf0] }
 0x480   :  { %v10599_v26 = vpack.c.bf16 %v3387_v52, %v3379_v48  ;;  %4220 = vmatmul.bf16.gmra.mxu1 %v10591_v39  ;;  %v9439_v48 = vld [vmem:[#allocation7 + $0x88] sm:$0xf]  ;;  %v9736_v52 = vld [vmem:[#allocation7 + $0x94] sm:$0xf0]  ;;  %v10611_v21 = vor.u32 %v9733_v2, %v9433_v10 }
 0x481   :  { %13168 = vst [vmem:[#allocation12_spill] sm:$0xff] %v10597_v42  ;;  %4309 = vmatmul.bf16.gmra.mxu2 %v10593_v55  ;;  %v9441_v42 = vld [vmem:[#allocation7 + $0x98] sm:$0xf0] }
 0x482   :  { %13169 = vst [vmem:[#allocation25_spill] sm:$0xff] %v10599_v26  ;;  %4398 = vmatmul.bf16.gmra.mxu3 %v10595_v9  ;;  %v9734_v26 = vld [vmem:[#allocation7 + $0x8c] sm:$0xf] }
 0x483   :  { %13173 = vst [vmem:[#allocation155_spill] sm:$0xff] %v10611_v21 }
 0x484   :  { %v1994_v18 = vpop.f32.mrf.mxu2  ;;  %v1658_v40 = vpop.f32.mrf.mxu0 }
 0x485   :  { %v2163_v17 = vpop.f32.mrf.mxu3  ;;  %v3400_v34 = vmax.f32 %v1658_v40, 0.0  ;;  %v1827_v31 = vpop.f32.mrf.mxu1  ;;  %v3394_v28 = vmax.f32 %v1994_v18, 0.0 }
 0x486   :  { %v3401_v23 = vmax.f32 %v1827_v31, 0.0  ;;  %v3395_v31 = vmax.f32 %v2163_v17, 0.0 }
 0x487   :  { %v10605_v61 = vpack.c.bf16 %v3400_v34, %v3392_v30  ;;  %v10613_v30 = vor.u32 %v9736_v52, %v9439_v48  ;;  %v9447_v48 = vld [vmem:[#allocation7 + $0xa0] sm:$0xf]  ;;  %v9739_v52 = vld [vmem:[#allocation7 + $0xac] sm:$0xf0] }
 0x488   :  { %v10607_v54 = vpack.c.bf16 %v3401_v23, %v3393_v27  ;;  %v10615_v23 = vor.u32 %v9734_v26, %v9441_v42  ;;  %v10629_v53 = vor.u32 %v9739_v52, %v9447_v48 }
 0x489   :  { %13170 = vst [vmem:[#allocation38_spill] sm:$0xff] %v10605_v61 }
 0x48a   :  { %13171 = vst [vmem:[#allocation153_spill] sm:$0xff] %v10607_v54 }
 0x48b   :  { %13174 = vst [vmem:[#allocation156_spill] sm:$0xff] %v10613_v30 }
 0x48c   :  { %v1996_v7 = vpop.f32.mrf.mxu2  ;;  %v1661_v34 = vpop.f32.mrf.mxu0  ;;  %13175 = vst [vmem:[#allocation157_spill] sm:$0xff] %v10615_v23 }
 0x48d   :  { %v3402_v40 = vmax.f32 %v1996_v7, 0.0  ;;  %v2165_v51 = vpop.f32.mrf.mxu3  ;;  %v1830_v54 = vpop.f32.mrf.mxu1  ;;  %v3408_v17 = vmax.f32 %v1661_v34, 0.0  ;;  %13180 = vst [vmem:[#allocation162_spill] sm:$0xff] %v10629_v53 }
 0x48e   :  { %v3403_v27 = vmax.f32 %v2165_v51, 0.0  ;;  %v3409_v26 = vmax.f32 %v1830_v54, 0.0 }
 0x48f   :  { %v10617_v56 = vpack.c.bf16 %v3402_v40, %v3394_v28  ;;  %4136 = vmatmul.bf16.gmra.mxu0 %v10609_v25  ;;  %v9737_v28 = vld [vmem:[#allocation7 + $0xa4] sm:$0xf]  ;;  %v9449_v40 = vld [vmem:[#allocation7 + $0xb0] sm:$0xf0] }
 0x490   :  { %v10619_v46 = vpack.c.bf16 %v3403_v27, %v3395_v31  ;;  %4225 = vmatmul.bf16.gmra.mxu1 %v10611_v21  ;;  %v9455_v31 = vld [vmem:[#allocation7 + $0xa8] sm:$0xf]  ;;  %v9740_v27 = vld [vmem:[#allocation7 + $0xb4] sm:$0xf0]  ;;  %v10631_v54 = vor.u32 %v9737_v28, %v9449_v40 }
 0x491   :  { %13176 = vst [vmem:[#allocation158_spill] sm:$0xff] %v10617_v56  ;;  %4314 = vmatmul.bf16.gmra.mxu2 %v10613_v30  ;;  %v9457_v56 = vld [vmem:[#allocation7 + $0xb8] sm:$0xf0] }
 0x492   :  { %13177 = vst [vmem:[#allocation159_spill] sm:$0xff] %v10619_v46  ;;  %4403 = vmatmul.bf16.gmra.mxu3 %v10615_v23  ;;  %v9738_v46 = vld [vmem:[#allocation7 + $0xac] sm:$0xf] }
 0x493   :  { %13181 = vst [vmem:[#allocation163_spill] sm:$0xff] %v10631_v54 }
 0x494   :  { %v1999_v7 = vpop.f32.mrf.mxu2  ;;  %v1663_v29 = vpop.f32.mrf.mxu0 }
 0x495   :  { %v2168_v18 = vpop.f32.mrf.mxu3  ;;  %v3416_v51 = vmax.f32 %v1663_v29, 0.0  ;;  %v1832_v42 = vpop.f32.mrf.mxu1  ;;  %v3410_v34 = vmax.f32 %v1999_v7, 0.0 }
 0x496   :  { %v3417_v47 = vmax.f32 %v1832_v42, 0.0  ;;  %v3411_v42 = vmax.f32 %v2168_v18, 0.0 }
 0x497   :  { %v10625_v2 = vpack.c.bf16 %v3416_v51, %v3408_v17  ;;  %v10633_v17 = vor.u32 %v9740_v27, %v9455_v31  ;;  %v9463_v31 = vld [vmem:[#allocation7 + $0xc0] sm:$0xf]  ;;  %v9743_v27 = vld [vmem:[#allocation7 + $0xcc] sm:$0xf0] }
 0x498   :  { %v10627_v10 = vpack.c.bf16 %v3417_v47, %v3409_v26  ;;  %v10635_v47 = vor.u32 %v9738_v46, %v9457_v56  ;;  %v10649_v33 = vor.u32 %v9743_v27, %v9463_v31 }
 0x499   :  { %13178 = vst [vmem:[#allocation160_spill] sm:$0xff] %v10625_v2 }
 0x49a   :  { %13179 = vst [vmem:[#allocation161_spill] sm:$0xff] %v10627_v10 }
 0x49b   :  { %13182 = vst [vmem:[#allocation164_spill] sm:$0xff] %v10633_v17 }
 0x49c   :  { %v2001_v61 = vpop.f32.mrf.mxu2  ;;  %v1666_v51 = vpop.f32.mrf.mxu0  ;;  %13183 = vst [vmem:[#allocation165_spill] sm:$0xff] %v10635_v47 }
 0x49d   :  { %v3418_v29 = vmax.f32 %v2001_v61, 0.0  ;;  %v2170_v36 = vpop.f32.mrf.mxu3  ;;  %v1835_v10 = vpop.f32.mrf.mxu1  ;;  %v3424_v18 = vmax.f32 %v1666_v51, 0.0  ;;  %13188 = vst [vmem:[#allocation170_spill] sm:$0xff] %v10649_v33 }
 0x49e   :  { %v3419_v26 = vmax.f32 %v2170_v36, 0.0  ;;  %v3425_v46 = vmax.f32 %v1835_v10, 0.0 }
 0x49f   :  { %v10637_v2 = vpack.c.bf16 %v3418_v29, %v3410_v34  ;;  %4141 = vmatmul.bf16.gmra.mxu0 %v10629_v53  ;;  %v9741_v34 = vld [vmem:[#allocation7 + $0xc4] sm:$0xf]  ;;  %v9465_v29 = vld [vmem:[#allocation7 + $0xd0] sm:$0xf0] }
 0x4a0   :  { %v10639_v6 = vpack.c.bf16 %v3419_v26, %v3411_v42  ;;  %4230 = vmatmul.bf16.gmra.mxu1 %v10631_v54  ;;  %v9471_v42 = vld [vmem:[#allocation7 + $0xc8] sm:$0xf]  ;;  %v9744_v26 = vld [vmem:[#allocation7 + $0xd4] sm:$0xf0]  ;;  %v10651_v10 = vor.u32 %v9741_v34, %v9465_v29 }
 0x4a1   :  { %13184 = vst [vmem:[#allocation166_spill] sm:$0xff] %v10637_v2  ;;  %4319 = vmatmul.bf16.gmra.mxu2 %v10633_v17  ;;  %v9473_v2 = vld [vmem:[#allocation7 + $0xd8] sm:$0xf0] }
 0x4a2   :  { %13185 = vst [vmem:[#allocation167_spill] sm:$0xff] %v10639_v6  ;;  %4408 = vmatmul.bf16.gmra.mxu3 %v10635_v47  ;;  %v9742_v6 = vld [vmem:[#allocation7 + $0xcc] sm:$0xf] }
 0x4a3   :  { %13189 = vst [vmem:[#allocation171_spill] sm:$0xff] %v10651_v10 }
 0x4a4   :  { %v2004_v61 = vpop.f32.mrf.mxu2  ;;  %v1668_v48 = vpop.f32.mrf.mxu0 }
 0x4a5   :  { %v2173_v7 = vpop.f32.mrf.mxu3  ;;  %v3432_v36 = vmax.f32 %v1668_v48, 0.0  ;;  %v1837_v56 = vpop.f32.mrf.mxu1  ;;  %v3426_v51 = vmax.f32 %v2004_v61, 0.0 }
 0x4a6   :  { %v3433_v52 = vmax.f32 %v1837_v56, 0.0  ;;  %v3427_v56 = vmax.f32 %v2173_v7, 0.0 }
 0x4a7   :  { %v10645_v28 = vpack.c.bf16 %v3432_v36, %v3424_v18  ;;  %v10653_v18 = vor.u32 %v9744_v26, %v9471_v42  ;;  %v9479_v42 = vld [vmem:[#allocation7 + $0xe0] sm:$0xf]  ;;  %v9747_v26 = vld [vmem:[#allocation7 + $0xec] sm:$0xf0] }
 0x4a8   :  { %v10647_v40 = vpack.c.bf16 %v3433_v52, %v3425_v46  ;;  %v10655_v52 = vor.u32 %v9742_v6, %v9473_v2  ;;  %v10669_v35 = vor.u32 %v9747_v26, %v9479_v42 }
 0x4a9   :  { %13186 = vst [vmem:[#allocation168_spill] sm:$0xff] %v10645_v28 }
 0x4aa   :  { %13187 = vst [vmem:[#allocation169_spill] sm:$0xff] %v10647_v40 }
 0x4ab   :  { %13190 = vst [vmem:[#allocation172_spill] sm:$0xff] %v10653_v18 }
 0x4ac   :  { %v2006_v63 = vpop.f32.mrf.mxu2  ;;  %v1671_v36 = vpop.f32.mrf.mxu0  ;;  %13191 = vst [vmem:[#allocation173_spill] sm:$0xff] %v10655_v52 }
 0x4ad   :  { %v3434_v48 = vmax.f32 %v2006_v63, 0.0  ;;  %v2175_v60 = vpop.f32.mrf.mxu3  ;;  %v1840_v40 = vpop.f32.mrf.mxu1  ;;  %v3440_v7 = vmax.f32 %v1671_v36, 0.0  ;;  %13196 = vst [vmem:[#allocation178_spill] sm:$0xff] %v10669_v35 }
 0x4ae   :  { %v3435_v46 = vmax.f32 %v2175_v60, 0.0  ;;  %v3441_v2 = vmax.f32 %v1840_v40, 0.0 }
 0x4af   :  { %v10657_v28 = vpack.c.bf16 %v3434_v48, %v3426_v51  ;;  %4146 = vmatmul.bf16.gmra.mxu0 %v10649_v33  ;;  %v9745_v51 = vld [vmem:[#allocation7 + $0xe4] sm:$0xf]  ;;  %v9481_v48 = vld [vmem:[#allocation7 + $0xf0] sm:$0xf0] }
 0x4b0   :  { %v10659_v44 = vpack.c.bf16 %v3435_v46, %v3427_v56  ;;  %4235 = vmatmul.bf16.gmra.mxu1 %v10651_v10  ;;  %v9487_v56 = vld [vmem:[#allocation7 + $0xe8] sm:$0xf]  ;;  %v9748_v46 = vld [vmem:[#allocation7 + $0xf4] sm:$0xf0]  ;;  %v10671_v40 = vor.u32 %v9745_v51, %v9481_v48 }
 0x4b1   :  { %13192 = vst [vmem:[#allocation174_spill] sm:$0xff] %v10657_v28  ;;  %4324 = vmatmul.bf16.gmra.mxu2 %v10653_v18  ;;  %v9489_v28 = vld [vmem:[#allocation7 + $0xf8] sm:$0xf0] }
 0x4b2   :  { %13193 = vst [vmem:[#allocation175_spill] sm:$0xff] %v10659_v44  ;;  %4413 = vmatmul.bf16.gmra.mxu3 %v10655_v52  ;;  %v9746_v44 = vld [vmem:[#allocation7 + $0xec] sm:$0xf] }
 0x4b3   :  { %13197 = vst [vmem:[#allocation179_spill] sm:$0xff] %v10671_v40 }
 0x4b4   :  { %v2009_v63 = vpop.f32.mrf.mxu2  ;;  %v1673_v31 = vpop.f32.mrf.mxu0 }
 0x4b5   :  { %v2178_v61 = vpop.f32.mrf.mxu3  ;;  %v3448_v60 = vmax.f32 %v1673_v31, 0.0  ;;  %v1842_v6 = vpop.f32.mrf.mxu1  ;;  %v3442_v36 = vmax.f32 %v2009_v63, 0.0 }
 0x4b6   :  { %v3449_v27 = vmax.f32 %v1842_v6, 0.0  ;;  %v3443_v6 = vmax.f32 %v2178_v61, 0.0 }
 0x4b7   :  { %v10665_v34 = vpack.c.bf16 %v3448_v60, %v3440_v7  ;;  %v10673_v7 = vor.u32 %v9748_v46, %v9487_v56  ;;  %v9495_v56 = vld [vmem:[#allocation7 + $0x100] sm:$0xf]  ;;  %v9751_v46 = vld [vmem:[#allocation7 + $0x10c] sm:$0xf0] }
 0x4b8   :  { %v10667_v29 = vpack.c.bf16 %v3449_v27, %v3441_v2  ;;  %v10675_v27 = vor.u32 %v9746_v44, %v9489_v28  ;;  %v10689_v16 = vor.u32 %v9751_v46, %v9495_v56  ;;  %v9511_v46 = vld [vmem:[#allocation7 + $0x120] sm:$0xf] }
 0x4b9   :  { %13194 = vst [vmem:[#allocation176_spill] sm:$0xff] %v10665_v34 }
 0x4ba   :  { %13195 = vst [vmem:[#allocation177_spill] sm:$0xff] %v10667_v29 }
 0x4bb   :  { %13198 = vst [vmem:[#allocation180_spill] sm:$0xff] %v10673_v7 }
 0x4bc   :  { %v2011_v15 = vpop.f32.mrf.mxu2  ;;  %v1676_v60 = vpop.f32.mrf.mxu0  ;;  %13199 = vst [vmem:[#allocation181_spill] sm:$0xff] %v10675_v27 }
 0x4bd   :  { %v3450_v31 = vmax.f32 %v2011_v15, 0.0  ;;  %v2180_v12 = vpop.f32.mrf.mxu3  ;;  %v1845_v29 = vpop.f32.mrf.mxu1  ;;  %v3456_v61 = vmax.f32 %v1676_v60, 0.0  ;;  %13204 = vst [vmem:[#allocation186_spill] sm:$0xff] %v10689_v16 }
 0x4be   :  { %v3451_v2 = vmax.f32 %v2180_v12, 0.0  ;;  %v3457_v28 = vmax.f32 %v1845_v29, 0.0 }
 0x4bf   :  { %v10677_v34 = vpack.c.bf16 %v3450_v31, %v3442_v36  ;;  %4151 = vmatmul.bf16.gmra.mxu0 %v10669_v35  ;;  %v9749_v36 = vld [vmem:[#allocation7 + $0x104] sm:$0xf]  ;;  %v9497_v31 = vld [vmem:[#allocation7 + $0x110] sm:$0xf0] }
 0x4c0   :  { %v10679_v3 = vpack.c.bf16 %v3451_v2, %v3443_v6  ;;  %4240 = vmatmul.bf16.gmra.mxu1 %v10671_v40  ;;  %v9503_v6 = vld [vmem:[#allocation7 + $0x108] sm:$0xf]  ;;  %v9752_v2 = vld [vmem:[#allocation7 + $0x114] sm:$0xf0]  ;;  %v10691_v29 = vor.u32 %v9749_v36, %v9497_v31  ;;  %v9753_v36 = vld [vmem:[#allocation7 + $0x124] sm:$0xf] }
 0x4c1   :  { %13200 = vst [vmem:[#allocation182_spill] sm:$0xff] %v10677_v34  ;;  %4329 = vmatmul.bf16.gmra.mxu2 %v10673_v7  ;;  %v9505_v34 = vld [vmem:[#allocation7 + $0x118] sm:$0xf0]  ;;  %v9513_v31 = vld [vmem:[#allocation7 + $0x130] sm:$0xf0] }
 0x4c2   :  { %13201 = vst [vmem:[#allocation183_spill] sm:$0xff] %v10679_v3  ;;  %4418 = vmatmul.bf16.gmra.mxu3 %v10675_v27  ;;  %v9750_v3 = vld [vmem:[#allocation7 + $0x10c] sm:$0xf] }
 0x4c3   :  { %13205 = vst [vmem:[#allocation187_spill] sm:$0xff] %v10691_v29 }
 0x4c4   :  { %v2014_v15 = vpop.f32.mrf.mxu2  ;;  %v1678_v42 = vpop.f32.mrf.mxu0 }
 0x4c5   :  { %v2183_v63 = vpop.f32.mrf.mxu3  ;;  %v3464_v12 = vmax.f32 %v1678_v42, 0.0  ;;  %v1847_v44 = vpop.f32.mrf.mxu1  ;;  %v3458_v60 = vmax.f32 %v2014_v15, 0.0 }
 0x4c6   :  { %v3465_v26 = vmax.f32 %v1847_v44, 0.0  ;;  %v3459_v44 = vmax.f32 %v2183_v63, 0.0 }
 0x4c7   :  { %v10685_v51 = vpack.c.bf16 %v3464_v12, %v3456_v61  ;;  %v10693_v61 = vor.u32 %v9752_v2, %v9503_v6  ;;  %v9519_v6 = vld [vmem:[#allocation7 + $0x128] sm:$0xf]  ;;  %v9756_v2 = vld [vmem:[#allocation7 + $0x134] sm:$0xf0] }
 0x4c8   :  { %v10687_v48 = vpack.c.bf16 %v3465_v26, %v3457_v28  ;;  %v10695_v26 = vor.u32 %v9750_v3, %v9505_v34 }
 0x4c9   :  { %13202 = vst [vmem:[#allocation184_spill] sm:$0xff] %v10685_v51 }
 0x4ca   :  { %13203 = vst [vmem:[#allocation185_spill] sm:$0xff] %v10687_v48 }
 0x4cb   :  { %13206 = vst [vmem:[#allocation188_spill] sm:$0xff] %v10693_v61 }
 0x4cc   :  { %v2016_v5 = vpop.f32.mrf.mxu2  ;;  %v4117_v12 = vpop.f32.mrf.mxu0  ;;  %13207 = vst [vmem:[#allocation189_spill] sm:$0xff] %v10695_v26 }
 0x4cd   :  { %v3466_v42 = vmax.f32 %v2016_v5, 0.0  ;;  %v2185_v62 = vpop.f32.mrf.mxu3  ;;  %v4206_v48 = vpop.f32.mrf.mxu1 }
 0x4ce   :  { %v3467_v28 = vmax.f32 %v2185_v62, 0.0  ;;  %v4207_v27 = vadd.f32 %v4206_v48, %v4117_v12  ;;  %v9755_v48 = vld [vmem:[#allocation7 + $0x12c] sm:$0xf0] }
 0x4cf   :  { %v10697_v51 = vpack.c.bf16 %v3466_v42, %v3458_v60  ;;  %4156 = vmatmul.bf16.gmra.mxu0 %v10689_v16  ;;  %v9754_v60 = vld [vmem:[#allocation7 + $0x12c] sm:$0xf]  ;;  %v9521_v42 = vld [vmem:[#allocation7 + $0x138] sm:$0xf0] }
 0x4d0   :  { %v10699_v7 = vpack.c.bf16 %v3467_v28, %v3459_v44  ;;  %4245 = vmatmul.bf16.gmra.mxu1 %v10691_v29  ;;  %v10707_v44 = vor.u32 %v9755_v48, %v9511_v46 }
 0x4d1   :  { %13208 = vst [vmem:[#allocation190_spill] sm:$0xff] %v10697_v51  ;;  %4334 = vmatmul.bf16.gmra.mxu2 %v10693_v61 }
 0x4d2   :  { %13209 = vst [vmem:[#allocation191_spill] sm:$0xff] %v10699_v7  ;;  %4423 = vmatmul.bf16.gmra.mxu3 %v10695_v26 }
 0x4d3   :  { %13211 = vst [vmem:[#allocation193_spill] sm:$0xff] %v10707_v44 }
 0x4d4   :  { %v4295_v5 = vpop.f32.mrf.mxu2  ;;  %v4119_v62 = vpop.f32.mrf.mxu0 }
 0x4d5   :  { %v4296_v15 = vadd.f32 %v4295_v5, %v4207_v27  ;;  %v4384_v63 = vpop.f32.mrf.mxu3  ;;  %v4208_v3 = vpop.f32.mrf.mxu1  ;;  %v10709_v27 = vor.u32 %v9753_v36, %v9513_v31  ;;  %v10711_v5 = vor.u32 %v9756_v2, %v9519_v6 }
 0x4d6   :  { %v4209_v56 = vadd.f32 %v4208_v3, %v4119_v62 }
 0x4d7   :  { %v10705_v34 = vadd.f32 %v4384_v63, %v4296_v15  ;;  %13212 = vst [vmem:[#allocation194_spill] sm:$0xff] %v10709_v27  ;;  %v10713_v63 = vor.u32 %v9754_v60, %v9521_v42  ;;  %v9527_v60 = vld [vmem:[#allocation7 + $0x140] sm:$0xf]  ;;  %v9757_v42 = vld [vmem:[#allocation7 + $0x144] sm:$0xf] }
 0x4d8   :  { %13213 = vst [vmem:[#allocation195_spill] sm:$0xff] %v10711_v5 }
 0x4d9   :  { %13210 = vst [vmem:[#allocation192_spill] sm:$0xff] %v10705_v34 }
 0x4da   :  { %13214 = vst [vmem:[#allocation196_spill] sm:$0xff] %v10713_v63 }
 0x4dc   :  { %v4297_v12 = vpop.f32.mrf.mxu2  ;;  %v4122_v15 = vpop.f32.mrf.mxu0 }
 0x4dd   :  { %v4298_v28 = vadd.f32 %v4297_v12, %v4209_v56  ;;  %v4386_v7 = vpop.f32.mrf.mxu3  ;;  %v4211_v62 = vpop.f32.mrf.mxu1  ;;  %v9529_v12 = vld [vmem:[#allocation7 + $0x150] sm:$0xf0] }
 0x4de   :  { %v4212_v51 = vadd.f32 %v4211_v62, %v4122_v15  ;;  %v9760_v15 = vld [vmem:[#allocation7 + $0x154] sm:$0xf0]  ;;  %v9758_v62 = vld [vmem:[#allocation7 + $0x14c] sm:$0xf] }
 0x4df   :  { %v10715_v3 = vadd.f32 %v4386_v7, %v4298_v28  ;;  %4161 = vmatmul.bf16.gmra.mxu0 %v10707_v44  ;;  %v9759_v7 = vld [vmem:[#allocation7 + $0x14c] sm:$0xf0]  ;;  %v9535_v28 = vld [vmem:[#allocation7 + $0x148] sm:$0xf] }
 0x4e0   :  { %4250 = vmatmul.bf16.gmra.mxu1 %v10709_v27  ;;  %v9537_v27 = vld [vmem:[#allocation7 + $0x158] sm:$0xf0] }
 0x4e1   :  { %13215 = vst [vmem:[#allocation197_spill] sm:$0xff] %v10715_v3  ;;  %4339 = vmatmul.bf16.gmra.mxu2 %v10711_v5  ;;  %v10723_v5 = vor.u32 %v9759_v7, %v9527_v60 }
 0x4e2   :  { %4428 = vmatmul.bf16.gmra.mxu3 %v10713_v63 }
 0x4e3   :  { %13217 = vst [vmem:[#allocation199_spill] sm:$0xff] %v10723_v5 }
 0x4e4   :  { %v4300_v56 = vpop.f32.mrf.mxu2  ;;  %v4124_v36 = vpop.f32.mrf.mxu0 }
 0x4e5   :  { %v4301_v46 = vadd.f32 %v4300_v56, %v4212_v51  ;;  %v4389_v48 = vpop.f32.mrf.mxu3  ;;  %v4213_v31 = vpop.f32.mrf.mxu1  ;;  %v10725_v51 = vor.u32 %v9757_v42, %v9529_v12  ;;  %v10727_v56 = vor.u32 %v9760_v15, %v9535_v28  ;;  %v9543_v28 = vld [vmem:[#allocation7 + $0x160] sm:$0xf]  ;;  %v9545_v15 = vld [vmem:[#allocation7 + $0x170] sm:$0xf0] }
 0x4e6   :  { %v4214_v2 = vadd.f32 %v4213_v31, %v4124_v36 }
 0x4e7   :  { %v10721_v6 = vadd.f32 %v4389_v48, %v4301_v46  ;;  %13218 = vst [vmem:[#allocation200_spill] sm:$0xff] %v10725_v51  ;;  %v10729_v48 = vor.u32 %v9758_v62, %v9537_v27  ;;  %v9551_v62 = vld [vmem:[#allocation7 + $0x168] sm:$0xf] }
 0x4e8   :  { %13219 = vst [vmem:[#allocation201_spill] sm:$0xff] %v10727_v56 }
 0x4e9   :  { %13216 = vst [vmem:[#allocation198_spill] sm:$0xff] %v10721_v6 }
 0x4ea   :  { %13220 = vst [vmem:[#allocation202_spill] sm:$0xff] %v10729_v48 }
 0x4ec   :  { %v4302_v3 = vpop.f32.mrf.mxu2  ;;  %v4127_v46 = vpop.f32.mrf.mxu0 }
 0x4ed   :  { %v4303_v63 = vadd.f32 %v4302_v3, %v4214_v2  ;;  %v4391_v44 = vpop.f32.mrf.mxu3  ;;  %v4216_v36 = vpop.f32.mrf.mxu1 }
 0x4ee   :  { %v4217_v6 = vadd.f32 %v4216_v36, %v4127_v46  ;;  %v9764_v46 = vld [vmem:[#allocation7 + $0x174] sm:$0xf0]  ;;  %v9762_v36 = vld [vmem:[#allocation7 + $0x16c] sm:$0xf] }
 0x4ef   :  { %v10731_v31 = vadd.f32 %v4391_v44, %v4303_v63  ;;  %4166 = vmatmul.bf16.gmra.mxu0 %v10723_v5  ;;  %v9763_v44 = vld [vmem:[#allocation7 + $0x16c] sm:$0xf0]  ;;  %v9761_v63 = vld [vmem:[#allocation7 + $0x164] sm:$0xf] }
 0x4f0   :  { %4255 = vmatmul.bf16.gmra.mxu1 %v10725_v51  ;;  %v9553_v51 = vld [vmem:[#allocation7 + $0x178] sm:$0xf0] }
 0x4f1   :  { %13221 = vst [vmem:[#allocation203_spill] sm:$0xff] %v10731_v31  ;;  %4344 = vmatmul.bf16.gmra.mxu2 %v10727_v56  ;;  %v10739_v56 = vor.u32 %v9763_v44, %v9543_v28 }
 0x4f2   :  { %4433 = vmatmul.bf16.gmra.mxu3 %v10729_v48 }
 0x4f3   :  { %13223 = vst [vmem:[#allocation205_spill] sm:$0xff] %v10739_v56 }
 0x4f4   :  { %v4305_v3 = vpop.f32.mrf.mxu2  ;;  %v4129_v7 = vpop.f32.mrf.mxu0 }
 0x4f5   :  { %v4306_v2 = vadd.f32 %v4305_v3, %v4217_v6  ;;  %v4394_v60 = vpop.f32.mrf.mxu3  ;;  %v4218_v42 = vpop.f32.mrf.mxu1  ;;  %v10741_v6 = vor.u32 %v9761_v63, %v9545_v15  ;;  %v10743_v3 = vor.u32 %v9764_v46, %v9551_v62  ;;  %v9559_v15 = vld [vmem:[#allocation7 + $0x180] sm:$0xf]  ;;  %v9767_v62 = vld [vmem:[#allocation7 + $0x18c] sm:$0xf0]  ;;  %v9765_v46 = vld [vmem:[#allocation7 + $0x184] sm:$0xf] }
 0x4f6   :  { %v4219_v27 = vadd.f32 %v4218_v42, %v4129_v7  ;;  %v10748_v7 = vor.u32 %v9762_v36, %v9553_v51  ;;  %v9561_v36 = vld [vmem:[#allocation7 + $0x190] sm:$0xf0] }
 0x4f7   :  { %v10737_v12 = vadd.f32 %v4394_v60, %v4306_v2  ;;  %13224 = vst [vmem:[#allocation206_spill] sm:$0xff] %v10741_v6  ;;  %v7114_v60 = vld [vmem:[%s12713_s3 + $0x78] sm:$0xf] }
 0x4f8   :  { %13225 = vst [vmem:[#allocation207_spill] sm:$0xff] %v10743_v3 }
 0x4f9   :  { %13222 = vst [vmem:[#allocation204_spill] sm:$0xff] %v10737_v12  ;;  %v9935_v12 = vmov 0  }
 0x4fa   :  { %13226 = vst [vmem:[#allocation208_spill] sm:$0xff] %v10748_v7  ;;  %9792 = vset.pattern.permute.xlu1 %v9935_v12  ;;  %9791 = vset.pattern.permute.xlu0 %v9935_v12 }
 0x4fb   :  { %7388 = vperm.xlu1 %9792, %v7114_v60   ;;  %9793 = vset.pattern.permute.xlu2 %v9935_v12  ;;  %v9768_v60 = vld [vmem:[#allocation7 + $0x194] sm:$0xf0] }
 0x4fc   :  { %v4307_v31 = vpop.f32.mrf.mxu2  ;;  %v4132_v2 = vpop.f32.mrf.mxu0 }
 0x4fd   :  { %v4308_v48 = vadd.f32 %v4307_v31, %v4219_v27  ;;  %v4396_v5 = vpop.f32.mrf.mxu3  ;;  %v4221_v42 = vpop.f32.mrf.mxu1 }
 0x4fe   :  { %v4222_v28 = vadd.f32 %v4221_v42, %v4132_v2  ;;  %v9567_v2 = vld [vmem:[#allocation7 + $0x188] sm:$0xf]  ;;  %v9766_v42 = vld [vmem:[#allocation7 + $0x18c] sm:$0xf] }
 0x4ff   :  { %v10750_v34 = vadd.f32 %v4396_v5, %v4308_v48  ;;  %4171 = vmatmul.bf16.gmra.mxu0 %v10739_v56  ;;  %v7115_v5 = vld [vmem:[%s12713_s3 + $0x7c] sm:$0xf]  ;;  %v10765_v56 = vor.u32 %v9768_v60, %v9567_v2  ;;  %v9575_v60 = vld [vmem:[#allocation7 + $0x1a0] sm:$0xf] }
 0x500   :  { %4260 = vmatmul.bf16.gmra.mxu1 %v10741_v6 }
 0x501   :  { %13227 = vst [vmem:[#allocation209_spill] sm:$0xff] %v10750_v34  ;;  %4349 = vmatmul.bf16.gmra.mxu2 %v10743_v3  ;;  %v10763_v34 = vor.u32 %v9765_v46, %v9561_v36 }
 0x502   :  { %4438 = vmatmul.bf16.gmra.mxu3 %v10748_v7  ;;  %v9569_v7 = vld [vmem:[#allocation7 + $0x198] sm:$0xf0]  ;;  %13231 = vst [vmem:[#allocation213_spill] sm:$0xff] %v10765_v56 }
 0x503   :  { %7397 = vperm.xlu1 %9792, %v7115_v5   ;;  %13230 = vst [vmem:[#allocation212_spill] sm:$0xff] %v10763_v34 }
 0x504   :  { %v4310_v31 = vpop.f32.mrf.mxu2  ;;  %v4134_v44 = vpop.f32.mrf.mxu0 }
 0x505   :  { %v4311_v51 = vadd.f32 %v4310_v31, %v4222_v28  ;;  %v4399_v27 = vpop.f32.mrf.mxu3  ;;  %v4223_v48 = vpop.f32.mrf.mxu1  ;;  %v10761_v31 = vor.u32 %v9767_v62, %v9559_v15 }
 0x506   :  { %v4224_v12 = vadd.f32 %v4223_v48, %v4134_v44  ;;  %v10770_v44 = vor.u32 %v9766_v42, %v9569_v7  ;;  %v7110_v7 = vld [vmem:[%s12713_s3 + $0x68] sm:$0xf]  ;;  %v9771_v42 = vld [vmem:[#allocation7 + $0x1ac] sm:$0xf0] }
 0x507   :  { %v10759_v63 = vadd.f32 %v4399_v27, %v4311_v51  ;;  %13229 = vst [vmem:[#allocation211_spill] sm:$0xff] %v10761_v31  ;;  %v7113_v27 = vld [vmem:[%s12713_s3 + $0x74] sm:$0xf] }
 0x508   :  { %13232 = vst [vmem:[#allocation214_spill] sm:$0xff] %v10770_v44 }
 0x509   :  { %13228 = vst [vmem:[#allocation210_spill] sm:$0xff] %v10759_v63 }
 0x50b   :  { %7379 = vperm.xlu1 %9792, %v7113_v27   ;;  %v9772_v27 = vld [vmem:[#allocation7 + $0x1b4] sm:$0xf0] }
 0x50c   :  { %v4312_v28 = vpop.f32.mrf.mxu2  ;;  %v4137_v51 = vpop.f32.mrf.mxu0 }
 0x50d   :  { %v4313_v3 = vadd.f32 %v4312_v28, %v4224_v12  ;;  %v4401_v6 = vpop.f32.mrf.mxu3  ;;  %v4226_v5 = vpop.f32.mrf.mxu1  ;;  %v9769_v28 = vld [vmem:[#allocation7 + $0x1a4] sm:$0xf] }
 0x50e   :  { %v4227_v63 = vadd.f32 %v4226_v5, %v4137_v51  ;;  %v9583_v51 = vld [vmem:[#allocation7 + $0x1a8] sm:$0xf]  ;;  %v9770_v5 = vld [vmem:[#allocation7 + $0x1ac] sm:$0xf] }
 0x50f   :  { %v10772_v48 = vadd.f32 %v4401_v6, %v4313_v3  ;;  %4176 = vmatmul.bf16.gmra.mxu0 %v10761_v31  ;;  %v7098_v6 = vld [vmem:[%s12713_s3 + $0x38] sm:$0xf] }
 0x510   :  { %4265 = vmatmul.bf16.gmra.mxu1 %v10763_v34  ;;  %7244 = vperm.xlu0 %9791, %v7098_v6   ;;  %v10790_v6 = vor.u32 %v9772_v27, %v9583_v51  ;;  %v7112_v27 = vld [vmem:[%s12713_s3 + $0x70] sm:$0xf] }
 0x511   :  { %13233 = vst [vmem:[#allocation215_spill] sm:$0xff] %v10772_v48  ;;  %4354 = vmatmul.bf16.gmra.mxu2 %v10765_v56  ;;  %v10786_v56 = vor.u32 %v9771_v42, %v9575_v60 }
 0x512   :  { %4443 = vmatmul.bf16.gmra.mxu3 %v10770_v44  ;;  %13237 = vst [vmem:[#allocation219_spill] sm:$0xff] %v10790_v6 }
 0x513   :  { %7352 = vperm.xlu1 %9792, %v7110_v7   ;;  %13235 = vst [vmem:[#allocation217_spill] sm:$0xff] %v10786_v56  ;;  %v7093_v7 = vld [vmem:[%s12713_s3 + $0x24] sm:$0xf] }
 0x514   :  { %v4315_v12 = vpop.f32.mrf.mxu2  ;;  %v4139_v46 = vpop.f32.mrf.mxu0 }
 0x515   :  { %v4316_v15 = vadd.f32 %v4315_v12, %v4227_v63  ;;  %v4404_v62 = vpop.f32.mrf.mxu3  ;;  %v4228_v3 = vpop.f32.mrf.mxu1  ;;  %v9577_v63 = vld [vmem:[#allocation7 + $0x1b0] sm:$0xf0]  ;;  %v9585_v12 = vld [vmem:[#allocation7 + $0x1b8] sm:$0xf0] }
 0x516   :  { %v4229_v2 = vadd.f32 %v4228_v3, %v4139_v46  ;;  %v10788_v31 = vor.u32 %v9769_v28, %v9577_v63  ;;  %v7096_v46 = vld [vmem:[%s12713_s3 + $0x30] sm:$0xf]  ;;  %v10801_v3 = vor.u32 %v9770_v5, %v9585_v12 }
 0x517   :  { %v10784_v36 = vadd.f32 %v4404_v62, %v4316_v15  ;;  %v7099_v62 = vld [vmem:[%s12713_s3 + $0x3c] sm:$0xf]  ;;  %7226 = vperm.xlu2 %9793, %v7096_v46   ;;  %v9775_v46 = vld [vmem:[#allocation7 + $0x1cc] sm:$0xf0] }
 0x518   :  { %13236 = vst [vmem:[#allocation218_spill] sm:$0xff] %v10788_v31  ;;  %7253 = vperm.xlu0 %9791, %v7099_v62   ;;  %v9591_v62 = vld [vmem:[#allocation7 + $0x1c0] sm:$0xf] }
 0x519   :  { %13234 = vst [vmem:[#allocation216_spill] sm:$0xff] %v10784_v36 }
 0x51a   :  { %13238 = vst [vmem:[#allocation220_spill] sm:$0xff] %v10801_v3 }
 0x51b   :  { %7199 = vperm.xlu1 %9792, %v7093_v7   ;;  %v9773_v7 = vld [vmem:[#allocation7 + $0x1c4] sm:$0xf] }
 0x51c   :  { %v4317_v44 = vpop.f32.mrf.mxu2  ;;  %v4142_v15 = vpop.f32.mrf.mxu0 }
 0x51d   :  { %v4318_v34 = vadd.f32 %v4317_v44, %v4229_v2  ;;  %v4406_v48 = vpop.f32.mrf.mxu3  ;;  %v4231_v44 = vpop.f32.mrf.mxu1 }
 0x51e   :  { %v4232_v60 = vadd.f32 %v4231_v44, %v4142_v15  ;;  %v9593_v44 = vld [vmem:[#allocation7 + $0x1d0] sm:$0xf0] }
 0x51f   :  { %v10803_v2 = vadd.f32 %v4406_v48, %v4318_v34  ;;  %4181 = vmatmul.bf16.gmra.mxu0 %v10786_v56  ;;  %v7097_v34 = vld [vmem:[%s12713_s3 + $0x34] sm:$0xf]  ;;  %v7090_v48 = vld [vmem:[%s12713_s3 + $0x18] sm:$0xf]  ;;  %v10822_v26 = vor.u32 %v9773_v7, %v9593_v44 }
 0x520   :  { %4270 = vmatmul.bf16.gmra.mxu1 %v10788_v31  ;;  %7370 = vperm.xlu0 %9791, %v7112_v27  }
 0x521   :  { %13239 = vst [vmem:[#allocation221_spill] sm:$0xff] %v10803_v2  ;;  %4359 = vmatmul.bf16.gmra.mxu2 %v10790_v6  ;;  %7235 = vperm.xlu2 %9793, %v7097_v34   ;;  %v9601_v6 = vld [vmem:[#allocation7 + $0x1d8] sm:$0xf0]  ;;  %v10820_v2 = vor.u32 %v9775_v46, %v9591_v62 }
 0x522   :  { %4448 = vmatmul.bf16.gmra.mxu3 %v10801_v3  ;;  %v9774_v3 = vld [vmem:[#allocation7 + $0x1cc] sm:$0xf]  ;;  %13241 = vst [vmem:[#allocation223_spill] sm:$0xff] %v10822_v26  ;;  %v7107_v34 = vld [vmem:[%s12713_s3 + $0x5c] sm:$0xf] }
 0x523   :  { %7172 = vperm.xlu1 %9792, %v7090_v48   ;;  %13240 = vst [vmem:[#allocation222_spill] sm:$0xff] %v10820_v2  ;;  %v10835_v48 = vor.u32 %v9774_v3, %v9601_v6 }
 0x524   :  { %v4320_v42 = vpop.f32.mrf.mxu2  ;;  %v4144_v51 = vpop.f32.mrf.mxu0 }
 0x525   :  { %v4321_v28 = vadd.f32 %v4320_v42, %v4232_v60  ;;  %v4409_v63 = vpop.f32.mrf.mxu3  ;;  %v4233_v5 = vpop.f32.mrf.mxu1  ;;  %v9599_v60 = vld [vmem:[#allocation7 + $0x1c8] sm:$0xf]  ;;  %v9776_v42 = vld [vmem:[#allocation7 + $0x1d4] sm:$0xf0]  ;;  %13243 = vst [vmem:[#allocation225_spill] sm:$0xff] %v10835_v48 }
 0x526   :  { %v4234_v15 = vadd.f32 %v4233_v5, %v4144_v51  ;;  %v10824_v27 = vor.u32 %v9776_v42, %v9599_v60  ;;  %v7094_v51 = vld [vmem:[%s12713_s3 + $0x28] sm:$0xf]  ;;  %v7104_v42 = vld [vmem:[%s12713_s3 + $0x50] sm:$0xf] }
 0x527   :  { %v10818_v12 = vadd.f32 %v4409_v63, %v4321_v28  ;;  %v7095_v63 = vld [vmem:[%s12713_s3 + $0x2c] sm:$0xf] }
 0x528   :  { %13242 = vst [vmem:[#allocation224_spill] sm:$0xff] %v10824_v27  ;;  %7217 = vperm.xlu0 %9791, %v7095_v63   ;;  %v9779_v63 = vld [vmem:[#allocation7 + $0x1ec] sm:$0xf0] }
 0x529   :  { %7208 = vperm.xlu2 %9793, %v7094_v51   ;;  %v9777_v51 = vld [vmem:[#allocation7 + $0x1e4] sm:$0xf] }
 0x52b   :  { %7325 = vperm.xlu1 %9792, %v7107_v34   ;;  %v9609_v34 = vld [vmem:[#allocation7 + $0x1f0] sm:$0xf0] }
 0x52c   :  { %v4322_v31 = vpop.f32.mrf.mxu2  ;;  %v4147_v28 = vpop.f32.mrf.mxu0 }
 0x52d   :  { %v4323_v56 = vadd.f32 %v4322_v31, %v4234_v15  ;;  %v4411_v36 = vpop.f32.mrf.mxu3  ;;  %v4236_v31 = vpop.f32.mrf.mxu1 }
 0x52e   :  { %v4237_v15 = vadd.f32 %v4236_v31, %v4147_v28  ;;  %v9607_v28 = vld [vmem:[#allocation7 + $0x1e0] sm:$0xf]  ;;  %v9615_v31 = vld [vmem:[#allocation7 + $0x1e8] sm:$0xf] }
 0x52f   :  { %v10837_v5 = vadd.f32 %v4411_v36, %v4323_v56  ;;  %4186 = vmatmul.bf16.gmra.mxu0 %v10820_v2  ;;  %v7111_v56 = vld [vmem:[%s12713_s3 + $0x6c] sm:$0xf]  ;;  %v7092_v36 = vld [vmem:[%s12713_s3 + $0x20] sm:$0xf] }
 0x530   :  { %4275 = vmatmul.bf16.gmra.mxu1 %v10822_v26  ;;  %7190 = vperm.xlu0 %9791, %v7092_v36  }
 0x531   :  { %13244 = vst [vmem:[#allocation226_spill] sm:$0xff] %v10837_v5  ;;  %4364 = vmatmul.bf16.gmra.mxu2 %v10824_v27  ;;  %7361 = vperm.xlu2 %9793, %v7111_v56  }
 0x532   :  { %4453 = vmatmul.bf16.gmra.mxu3 %v10835_v48  ;;  %v10856_v48 = vor.u32 %v9777_v51, %v9609_v34 }
 0x533   :  { %7298 = vperm.xlu1 %9792, %v7104_v42   ;;  %v7108_v42 = vld [vmem:[%s12713_s3 + $0x60] sm:$0xf] }
 0x534   :  { %v4325_v62 = vpop.f32.mrf.mxu2  ;;  %v4149_v6 = vpop.f32.mrf.mxu0  ;;  %13246 = vst [vmem:[#allocation228_spill] sm:$0xff] %v10856_v48 }
 0x535   :  { %v4326_v46 = vadd.f32 %v4325_v62, %v4237_v15  ;;  %v4414_v7 = vpop.f32.mrf.mxu3  ;;  %v4238_v3 = vpop.f32.mrf.mxu1  ;;  %v9780_v15 = vld [vmem:[#allocation7 + $0x1f4] sm:$0xf0]  ;;  %v9778_v62 = vld [vmem:[#allocation7 + $0x1ec] sm:$0xf] }
 0x536   :  { %v4239_v60 = vadd.f32 %v4238_v3, %v4149_v6  ;;  %v10854_v6 = vor.u32 %v9779_v63, %v9607_v28  ;;  %v10858_v27 = vor.u32 %v9780_v15, %v9615_v31  ;;  %v7087_v28 = vld [vmem:[%s12713_s3 + $0xc] sm:$0xf] }
 0x537   :  { %v10843_v44 = vadd.f32 %v4414_v7, %v4326_v46  ;;  %v9617_v46 = vld [vmem:[#allocation7 + $0x1f8] sm:$0xf0] }
 0x538   :  { %v10860_v5 = vor.u32 %v9778_v62, %v9617_v46  ;;  %v7106_v62 = vld [vmem:[%s12713_s3 + $0x58] sm:$0xf]  ;;  %v7091_v46 = vld [vmem:[%s12713_s3 + $0x1c] sm:$0xf] }
 0x539   :  { %13245 = vst [vmem:[#allocation227_spill] sm:$0xff] %v10843_v44  ;;  %7334 = vperm.xlu2 %9793, %v7108_v42  }
 0x53b   :  { %7145 = vperm.xlu1 %9792, %v7087_v28  }
 0x53c   :  { %v4327_v7 = vpop.f32.mrf.mxu2  ;;  %v4152_v26 = vpop.f32.mrf.mxu0 }
 0x53d   :  { %v4328_v3 = vadd.f32 %v4327_v7, %v4239_v60  ;;  %v4416_v44 = vpop.f32.mrf.mxu3  ;;  %v4241_v56 = vpop.f32.mrf.mxu1  ;;  %v7109_v60 = vld [vmem:[%s12713_s3 + $0x64] sm:$0xf]  ;;  %v7084_v7 = vld [vmem:[%s12713_s3] sm:$0xf] }
 0x53e   :  { %v4242_v2 = vadd.f32 %v4241_v56, %v4152_v26  ;;  %7343 = vperm.xlu0 %9791, %v7109_v60  }
 0x53f   :  { %v10862_v36 = vadd.f32 %v4416_v44, %v4328_v3  ;;  %4191 = vmatmul.bf16.gmra.mxu0 %v10854_v6 }
 0x540   :  { %4280 = vmatmul.bf16.gmra.mxu1 %v10856_v48 }
 0x541   :  { %4369 = vmatmul.bf16.gmra.mxu2 %v10858_v27  ;;  %7181 = vperm.xlu2 %9793, %v7091_v46  }
 0x542   :  { %4458 = vmatmul.bf16.gmra.mxu3 %v10860_v5 }
 0x543   :  { %7118 = vperm.xlu1 %9792, %v7084_v7  }
 0x544   :  { %v4330_v26 = vpop.f32.mrf.mxu2  ;;  %v4154_v51 = vpop.f32.mrf.mxu0 }
 0x545   :  { %v4331_v44 = vadd.f32 %v4330_v26, %v4242_v2  ;;  %v4419_v63 = vpop.f32.mrf.mxu3  ;;  %v4243_v34 = vpop.f32.mrf.mxu1 }
 0x546   :  { %v4244_v15 = vadd.f32 %v4243_v34, %v4154_v51  ;;  %7316 = vperm.xlu0 %9791, %v7106_v62   ;;  %v7088_v51 = vld [vmem:[%s12713_s3 + $0x10] sm:$0xf] }
 0x547   :  { %v10877_v31 = vadd.f32 %v4419_v63, %v4331_v44  ;;  %v7089_v44 = vld [vmem:[%s12713_s3 + $0x14] sm:$0xf]  ;;  %v13247_v63 = vld [vmem:[#allocation24_spill] sm:$0xff] }
 0x548   :  { %v13248_v34 = vld [vmem:[#allocation37_spill] sm:$0xff] }
 0x549   :  { %7154 = vperm.xlu2 %9793, %v7088_v51   ;;  %v13254_v51 = vld [vmem:[#allocation48_spill] sm:$0xff] }
 0x54c   :  { %v4332_v2 = vpop.f32.mrf.mxu2  ;;  %v4157_v42 = vpop.f32.mrf.mxu0 }
 0x54d   :  { %v4333_v3 = vadd.f32 %v4332_v2, %v4244_v15  ;;  %v4421_v56 = vpop.f32.mrf.mxu3  ;;  %v4246_v60 = vpop.f32.mrf.mxu1  ;;  %v13249_v2 = vld [vmem:[#allocation23_spill] sm:$0xff] }
 0x54e   :  { %v4247_v26 = vadd.f32 %v4246_v60, %v4157_v42  ;;  %7163 = vperm.xlu0 %9791, %v7089_v44   ;;  %v13251_v42 = vld [vmem:[#allocation49_spill] sm:$0xff]  ;;  %v13253_v44 = vld [vmem:[#allocation35_spill] sm:$0xff] }
 0x54f   :  { %v10888_v28 = vadd.f32 %v4421_v56, %v4333_v3  ;;  %4472 = vmatmul.bf16.vlgmr.msrb.gmra.mxu0 %v10497_v59  ;;  %v13250_v56 = vld [vmem:[#allocation36_spill] sm:$0xff] }
 0x550   :  { %4561 = vmatmul.bf16.vlgmr.msrb.gmra.mxu1 %v10499_v24  ;;  %5176 = vmatpush.bf16.msrb.mxu0 %v13247_v63 }
 0x551   :  { %4650 = vmatmul.bf16.vlgmr.msrb.gmra.mxu2 %v10501_v22  ;;  %5265 = vmatpush.bf16.msrb.mxu1 %v13248_v34 }
 0x552   :  { %4739 = vmatmul.bf16.vlgmr.msrb.gmra.mxu3 %v10503_v19  ;;  %5354 = vmatpush.bf16.msrb.mxu2 %v10189_v37  ;;  %v7086_v37 = vld [vmem:[%s12713_s3 + $0x8] sm:$0xf] }
 0x553   :  { %5443 = vmatpush.bf16.msrb.mxu3 %v10291_v57  ;;  %v13252_v57 = vld [vmem:[#allocation22_spill] sm:$0xff] }
 0x554   :  { %v4335_v15 = vpop.f32.mrf.mxu2  ;;  %v4159_v7 = vpop.f32.mrf.mxu0  ;;  %5177 = vmatpush.bf16.msrb.mxu0 %v13249_v2  ;;  %v13256_v2 = vld [vmem:[#allocation34_spill] sm:$0xff] }
 0x555   :  { %v4336_v62 = vadd.f32 %v4335_v15, %v4247_v26  ;;  %v4424_v46 = vpop.f32.mrf.mxu3  ;;  %v4248_v3 = vpop.f32.mrf.mxu1  ;;  %5266 = vmatpush.bf16.msrb.mxu1 %v13250_v56  ;;  %v7105_v26 = vld [vmem:[%s12713_s3 + $0x54] sm:$0xf] }
 0x556   :  { %5355 = vmatpush.bf16.msrb.mxu2 %v13251_v42  ;;  %v4249_v63 = vadd.f32 %v4248_v3, %v4159_v7  ;;  %7136 = vperm.xlu0 %9791, %v7086_v37   ;;  %v13257_v3 = vld [vmem:[#allocation47_spill] sm:$0xff]  ;;  %v13259_v37 = vld [vmem:[#allocation32_spill] sm:$0xff] }
 0x557   :  { %v10907_v60 = vadd.f32 %v4424_v46, %v4336_v62  ;;  %5444 = vmatpush.bf16.msrb.mxu3 %v10283_v8  ;;  %7307 = vperm.xlu2 %9793, %v7105_v26   ;;  %v13255_v46 = vld [vmem:[#allocation21_spill] sm:$0xff] }
 0x558   :  { %5178 = vmatpush.bf16.msrb.mxu0 %v13252_v57  ;;  %v13260_v57 = vld [vmem:[#allocation45_spill] sm:$0xff] }
 0x559   :  { %5267 = vmatpush.bf16.msrb.mxu1 %v13253_v44 }
 0x55a   :  { %5356 = vmatpush.bf16.msrb.mxu2 %v13254_v51 }
 0x55b   :  { %5445 = vmatpush.bf16.msrb.mxu3 %v10275_v38  ;;  %v13258_v38 = vld [vmem:[#allocation19_spill] sm:$0xff] }
 0x55c   :  { %v4337_v34 = vpop.f32.mrf.mxu2  ;;  %v4162_v62 = vpop.f32.mrf.mxu0  ;;  %5179 = vmatpush.bf16.msrb.mxu0 %v13255_v46 }
 0x55d   :  { %v4338_v15 = vadd.f32 %v4337_v34, %v4249_v63  ;;  %v4426_v8 = vpop.f32.mrf.mxu3  ;;  %v4251_v7 = vpop.f32.mrf.mxu1  ;;  %5268 = vmatpush.bf16.msrb.mxu1 %v13256_v2  ;;  %v7102_v63 = vld [vmem:[%s12713_s3 + $0x48] sm:$0xf]  ;;  %v13261_v34 = vld [vmem:[#allocation17_spill] sm:$0xff]  ;;  %v13264_v2 = vld [vmem:[#allocation15_spill] sm:$0xff] }
 0x55e   :  { %5357 = vmatpush.bf16.msrb.mxu2 %v13257_v3  ;;  %v4252_v42 = vadd.f32 %v4251_v7, %v4162_v62  ;;  %v13263_v62 = vld [vmem:[#allocation43_spill] sm:$0xff]  ;;  %v13265_v3 = vld [vmem:[#allocation28_spill] sm:$0xff] }
 0x55f   :  { %v10923_v56 = vadd.f32 %v4426_v8, %v4338_v15  ;;  %5446 = vmatpush.bf16.msrb.mxu3 %v10265_v41  ;;  %4477 = vmatmul.bf16.gmra.mxu0 %v10529_v11  ;;  %v13262_v8 = vld [vmem:[#allocation30_spill] sm:$0xff] }
 0x560   :  { %4566 = vmatmul.bf16.gmra.mxu1 %v10531_v20  ;;  %5180 = vmatpush.bf16.msrb.mxu0 %v13258_v38 }
 0x561   :  { %4655 = vmatmul.bf16.gmra.mxu2 %v10533_v1  ;;  %5269 = vmatpush.bf16.msrb.mxu1 %v13259_v37 }
 0x562   :  { %4744 = vmatmul.bf16.gmra.mxu3 %v10536_v32  ;;  %5358 = vmatpush.bf16.msrb.mxu2 %v13260_v57 }
 0x563   :  { %5447 = vmatpush.bf16.msrb.mxu3 %v10255_v58  ;;  %7280 = vperm.xlu2 %9793, %v7102_v63   ;;  %v7085_v58 = vld [vmem:[%s12713_s3 + $0x4] sm:$0xf] }
 0x564   :  { %v4340_v41 = vpop.f32.mrf.mxu2  ;;  %v4164_v51 = vpop.f32.mrf.mxu0  ;;  %5181 = vmatpush.bf16.msrb.mxu0 %v13261_v34 }
 0x565   :  { %v4341_v26 = vadd.f32 %v4340_v41, %v4252_v42  ;;  %v4429_v44 = vpop.f32.mrf.mxu3  ;;  %v4253_v15 = vpop.f32.mrf.mxu1  ;;  %5270 = vmatpush.bf16.msrb.mxu1 %v13262_v8  ;;  %v13266_v42 = vld [vmem:[#allocation41_spill] sm:$0xff] }
 0x566   :  { %5359 = vmatpush.bf16.msrb.mxu2 %v13263_v62  ;;  %v4254_v7 = vadd.f32 %v4253_v15, %v4164_v51  ;;  %v13267_v41 = vld [vmem:[#allocation13_spill] sm:$0xff] }
 0x567   :  { %v10940_v46 = vadd.f32 %v4429_v44, %v4341_v26  ;;  %5448 = vmatpush.bf16.msrb.mxu3 %v10243_v0  ;;  %v13268_v26 = vld [vmem:[#allocation26_spill] sm:$0xff]  ;;  %v13269_v44 = vld [vmem:[#allocation39_spill] sm:$0xff] }
 0x568   :  { %5182 = vmatpush.bf16.msrb.mxu0 %v13264_v2 }
 0x569   :  { %5271 = vmatpush.bf16.msrb.mxu1 %v13265_v3 }
 0x56a   :  { %5360 = vmatpush.bf16.msrb.mxu2 %v13266_v42 }
 0x56b   :  { %5449 = vmatpush.bf16.msrb.mxu3 %v10231_v50  ;;  %7127 = vperm.xlu2 %9793, %v7085_v58  }
 0x56c   :  { %v4342_v38 = vpop.f32.mrf.mxu2  ;;  %v4167_v57 = vpop.f32.mrf.mxu0  ;;  %5183 = vmatpush.bf16.msrb.mxu0 %v13267_v41 }
 0x56d   :  { %v4343_v63 = vadd.f32 %v4342_v38, %v4254_v7  ;;  %v4431_v37 = vpop.f32.mrf.mxu3  ;;  %v4256_v0 = vpop.f32.mrf.mxu1  ;;  %5272 = vmatpush.bf16.msrb.mxu1 %v13268_v26 }
 0x56e   :  { %5361 = vmatpush.bf16.msrb.mxu2 %v13269_v44  ;;  %v4257_v34 = vadd.f32 %v4256_v0, %v4167_v57  ;;  %v10962_v42 = vpop.permute.xlu1 %7388 }
 0x56f   :  { %v10953_v51 = vadd.f32 %v4431_v37, %v4343_v63  ;;  %5450 = vmatpush.bf16.msrb.mxu3 %v10208_v4  ;;  %4482 = vmatmul.bf16.gmra.mxu0 %v10565_v45  ;;  %13270 = vst [vmem:[#allocation24_spill] sm:$0xff] %v10962_v42 }
 0x570   :  { %4571 = vmatmul.bf16.gmra.mxu1 %v10567_v43 }
 0x571   :  { %4660 = vmatmul.bf16.gmra.mxu2 %v10569_v49  ;;  %v10967_v0 = vpop.permute.xlu2 %7226 }
 0x572   :  { %4749 = vmatmul.bf16.gmra.mxu3 %v10572_v14 }
 0x574   :  { %v4345_v50 = vpop.f32.mrf.mxu2  ;;  %v4169_v62 = vpop.f32.mrf.mxu0 }
 0x575   :  { %v4346_v15 = vadd.f32 %v4345_v50, %v4257_v34  ;;  %v4434_v8 = vpop.f32.mrf.mxu3  ;;  %v4258_v7 = vpop.f32.mrf.mxu1 }
 0x576   :  { %v4259_v58 = vadd.f32 %v4258_v7, %v4169_v62 }
 0x577   :  { %v10960_v2 = vadd.f32 %v4434_v8, %v4346_v15  ;;  %v10972_v8 = vpop.permute.xlu1 %7397 }
 0x578   :  { %13272 = vst [vmem:[#allocation23_spill] sm:$0xff] %v10972_v8 }
 0x57c   :  { %v4347_v3 = vpop.f32.mrf.mxu2  ;;  %v4172_v63 = vpop.f32.mrf.mxu0 }
 0x57d   :  { %v4348_v4 = vadd.f32 %v4347_v3, %v4259_v58  ;;  %v4436_v38 = vpop.f32.mrf.mxu3  ;;  %v4261_v37 = vpop.f32.mrf.mxu1 }
 0x57e   :  { %v4262_v41 = vadd.f32 %v4261_v37, %v4172_v63  ;;  %v10976_v58 = vpop.permute.xlu2 %7235 }
 0x57f   :  { %v10964_v57 = vadd.f32 %v4436_v38, %v4348_v4  ;;  %4487 = vmatmul.bf16.gmra.mxu0 %v10589_v13 }
 0x580   :  { %4576 = vmatmul.bf16.gmra.mxu1 %v10591_v39  ;;  %v13301_v39 = vld [vmem:[#allocation194_spill] sm:$0xff] }
 0x581   :  { %13271 = vst [vmem:[#allocation37_spill] sm:$0xff] %v10964_v57  ;;  %4665 = vmatmul.bf16.gmra.mxu2 %v10593_v55 }
 0x582   :  { %4754 = vmatmul.bf16.gmra.mxu3 %v10595_v9 }
 0x584   :  { %v4350_v26 = vpop.f32.mrf.mxu2  ;;  %v4174_v50 = vpop.f32.mrf.mxu0 }
 0x585   :  { %v4351_v44 = vadd.f32 %v4350_v26, %v4262_v41  ;;  %v4439_v34 = vpop.f32.mrf.mxu3  ;;  %v4263_v15 = vpop.f32.mrf.mxu1 }
 0x586   :  { %v4264_v7 = vadd.f32 %v4263_v15, %v4174_v50  ;;  %v10981_v41 = vpop.permute.xlu1 %7379 }
 0x587   :  { %v10974_v62 = vadd.f32 %v4439_v34, %v4351_v44  ;;  %13275 = vst [vmem:[#allocation22_spill] sm:$0xff] %v10981_v41  ;;  %v10986_v44 = vpop.permute.xlu2 %7208 }
 0x589   :  { %13273 = vst [vmem:[#allocation36_spill] sm:$0xff] %v10974_v62 }
 0x58c   :  { %v4352_v3 = vpop.f32.mrf.mxu2  ;;  %v4177_v63 = vpop.f32.mrf.mxu0 }
 0x58d   :  { %v4353_v4 = vadd.f32 %v4352_v3, %v4264_v7  ;;  %v4441_v38 = vpop.f32.mrf.mxu3  ;;  %v4266_v37 = vpop.f32.mrf.mxu1 }
 0x58e   :  { %v4267_v9 = vadd.f32 %v4266_v37, %v4177_v63  ;;  %v10988_v3 = vpop.permute.xlu0 %7244  ;;  %v10992_v63 = vpop.permute.xlu1 %7352 }
 0x58f   :  { %v10978_v42 = vadd.f32 %v4441_v38, %v4353_v4  ;;  %4492 = vmatmul.bf16.gmra.mxu0 %v10609_v25  ;;  %13277 = vst [vmem:[#allocation48_spill] sm:$0xff] %v10992_v63 }
 0x590   :  { %4581 = vmatmul.bf16.gmra.mxu1 %v10611_v21 }
 0x591   :  { %13274 = vst [vmem:[#allocation49_spill] sm:$0xff] %v10978_v42  ;;  %4670 = vmatmul.bf16.gmra.mxu2 %v10613_v30 }
 0x592   :  { %4759 = vmatmul.bf16.gmra.mxu3 %v10615_v23  ;;  %v10994_v23 = vpop.permute.xlu2 %7361 }
 0x593   :  { %13278 = vst [vmem:[#allocation21_spill] sm:$0xff] %v10994_v23 }
 0x594   :  { %v4355_v26 = vpop.f32.mrf.mxu2  ;;  %v4179_v15 = vpop.f32.mrf.mxu0 }
 0x595   :  { %v4356_v34 = vadd.f32 %v4355_v26, %v4267_v9  ;;  %v4444_v50 = vpop.f32.mrf.mxu3  ;;  %v4268_v7 = vpop.f32.mrf.mxu1 }
 0x596   :  { %v4269_v38 = vadd.f32 %v4268_v7, %v4179_v15  ;;  %v10999_v26 = vpop.permute.xlu0 %7253 }
 0x597   :  { %v10990_v4 = vadd.f32 %v4444_v50, %v4356_v34  ;;  %v11004_v50 = vpop.permute.xlu1 %7199 }
 0x599   :  { %13276 = vst [vmem:[#allocation35_spill] sm:$0xff] %v10990_v4 }
 0x59c   :  { %v4357_v37 = vpop.f32.mrf.mxu2  ;;  %v4182_v30 = vpop.f32.mrf.mxu0 }
 0x59d   :  { %v4358_v8 = vadd.f32 %v4357_v37, %v4269_v38  ;;  %v4446_v41 = vpop.f32.mrf.mxu3  ;;  %v4271_v21 = vpop.f32.mrf.mxu1 }
 0x59e   :  { %v4272_v9 = vadd.f32 %v4271_v21, %v4182_v30  ;;  %v11008_v30 = vpop.permute.xlu2 %7334 }
 0x59f   :  { %v10996_v42 = vadd.f32 %v4446_v41, %v4358_v8  ;;  %4497 = vmatmul.bf16.gmra.mxu0 %v10629_v53  ;;  %13281 = vst [vmem:[#allocation19_spill] sm:$0xff] %v11008_v30  ;;  %v11010_v41 = vpop.permute.xlu0 %7370 }
 0x5a0   :  { %4586 = vmatmul.bf16.gmra.mxu1 %v10631_v54  ;;  %13282 = vst [vmem:[#allocation32_spill] sm:$0xff] %v11010_v41 }
 0x5a1   :  { %13279 = vst [vmem:[#allocation34_spill] sm:$0xff] %v10996_v42  ;;  %4675 = vmatmul.bf16.gmra.mxu2 %v10633_v17 }
 0x5a2   :  { %4764 = vmatmul.bf16.gmra.mxu3 %v10635_v47  ;;  %v11012_v47 = vpop.permute.xlu1 %7172 }
 0x5a4   :  { %v4360_v34 = vpop.f32.mrf.mxu2  ;;  %v4184_v38 = vpop.f32.mrf.mxu0 }
 0x5a5   :  { %v4361_v15 = vadd.f32 %v4360_v34, %v4272_v9  ;;  %v4449_v7 = vpop.f32.mrf.mxu3  ;;  %v4273_v37 = vpop.f32.mrf.mxu1 }
 0x5a6   :  { %v4274_v21 = vadd.f32 %v4273_v37, %v4184_v38  ;;  %v11020_v34 = vpop.permute.xlu2 %7181 }
 0x5a7   :  { %v11006_v8 = vadd.f32 %v4449_v7, %v4361_v15 }
 0x5a9   :  { %13280 = vst [vmem:[#allocation47_spill] sm:$0xff] %v11006_v8 }
 0x5ac   :  { %v4362_v23 = vpop.f32.mrf.mxu2  ;;  %v4187_v17 = vpop.f32.mrf.mxu0 }
 0x5ad   :  { %v4363_v63 = vadd.f32 %v4362_v23, %v4274_v21  ;;  %v4451_v54 = vpop.f32.mrf.mxu3  ;;  %v4276_v42 = vpop.f32.mrf.mxu1 }
 0x5ae   :  { %v4277_v9 = vadd.f32 %v4276_v42, %v4187_v17  ;;  %v11022_v23 = vpop.permute.xlu0 %7217  ;;  %v11026_v42 = vpop.permute.xlu1 %7325 }
 0x5af   :  { %v11014_v53 = vadd.f32 %v4451_v54, %v4363_v63  ;;  %4502 = vmatmul.bf16.gmra.mxu0 %v10649_v33  ;;  %13285 = vst [vmem:[#allocation30_spill] sm:$0xff] %v11026_v42  ;;  %v11028_v41 = vpop.permute.xlu2 %7154 }
 0x5b0   :  { %4591 = vmatmul.bf16.gmra.mxu1 %v10651_v10 }
 0x5b1   :  { %13283 = vst [vmem:[#allocation45_spill] sm:$0xff] %v11014_v53  ;;  %4680 = vmatmul.bf16.gmra.mxu2 %v10653_v18  ;;  %v7103_v53 = vld [vmem:[%s12713_s3 + $0x4c] sm:$0xf] }
 0x5b2   :  { %4769 = vmatmul.bf16.gmra.mxu3 %v10655_v52  ;;  %7289 = vperm.xlu0 %9791, %v7103_v53   ;;  %v7100_v53 = vld [vmem:[%s12713_s3 + $0x40] sm:$0xf] }
 0x5b4   :  { %v4365_v15 = vpop.f32.mrf.mxu2  ;;  %v4189_v37 = vpop.f32.mrf.mxu0 }
 0x5b5   :  { %v4366_v7 = vadd.f32 %v4365_v15, %v4277_v9  ;;  %v4454_v38 = vpop.f32.mrf.mxu3  ;;  %v4278_v21 = vpop.f32.mrf.mxu1 }
 0x5b6   :  { %v4279_v17 = vadd.f32 %v4278_v21, %v4189_v37  ;;  %v11033_v9 = vpop.permute.xlu0 %7190  ;;  %v13288_v37 = vld [vmem:[#allocation181_spill] sm:$0xff]  ;;  %v11041_v21 = vpop.permute.xlu1 %7298 }
 0x5b7   :  { %v11024_v54 = vadd.f32 %v4454_v38, %v4366_v7  ;;  %v13287_v38 = vld [vmem:[#allocation180_spill] sm:$0xff]  ;;  %13289 = vst [vmem:[#allocation15_spill] sm:$0xff] %v11041_v21  ;;  %v13304_v21 = vld [vmem:[#allocation198_spill] sm:$0xff] }
 0x5b9   :  { %13284 = vst [vmem:[#allocation17_spill] sm:$0xff] %v11024_v54 }
 0x5ba   :  { %7262 = vperm.xlu0 %9791, %v7100_v53  }
 0x5bc   :  { %v4367_v63 = vpop.f32.mrf.mxu2  ;;  %v4192_v52 = vpop.f32.mrf.mxu0 }
 0x5bd   :  { %v4368_v18 = vadd.f32 %v4367_v63, %v4279_v17  ;;  %v4456_v10 = vpop.f32.mrf.mxu3  ;;  %v4281_v33 = vpop.f32.mrf.mxu1 }
 0x5be   :  { %v4282_v7 = vadd.f32 %v4281_v33, %v4192_v52  ;;  %v11046_v33 = vpop.permute.xlu2 %7307 }
 0x5bf   :  { %v11035_v15 = vadd.f32 %v4456_v10, %v4368_v18  ;;  %4507 = vmatmul.bf16.gmra.mxu0 %v10669_v35  ;;  %13290 = vst [vmem:[#allocation28_spill] sm:$0xff] %v11046_v33  ;;  %v7101_v35 = vld [vmem:[%s12713_s3 + $0x44] sm:$0xf] }
 0x5c0   :  { %4596 = vmatmul.bf16.gmra.mxu1 %v10671_v40  ;;  %v11052_v40 = vpop.permute.xlu1 %7145  ;;  %7271 = vperm.xlu1 %9792, %v7101_v35  }
 0x5c1   :  { %13286 = vst [vmem:[#allocation43_spill] sm:$0xff] %v11035_v15  ;;  %4685 = vmatmul.bf16.gmra.mxu2 %v13287_v38  ;;  %v11050_v38 = vpop.permute.xlu0 %7343 }
 0x5c2   :  { %4774 = vmatmul.bf16.gmra.mxu3 %v13288_v37  ;;  %13292 = vst [vmem:[#allocation13_spill] sm:$0xff] %v11050_v38  ;;  %v13296_v38 = vld [vmem:[#allocation192_spill] sm:$0xff] }
 0x5c4   :  { %v4370_v17 = vpop.f32.mrf.mxu2  ;;  %v4194_v8 = vpop.f32.mrf.mxu0 }
 0x5c5   :  { %v4371_v63 = vadd.f32 %v4370_v17, %v4282_v7  ;;  %v4459_v54 = vpop.f32.mrf.mxu3  ;;  %v4283_v10 = vpop.f32.mrf.mxu1 }
 0x5c6   :  { %v4284_v52 = vadd.f32 %v4283_v10, %v4194_v8  ;;  %v11060_v8 = vpop.permute.xlu2 %7280 }
 0x5c7   :  { %v11048_v18 = vadd.f32 %v4459_v54, %v4371_v63  ;;  %v9936_v54 = vmov 839922192   ;;  %v13294_v63 = vld [vmem:[#allocation189_spill] sm:$0xff] }
 0x5c9   :  { %13291 = vst [vmem:[#allocation41_spill] sm:$0xff] %v11048_v18  ;;  %v11065_v10 = vpop.permute.xlu0 %7316 }
 0x5ca   :  { %13295 = vst [vmem:[#allocation39_spill] sm:$0xff] %v11065_v10 }
 0x5cc   :  { %v4372_v37 = vpop.f32.mrf.mxu2  ;;  %v4473_v17 = vpop.f32.mrf.mxu0 }
 0x5cd   :  { %v4373_v15 = vadd.f32 %v4372_v37, %v4284_v52  ;;  %v4461_v7 = vpop.f32.mrf.mxu3  ;;  %v4562_v30 = vpop.f32.mrf.mxu1  ;;  %v7122_v37 = vunpack.c.l.s4 %v9936_v54 }
 0x5ce   :  { %v4563_v53 = vadd.f32 %v4562_v30, %v4473_v17  ;;  %v7128_v25 = vpop.permute.xlu2 %7127 }
 0x5cf   :  { %v11057_v4 = vadd.f32 %v4461_v7, %v4373_v15  ;;  %4512 = vmatmul.bf16.gmra.mxu0 %v10689_v16  ;;  %v11067_v7 = vunpack.c.0.s8 %v7122_v37 }
 0x5d0   :  { %4601 = vmatmul.bf16.gmra.mxu1 %v10691_v29 }
 0x5d1   :  { %13293 = vst [vmem:[#allocation26_spill] sm:$0xff] %v11057_v4  ;;  %4690 = vmatmul.bf16.gmra.mxu2 %v10693_v61  ;;  %v7119_v4 = vpop.permute.xlu1 %7118  ;;  %v11071_v42 = vpop.permute.xlu0 %7163 }
 0x5d2   :  { %4779 = vmatmul.bf16.gmra.mxu3 %v13294_v63  ;;  %v7124_v61 = vperm.slane %v7119_v4, %v11067_v7 }
 0x5d4   :  { %v4651_v52 = vpop.f32.mrf.mxu2  ;;  %v4475_v15 = vpop.f32.mrf.mxu0  ;;  %v11074_v55 = vunpack.c.l.bf16 %v7124_v61 }
 0x5d5   :  { %v4652_v18 = vadd.f32 %v4651_v52, %v4563_v53  ;;  %v4740_v35 = vpop.f32.mrf.mxu3  ;;  %v4564_v30 = vpop.f32.mrf.mxu1  ;;  %v7133_v53 = vperm.slane %v7128_v25, %v11067_v7 }
 0x5d6   :  { %v4565_v16 = vadd.f32 %v4564_v30, %v4475_v15  ;;  %13297 = vst [vmem:[#allocation192_spill] sm:$0xff] %v11074_v55  ;;  %v13298_v30 = vld [vmem:[#allocation193_spill] sm:$0xff] }
 0x5d7   :  { %v4741_v17 = vadd.f32 %v4740_v35, %v4652_v18 }
 0x5d9   :  { %v6956_v29 = vpack.c.bf16 %v4741_v17, %v13296_v38  ;;  %v13299_v38 = vld [vmem:[#allocation197_spill] sm:$0xff]  ;;  %v11078_v17 = vunpack.c.l.bf16 %v7133_v53  ;;  %v7137_v13 = vpop.permute.xlu0 %7136 }
 0x5db   :  { %v7404_v62 = vunpack.c.l.bf16 %v6956_v29  ;;  %v7405_v37 = vunpack.c.h.bf16 %v6956_v29  ;;  %13300 = vst [vmem:[#allocation197_spill] sm:$0xff] %v11078_v17 }
 0x5dc   :  { %v4653_v54 = vpop.f32.mrf.mxu2  ;;  %v4478_v52 = vpop.f32.mrf.mxu0 }
 0x5dd   :  { %v4654_v63 = vadd.f32 %v4653_v54, %v4565_v16  ;;  %v4742_v10 = vpop.f32.mrf.mxu3  ;;  %v4567_v18 = vpop.f32.mrf.mxu1  ;;  %v13302_v16 = vld [vmem:[#allocation195_spill] sm:$0xff]  ;;  %v13303_v54 = vld [vmem:[#allocation196_spill] sm:$0xff]  ;;  %v7692_v25 = vadd.f32 %v11074_v55, %v7404_v62  ;;  %v7693_v29 = vadd.f32 %v11074_v55, %v7405_v37 }
 0x5de   :  { %v4568_v15 = vadd.f32 %v4567_v18, %v4478_v52 }
 0x5df   :  { %v4743_v35 = vadd.f32 %v4742_v10, %v4654_v63  ;;  %4517 = vmatmul.bf16.gmra.mxu0 %v13298_v30  ;;  %v8333_v30 = vmax.f32 %v7693_v29, 0.0 }
 0x5e0   :  { %4606 = vmatmul.bf16.gmra.mxu1 %v13301_v39  ;;  %v8332_v39 = vmax.f32 %v7692_v25, 0.0 }
 0x5e1   :  { %v6960_v4 = vpack.c.bf16 %v4743_v35, %v13299_v38  ;;  %4695 = vmatmul.bf16.gmra.mxu2 %v13302_v16 }
 0x5e2   :  { %4784 = vmatmul.bf16.gmra.mxu3 %v13303_v54 }
 0x5e3   :  { %v7412_v61 = vunpack.c.l.bf16 %v6960_v4  ;;  %v7413_v57 = vunpack.c.h.bf16 %v6960_v4 }
 0x5e4   :  { %v4656_v63 = vpop.f32.mrf.mxu2  ;;  %v4480_v18 = vpop.f32.mrf.mxu0 }
 0x5e5   :  { %v4657_v10 = vadd.f32 %v4656_v63, %v4568_v15  ;;  %v4745_v52 = vpop.f32.mrf.mxu3  ;;  %v7700_v35 = vadd.f32 %v11078_v17, %v7412_v61  ;;  %v7701_v53 = vadd.f32 %v11078_v17, %v7413_v57  ;;  %v4569_v38 = vpop.f32.mrf.mxu1  ;;  %v7142_v15 = vperm.slane %v7137_v13, %v11067_v7 }
 0x5e6   :  { %v4570_v54 = vadd.f32 %v4569_v38, %v4480_v18  ;;  %v7151_v57 = vperm.slane %v11052_v40, %v11067_v7  ;;  %v13312_v38 = vld [vmem:[#allocation201_spill] sm:$0xff]  ;;  %v13313_v40 = vld [vmem:[#allocation202_spill] sm:$0xff] }
 0x5e7   :  { %v4746_v16 = vadd.f32 %v4745_v52, %v4657_v10  ;;  %v8340_v33 = vmax.f32 %v7700_v35, 0.0  ;;  %v8341_v62 = vmax.f32 %v7701_v53, 0.0  ;;  %v11095_v18 = vunpack.c.l.bf16 %v7142_v15 }
 0x5e9   :  { %v6964_v37 = vpack.c.bf16 %v4746_v16, %v13304_v21  ;;  %v11088_v55 = vpack.c.bf16 %v8340_v33, %v8332_v39  ;;  %v11090_v4 = vpack.c.bf16 %v8341_v62, %v8333_v30  ;;  %13307 = vst [vmem:[#allocation230_spill] sm:$0xff] %v11095_v18  ;;  %v13308_v39 = vld [vmem:[#allocation199_spill] sm:$0xff]  ;;  %v11098_v33 = vunpack.c.l.bf16 %v7151_v57  ;;  %v13311_v16 = vld [vmem:[#allocation200_spill] sm:$0xff] }
 0x5ea   :  { %v13310_v30 = vld [vmem:[#allocation203_spill] sm:$0xff] }
 0x5eb   :  { %13305 = vst [vmem:[#allocation198_spill] sm:$0xff] %v11088_v55  ;;  %v7420_v10 = vunpack.c.l.bf16 %v6964_v37  ;;  %v7421_v52 = vunpack.c.h.bf16 %v6964_v37 }
 0x5ec   :  { %13306 = vst [vmem:[#allocation229_spill] sm:$0xff] %v11090_v4  ;;  %v4658_v63 = vpop.f32.mrf.mxu2  ;;  %v4483_v29 = vpop.f32.mrf.mxu0 }
 0x5ed   :  { %v4659_v61 = vadd.f32 %v4658_v63, %v4570_v54  ;;  %v4747_v25 = vpop.f32.mrf.mxu3  ;;  %v4572_v35 = vpop.f32.mrf.mxu1  ;;  %13309 = vst [vmem:[#allocation199_spill] sm:$0xff] %v11098_v33  ;;  %v7708_v54 = vadd.f32 %v11095_v18, %v7420_v10  ;;  %v7709_v62 = vadd.f32 %v11095_v18, %v7421_v52  ;;  %v13314_v10 = vld [vmem:[#allocation204_spill] sm:$0xff] }
 0x5ee   :  { %v4573_v21 = vadd.f32 %v4572_v35, %v4483_v29 }
 0x5ef   :  { %v4748_v53 = vadd.f32 %v4747_v25, %v4659_v61  ;;  %4522 = vmatmul.bf16.gmra.mxu0 %v13308_v39  ;;  %v8349_v4 = vmax.f32 %v7709_v62, 0.0 }
 0x5f0   :  { %4611 = vmatmul.bf16.gmra.mxu1 %v13311_v16 }
 0x5f1   :  { %v6968_v13 = vpack.c.bf16 %v4748_v53, %v13310_v30  ;;  %4700 = vmatmul.bf16.gmra.mxu2 %v13312_v38  ;;  %v8348_v30 = vmax.f32 %v7708_v54, 0.0 }
 0x5f2   :  { %4789 = vmatmul.bf16.gmra.mxu3 %v13313_v40 }
 0x5f3   :  { %v7428_v37 = vunpack.c.l.bf16 %v6968_v13  ;;  %v7429_v15 = vunpack.c.h.bf16 %v6968_v13 }
 0x5f4   :  { %v4661_v63 = vpop.f32.mrf.mxu2  ;;  %v4485_v29 = vpop.f32.mrf.mxu0 }
 0x5f5   :  { %v4662_v61 = vadd.f32 %v4661_v63, %v4573_v21  ;;  %v4750_v25 = vpop.f32.mrf.mxu3  ;;  %v7716_v57 = vadd.f32 %v11098_v33, %v7428_v37  ;;  %v7717_v35 = vadd.f32 %v11098_v33, %v7429_v15  ;;  %v4574_v53 = vpop.f32.mrf.mxu1  ;;  %v7160_v21 = vperm.slane %v11028_v41, %v11067_v7 }
 0x5f6   :  { %v4575_v17 = vadd.f32 %v4574_v53, %v4485_v29  ;;  %v7169_v37 = vperm.slane %v11071_v42, %v11067_v7  ;;  %v13321_v53 = vld [vmem:[#allocation206_spill] sm:$0xff]  ;;  %v13323_v42 = vld [vmem:[#allocation208_spill] sm:$0xff] }
 0x5f7   :  { %v4751_v55 = vadd.f32 %v4750_v25, %v4662_v61  ;;  %v8356_v40 = vmax.f32 %v7716_v57, 0.0  ;;  %v8357_v38 = vmax.f32 %v7717_v35, 0.0  ;;  %v11117_v61 = vunpack.c.l.bf16 %v7160_v21  ;;  %v13318_v35 = vld [vmem:[#allocation205_spill] sm:$0xff] }
 0x5f9   :  { %v6972_v16 = vpack.c.bf16 %v4751_v55, %v13314_v10  ;;  %v11109_v52 = vpack.c.bf16 %v8356_v40, %v8348_v30  ;;  %v11111_v13 = vpack.c.bf16 %v8357_v38, %v8349_v4  ;;  %13317 = vst [vmem:[#allocation231_spill] sm:$0xff] %v11117_v61  ;;  %v11120_v4 = vunpack.c.l.bf16 %v7169_v37  ;;  %v13320_v38 = vld [vmem:[#allocation209_spill] sm:$0xff]  ;;  %v13322_v30 = vld [vmem:[#allocation207_spill] sm:$0xff] }
 0x5fb   :  { %13315 = vst [vmem:[#allocation203_spill] sm:$0xff] %v11109_v52  ;;  %v7436_v25 = vunpack.c.l.bf16 %v6972_v16  ;;  %v7437_v29 = vunpack.c.h.bf16 %v6972_v16 }
 0x5fc   :  { %13316 = vst [vmem:[#allocation204_spill] sm:$0xff] %v11111_v13  ;;  %v4663_v63 = vpop.f32.mrf.mxu2  ;;  %v4488_v62 = vpop.f32.mrf.mxu0 }
 0x5fd   :  { %v4664_v15 = vadd.f32 %v4663_v63, %v4575_v17  ;;  %v4752_v54 = vpop.f32.mrf.mxu3  ;;  %v4577_v57 = vpop.f32.mrf.mxu1  ;;  %13319 = vst [vmem:[#allocation205_spill] sm:$0xff] %v11120_v4  ;;  %v7724_v17 = vadd.f32 %v11117_v61, %v7436_v25  ;;  %v7725_v10 = vadd.f32 %v11117_v61, %v7437_v29  ;;  %v13324_v25 = vld [vmem:[#allocation210_spill] sm:$0xff] }
 0x5fe   :  { %v4578_v40 = vadd.f32 %v4577_v57, %v4488_v62 }
 0x5ff   :  { %v4753_v55 = vadd.f32 %v4752_v54, %v4664_v15  ;;  %4527 = vmatmul.bf16.gmra.mxu0 %v13318_v35  ;;  %v8365_v13 = vmax.f32 %v7725_v10, 0.0 }
 0x600   :  { %4616 = vmatmul.bf16.gmra.mxu1 %v13321_v53 }
 0x601   :  { %v6976_v41 = vpack.c.bf16 %v4753_v55, %v13320_v38  ;;  %4705 = vmatmul.bf16.gmra.mxu2 %v13322_v30  ;;  %v8364_v38 = vmax.f32 %v7724_v17, 0.0 }
 0x602   :  { %4794 = vmatmul.bf16.gmra.mxu3 %v13323_v42 }
 0x603   :  { %v7444_v16 = vunpack.c.l.bf16 %v6976_v41  ;;  %v7445_v21 = vunpack.c.h.bf16 %v6976_v41 }
 0x604   :  { %v4666_v63 = vpop.f32.mrf.mxu2  ;;  %v4490_v62 = vpop.f32.mrf.mxu0 }
 0x605   :  { %v4667_v15 = vadd.f32 %v4666_v63, %v4578_v40  ;;  %v4755_v54 = vpop.f32.mrf.mxu3  ;;  %v7732_v37 = vadd.f32 %v11120_v4, %v7444_v16  ;;  %v7733_v57 = vadd.f32 %v11120_v4, %v7445_v21  ;;  %v4579_v55 = vpop.f32.mrf.mxu1  ;;  %v7178_v40 = vperm.slane %v11012_v47, %v11067_v7 }
 0x606   :  { %v4580_v33 = vadd.f32 %v4579_v55, %v4490_v62  ;;  %v7187_v16 = vperm.slane %v11020_v34, %v11067_v7  ;;  %v13331_v55 = vld [vmem:[#allocation212_spill] sm:$0xff]  ;;  %v13333_v34 = vld [vmem:[#allocation214_spill] sm:$0xff] }
 0x607   :  { %v4756_v52 = vadd.f32 %v4755_v54, %v4667_v15  ;;  %v8372_v18 = vmax.f32 %v7732_v37, 0.0  ;;  %v8373_v42 = vmax.f32 %v7733_v57, 0.0  ;;  %v11139_v15 = vunpack.c.l.bf16 %v7178_v40  ;;  %v13328_v57 = vld [vmem:[#allocation211_spill] sm:$0xff] }
 0x609   :  { %v6980_v30 = vpack.c.bf16 %v4756_v52, %v13324_v25  ;;  %v11131_v29 = vpack.c.bf16 %v8372_v18, %v8364_v38  ;;  %v11133_v41 = vpack.c.bf16 %v8373_v42, %v8365_v13  ;;  %13327 = vst [vmem:[#allocation232_spill] sm:$0xff] %v11139_v15  ;;  %v11142_v13 = vunpack.c.l.bf16 %v7187_v16  ;;  %v13330_v42 = vld [vmem:[#allocation215_spill] sm:$0xff]  ;;  %v13332_v38 = vld [vmem:[#allocation213_spill] sm:$0xff] }
 0x60b   :  { %13325 = vst [vmem:[#allocation209_spill] sm:$0xff] %v11131_v29  ;;  %v7452_v54 = vunpack.c.l.bf16 %v6980_v30  ;;  %v7453_v62 = vunpack.c.h.bf16 %v6980_v30 }
 0x60c   :  { %13326 = vst [vmem:[#allocation210_spill] sm:$0xff] %v11133_v41  ;;  %v4668_v63 = vpop.f32.mrf.mxu2  ;;  %v4493_v10 = vpop.f32.mrf.mxu0 }
 0x60d   :  { %v4669_v21 = vadd.f32 %v4668_v63, %v4580_v33  ;;  %v4757_v17 = vpop.f32.mrf.mxu3  ;;  %v4582_v37 = vpop.f32.mrf.mxu1  ;;  %13329 = vst [vmem:[#allocation211_spill] sm:$0xff] %v11142_v13  ;;  %v7740_v33 = vadd.f32 %v11139_v15, %v7452_v54  ;;  %v7741_v25 = vadd.f32 %v11139_v15, %v7453_v62  ;;  %v13334_v54 = vld [vmem:[#allocation216_spill] sm:$0xff] }
 0x60e   :  { %v4583_v18 = vadd.f32 %v4582_v37, %v4493_v10 }
 0x60f   :  { %v4758_v52 = vadd.f32 %v4757_v17, %v4669_v21  ;;  %4532 = vmatmul.bf16.gmra.mxu0 %v13328_v57  ;;  %v8381_v41 = vmax.f32 %v7741_v25, 0.0 }
 0x610   :  { %4621 = vmatmul.bf16.gmra.mxu1 %v13331_v55 }
 0x611   :  { %v6984_v47 = vpack.c.bf16 %v4758_v52, %v13330_v42  ;;  %4710 = vmatmul.bf16.gmra.mxu2 %v13332_v38  ;;  %v8380_v42 = vmax.f32 %v7740_v33, 0.0 }
 0x612   :  { %4799 = vmatmul.bf16.gmra.mxu3 %v13333_v34 }
 0x613   :  { %v7460_v30 = vunpack.c.l.bf16 %v6984_v47  ;;  %v7461_v40 = vunpack.c.h.bf16 %v6984_v47 }
 0x614   :  { %v4671_v63 = vpop.f32.mrf.mxu2  ;;  %v4495_v10 = vpop.f32.mrf.mxu0 }
 0x615   :  { %v4672_v21 = vadd.f32 %v4671_v63, %v4583_v18  ;;  %v4760_v17 = vpop.f32.mrf.mxu3  ;;  %v7748_v16 = vadd.f32 %v11142_v13, %v7460_v30  ;;  %v7749_v37 = vadd.f32 %v11142_v13, %v7461_v40  ;;  %v4584_v52 = vpop.f32.mrf.mxu1  ;;  %v7196_v18 = vperm.slane %v11033_v9, %v11067_v7 }
 0x616   :  { %v4585_v4 = vadd.f32 %v4584_v52, %v4495_v10  ;;  %v7205_v30 = vperm.slane %v11004_v50, %v11067_v7  ;;  %v13341_v52 = vld [vmem:[#allocation218_spill] sm:$0xff]  ;;  %v13343_v50 = vld [vmem:[#allocation220_spill] sm:$0xff] }
 0x617   :  { %v4761_v29 = vadd.f32 %v4760_v17, %v4672_v21  ;;  %v8388_v61 = vmax.f32 %v7748_v16, 0.0  ;;  %v8389_v34 = vmax.f32 %v7749_v37, 0.0  ;;  %v11161_v21 = vunpack.c.l.bf16 %v7196_v18  ;;  %v13338_v37 = vld [vmem:[#allocation217_spill] sm:$0xff] }
 0x619   :  { %v6988_v38 = vpack.c.bf16 %v4761_v29, %v13334_v54  ;;  %v11153_v62 = vpack.c.bf16 %v8388_v61, %v8380_v42  ;;  %v11155_v47 = vpack.c.bf16 %v8389_v34, %v8381_v41  ;;  %13337 = vst [vmem:[#allocation233_spill] sm:$0xff] %v11161_v21  ;;  %v11164_v41 = vunpack.c.l.bf16 %v7205_v30  ;;  %v13340_v34 = vld [vmem:[#allocation221_spill] sm:$0xff]  ;;  %v13342_v42 = vld [vmem:[#allocation219_spill] sm:$0xff] }
 0x61b   :  { %13335 = vst [vmem:[#allocation215_spill] sm:$0xff] %v11153_v62  ;;  %v7468_v17 = vunpack.c.l.bf16 %v6988_v38  ;;  %v7469_v10 = vunpack.c.h.bf16 %v6988_v38 }
 0x61c   :  { %13336 = vst [vmem:[#allocation216_spill] sm:$0xff] %v11155_v47  ;;  %v4673_v63 = vpop.f32.mrf.mxu2  ;;  %v4498_v25 = vpop.f32.mrf.mxu0 }
 0x61d   :  { %v4674_v40 = vadd.f32 %v4673_v63, %v4585_v4  ;;  %v4762_v33 = vpop.f32.mrf.mxu3  ;;  %v4587_v16 = vpop.f32.mrf.mxu1  ;;  %13339 = vst [vmem:[#allocation217_spill] sm:$0xff] %v11164_v41  ;;  %v7756_v4 = vadd.f32 %v11161_v21, %v7468_v17  ;;  %v7757_v54 = vadd.f32 %v11161_v21, %v7469_v10 }
 0x61e   :  { %v4588_v61 = vadd.f32 %v4587_v16, %v4498_v25 }
 0x61f   :  { %v4763_v29 = vadd.f32 %v4762_v33, %v4674_v40  ;;  %4537 = vmatmul.bf16.gmra.mxu0 %v13338_v37  ;;  %v8397_v47 = vmax.f32 %v7757_v54, 0.0 }
 0x620   :  { %4626 = vmatmul.bf16.gmra.mxu1 %v13341_v52 }
 0x621   :  { %v6992_v9 = vpack.c.bf16 %v4763_v29, %v13340_v34  ;;  %4715 = vmatmul.bf16.gmra.mxu2 %v13342_v42  ;;  %v8396_v34 = vmax.f32 %v7756_v4, 0.0 }
 0x622   :  { %4804 = vmatmul.bf16.gmra.mxu3 %v13343_v50 }
 0x623   :  { %v7476_v38 = vunpack.c.l.bf16 %v6992_v9  ;;  %v7477_v18 = vunpack.c.h.bf16 %v6992_v9 }
 0x624   :  { %v4676_v63 = vpop.f32.mrf.mxu2  ;;  %v4500_v25 = vpop.f32.mrf.mxu0 }
 0x625   :  { %v4677_v40 = vadd.f32 %v4676_v63, %v4588_v61  ;;  %v4765_v33 = vpop.f32.mrf.mxu3  ;;  %v7764_v30 = vadd.f32 %v11164_v41, %v7476_v38  ;;  %v7765_v16 = vadd.f32 %v11164_v41, %v7477_v18  ;;  %v4589_v29 = vpop.f32.mrf.mxu1  ;;  %v7214_v61 = vperm.slane %v10986_v44, %v11067_v7 }
 0x626   :  { %v4590_v13 = vadd.f32 %v4589_v29, %v4500_v25  ;;  %v7223_v38 = vperm.slane %v11022_v23, %v11067_v7  ;;  %v13351_v29 = vld [vmem:[#allocation224_spill] sm:$0xff]  ;;  %v13352_v23 = vld [vmem:[#allocation225_spill] sm:$0xff] }
 0x627   :  { %v4766_v62 = vadd.f32 %v4765_v33, %v4677_v40  ;;  %v8404_v15 = vmax.f32 %v7764_v30, 0.0  ;;  %v8405_v50 = vmax.f32 %v7765_v16, 0.0  ;;  %v11183_v33 = vunpack.c.l.bf16 %v7214_v61  ;;  %v13350_v16 = vld [vmem:[#allocation223_spill] sm:$0xff] }
 0x629   :  { %v6996_v17 = vpack.c.bf16 %v4766_v62, %v10818_v12  ;;  %v11175_v10 = vpack.c.bf16 %v8404_v15, %v8396_v34  ;;  %v11177_v9 = vpack.c.bf16 %v8405_v50, %v8397_v47  ;;  %13346 = vst [vmem:[#allocation235_spill] sm:$0xff] %v11183_v33  ;;  %v13347_v62 = vld [vmem:[#allocation222_spill] sm:$0xff]  ;;  %v11186_v47 = vunpack.c.l.bf16 %v7223_v38 }
 0x62a   :  { %v13349_v50 = vld [vmem:[#allocation226_spill] sm:$0xff] }
 0x62b   :  { %13344 = vst [vmem:[#allocation221_spill] sm:$0xff] %v11175_v10  ;;  %v7484_v25 = vunpack.c.l.bf16 %v6996_v17  ;;  %v7485_v15 = vunpack.c.h.bf16 %v6996_v17 }
 0x62c   :  { %13345 = vst [vmem:[#allocation234_spill] sm:$0xff] %v11177_v9  ;;  %v4678_v63 = vpop.f32.mrf.mxu2  ;;  %v4503_v54 = vpop.f32.mrf.mxu0 }
 0x62d   :  { %v4679_v18 = vadd.f32 %v4678_v63, %v4590_v13  ;;  %v4767_v4 = vpop.f32.mrf.mxu3  ;;  %v4592_v40 = vpop.f32.mrf.mxu1  ;;  %13348 = vst [vmem:[#allocation222_spill] sm:$0xff] %v11186_v47  ;;  %v7772_v61 = vadd.f32 %v11183_v33, %v7484_v25 }
 0x62e   :  { %v4593_v12 = vadd.f32 %v4592_v40, %v4503_v54 }
 0x62f   :  { %v4768_v30 = vadd.f32 %v4767_v4, %v4679_v18  ;;  %4542 = vmatmul.bf16.gmra.mxu0 %v13347_v62  ;;  %v7773_v18 = vadd.f32 %v11183_v33, %v7485_v15  ;;  %v8412_v10 = vmax.f32 %v7772_v61, 0.0 }
 0x630   :  { %4631 = vmatmul.bf16.gmra.mxu1 %v13350_v16 }
 0x631   :  { %v7000_v44 = vpack.c.bf16 %v4768_v30, %v13349_v50  ;;  %4720 = vmatmul.bf16.gmra.mxu2 %v13351_v29  ;;  %v8413_v21 = vmax.f32 %v7773_v18, 0.0 }
 0x632   :  { %4809 = vmatmul.bf16.gmra.mxu3 %v13352_v23 }
 0x633   :  { %v7492_v13 = vunpack.c.l.bf16 %v7000_v44  ;;  %v7493_v34 = vunpack.c.h.bf16 %v7000_v44  ;;  %v13353_v44 = vld [vmem:[#allocation227_spill] sm:$0xff] }
 0x634   :  { %v4681_v63 = vpop.f32.mrf.mxu2  ;;  %v4505_v54 = vpop.f32.mrf.mxu0 }
 0x635   :  { %v4682_v17 = vadd.f32 %v4681_v63, %v4593_v12  ;;  %v4770_v4 = vpop.f32.mrf.mxu3  ;;  %v7780_v38 = vadd.f32 %v11186_v47, %v7492_v13  ;;  %v7781_v40 = vadd.f32 %v11186_v47, %v7493_v34  ;;  %v4594_v30 = vpop.f32.mrf.mxu1  ;;  %v7232_v12 = vperm.slane %v10967_v0, %v11067_v7 }
 0x636   :  { %v4595_v9 = vadd.f32 %v4594_v30, %v4505_v54  ;;  %v7241_v13 = vperm.slane %v10976_v58, %v11067_v7 }
 0x637   :  { %v4771_v50 = vadd.f32 %v4770_v4, %v4682_v17  ;;  %v8420_v41 = vmax.f32 %v7780_v38, 0.0  ;;  %v8421_v23 = vmax.f32 %v7781_v40, 0.0  ;;  %v11205_v61 = vunpack.c.l.bf16 %v7232_v12 }
 0x639   :  { %v7004_v29 = vpack.c.bf16 %v4771_v50, %v13353_v44  ;;  %v11197_v25 = vpack.c.bf16 %v8420_v41, %v8412_v10  ;;  %v11201_v15 = vpack.c.bf16 %v8421_v23, %v8413_v21  ;;  %13356 = vst [vmem:[#allocation236_spill] sm:$0xff] %v11205_v61  ;;  %v11208_v10 = vunpack.c.l.bf16 %v7241_v13 }
 0x63b   :  { %13354 = vst [vmem:[#allocation226_spill] sm:$0xff] %v11197_v25  ;;  %v7500_v18 = vunpack.c.l.bf16 %v7004_v29  ;;  %v7501_v54 = vunpack.c.h.bf16 %v7004_v29 }
 0x63c   :  { %13355 = vst [vmem:[#allocation227_spill] sm:$0xff] %v11201_v15  ;;  %v4683_v63 = vpop.f32.mrf.mxu2  ;;  %v4508_v4 = vpop.f32.mrf.mxu0 }
 0x63d   :  { %v4684_v34 = vadd.f32 %v4683_v63, %v4595_v9  ;;  %v4772_v17 = vpop.f32.mrf.mxu3  ;;  %v4597_v38 = vpop.f32.mrf.mxu1  ;;  %13357 = vst [vmem:[#allocation237_spill] sm:$0xff] %v11208_v10  ;;  %v7788_v58 = vadd.f32 %v11205_v61, %v7500_v18  ;;  %v7789_v21 = vadd.f32 %v11205_v61, %v7501_v54 }
 0x63e   :  { %v4598_v41 = vadd.f32 %v4597_v38, %v4508_v4 }
 0x63f   :  { %v4773_v40 = vadd.f32 %v4772_v17, %v4684_v34  ;;  %4547 = vmatmul.bf16.gmra.mxu0 %v10854_v6  ;;  %v8428_v13 = vmax.f32 %v7788_v58, 0.0  ;;  %v8429_v34 = vmax.f32 %v7789_v21, 0.0  ;;  %v7259_v58 = vperm.slane %v10999_v26, %v11067_v7 }
 0x640   :  { %4636 = vmatmul.bf16.gmra.mxu1 %v10856_v48 }
 0x641   :  { %v7008_v0 = vpack.c.bf16 %v4773_v40, %v10862_v36  ;;  %4725 = vmatmul.bf16.gmra.mxu2 %v10858_v27 }
 0x642   :  { %4814 = vmatmul.bf16.gmra.mxu3 %v10860_v5 }
 0x643   :  { %v7508_v9 = vunpack.c.l.bf16 %v7008_v0  ;;  %v7509_v29 = vunpack.c.h.bf16 %v7008_v0 }
 0x644   :  { %v4686_v23 = vpop.f32.mrf.mxu2  ;;  %v4510_v44 = vpop.f32.mrf.mxu0 }
 0x645   :  { %v4687_v30 = vadd.f32 %v4686_v23, %v4598_v41  ;;  %v4775_v50 = vpop.f32.mrf.mxu3  ;;  %v7796_v12 = vadd.f32 %v11208_v10, %v7508_v9  ;;  %v7797_v36 = vadd.f32 %v11208_v10, %v7509_v29  ;;  %v4599_v63 = vpop.f32.mrf.mxu1  ;;  %v7250_v41 = vperm.slane %v10988_v3, %v11067_v7 }
 0x646   :  { %v4600_v4 = vadd.f32 %v4599_v63, %v4510_v44  ;;  %v11225_v9 = vpop.permute.xlu0 %7289 }
 0x647   :  { %v4776_v17 = vadd.f32 %v4775_v50, %v4687_v30  ;;  %v8436_v38 = vmax.f32 %v7796_v12, 0.0  ;;  %v8437_v40 = vmax.f32 %v7797_v36, 0.0  ;;  %v11229_v50 = vunpack.c.l.bf16 %v7250_v41  ;;  %v13365_v41 = vld [vmem:[#allocation184_spill] sm:$0xff] }
 0x649   :  { %v7012_v18 = vpack.c.bf16 %v4776_v17, %v10877_v31  ;;  %v11219_v54 = vpack.c.bf16 %v8436_v38, %v8428_v13  ;;  %v11221_v0 = vpack.c.bf16 %v8437_v40, %v8429_v34  ;;  %13360 = vst [vmem:[#allocation240_spill] sm:$0xff] %v11229_v50  ;;  %v11232_v13 = vunpack.c.l.bf16 %v7259_v58  ;;  %v13362_v17 = vld [vmem:[#allocation78_spill] sm:$0xff] }
 0x64a   :  { %v13363_v40 = vld [vmem:[#allocation110_spill] sm:$0xff] }
 0x64b   :  { %13358 = vst [vmem:[#allocation238_spill] sm:$0xff] %v11219_v54  ;;  %v7516_v44 = vunpack.c.l.bf16 %v7012_v18  ;;  %v7517_v31 = vunpack.c.h.bf16 %v7012_v18  ;;  %v13364_v18 = vld [vmem:[#allocation142_spill] sm:$0xff] }
 0x64c   :  { %13359 = vst [vmem:[#allocation239_spill] sm:$0xff] %v11221_v0  ;;  %v4688_v23 = vpop.f32.mrf.mxu2  ;;  %v4513_v30 = vpop.f32.mrf.mxu0 }
 0x64d   :  { %v4689_v21 = vadd.f32 %v4688_v23, %v4600_v4  ;;  %v4777_v29 = vpop.f32.mrf.mxu3  ;;  %v4602_v12 = vpop.f32.mrf.mxu1  ;;  %13361 = vst [vmem:[#allocation241_spill] sm:$0xff] %v11232_v13  ;;  %v7804_v26 = vadd.f32 %v11229_v50, %v7516_v44  ;;  %v7805_v34 = vadd.f32 %v11229_v50, %v7517_v31 }
 0x64e   :  { %v4603_v63 = vadd.f32 %v4602_v12, %v4513_v30  ;;  %v13366_v12 = vld [vmem:[#allocation74_spill] sm:$0xff]  ;;  %v7263_v15 = vpop.permute.xlu0 %7262 }
 0x64f   :  { %v4778_v36 = vadd.f32 %v4777_v29, %v4689_v21  ;;  %4828 = vmatmul.bf16.vlgmr.msra.gmra.mxu0 %v10497_v59  ;;  %v8444_v44 = vmax.f32 %v7804_v26, 0.0  ;;  %v8445_v31 = vmax.f32 %v7805_v34, 0.0  ;;  %v7268_v34 = vperm.slane %v7263_v15, %v11067_v7  ;;  %v13377_v15 = vld [vmem:[#allocation66_spill] sm:$0xff] }
 0x650   :  { %4917 = vmatmul.bf16.vlgmr.msra.gmra.mxu1 %v10499_v24  ;;  %5532 = vmatpush.bf16.msra.mxu0 %v13362_v17 }
 0x651   :  { %v7016_v3 = vpack.c.bf16 %v4778_v36, %v10888_v28  ;;  %5006 = vmatmul.bf16.vlgmr.msra.gmra.mxu2 %v10501_v22  ;;  %5621 = vmatpush.bf16.msra.mxu1 %v13363_v40  ;;  %v13367_v40 = vld [vmem:[#allocation106_spill] sm:$0xff] }
 0x652   :  { %5095 = vmatmul.bf16.vlgmr.msra.gmra.mxu3 %v10503_v19  ;;  %5710 = vmatpush.bf16.msra.mxu2 %v13364_v18  ;;  %v13368_v18 = vld [vmem:[#allocation138_spill] sm:$0xff] }
 0x653   :  { %v7524_v4 = vunpack.c.l.bf16 %v7016_v3  ;;  %v7525_v38 = vunpack.c.h.bf16 %v7016_v3  ;;  %5799 = vmatpush.bf16.msra.mxu3 %v13365_v41 }
 0x654   :  { %v4691_v28 = vpop.f32.mrf.mxu2  ;;  %v4515_v30 = vpop.f32.mrf.mxu0  ;;  %5533 = vmatpush.bf16.msra.mxu0 %v13366_v12  ;;  %v13374_v12 = vld [vmem:[#allocation134_spill] sm:$0xff] }
 0x655   :  { %v7812_v23 = vadd.f32 %v11232_v13, %v7524_v4  ;;  %v7813_v58 = vadd.f32 %v11232_v13, %v7525_v38  ;;  %v4692_v21 = vadd.f32 %v4691_v28, %v4603_v63  ;;  %v4780_v29 = vpop.f32.mrf.mxu3  ;;  %v4604_v36 = vpop.f32.mrf.mxu1  ;;  %5622 = vmatpush.bf16.msra.mxu1 %v13367_v40  ;;  %v13369_v4 = vld [vmem:[#allocation176_spill] sm:$0xff]  ;;  %v13372_v28 = vld [vmem:[#allocation70_spill] sm:$0xff] }
 0x656   :  { %5711 = vmatpush.bf16.msra.mxu2 %v13368_v18  ;;  %v4605_v25 = vadd.f32 %v4604_v36, %v4515_v30  ;;  %v13378_v18 = vld [vmem:[#allocation98_spill] sm:$0xff] }
 0x657   :  { %v8452_v3 = vmax.f32 %v7812_v23, 0.0  ;;  %v8453_v17 = vmax.f32 %v7813_v58, 0.0  ;;  %v4781_v41 = vadd.f32 %v4780_v29, %v4692_v21  ;;  %5800 = vmatpush.bf16.msra.mxu3 %v13369_v4  ;;  %v7272_v23 = vpop.permute.xlu1 %7271  ;;  %v13373_v58 = vld [vmem:[#allocation102_spill] sm:$0xff]  ;;  %v13375_v21 = vld [vmem:[#allocation168_spill] sm:$0xff] }
 0x658   :  { %5534 = vmatpush.bf16.msra.mxu0 %v13372_v28 }
 0x659   :  { %v7020_v63 = vpack.c.bf16 %v4781_v41, %v10907_v60  ;;  %v11251_v38 = vpack.c.bf16 %v8452_v3, %v8444_v44  ;;  %v11253_v26 = vpack.c.bf16 %v8453_v17, %v8445_v31  ;;  %5623 = vmatpush.bf16.msra.mxu1 %v13373_v58  ;;  %v7277_v60 = vperm.slane %v7272_v23, %v11067_v7  ;;  %v13379_v41 = vld [vmem:[#allocation130_spill] sm:$0xff]  ;;  %v13380_v58 = vld [vmem:[#allocation160_spill] sm:$0xff] }
 0x65a   :  { %5712 = vmatpush.bf16.msra.mxu2 %v13374_v12  ;;  %v11261_v17 = vunpack.c.l.bf16 %v7268_v34 }
 0x65b   :  { %13370 = vst [vmem:[#allocation78_spill] sm:$0xff] %v11251_v38  ;;  %5801 = vmatpush.bf16.msra.mxu3 %v13375_v21  ;;  %v7532_v3 = vunpack.c.l.bf16 %v7020_v63  ;;  %v7533_v31 = vunpack.c.h.bf16 %v7020_v63  ;;  %v11269_v23 = vunpack.c.l.bf16 %v7277_v60  ;;  %v13382_v63 = vld [vmem:[#allocation62_spill] sm:$0xff] }
 0x65c   :  { %13371 = vst [vmem:[#allocation110_spill] sm:$0xff] %v11253_v26  ;;  %v4693_v29 = vpop.f32.mrf.mxu2  ;;  %v4518_v44 = vpop.f32.mrf.mxu0  ;;  %5535 = vmatpush.bf16.msra.mxu0 %v13377_v15 }
 0x65d   :  { %v4694_v30 = vadd.f32 %v4693_v29, %v4605_v25  ;;  %v4782_v36 = vpop.f32.mrf.mxu3  ;;  %13376 = vst [vmem:[#allocation142_spill] sm:$0xff] %v11261_v17  ;;  %v4607_v40 = vpop.f32.mrf.mxu1  ;;  %5624 = vmatpush.bf16.msra.mxu1 %v13378_v18  ;;  %v7820_v34 = vadd.f32 %v11261_v17, %v7532_v3  ;;  %v7821_v12 = vadd.f32 %v11261_v17, %v7533_v31 }
 0x65e   :  { %5713 = vmatpush.bf16.msra.mxu2 %v13379_v41  ;;  %v4608_v28 = vadd.f32 %v4607_v40, %v4518_v44  ;;  %13381 = vst [vmem:[#allocation184_spill] sm:$0xff] %v11269_v23 }
 0x65f   :  { %v4783_v4 = vadd.f32 %v4782_v36, %v4694_v30  ;;  %5802 = vmatpush.bf16.msra.mxu3 %v13380_v58  ;;  %4833 = vmatmul.bf16.gmra.mxu0 %v10529_v11  ;;  %v13383_v30 = vld [vmem:[#allocation94_spill] sm:$0xff]  ;;  %v8460_v31 = vmax.f32 %v7820_v34, 0.0  ;;  %v8461_v58 = vmax.f32 %v7821_v12, 0.0  ;;  %v7286_v34 = vperm.slane %v11060_v8, %v11067_v7 }
 0x660   :  { %4922 = vmatmul.bf16.gmra.mxu1 %v10531_v20  ;;  %5536 = vmatpush.bf16.msra.mxu0 %v13382_v63  ;;  %v13384_v36 = vld [vmem:[#allocation126_spill] sm:$0xff] }
 0x661   :  { %v7024_v25 = vpack.c.bf16 %v4783_v4, %v10923_v56  ;;  %5011 = vmatmul.bf16.gmra.mxu2 %v10533_v1  ;;  %5625 = vmatpush.bf16.msra.mxu1 %v13383_v30  ;;  %v13385_v56 = vld [vmem:[#allocation38_spill] sm:$0xff] }
 0x662   :  { %5100 = vmatmul.bf16.gmra.mxu3 %v10536_v32  ;;  %5714 = vmatpush.bf16.msra.mxu2 %v13384_v36  ;;  %v13386_v4 = vld [vmem:[#allocation58_spill] sm:$0xff] }
 0x663   :  { %v7540_v21 = vunpack.c.l.bf16 %v7024_v25  ;;  %v7541_v29 = vunpack.c.h.bf16 %v7024_v25  ;;  %5803 = vmatpush.bf16.msra.mxu3 %v13385_v56  ;;  %v13387_v25 = vld [vmem:[#allocation90_spill] sm:$0xff] }
 0x664   :  { %v4696_v60 = vpop.f32.mrf.mxu2  ;;  %v4520_v40 = vpop.f32.mrf.mxu0  ;;  %5537 = vmatpush.bf16.msra.mxu0 %v13386_v4  ;;  %v13388_v63 = vld [vmem:[#allocation122_spill] sm:$0xff] }
 0x665   :  { %v4697_v44 = vadd.f32 %v4696_v60, %v4608_v28  ;;  %v4785_v15 = vpop.f32.mrf.mxu3  ;;  %v7828_v18 = vadd.f32 %v11269_v23, %v7540_v21  ;;  %v7829_v41 = vadd.f32 %v11269_v23, %v7541_v29  ;;  %v4609_v3 = vpop.f32.mrf.mxu1  ;;  %5626 = vmatpush.bf16.msra.mxu1 %v13387_v25  ;;  %v13389_v28 = vld [vmem:[#allocation16_spill] sm:$0xff]  ;;  %v13392_v12 = vld [vmem:[#allocation54_spill] sm:$0xff] }
 0x666   :  { %5715 = vmatpush.bf16.msra.mxu2 %v13388_v63  ;;  %v4610_v36 = vadd.f32 %v4609_v3, %v4520_v40  ;;  %v13393_v4 = vld [vmem:[#allocation86_spill] sm:$0xff]  ;;  %v7295_v40 = vperm.slane %v11225_v9, %v11067_v7 }
 0x667   :  { %v4786_v30 = vadd.f32 %v4785_v15, %v4697_v44  ;;  %v8468_v56 = vmax.f32 %v7828_v18, 0.0  ;;  %v8469_v0 = vmax.f32 %v7829_v41, 0.0  ;;  %5804 = vmatpush.bf16.msra.mxu3 %v13389_v28  ;;  %v13394_v25 = vld [vmem:[#allocation118_spill] sm:$0xff] }
 0x668   :  { %5538 = vmatpush.bf16.msra.mxu0 %v13392_v12  ;;  %v13395_v44 = vld [vmem:[#allocation46_spill] sm:$0xff]  ;;  %v13400_v12 = vld [vmem:[#allocation149_spill] sm:$0xff]  ;;  %v11306_v9 = vunpack.c.l.bf16 %v7295_v40 }
 0x669   :  { %v7028_v60 = vpack.c.bf16 %v4786_v30, %v10940_v46  ;;  %v11287_v21 = vpack.c.bf16 %v8468_v56, %v8460_v31  ;;  %v11289_v29 = vpack.c.bf16 %v8469_v0, %v8461_v58  ;;  %5627 = vmatpush.bf16.msra.mxu1 %v13393_v4  ;;  %v11299_v0 = vunpack.c.l.bf16 %v7286_v34  ;;  %v13397_v8 = vld [vmem:[#allocation50_spill] sm:$0xff] }
 0x66a   :  { %5716 = vmatpush.bf16.msra.mxu2 %v13394_v25  ;;  %v13398_v63 = vld [vmem:[#allocation82_spill] sm:$0xff]  ;;  %13401 = vst [vmem:[#allocation176_spill] sm:$0xff] %v11306_v9 }
 0x66b   :  { %13390 = vst [vmem:[#allocation74_spill] sm:$0xff] %v11287_v21  ;;  %5805 = vmatpush.bf16.msra.mxu3 %v13395_v44  ;;  %v7548_v3 = vunpack.c.l.bf16 %v7028_v60  ;;  %v7549_v31 = vunpack.c.h.bf16 %v7028_v60  ;;  %v13399_v30 = vld [vmem:[#allocation114_spill] sm:$0xff] }
 0x66c   :  { %13391 = vst [vmem:[#allocation106_spill] sm:$0xff] %v11289_v29  ;;  %v4698_v15 = vpop.f32.mrf.mxu2  ;;  %v4523_v41 = vpop.f32.mrf.mxu0  ;;  %5539 = vmatpush.bf16.msra.mxu0 %v13397_v8 }
 0x66d   :  { %v4699_v46 = vadd.f32 %v4698_v15, %v4610_v36  ;;  %v4787_v18 = vpop.f32.mrf.mxu3  ;;  %13396 = vst [vmem:[#allocation138_spill] sm:$0xff] %v11299_v0  ;;  %v4612_v58 = vpop.f32.mrf.mxu1  ;;  %5628 = vmatpush.bf16.msra.mxu1 %v13398_v63  ;;  %v7836_v60 = vadd.f32 %v11299_v0, %v7548_v3  ;;  %v7837_v34 = vadd.f32 %v11299_v0, %v7549_v31 }
 0x66e   :  { %5717 = vmatpush.bf16.msra.mxu2 %v13399_v30  ;;  %v4613_v28 = vadd.f32 %v4612_v58, %v4523_v41 }
 0x66f   :  { %v4788_v56 = vadd.f32 %v4787_v18, %v4699_v46  ;;  %5806 = vmatpush.bf16.msra.mxu3 %v13400_v12  ;;  %4838 = vmatmul.bf16.gmra.mxu0 %v10565_v45  ;;  %v8476_v8 = vmax.f32 %v7836_v60, 0.0  ;;  %v8477_v58 = vmax.f32 %v7837_v34, 0.0 }
 0x670   :  { %4927 = vmatmul.bf16.gmra.mxu1 %v10567_v43 }
 0x671   :  { %v7032_v36 = vpack.c.bf16 %v4788_v56, %v10953_v51  ;;  %5016 = vmatmul.bf16.gmra.mxu2 %v10569_v49 }
 0x672   :  { %5105 = vmatmul.bf16.gmra.mxu3 %v10572_v14 }
 0x673   :  { %v7556_v4 = vunpack.c.l.bf16 %v7032_v36  ;;  %v7557_v25 = vunpack.c.h.bf16 %v7032_v36 }
 0x674   :  { %v4701_v44 = vpop.f32.mrf.mxu2  ;;  %v4525_v18 = vpop.f32.mrf.mxu0 }
 0x675   :  { %v4702_v15 = vadd.f32 %v4701_v44, %v4613_v28  ;;  %v4790_v46 = vpop.f32.mrf.mxu3  ;;  %v7844_v40 = vadd.f32 %v11306_v9, %v7556_v4  ;;  %v7845_v51 = vadd.f32 %v11306_v9, %v7557_v25  ;;  %v4614_v41 = vpop.f32.mrf.mxu1  ;;  %v13404_v28 = vld [vmem:[#allocation15_spill] sm:$0xff]  ;;  %v13405_v4 = vld [vmem:[#allocation28_spill] sm:$0xff] }
 0x676   :  { %v4615_v30 = vadd.f32 %v4614_v41, %v4525_v18  ;;  %v7304_v44 = vperm.slane %v13404_v28, %v11067_v7  ;;  %v7313_v25 = vperm.slane %v13405_v4, %v11067_v7  ;;  %v13407_v41 = vld [vmem:[#allocation42_spill] sm:$0xff] }
 0x677   :  { %v4791_v63 = vadd.f32 %v4790_v46, %v4702_v15  ;;  %v8484_v56 = vmax.f32 %v7844_v40, 0.0  ;;  %v8485_v12 = vmax.f32 %v7845_v51, 0.0 }
 0x678   :  { %v11325_v15 = vunpack.c.l.bf16 %v7304_v44 }
 0x679   :  { %v7036_v3 = vpack.c.bf16 %v4791_v63, %v10960_v2  ;;  %v11317_v31 = vpack.c.bf16 %v8484_v56, %v8476_v8  ;;  %v11319_v36 = vpack.c.bf16 %v8485_v12, %v8477_v58  ;;  %v11328_v8 = vunpack.c.l.bf16 %v7313_v25  ;;  %v13409_v58 = vld [vmem:[#allocation37_spill] sm:$0xff]  ;;  %v13410_v56 = vld [vmem:[#allocation14_spill] sm:$0xff]  ;;  %v13411_v12 = vld [vmem:[#allocation27_spill] sm:$0xff] }
 0x67a   :  { %13406 = vst [vmem:[#allocation134_spill] sm:$0xff] %v11325_v15 }
 0x67b   :  { %13402 = vst [vmem:[#allocation70_spill] sm:$0xff] %v11317_v31  ;;  %v7564_v46 = vunpack.c.l.bf16 %v7036_v3  ;;  %v7565_v18 = vunpack.c.h.bf16 %v7036_v3 }
 0x67c   :  { %13403 = vst [vmem:[#allocation102_spill] sm:$0xff] %v11319_v36  ;;  %v4703_v29 = vpop.f32.mrf.mxu2  ;;  %v4528_v34 = vpop.f32.mrf.mxu0 }
 0x67d   :  { %v4704_v21 = vadd.f32 %v4703_v29, %v4615_v30  ;;  %v4792_v60 = vpop.f32.mrf.mxu3  ;;  %v4617_v40 = vpop.f32.mrf.mxu1  ;;  %13408 = vst [vmem:[#allocation168_spill] sm:$0xff] %v11328_v8  ;;  %v13412_v29 = vld [vmem:[#allocation40_spill] sm:$0xff]  ;;  %v7852_v30 = vadd.f32 %v11325_v15, %v7564_v46  ;;  %v7853_v28 = vadd.f32 %v11325_v15, %v7565_v18 }
 0x67e   :  { %v4618_v51 = vadd.f32 %v4617_v40, %v4528_v34  ;;  %v13413_v46 = vld [vmem:[#allocation36_spill] sm:$0xff] }
 0x67f   :  { %v4793_v2 = vadd.f32 %v4792_v60, %v4704_v21  ;;  %4843 = vmatmul.bf16.gmra.mxu0 %v13407_v41  ;;  %v8493_v36 = vmax.f32 %v7853_v28, 0.0 }
 0x680   :  { %4932 = vmatmul.bf16.gmra.mxu1 %v13410_v56 }
 0x681   :  { %v7040_v63 = vpack.c.bf16 %v4793_v2, %v13409_v58  ;;  %5021 = vmatmul.bf16.gmra.mxu2 %v13411_v12  ;;  %v8492_v58 = vmax.f32 %v7852_v30, 0.0 }
 0x682   :  { %5110 = vmatmul.bf16.gmra.mxu3 %v13412_v29 }
 0x683   :  { %v7572_v3 = vunpack.c.l.bf16 %v7040_v63  ;;  %v7573_v44 = vunpack.c.h.bf16 %v7040_v63 }
 0x684   :  { %v4706_v21 = vpop.f32.mrf.mxu2  ;;  %v4530_v34 = vpop.f32.mrf.mxu0 }
 0x685   :  { %v4707_v4 = vadd.f32 %v4706_v21, %v4618_v51  ;;  %v4795_v60 = vpop.f32.mrf.mxu3  ;;  %v7860_v25 = vadd.f32 %v11328_v8, %v7572_v3  ;;  %v7861_v40 = vadd.f32 %v11328_v8, %v7573_v44  ;;  %v4619_v2 = vpop.f32.mrf.mxu1  ;;  %v13416_v51 = vld [vmem:[#allocation39_spill] sm:$0xff]  ;;  %v13417_v3 = vld [vmem:[#allocation30_spill] sm:$0xff] }
 0x686   :  { %v4620_v54 = vadd.f32 %v4619_v2, %v4530_v34  ;;  %v7322_v21 = vperm.slane %v13416_v51, %v11067_v7  ;;  %v7331_v44 = vperm.slane %v13417_v3, %v11067_v7 }
 0x687   :  { %v4796_v31 = vadd.f32 %v4795_v60, %v4707_v4  ;;  %v8500_v26 = vmax.f32 %v7860_v25, 0.0  ;;  %v8501_v38 = vmax.f32 %v7861_v40, 0.0  ;;  %v13419_v40 = vld [vmem:[#allocation154_spill] sm:$0xff] }
 0x688   :  { %v11347_v4 = vunpack.c.l.bf16 %v7322_v21 }
 0x689   :  { %v7044_v9 = vpack.c.bf16 %v4796_v31, %v13413_v46  ;;  %v11339_v18 = vpack.c.bf16 %v8500_v26, %v8492_v58  ;;  %v11341_v63 = vpack.c.bf16 %v8501_v38, %v8493_v36  ;;  %v11350_v38 = vunpack.c.l.bf16 %v7331_v44  ;;  %v13421_v36 = vld [vmem:[#allocation49_spill] sm:$0xff]  ;;  %v13422_v58 = vld [vmem:[#allocation155_spill] sm:$0xff]  ;;  %v13423_v46 = vld [vmem:[#allocation156_spill] sm:$0xff] }
 0x68a   :  { %13418 = vst [vmem:[#allocation130_spill] sm:$0xff] %v11347_v4 }
 0x68b   :  { %13414 = vst [vmem:[#allocation66_spill] sm:$0xff] %v11339_v18  ;;  %v7580_v60 = vunpack.c.l.bf16 %v7044_v9  ;;  %v7581_v34 = vunpack.c.h.bf16 %v7044_v9 }
 0x68c   :  { %13415 = vst [vmem:[#allocation98_spill] sm:$0xff] %v11341_v63  ;;  %v4708_v15 = vpop.f32.mrf.mxu2  ;;  %v4533_v28 = vpop.f32.mrf.mxu0 }
 0x68d   :  { %v4709_v8 = vadd.f32 %v4708_v15, %v4620_v54  ;;  %v4797_v30 = vpop.f32.mrf.mxu3  ;;  %v4622_v25 = vpop.f32.mrf.mxu1  ;;  %13420 = vst [vmem:[#allocation160_spill] sm:$0xff] %v11350_v38  ;;  %v13424_v54 = vld [vmem:[#allocation157_spill] sm:$0xff]  ;;  %v7868_v15 = vadd.f32 %v11347_v4, %v7580_v60  ;;  %v7869_v51 = vadd.f32 %v11347_v4, %v7581_v34  ;;  %v13425_v60 = vld [vmem:[#allocation35_spill] sm:$0xff] }
 0x68e   :  { %v4623_v26 = vadd.f32 %v4622_v25, %v4533_v28 }
 0x68f   :  { %v4798_v31 = vadd.f32 %v4797_v30, %v4709_v8  ;;  %4848 = vmatmul.bf16.gmra.mxu0 %v13419_v40  ;;  %v8509_v63 = vmax.f32 %v7869_v51, 0.0 }
 0x690   :  { %4937 = vmatmul.bf16.gmra.mxu1 %v13422_v58 }
 0x691   :  { %v7048_v2 = vpack.c.bf16 %v4798_v31, %v13421_v36  ;;  %5026 = vmatmul.bf16.gmra.mxu2 %v13423_v46  ;;  %v8508_v36 = vmax.f32 %v7868_v15, 0.0 }
 0x692   :  { %5115 = vmatmul.bf16.gmra.mxu3 %v13424_v54 }
 0x693   :  { %v7588_v9 = vunpack.c.l.bf16 %v7048_v2  ;;  %v7589_v21 = vunpack.c.h.bf16 %v7048_v2 }
 0x694   :  { %v4711_v8 = vpop.f32.mrf.mxu2  ;;  %v4535_v28 = vpop.f32.mrf.mxu0 }
 0x695   :  { %v4712_v3 = vadd.f32 %v4711_v8, %v4623_v26  ;;  %v4800_v30 = vpop.f32.mrf.mxu3  ;;  %v7876_v44 = vadd.f32 %v11350_v38, %v7588_v9  ;;  %v7877_v25 = vadd.f32 %v11350_v38, %v7589_v21  ;;  %v4624_v31 = vpop.f32.mrf.mxu1  ;;  %v13428_v26 = vld [vmem:[#allocation19_spill] sm:$0xff]  ;;  %v13429_v9 = vld [vmem:[#allocation13_spill] sm:$0xff] }
 0x696   :  { %v4625_v0 = vadd.f32 %v4624_v31, %v4535_v28  ;;  %v7340_v8 = vperm.slane %v13428_v26, %v11067_v7  ;;  %v7349_v21 = vperm.slane %v13429_v9, %v11067_v7 }
 0x697   :  { %v4801_v18 = vadd.f32 %v4800_v30, %v4712_v3  ;;  %v8516_v23 = vmax.f32 %v7876_v44, 0.0  ;;  %v8517_v17 = vmax.f32 %v7877_v25, 0.0  ;;  %v13431_v25 = vld [vmem:[#allocation162_spill] sm:$0xff] }
 0x698   :  { %v11369_v3 = vunpack.c.l.bf16 %v7340_v8 }
 0x699   :  { %v7052_v13 = vpack.c.bf16 %v4801_v18, %v13425_v60  ;;  %v11361_v34 = vpack.c.bf16 %v8516_v23, %v8508_v36  ;;  %v11363_v2 = vpack.c.bf16 %v8517_v17, %v8509_v63  ;;  %v11372_v17 = vunpack.c.l.bf16 %v7349_v21  ;;  %v13433_v63 = vld [vmem:[#allocation34_spill] sm:$0xff]  ;;  %v13434_v36 = vld [vmem:[#allocation163_spill] sm:$0xff]  ;;  %v13435_v60 = vld [vmem:[#allocation164_spill] sm:$0xff] }
 0x69a   :  { %13430 = vst [vmem:[#allocation126_spill] sm:$0xff] %v11369_v3 }
 0x69b   :  { %13426 = vst [vmem:[#allocation62_spill] sm:$0xff] %v11361_v34  ;;  %v7596_v30 = vunpack.c.l.bf16 %v7052_v13  ;;  %v7597_v28 = vunpack.c.h.bf16 %v7052_v13 }
 0x69c   :  { %13427 = vst [vmem:[#allocation94_spill] sm:$0xff] %v11363_v2  ;;  %v4713_v4 = vpop.f32.mrf.mxu2  ;;  %v4538_v51 = vpop.f32.mrf.mxu0 }
 0x69d   :  { %v4714_v38 = vadd.f32 %v4713_v4, %v4625_v0  ;;  %v4802_v15 = vpop.f32.mrf.mxu3  ;;  %v4627_v44 = vpop.f32.mrf.mxu1  ;;  %13432 = vst [vmem:[#allocation38_spill] sm:$0xff] %v11372_v17  ;;  %v13436_v0 = vld [vmem:[#allocation165_spill] sm:$0xff]  ;;  %v7884_v4 = vadd.f32 %v11369_v3, %v7596_v30  ;;  %v7885_v26 = vadd.f32 %v11369_v3, %v7597_v28  ;;  %v13437_v30 = vld [vmem:[#allocation47_spill] sm:$0xff] }
 0x69e   :  { %v4628_v23 = vadd.f32 %v4627_v44, %v4538_v51 }
 0x69f   :  { %v4803_v18 = vadd.f32 %v4802_v15, %v4714_v38  ;;  %4853 = vmatmul.bf16.gmra.mxu0 %v13431_v25  ;;  %v8525_v2 = vmax.f32 %v7885_v26, 0.0 }
 0x6a0   :  { %4942 = vmatmul.bf16.gmra.mxu1 %v13434_v36 }
 0x6a1   :  { %v7056_v31 = vpack.c.bf16 %v4803_v18, %v13433_v63  ;;  %5031 = vmatmul.bf16.gmra.mxu2 %v13435_v60  ;;  %v8524_v63 = vmax.f32 %v7884_v4, 0.0 }
 0x6a2   :  { %5120 = vmatmul.bf16.gmra.mxu3 %v13436_v0 }
 0x6a3   :  { %v7604_v13 = vunpack.c.l.bf16 %v7056_v31  ;;  %v7605_v8 = vunpack.c.h.bf16 %v7056_v31 }
 0x6a4   :  { %v4716_v38 = vpop.f32.mrf.mxu2  ;;  %v4540_v51 = vpop.f32.mrf.mxu0 }
 0x6a5   :  { %v4717_v9 = vadd.f32 %v4716_v38, %v4628_v23  ;;  %v4805_v15 = vpop.f32.mrf.mxu3  ;;  %v7892_v21 = vadd.f32 %v11372_v17, %v7604_v13  ;;  %v7893_v44 = vadd.f32 %v11372_v17, %v7605_v8  ;;  %v4629_v18 = vpop.f32.mrf.mxu1  ;;  %v13440_v23 = vld [vmem:[#allocation48_spill] sm:$0xff]  ;;  %v13441_v13 = vld [vmem:[#allocation21_spill] sm:$0xff] }
 0x6a6   :  { %v4630_v50 = vadd.f32 %v4629_v18, %v4540_v51  ;;  %v7358_v38 = vperm.slane %v13440_v23, %v11067_v7  ;;  %v7367_v8 = vperm.slane %v13441_v13, %v11067_v7 }
 0x6a7   :  { %v4806_v34 = vadd.f32 %v4805_v15, %v4717_v9  ;;  %v8532_v10 = vmax.f32 %v7892_v21, 0.0  ;;  %v8533_v61 = vmax.f32 %v7893_v44, 0.0  ;;  %v13443_v44 = vld [vmem:[#allocation170_spill] sm:$0xff] }
 0x6a8   :  { %v11391_v9 = vunpack.c.l.bf16 %v7358_v38 }
 0x6a9   :  { %v7060_v47 = vpack.c.bf16 %v4806_v34, %v13437_v30  ;;  %v11383_v28 = vpack.c.bf16 %v8532_v10, %v8524_v63  ;;  %v11385_v31 = vpack.c.bf16 %v8533_v61, %v8525_v2  ;;  %v11394_v61 = vunpack.c.l.bf16 %v7367_v8  ;;  %v13445_v2 = vld [vmem:[#allocation45_spill] sm:$0xff]  ;;  %v13446_v63 = vld [vmem:[#allocation171_spill] sm:$0xff]  ;;  %v13447_v30 = vld [vmem:[#allocation172_spill] sm:$0xff] }
 0x6aa   :  { %13442 = vst [vmem:[#allocation122_spill] sm:$0xff] %v11391_v9 }
 0x6ab   :  { %13438 = vst [vmem:[#allocation58_spill] sm:$0xff] %v11383_v28  ;;  %v7612_v15 = vunpack.c.l.bf16 %v7060_v47  ;;  %v7613_v51 = vunpack.c.h.bf16 %v7060_v47 }
 0x6ac   :  { %13439 = vst [vmem:[#allocation90_spill] sm:$0xff] %v11385_v31  ;;  %v4718_v3 = vpop.f32.mrf.mxu2  ;;  %v4543_v26 = vpop.f32.mrf.mxu0 }
 0x6ad   :  { %v4719_v17 = vadd.f32 %v4718_v3, %v4630_v50  ;;  %v4807_v4 = vpop.f32.mrf.mxu3  ;;  %v4632_v21 = vpop.f32.mrf.mxu1  ;;  %13444 = vst [vmem:[#allocation16_spill] sm:$0xff] %v11394_v61  ;;  %v13448_v50 = vld [vmem:[#allocation173_spill] sm:$0xff]  ;;  %v7900_v3 = vadd.f32 %v11391_v9, %v7612_v15  ;;  %v7901_v23 = vadd.f32 %v11391_v9, %v7613_v51 }
 0x6ae   :  { %v4633_v10 = vadd.f32 %v4632_v21, %v4543_v26  ;;  %v13449_v15 = vld [vmem:[#allocation17_spill] sm:$0xff] }
 0x6af   :  { %v4808_v34 = vadd.f32 %v4807_v4, %v4719_v17  ;;  %4858 = vmatmul.bf16.gmra.mxu0 %v13443_v44  ;;  %v8541_v31 = vmax.f32 %v7901_v23, 0.0 }
 0x6b0   :  { %4947 = vmatmul.bf16.gmra.mxu1 %v13446_v63 }
 0x6b1   :  { %v7064_v18 = vpack.c.bf16 %v4808_v34, %v13445_v2  ;;  %5036 = vmatmul.bf16.gmra.mxu2 %v13447_v30  ;;  %v8540_v2 = vmax.f32 %v7900_v3, 0.0 }
 0x6b2   :  { %5125 = vmatmul.bf16.gmra.mxu3 %v13448_v50 }
 0x6b3   :  { %v7620_v47 = vunpack.c.l.bf16 %v7064_v18  ;;  %v7621_v38 = vunpack.c.h.bf16 %v7064_v18 }
 0x6b4   :  { %v4721_v17 = vpop.f32.mrf.mxu2  ;;  %v4545_v26 = vpop.f32.mrf.mxu0 }
 0x6b5   :  { %v4722_v13 = vadd.f32 %v4721_v17, %v4633_v10  ;;  %v4810_v4 = vpop.f32.mrf.mxu3  ;;  %v7908_v8 = vadd.f32 %v11394_v61, %v7620_v47  ;;  %v7909_v21 = vadd.f32 %v11394_v61, %v7621_v38  ;;  %v4634_v34 = vpop.f32.mrf.mxu1  ;;  %v13452_v10 = vld [vmem:[#allocation32_spill] sm:$0xff]  ;;  %v13453_v47 = vld [vmem:[#allocation22_spill] sm:$0xff] }
 0x6b6   :  { %v4635_v33 = vadd.f32 %v4634_v34, %v4545_v26  ;;  %v7376_v17 = vperm.slane %v13452_v10, %v11067_v7  ;;  %v7385_v38 = vperm.slane %v13453_v47, %v11067_v7 }
 0x6b7   :  { %v4811_v28 = vadd.f32 %v4810_v4, %v4722_v13  ;;  %v8548_v50 = vmax.f32 %v7908_v8, 0.0  ;;  %v8549_v30 = vmax.f32 %v7909_v21, 0.0  ;;  %v13455_v21 = vld [vmem:[#allocation178_spill] sm:$0xff] }
 0x6b8   :  { %v11413_v13 = vunpack.c.l.bf16 %v7376_v17 }
 0x6b9   :  { %v7068_v63 = vpack.c.bf16 %v4811_v28, %v13449_v15  ;;  %v11405_v51 = vpack.c.bf16 %v8548_v50, %v8540_v2  ;;  %v11407_v18 = vpack.c.bf16 %v8549_v30, %v8541_v31  ;;  %v11416_v31 = vunpack.c.l.bf16 %v7385_v38  ;;  %v13457_v30 = vld [vmem:[#allocation43_spill] sm:$0xff]  ;;  %v13459_v15 = vld [vmem:[#allocation180_spill] sm:$0xff] }
 0x6ba   :  { %13454 = vst [vmem:[#allocation118_spill] sm:$0xff] %v11413_v13  ;;  %v13458_v2 = vld [vmem:[#allocation179_spill] sm:$0xff] }
 0x6bb   :  { %13450 = vst [vmem:[#allocation54_spill] sm:$0xff] %v11405_v51  ;;  %v7628_v4 = vunpack.c.l.bf16 %v7068_v63  ;;  %v7629_v26 = vunpack.c.h.bf16 %v7068_v63 }
 0x6bc   :  { %13451 = vst [vmem:[#allocation86_spill] sm:$0xff] %v11407_v18  ;;  %v4723_v9 = vpop.f32.mrf.mxu2  ;;  %v4548_v23 = vpop.f32.mrf.mxu0 }
 0x6bd   :  { %v4724_v61 = vadd.f32 %v4723_v9, %v4635_v33  ;;  %v4812_v3 = vpop.f32.mrf.mxu3  ;;  %v4637_v8 = vpop.f32.mrf.mxu1  ;;  %13456 = vst [vmem:[#allocation46_spill] sm:$0xff] %v11416_v31  ;;  %v13460_v33 = vld [vmem:[#allocation181_spill] sm:$0xff]  ;;  %v7916_v9 = vadd.f32 %v11413_v13, %v7628_v4  ;;  %v7917_v10 = vadd.f32 %v11413_v13, %v7629_v26 }
 0x6be   :  { %v4638_v50 = vadd.f32 %v4637_v8, %v4548_v23  ;;  %v13461_v4 = vld [vmem:[#allocation41_spill] sm:$0xff] }
 0x6bf   :  { %v4813_v28 = vadd.f32 %v4812_v3, %v4724_v61  ;;  %4863 = vmatmul.bf16.gmra.mxu0 %v13455_v21  ;;  %v8557_v18 = vmax.f32 %v7917_v10, 0.0 }
 0x6c0   :  { %4952 = vmatmul.bf16.gmra.mxu1 %v13458_v2 }
 0x6c1   :  { %v7072_v34 = vpack.c.bf16 %v4813_v28, %v13457_v30  ;;  %5041 = vmatmul.bf16.gmra.mxu2 %v13459_v15  ;;  %v8556_v30 = vmax.f32 %v7916_v9, 0.0 }
 0x6c2   :  { %5130 = vmatmul.bf16.gmra.mxu3 %v13460_v33 }
 0x6c3   :  { %v7636_v63 = vunpack.c.l.bf16 %v7072_v34  ;;  %v7637_v17 = vunpack.c.h.bf16 %v7072_v34 }
 0x6c4   :  { %v4726_v61 = vpop.f32.mrf.mxu2  ;;  %v4550_v23 = vpop.f32.mrf.mxu0 }
 0x6c5   :  { %v4727_v47 = vadd.f32 %v4726_v61, %v4638_v50  ;;  %v4815_v3 = vpop.f32.mrf.mxu3  ;;  %v7924_v38 = vadd.f32 %v11416_v31, %v7636_v63  ;;  %v7925_v8 = vadd.f32 %v11416_v31, %v7637_v17  ;;  %v4639_v28 = vpop.f32.mrf.mxu1  ;;  %v13464_v50 = vld [vmem:[#allocation24_spill] sm:$0xff]  ;;  %v13465_v63 = vld [vmem:[#allocation23_spill] sm:$0xff] }
 0x6c6   :  { %v4640_v15 = vadd.f32 %v4639_v28, %v4550_v23  ;;  %v7394_v61 = vperm.slane %v13464_v50, %v11067_v7  ;;  %v7403_v17 = vperm.slane %v13465_v63, %v11067_v7 }
 0x6c7   :  { %v4816_v51 = vadd.f32 %v4815_v3, %v4727_v47  ;;  %v8564_v33 = vmax.f32 %v7924_v38, 0.0  ;;  %v8565_v2 = vmax.f32 %v7925_v8, 0.0  ;;  %v13467_v8 = vld [vmem:[#allocation186_spill] sm:$0xff] }
 0x6c8   :  { %v11435_v47 = vunpack.c.l.bf16 %v7394_v61 }
 0x6c9   :  { %v7076_v21 = vpack.c.bf16 %v4816_v51, %v13461_v4  ;;  %v11427_v26 = vpack.c.bf16 %v8564_v33, %v8556_v30  ;;  %v11429_v34 = vpack.c.bf16 %v8565_v2, %v8557_v18  ;;  %v11438_v18 = vunpack.c.l.bf16 %v7403_v17  ;;  %v13469_v2 = vld [vmem:[#allocation26_spill] sm:$0xff]  ;;  %v13470_v30 = vld [vmem:[#allocation187_spill] sm:$0xff]  ;;  %v13471_v4 = vld [vmem:[#allocation188_spill] sm:$0xff] }
 0x6ca   :  { %13466 = vst [vmem:[#allocation114_spill] sm:$0xff] %v11435_v47 }
 0x6cb   :  { %13462 = vst [vmem:[#allocation50_spill] sm:$0xff] %v11427_v26  ;;  %v7644_v3 = vunpack.c.l.bf16 %v7076_v21  ;;  %v7645_v23 = vunpack.c.h.bf16 %v7076_v21 }
 0x6cc   :  { %13463 = vst [vmem:[#allocation82_spill] sm:$0xff] %v11429_v34  ;;  %v4728_v13 = vpop.f32.mrf.mxu2  ;;  %v4829_v10 = vpop.f32.mrf.mxu0 }
 0x6cd   :  { %v4729_v31 = vadd.f32 %v4728_v13, %v4640_v15  ;;  %v4817_v9 = vpop.f32.mrf.mxu3  ;;  %v4918_v38 = vpop.f32.mrf.mxu1  ;;  %13468 = vst [vmem:[#allocation149_spill] sm:$0xff] %v11438_v18  ;;  %v7932_v7 = vadd.f32 %v11435_v47, %v7644_v3  ;;  %v7933_v13 = vadd.f32 %v11435_v47, %v7645_v23  ;;  %v13472_v15 = vld [vmem:[#allocation189_spill] sm:$0xff] }
 0x6ce   :  { %v4919_v33 = vadd.f32 %v4918_v38, %v4829_v10 }
 0x6cf   :  { %v4818_v51 = vadd.f32 %v4817_v9, %v4729_v31  ;;  %4868 = vmatmul.bf16.gmra.mxu0 %v13467_v8  ;;  %v8572_v38 = vmax.f32 %v7932_v7, 0.0  ;;  %v13475_v7 = vld [vmem:[#allocation193_spill] sm:$0xff] }
 0x6d0   :  { %4957 = vmatmul.bf16.gmra.mxu1 %v13470_v30 }
 0x6d1   :  { %v7080_v28 = vpack.c.bf16 %v4818_v51, %v13469_v2  ;;  %5046 = vmatmul.bf16.gmra.mxu2 %v13471_v4  ;;  %v8573_v51 = vmax.f32 %v7933_v13, 0.0  ;;  %v13476_v13 = vld [vmem:[#allocation194_spill] sm:$0xff] }
 0x6d2   :  { %5135 = vmatmul.bf16.gmra.mxu3 %v13472_v15 }
 0x6d3   :  { %v7652_v21 = vunpack.c.l.bf16 %v7080_v28  ;;  %v7653_v50 = vunpack.c.h.bf16 %v7080_v28 }
 0x6d4   :  { %v5007_v31 = vpop.f32.mrf.mxu2  ;;  %v4831_v10 = vpop.f32.mrf.mxu0 }
 0x6d5   :  { %v7940_v61 = vadd.f32 %v11438_v18, %v7652_v21  ;;  %v7941_v63 = vadd.f32 %v11438_v18, %v7653_v50  ;;  %v5008_v17 = vadd.f32 %v5007_v31, %v4919_v33  ;;  %v5096_v9 = vpop.f32.mrf.mxu3  ;;  %v4920_v2 = vpop.f32.mrf.mxu1 }
 0x6d6   :  { %v4921_v23 = vadd.f32 %v4920_v2, %v4831_v10 }
 0x6d7   :  { %v8580_v34 = vmax.f32 %v7940_v61, 0.0  ;;  %v8581_v26 = vmax.f32 %v7941_v63, 0.0  ;;  %v11448_v3 = vadd.f32 %v5096_v9, %v5008_v17  ;;  %v13477_v61 = vld [vmem:[#allocation195_spill] sm:$0xff]  ;;  %v13478_v63 = vld [vmem:[#allocation196_spill] sm:$0xff] }
 0x6d9   :  { %v11450_v47 = vpack.c.bf16 %v8580_v34, %v8572_v38  ;;  %v11452_v15 = vpack.c.bf16 %v8581_v26, %v8573_v51 }
 0x6db   :  { %13473 = vst [vmem:[#allocation15_spill] sm:$0xff] %v11450_v47  ;;  %v13481_v47 = vld [vmem:[#allocation201_spill] sm:$0xff] }
 0x6dc   :  { %13474 = vst [vmem:[#allocation28_spill] sm:$0xff] %v11452_v15  ;;  %v5009_v28 = vpop.f32.mrf.mxu2  ;;  %v4834_v30 = vpop.f32.mrf.mxu0  ;;  %v13480_v15 = vld [vmem:[#allocation200_spill] sm:$0xff] }
 0x6dd   :  { %v5010_v4 = vadd.f32 %v5009_v28, %v4921_v23  ;;  %v5098_v21 = vpop.f32.mrf.mxu3  ;;  %v4923_v50 = vpop.f32.mrf.mxu1 }
 0x6de   :  { %v4924_v31 = vadd.f32 %v4923_v50, %v4834_v30 }
 0x6df   :  { %v11454_v33 = vadd.f32 %v5098_v21, %v5010_v4  ;;  %4873 = vmatmul.bf16.gmra.mxu0 %v13475_v7 }
 0x6e0   :  { %4962 = vmatmul.bf16.gmra.mxu1 %v13476_v13 }
 0x6e1   :  { %5051 = vmatmul.bf16.gmra.mxu2 %v13477_v61 }
 0x6e2   :  { %5140 = vmatmul.bf16.gmra.mxu3 %v13478_v63 }
 0x6e4   :  { %v5012_v34 = vpop.f32.mrf.mxu2  ;;  %v4836_v9 = vpop.f32.mrf.mxu0 }
 0x6e5   :  { %v5013_v17 = vadd.f32 %v5012_v34, %v4924_v31  ;;  %v5101_v26 = vpop.f32.mrf.mxu3  ;;  %v4925_v10 = vpop.f32.mrf.mxu1  ;;  %v13482_v31 = vld [vmem:[#allocation202_spill] sm:$0xff] }
 0x6e6   :  { %v4926_v51 = vadd.f32 %v4925_v10, %v4836_v9 }
 0x6e7   :  { %v11460_v38 = vadd.f32 %v5101_v26, %v5013_v17 }
 0x6ec   :  { %v5014_v2 = vpop.f32.mrf.mxu2  ;;  %v4839_v30 = vpop.f32.mrf.mxu0 }
 0x6ed   :  { %v5015_v4 = vadd.f32 %v5014_v2, %v4926_v51  ;;  %v5103_v23 = vpop.f32.mrf.mxu3  ;;  %v4928_v28 = vpop.f32.mrf.mxu1 }
 0x6ee   :  { %v4929_v50 = vadd.f32 %v4928_v28, %v4839_v30 }
 0x6ef   :  { %v11462_v21 = vadd.f32 %v5103_v23, %v5015_v4  ;;  %4878 = vmatmul.bf16.gmra.mxu0 %v13308_v39 }
 0x6f0   :  { %4967 = vmatmul.bf16.gmra.mxu1 %v13480_v15 }
 0x6f1   :  { %13479 = vst [vmem:[#allocation42_spill] sm:$0xff] %v11462_v21  ;;  %5056 = vmatmul.bf16.gmra.mxu2 %v13481_v47 }
 0x6f2   :  { %5145 = vmatmul.bf16.gmra.mxu3 %v13482_v31  ;;  %v13485_v31 = vld [vmem:[#allocation207_spill] sm:$0xff] }
 0x6f4   :  { %v5017_v34 = vpop.f32.mrf.mxu2  ;;  %v4841_v9 = vpop.f32.mrf.mxu0 }
 0x6f5   :  { %v5018_v17 = vadd.f32 %v5017_v34, %v4929_v50  ;;  %v5106_v26 = vpop.f32.mrf.mxu3  ;;  %v4930_v10 = vpop.f32.mrf.mxu1  ;;  %v13486_v50 = vld [vmem:[#allocation208_spill] sm:$0xff] }
 0x6f6   :  { %v4931_v2 = vadd.f32 %v4930_v10, %v4841_v9 }
 0x6f7   :  { %v11468_v51 = vadd.f32 %v5106_v26, %v5018_v17 }
 0x6f9   :  { %13483 = vst [vmem:[#allocation37_spill] sm:$0xff] %v11468_v51 }
 0x6fc   :  { %v5019_v18 = vpop.f32.mrf.mxu2  ;;  %v4844_v30 = vpop.f32.mrf.mxu0 }
 0x6fd   :  { %v5020_v4 = vadd.f32 %v5019_v18, %v4931_v2  ;;  %v5108_v23 = vpop.f32.mrf.mxu3  ;;  %v4933_v28 = vpop.f32.mrf.mxu1 }
 0x6fe   :  { %v4934_v15 = vadd.f32 %v4933_v28, %v4844_v30 }
 0x6ff   :  { %v11470_v21 = vadd.f32 %v5108_v23, %v5020_v4  ;;  %4883 = vmatmul.bf16.gmra.mxu0 %v13318_v35 }
 0x700   :  { %4972 = vmatmul.bf16.gmra.mxu1 %v13321_v53 }
 0x701   :  { %13484 = vst [vmem:[#allocation27_spill] sm:$0xff] %v11470_v21  ;;  %5061 = vmatmul.bf16.gmra.mxu2 %v13485_v31 }
 0x702   :  { %5150 = vmatmul.bf16.gmra.mxu3 %v13486_v50  ;;  %v13489_v50 = vld [vmem:[#allocation213_spill] sm:$0xff] }
 0x704   :  { %v5022_v34 = vpop.f32.mrf.mxu2  ;;  %v4846_v9 = vpop.f32.mrf.mxu0 }
 0x705   :  { %v5023_v17 = vadd.f32 %v5022_v34, %v4934_v15  ;;  %v5111_v26 = vpop.f32.mrf.mxu3  ;;  %v4935_v10 = vpop.f32.mrf.mxu1  ;;  %v13490_v15 = vld [vmem:[#allocation214_spill] sm:$0xff] }
 0x706   :  { %v4936_v2 = vadd.f32 %v4935_v10, %v4846_v9 }
 0x707   :  { %v11476_v18 = vadd.f32 %v5111_v26, %v5023_v17 }
 0x709   :  { %13487 = vst [vmem:[#allocation40_spill] sm:$0xff] %v11476_v18 }
 0x70c   :  { %v5024_v51 = vpop.f32.mrf.mxu2  ;;  %v4849_v30 = vpop.f32.mrf.mxu0 }
 0x70d   :  { %v5025_v4 = vadd.f32 %v5024_v51, %v4936_v2  ;;  %v5113_v23 = vpop.f32.mrf.mxu3  ;;  %v4938_v28 = vpop.f32.mrf.mxu1 }
 0x70e   :  { %v4939_v53 = vadd.f32 %v4938_v28, %v4849_v30 }
 0x70f   :  { %v11478_v21 = vadd.f32 %v5113_v23, %v5025_v4  ;;  %4888 = vmatmul.bf16.gmra.mxu0 %v13328_v57 }
 0x710   :  { %4977 = vmatmul.bf16.gmra.mxu1 %v13331_v55 }
 0x711   :  { %13488 = vst [vmem:[#allocation36_spill] sm:$0xff] %v11478_v21  ;;  %5066 = vmatmul.bf16.gmra.mxu2 %v13489_v50 }
 0x712   :  { %5155 = vmatmul.bf16.gmra.mxu3 %v13490_v15 }
 0x714   :  { %v5027_v34 = vpop.f32.mrf.mxu2  ;;  %v4851_v9 = vpop.f32.mrf.mxu0 }
 0x715   :  { %v5028_v17 = vadd.f32 %v5027_v34, %v4939_v53  ;;  %v5116_v26 = vpop.f32.mrf.mxu3  ;;  %v4940_v10 = vpop.f32.mrf.mxu1  ;;  %v13493_v53 = vld [vmem:[#allocation220_spill] sm:$0xff] }
 0x716   :  { %v4941_v2 = vadd.f32 %v4940_v10, %v4851_v9 }
 0x717   :  { %v11484_v51 = vadd.f32 %v5116_v26, %v5028_v17 }
 0x719   :  { %13491 = vst [vmem:[#allocation39_spill] sm:$0xff] %v11484_v51 }
 0x71c   :  { %v5029_v18 = vpop.f32.mrf.mxu2  ;;  %v4854_v30 = vpop.f32.mrf.mxu0 }
 0x71d   :  { %v5030_v4 = vadd.f32 %v5029_v18, %v4941_v2  ;;  %v5118_v23 = vpop.f32.mrf.mxu3  ;;  %v4943_v28 = vpop.f32.mrf.mxu1 }
 0x71e   :  { %v4944_v55 = vadd.f32 %v4943_v28, %v4854_v30 }
 0x71f   :  { %v11486_v21 = vadd.f32 %v5118_v23, %v5030_v4  ;;  %4893 = vmatmul.bf16.gmra.mxu0 %v13338_v37 }
 0x720   :  { %4982 = vmatmul.bf16.gmra.mxu1 %v13341_v52 }
 0x721   :  { %13492 = vst [vmem:[#allocation30_spill] sm:$0xff] %v11486_v21  ;;  %5071 = vmatmul.bf16.gmra.mxu2 %v13342_v42 }
 0x722   :  { %5160 = vmatmul.bf16.gmra.mxu3 %v13493_v53  ;;  %v13496_v53 = vld [vmem:[#allocation224_spill] sm:$0xff] }
 0x724   :  { %v5032_v34 = vpop.f32.mrf.mxu2  ;;  %v4856_v9 = vpop.f32.mrf.mxu0 }
 0x725   :  { %v5033_v17 = vadd.f32 %v5032_v34, %v4944_v55  ;;  %v5121_v26 = vpop.f32.mrf.mxu3  ;;  %v4945_v10 = vpop.f32.mrf.mxu1  ;;  %v13497_v55 = vld [vmem:[#allocation225_spill] sm:$0xff] }
 0x726   :  { %v4946_v2 = vadd.f32 %v4945_v10, %v4856_v9 }
 0x727   :  { %v11492_v18 = vadd.f32 %v5121_v26, %v5033_v17 }
 0x729   :  { %13494 = vst [vmem:[#allocation154_spill] sm:$0xff] %v11492_v18 }
 0x72c   :  { %v5034_v51 = vpop.f32.mrf.mxu2  ;;  %v4859_v30 = vpop.f32.mrf.mxu0 }
 0x72d   :  { %v5035_v4 = vadd.f32 %v5034_v51, %v4946_v2  ;;  %v5123_v23 = vpop.f32.mrf.mxu3  ;;  %v4948_v28 = vpop.f32.mrf.mxu1 }
 0x72e   :  { %v4949_v52 = vadd.f32 %v4948_v28, %v4859_v30 }
 0x72f   :  { %v11494_v21 = vadd.f32 %v5123_v23, %v5035_v4  ;;  %4898 = vmatmul.bf16.gmra.mxu0 %v13347_v62 }
 0x730   :  { %4987 = vmatmul.bf16.gmra.mxu1 %v13350_v16 }
 0x731   :  { %13495 = vst [vmem:[#allocation49_spill] sm:$0xff] %v11494_v21  ;;  %5076 = vmatmul.bf16.gmra.mxu2 %v13496_v53 }
 0x732   :  { %5165 = vmatmul.bf16.gmra.mxu3 %v13497_v55 }
 0x734   :  { %v5037_v34 = vpop.f32.mrf.mxu2  ;;  %v4861_v9 = vpop.f32.mrf.mxu0 }
 0x735   :  { %v5038_v17 = vadd.f32 %v5037_v34, %v4949_v52  ;;  %v5126_v26 = vpop.f32.mrf.mxu3  ;;  %v4950_v10 = vpop.f32.mrf.mxu1 }
 0x736   :  { %v4951_v2 = vadd.f32 %v4950_v10, %v4861_v9 }
 0x737   :  { %v11500_v51 = vadd.f32 %v5126_v26, %v5038_v17 }
 0x73c   :  { %v5039_v18 = vpop.f32.mrf.mxu2  ;;  %v4864_v30 = vpop.f32.mrf.mxu0 }
 0x73d   :  { %v5040_v4 = vadd.f32 %v5039_v18, %v4951_v2  ;;  %v5128_v23 = vpop.f32.mrf.mxu3  ;;  %v4953_v28 = vpop.f32.mrf.mxu1 }
 0x73e   :  { %v4954_v16 = vadd.f32 %v4953_v28, %v4864_v30 }
 0x73f   :  { %v11502_v21 = vadd.f32 %v5128_v23, %v5040_v4  ;;  %4903 = vmatmul.bf16.gmra.mxu0 %v10854_v6 }
 0x740   :  { %4992 = vmatmul.bf16.gmra.mxu1 %v10856_v48 }
 0x741   :  { %13498 = vst [vmem:[#allocation35_spill] sm:$0xff] %v11502_v21  ;;  %5081 = vmatmul.bf16.gmra.mxu2 %v10858_v27 }
 0x742   :  { %5170 = vmatmul.bf16.gmra.mxu3 %v10860_v5 }
 0x744   :  { %v5042_v52 = vpop.f32.mrf.mxu2  ;;  %v4866_v26 = vpop.f32.mrf.mxu0 }
 0x745   :  { %v5043_v34 = vadd.f32 %v5042_v52, %v4954_v16  ;;  %v5131_v17 = vpop.f32.mrf.mxu3  ;;  %v4955_v9 = vpop.f32.mrf.mxu1  ;;  %v13500_v16 = vld [vmem:[#allocation79_spill] sm:$0xff] }
 0x746   :  { %v4956_v10 = vadd.f32 %v4955_v9, %v4866_v26  ;;  %v13501_v52 = vld [vmem:[#allocation111_spill] sm:$0xff] }
 0x747   :  { %v11508_v18 = vadd.f32 %v5131_v17, %v5043_v34  ;;  %v13502_v34 = vld [vmem:[#allocation143_spill] sm:$0xff]  ;;  %v13503_v17 = vld [vmem:[#allocation185_spill] sm:$0xff] }
 0x74c   :  { %v5044_v2 = vpop.f32.mrf.mxu2  ;;  %v4869_v30 = vpop.f32.mrf.mxu0 }
 0x74d   :  { %v5045_v4 = vadd.f32 %v5044_v2, %v4956_v10  ;;  %v5133_v23 = vpop.f32.mrf.mxu3  ;;  %v4958_v28 = vpop.f32.mrf.mxu1 }
 0x74e   :  { %v4959_v48 = vadd.f32 %v4958_v28, %v4869_v30  ;;  %v13505_v30 = vld [vmem:[#allocation107_spill] sm:$0xff] }
 0x74f   :  { %v11510_v21 = vadd.f32 %v5133_v23, %v5045_v4  ;;  %5184 = vmatmul.bf16.vlgmr.msrb.gmra.mxu0 %v10497_v59  ;;  %v13504_v4 = vld [vmem:[#allocation75_spill] sm:$0xff] }
 0x750   :  { %5273 = vmatmul.bf16.vlgmr.msrb.gmra.mxu1 %v10499_v24  ;;  %5888 = vmatpush.bf16.msrb.mxu0 %v13500_v16  ;;  %v13506_v28 = vld [vmem:[#allocation139_spill] sm:$0xff] }
 0x751   :  { %13499 = vst [vmem:[#allocation19_spill] sm:$0xff] %v11510_v21  ;;  %5362 = vmatmul.bf16.vlgmr.msrb.gmra.mxu2 %v10501_v22  ;;  %5977 = vmatpush.bf16.msrb.mxu1 %v13501_v52  ;;  %v13507_v22 = vld [vmem:[#allocation177_spill] sm:$0xff]  ;;  %v13508_v52 = vld [vmem:[#allocation71_spill] sm:$0xff] }
 0x752   :  { %5451 = vmatmul.bf16.vlgmr.msrb.gmra.mxu3 %v10503_v19  ;;  %6066 = vmatpush.bf16.msrb.mxu2 %v13502_v34  ;;  %v13509_v34 = vld [vmem:[#allocation103_spill] sm:$0xff] }
 0x753   :  { %6155 = vmatpush.bf16.msrb.mxu3 %v13503_v17  ;;  %v13510_v17 = vld [vmem:[#allocation135_spill] sm:$0xff] }
 0x754   :  { %v5047_v26 = vpop.f32.mrf.mxu2  ;;  %v4871_v2 = vpop.f32.mrf.mxu0  ;;  %5889 = vmatpush.bf16.msrb.mxu0 %v13504_v4 }
 0x755   :  { %v5048_v9 = vadd.f32 %v5047_v26, %v4959_v48  ;;  %v5136_v10 = vpop.f32.mrf.mxu3  ;;  %v4960_v23 = vpop.f32.mrf.mxu1  ;;  %5978 = vmatpush.bf16.msrb.mxu1 %v13505_v30  ;;  %v13511_v48 = vld [vmem:[#allocation169_spill] sm:$0xff]  ;;  %v13512_v30 = vld [vmem:[#allocation67_spill] sm:$0xff] }
 0x756   :  { %6067 = vmatpush.bf16.msrb.mxu2 %v13506_v28  ;;  %v4961_v16 = vadd.f32 %v4960_v23, %v4871_v2  ;;  %v13515_v23 = vld [vmem:[#allocation161_spill] sm:$0xff] }
 0x757   :  { %v11523_v19 = vadd.f32 %v5136_v10, %v5048_v9  ;;  %6156 = vmatpush.bf16.msrb.mxu3 %v13507_v22  ;;  %v13513_v9 = vld [vmem:[#allocation99_spill] sm:$0xff] }
 0x758   :  { %5890 = vmatpush.bf16.msrb.mxu0 %v13508_v52  ;;  %v13514_v10 = vld [vmem:[#allocation131_spill] sm:$0xff] }
 0x759   :  { %5979 = vmatpush.bf16.msrb.mxu1 %v13509_v34  ;;  %v13517_v52 = vld [vmem:[#allocation95_spill] sm:$0xff] }
 0x75a   :  { %6068 = vmatpush.bf16.msrb.mxu2 %v13510_v17  ;;  %v13518_v34 = vld [vmem:[#allocation127_spill] sm:$0xff]  ;;  %v13519_v17 = vld [vmem:[#allocation153_spill] sm:$0xff] }
 0x75b   :  { %6157 = vmatpush.bf16.msrb.mxu3 %v13511_v48 }
 0x75c   :  { %v5049_v26 = vpop.f32.mrf.mxu2  ;;  %v4874_v21 = vpop.f32.mrf.mxu0  ;;  %5891 = vmatpush.bf16.msrb.mxu0 %v13512_v30 }
 0x75d   :  { %v5050_v4 = vadd.f32 %v5049_v26, %v4961_v16  ;;  %v5138_v24 = vpop.f32.mrf.mxu3  ;;  %v4963_v28 = vpop.f32.mrf.mxu1  ;;  %5980 = vmatpush.bf16.msrb.mxu1 %v13513_v9  ;;  %v13516_v16 = vld [vmem:[#allocation63_spill] sm:$0xff] }
 0x75e   :  { %6069 = vmatpush.bf16.msrb.mxu2 %v13514_v10  ;;  %v4964_v2 = vadd.f32 %v4963_v28, %v4874_v21  ;;  %v13521_v28 = vld [vmem:[#allocation91_spill] sm:$0xff] }
 0x75f   :  { %v11533_v22 = vadd.f32 %v5138_v24, %v5050_v4  ;;  %6158 = vmatpush.bf16.msrb.mxu3 %v13515_v23  ;;  %5189 = vmatmul.bf16.gmra.mxu0 %v10529_v11  ;;  %v13520_v4 = vld [vmem:[#allocation59_spill] sm:$0xff] }
 0x760   :  { %5278 = vmatmul.bf16.gmra.mxu1 %v10531_v20  ;;  %5892 = vmatpush.bf16.msrb.mxu0 %v13516_v16  ;;  %v13522_v9 = vld [vmem:[#allocation123_spill] sm:$0xff]  ;;  %v13523_v16 = vld [vmem:[#allocation29_spill] sm:$0xff] }
 0x761   :  { %5367 = vmatmul.bf16.gmra.mxu2 %v10533_v1  ;;  %5981 = vmatpush.bf16.msrb.mxu1 %v13517_v52  ;;  %v13524_v52 = vld [vmem:[#allocation55_spill] sm:$0xff] }
 0x762   :  { %5456 = vmatmul.bf16.gmra.mxu3 %v10536_v32  ;;  %6070 = vmatpush.bf16.msrb.mxu2 %v13518_v34  ;;  %v13525_v34 = vld [vmem:[#allocation87_spill] sm:$0xff] }
 0x763   :  { %6159 = vmatpush.bf16.msrb.mxu3 %v13519_v17  ;;  %v13526_v17 = vld [vmem:[#allocation119_spill] sm:$0xff] }
 0x764   :  { %v5052_v24 = vpop.f32.mrf.mxu2  ;;  %v4876_v26 = vpop.f32.mrf.mxu0  ;;  %5893 = vmatpush.bf16.msrb.mxu0 %v13520_v4 }
 0x765   :  { %v5053_v21 = vadd.f32 %v5052_v24, %v4964_v2  ;;  %v5141_v48 = vpop.f32.mrf.mxu3  ;;  %v4965_v30 = vpop.f32.mrf.mxu1  ;;  %5982 = vmatpush.bf16.msrb.mxu1 %v13521_v28  ;;  %v13527_v2 = vld [vmem:[#allocation18_spill] sm:$0xff]  ;;  %v13528_v28 = vld [vmem:[#allocation51_spill] sm:$0xff] }
 0x766   :  { %6071 = vmatpush.bf16.msrb.mxu2 %v13522_v9  ;;  %v4966_v23 = vadd.f32 %v4965_v30, %v4876_v26 }
 0x767   :  { %v11547_v10 = vadd.f32 %v5141_v48, %v5053_v21  ;;  %6160 = vmatpush.bf16.msrb.mxu3 %v13523_v16  ;;  %v13529_v21 = vld [vmem:[#allocation83_spill] sm:$0xff]  ;;  %v13531_v16 = vld [vmem:[#allocation150_spill] sm:$0xff] }
 0x768   :  { %5894 = vmatpush.bf16.msrb.mxu0 %v13524_v52  ;;  %v13530_v48 = vld [vmem:[#allocation115_spill] sm:$0xff] }
 0x769   :  { %5983 = vmatpush.bf16.msrb.mxu1 %v13525_v34 }
 0x76a   :  { %6072 = vmatpush.bf16.msrb.mxu2 %v13526_v17 }
 0x76b   :  { %6161 = vmatpush.bf16.msrb.mxu3 %v13527_v2 }
 0x76c   :  { %v5054_v24 = vpop.f32.mrf.mxu2  ;;  %v4879_v1 = vpop.f32.mrf.mxu0  ;;  %5895 = vmatpush.bf16.msrb.mxu0 %v13528_v28 }
 0x76d   :  { %v5055_v4 = vadd.f32 %v5054_v24, %v4966_v23  ;;  %v5143_v32 = vpop.f32.mrf.mxu3  ;;  %v4968_v9 = vpop.f32.mrf.mxu1  ;;  %5984 = vmatpush.bf16.msrb.mxu1 %v13529_v21 }
 0x76e   :  { %6073 = vmatpush.bf16.msrb.mxu2 %v13530_v48  ;;  %v4969_v30 = vadd.f32 %v4968_v9, %v4879_v1 }
 0x76f   :  { %v11557_v26 = vadd.f32 %v5143_v32, %v5055_v4  ;;  %6162 = vmatpush.bf16.msrb.mxu3 %v13531_v16  ;;  %5194 = vmatmul.bf16.gmra.mxu0 %v10565_v45 }
 0x770   :  { %5283 = vmatmul.bf16.gmra.mxu1 %v10567_v43 }
 0x771   :  { %5372 = vmatmul.bf16.gmra.mxu2 %v10569_v49 }
 0x772   :  { %5461 = vmatmul.bf16.gmra.mxu3 %v10572_v14 }
 0x774   :  { %v5057_v23 = vpop.f32.mrf.mxu2  ;;  %v4881_v17 = vpop.f32.mrf.mxu0 }
 0x775   :  { %v5058_v52 = vadd.f32 %v5057_v23, %v4969_v30  ;;  %v5146_v34 = vpop.f32.mrf.mxu3  ;;  %v4970_v2 = vpop.f32.mrf.mxu1 }
 0x776   :  { %v4971_v32 = vadd.f32 %v4970_v2, %v4881_v17 }
 0x777   :  { %v11564_v24 = vadd.f32 %v5146_v34, %v5058_v52 }
 0x77c   :  { %v5059_v4 = vpop.f32.mrf.mxu2  ;;  %v4884_v9 = vpop.f32.mrf.mxu0 }
 0x77d   :  { %v5060_v1 = vadd.f32 %v5059_v4, %v4971_v32  ;;  %v5148_v28 = vpop.f32.mrf.mxu3  ;;  %v4973_v21 = vpop.f32.mrf.mxu1 }
 0x77e   :  { %v4974_v16 = vadd.f32 %v4973_v21, %v4884_v9 }
 0x77f   :  { %v11566_v48 = vadd.f32 %v5148_v28, %v5060_v1  ;;  %5199 = vmatmul.bf16.gmra.mxu0 %v13407_v41 }
 0x780   :  { %5288 = vmatmul.bf16.gmra.mxu1 %v13410_v56 }
 0x781   :  { %13532 = vst [vmem:[#allocation13_spill] sm:$0xff] %v11566_v48  ;;  %5377 = vmatmul.bf16.gmra.mxu2 %v13411_v12 }
 0x782   :  { %5466 = vmatmul.bf16.gmra.mxu3 %v13412_v29 }
 0x784   :  { %v5062_v30 = vpop.f32.mrf.mxu2  ;;  %v4886_v34 = vpop.f32.mrf.mxu0 }
 0x785   :  { %v5063_v23 = vadd.f32 %v5062_v30, %v4974_v16  ;;  %v5151_v52 = vpop.f32.mrf.mxu3  ;;  %v4975_v17 = vpop.f32.mrf.mxu1 }
 0x786   :  { %v4976_v32 = vadd.f32 %v4975_v17, %v4886_v34 }
 0x787   :  { %v11572_v2 = vadd.f32 %v5151_v52, %v5063_v23 }
 0x78c   :  { %v5064_v4 = vpop.f32.mrf.mxu2  ;;  %v4889_v9 = vpop.f32.mrf.mxu0 }
 0x78d   :  { %v5065_v1 = vadd.f32 %v5064_v4, %v4976_v32  ;;  %v5153_v28 = vpop.f32.mrf.mxu3  ;;  %v4978_v21 = vpop.f32.mrf.mxu1 }
 0x78e   :  { %v4979_v56 = vadd.f32 %v4978_v21, %v4889_v9 }
 0x78f   :  { %v11574_v48 = vadd.f32 %v5153_v28, %v5065_v1  ;;  %5204 = vmatmul.bf16.gmra.mxu0 %v13419_v40 }
 0x790   :  { %5293 = vmatmul.bf16.gmra.mxu1 %v13422_v58 }
 0x791   :  { %13533 = vst [vmem:[#allocation34_spill] sm:$0xff] %v11574_v48  ;;  %5382 = vmatmul.bf16.gmra.mxu2 %v13423_v46 }
 0x792   :  { %5471 = vmatmul.bf16.gmra.mxu3 %v13424_v54 }
 0x794   :  { %v5067_v16 = vpop.f32.mrf.mxu2  ;;  %v4891_v52 = vpop.f32.mrf.mxu0 }
 0x795   :  { %v5068_v30 = vadd.f32 %v5067_v16, %v4979_v56  ;;  %v5156_v23 = vpop.f32.mrf.mxu3  ;;  %v4980_v34 = vpop.f32.mrf.mxu1 }
 0x796   :  { %v4981_v32 = vadd.f32 %v4980_v34, %v4891_v52 }
 0x797   :  { %v11580_v17 = vadd.f32 %v5156_v23, %v5068_v30 }
 0x79c   :  { %v5069_v4 = vpop.f32.mrf.mxu2  ;;  %v4894_v9 = vpop.f32.mrf.mxu0 }
 0x79d   :  { %v5070_v1 = vadd.f32 %v5069_v4, %v4981_v32  ;;  %v5158_v28 = vpop.f32.mrf.mxu3  ;;  %v4983_v21 = vpop.f32.mrf.mxu1 }
 0x79e   :  { %v4984_v58 = vadd.f32 %v4983_v21, %v4894_v9 }
 0x79f   :  { %v11582_v48 = vadd.f32 %v5158_v28, %v5070_v1  ;;  %5209 = vmatmul.bf16.gmra.mxu0 %v13431_v25 }
 0x7a0   :  { %5298 = vmatmul.bf16.gmra.mxu1 %v13434_v36 }
 0x7a1   :  { %13534 = vst [vmem:[#allocation47_spill] sm:$0xff] %v11582_v48  ;;  %5387 = vmatmul.bf16.gmra.mxu2 %v13435_v60  ;;  %v13537_v60 = vld [vmem:[#allocation171_spill] sm:$0xff] }
 0x7a2   :  { %5476 = vmatmul.bf16.gmra.mxu3 %v13436_v0  ;;  %v13538_v0 = vld [vmem:[#allocation172_spill] sm:$0xff] }
 0x7a4   :  { %v5072_v56 = vpop.f32.mrf.mxu2  ;;  %v4896_v23 = vpop.f32.mrf.mxu0 }
 0x7a5   :  { %v5073_v16 = vadd.f32 %v5072_v56, %v4984_v58  ;;  %v5161_v30 = vpop.f32.mrf.mxu3  ;;  %v4985_v52 = vpop.f32.mrf.mxu1  ;;  %v13539_v58 = vld [vmem:[#allocation173_spill] sm:$0xff] }
 0x7a6   :  { %v4986_v32 = vadd.f32 %v4985_v52, %v4896_v23 }
 0x7a7   :  { %v11588_v34 = vadd.f32 %v5161_v30, %v5073_v16 }
 0x7a9   :  { %13535 = vst [vmem:[#allocation48_spill] sm:$0xff] %v11588_v34 }
 0x7ac   :  { %v5074_v4 = vpop.f32.mrf.mxu2  ;;  %v4899_v9 = vpop.f32.mrf.mxu0 }
 0x7ad   :  { %v5075_v1 = vadd.f32 %v5074_v4, %v4986_v32  ;;  %v5163_v28 = vpop.f32.mrf.mxu3  ;;  %v4988_v21 = vpop.f32.mrf.mxu1 }
 0x7ae   :  { %v4989_v36 = vadd.f32 %v4988_v21, %v4899_v9 }
 0x7af   :  { %v11590_v48 = vadd.f32 %v5163_v28, %v5075_v1  ;;  %5214 = vmatmul.bf16.gmra.mxu0 %v13443_v44  ;;  %v13542_v44 = vld [vmem:[#allocation178_spill] sm:$0xff] }
 0x7b0   :  { %5303 = vmatmul.bf16.gmra.mxu1 %v13537_v60 }
 0x7b1   :  { %13536 = vst [vmem:[#allocation21_spill] sm:$0xff] %v11590_v48  ;;  %5392 = vmatmul.bf16.gmra.mxu2 %v13538_v0  ;;  %v13543_v0 = vld [vmem:[#allocation179_spill] sm:$0xff] }
 0x7b2   :  { %5481 = vmatmul.bf16.gmra.mxu3 %v13539_v58  ;;  %v13544_v58 = vld [vmem:[#allocation180_spill] sm:$0xff] }
 0x7b4   :  { %v5077_v56 = vpop.f32.mrf.mxu2  ;;  %v4901_v23 = vpop.f32.mrf.mxu0 }
 0x7b5   :  { %v5078_v16 = vadd.f32 %v5077_v56, %v4989_v36  ;;  %v5166_v30 = vpop.f32.mrf.mxu3  ;;  %v4990_v52 = vpop.f32.mrf.mxu1  ;;  %v13545_v36 = vld [vmem:[#allocation181_spill] sm:$0xff] }
 0x7b6   :  { %v4991_v4 = vadd.f32 %v4990_v52, %v4901_v23 }
 0x7b7   :  { %v11596_v32 = vadd.f32 %v5166_v30, %v5078_v16 }
 0x7b9   :  { %13540 = vst [vmem:[#allocation45_spill] sm:$0xff] %v11596_v32 }
 0x7bc   :  { %v5079_v34 = vpop.f32.mrf.mxu2  ;;  %v4904_v9 = vpop.f32.mrf.mxu0 }
 0x7bd   :  { %v5080_v1 = vadd.f32 %v5079_v34, %v4991_v4  ;;  %v5168_v28 = vpop.f32.mrf.mxu3  ;;  %v4993_v21 = vpop.f32.mrf.mxu1 }
 0x7be   :  { %v4994_v60 = vadd.f32 %v4993_v21, %v4904_v9 }
 0x7bf   :  { %v11598_v48 = vadd.f32 %v5168_v28, %v5080_v1  ;;  %5219 = vmatmul.bf16.gmra.mxu0 %v13542_v44 }
 0x7c0   :  { %5308 = vmatmul.bf16.gmra.mxu1 %v13543_v0 }
 0x7c1   :  { %13541 = vst [vmem:[#allocation17_spill] sm:$0xff] %v11598_v48  ;;  %5397 = vmatmul.bf16.gmra.mxu2 %v13544_v58  ;;  %v13548_v58 = vld [vmem:[#allocation187_spill] sm:$0xff] }
 0x7c2   :  { %5486 = vmatmul.bf16.gmra.mxu3 %v13545_v36  ;;  %v13549_v36 = vld [vmem:[#allocation188_spill] sm:$0xff] }
 0x7c4   :  { %v5082_v56 = vpop.f32.mrf.mxu2  ;;  %v4906_v23 = vpop.f32.mrf.mxu0 }
 0x7c5   :  { %v5083_v16 = vadd.f32 %v5082_v56, %v4994_v60  ;;  %v5171_v30 = vpop.f32.mrf.mxu3  ;;  %v4995_v52 = vpop.f32.mrf.mxu1  ;;  %v13550_v60 = vld [vmem:[#allocation189_spill] sm:$0xff] }
 0x7c6   :  { %v4996_v4 = vadd.f32 %v4995_v52, %v4906_v23 }
 0x7c7   :  { %v11604_v34 = vadd.f32 %v5171_v30, %v5083_v16 }
 0x7c9   :  { %13546 = vst [vmem:[#allocation32_spill] sm:$0xff] %v11604_v34 }
 0x7cc   :  { %v5084_v32 = vpop.f32.mrf.mxu2  ;;  %v5185_v9 = vpop.f32.mrf.mxu0 }
 0x7cd   :  { %v5085_v1 = vadd.f32 %v5084_v32, %v4996_v4  ;;  %v5173_v28 = vpop.f32.mrf.mxu3  ;;  %v5274_v21 = vpop.f32.mrf.mxu1 }
 0x7ce   :  { %v5275_v0 = vadd.f32 %v5274_v21, %v5185_v9 }
 0x7cf   :  { %v11606_v48 = vadd.f32 %v5173_v28, %v5085_v1  ;;  %5224 = vmatmul.bf16.gmra.mxu0 %v13467_v8 }
 0x7d0   :  { %5313 = vmatmul.bf16.gmra.mxu1 %v13548_v58 }
 0x7d1   :  { %13547 = vst [vmem:[#allocation22_spill] sm:$0xff] %v11606_v48  ;;  %5402 = vmatmul.bf16.gmra.mxu2 %v13549_v36 }
 0x7d2   :  { %5491 = vmatmul.bf16.gmra.mxu3 %v13550_v60 }
 0x7d4   :  { %v5363_v56 = vpop.f32.mrf.mxu2  ;;  %v5187_v23 = vpop.f32.mrf.mxu0 }
 0x7d5   :  { %v5364_v16 = vadd.f32 %v5363_v56, %v5275_v0  ;;  %v5452_v30 = vpop.f32.mrf.mxu3  ;;  %v5276_v52 = vpop.f32.mrf.mxu1 }
 0x7d6   :  { %v5277_v4 = vadd.f32 %v5276_v52, %v5187_v23 }
 0x7d7   :  { %v5453_v32 = vadd.f32 %v5452_v30, %v5364_v16 }
 0x7d9   :  { %v6957_v34 = vpack.c.bf16 %v5453_v32, %v11448_v3  ;;  %v13551_v3 = vld [vmem:[#allocation192_spill] sm:$0xff] }
 0x7db   :  { %v7406_v48 = vunpack.c.l.bf16 %v6957_v34  ;;  %v7407_v8 = vunpack.c.h.bf16 %v6957_v34 }
 0x7dc   :  { %v5365_v1 = vpop.f32.mrf.mxu2  ;;  %v5190_v21 = vpop.f32.mrf.mxu0 }
 0x7dd   :  { %v5366_v28 = vadd.f32 %v5365_v1, %v5277_v4  ;;  %v5454_v9 = vpop.f32.mrf.mxu3  ;;  %v5279_v58 = vpop.f32.mrf.mxu1  ;;  %v7694_v56 = vadd.f32 %v13551_v3, %v7406_v48  ;;  %v7695_v16 = vadd.f32 %v13551_v3, %v7407_v8  ;;  %v13552_v4 = vld [vmem:[#allocation197_spill] sm:$0xff] }
 0x7de   :  { %v5280_v36 = vadd.f32 %v5279_v58, %v5190_v21 }
 0x7df   :  { %v5455_v44 = vadd.f32 %v5454_v9, %v5366_v28  ;;  %5229 = vmatmul.bf16.gmra.mxu0 %v13475_v7  ;;  %v8334_v28 = vmax.f32 %v7694_v56, 0.0  ;;  %v8335_v9 = vmax.f32 %v7695_v16, 0.0  ;;  %v13555_v16 = vld [vmem:[#allocation42_spill] sm:$0xff] }
 0x7e0   :  { %5318 = vmatmul.bf16.gmra.mxu1 %v13476_v13 }
 0x7e1   :  { %v6961_v0 = vpack.c.bf16 %v5455_v44, %v11454_v33  ;;  %5407 = vmatmul.bf16.gmra.mxu2 %v13477_v61 }
 0x7e2   :  { %5496 = vmatmul.bf16.gmra.mxu3 %v13478_v63 }
 0x7e3   :  { %v7414_v30 = vunpack.c.l.bf16 %v6961_v0  ;;  %v7415_v23 = vunpack.c.h.bf16 %v6961_v0 }
 0x7e4   :  { %v5368_v34 = vpop.f32.mrf.mxu2  ;;  %v5192_v58 = vpop.f32.mrf.mxu0 }
 0x7e5   :  { %v5369_v52 = vadd.f32 %v5368_v34, %v5280_v36  ;;  %v5457_v32 = vpop.f32.mrf.mxu3  ;;  %v7702_v1 = vadd.f32 %v13552_v4, %v7414_v30  ;;  %v7703_v44 = vadd.f32 %v13552_v4, %v7415_v23  ;;  %v5281_v33 = vpop.f32.mrf.mxu1 }
 0x7e6   :  { %v5282_v61 = vadd.f32 %v5281_v33, %v5192_v58 }
 0x7e7   :  { %v5458_v21 = vadd.f32 %v5457_v32, %v5369_v52  ;;  %v8342_v63 = vmax.f32 %v7702_v1, 0.0  ;;  %v8343_v13 = vmax.f32 %v7703_v44, 0.0  ;;  %v13556_v32 = vld [vmem:[#allocation200_spill] sm:$0xff] }
 0x7e9   :  { %v6965_v48 = vpack.c.bf16 %v5458_v21, %v11460_v38  ;;  %v11623_v8 = vpack.c.bf16 %v8342_v63, %v8334_v28  ;;  %v11625_v0 = vpack.c.bf16 %v8343_v13, %v8335_v9  ;;  %v13557_v63 = vld [vmem:[#allocation202_spill] sm:$0xff]  ;;  %v13559_v28 = vld [vmem:[#allocation199_spill] sm:$0xff] }
 0x7ea   :  { %v13558_v13 = vld [vmem:[#allocation230_spill] sm:$0xff] }
 0x7eb   :  { %13553 = vst [vmem:[#allocation43_spill] sm:$0xff] %v11623_v8  ;;  %v7422_v30 = vunpack.c.l.bf16 %v6965_v48  ;;  %v7423_v60 = vunpack.c.h.bf16 %v6965_v48 }
 0x7ec   :  { %13554 = vst [vmem:[#allocation41_spill] sm:$0xff] %v11625_v0  ;;  %v5370_v36 = vpop.f32.mrf.mxu2  ;;  %v5195_v7 = vpop.f32.mrf.mxu0 }
 0x7ed   :  { %v5371_v34 = vadd.f32 %v5370_v36, %v5282_v61  ;;  %v5459_v3 = vpop.f32.mrf.mxu3  ;;  %v5284_v23 = vpop.f32.mrf.mxu1  ;;  %v7710_v38 = vadd.f32 %v13558_v13, %v7422_v30  ;;  %v7711_v61 = vadd.f32 %v13558_v13, %v7423_v60  ;;  %v13560_v30 = vld [vmem:[#allocation37_spill] sm:$0xff] }
 0x7ee   :  { %v5285_v56 = vadd.f32 %v5284_v23, %v5195_v7 }
 0x7ef   :  { %v5460_v4 = vadd.f32 %v5459_v3, %v5371_v34  ;;  %5234 = vmatmul.bf16.gmra.mxu0 %v13308_v39  ;;  %v8350_v48 = vmax.f32 %v7710_v38, 0.0  ;;  %v8351_v36 = vmax.f32 %v7711_v61, 0.0  ;;  %v13563_v61 = vld [vmem:[#allocation27_spill] sm:$0xff] }
 0x7f0   :  { %5323 = vmatmul.bf16.gmra.mxu1 %v13556_v32 }
 0x7f1   :  { %v6969_v52 = vpack.c.bf16 %v5460_v4, %v13555_v16  ;;  %5412 = vmatmul.bf16.gmra.mxu2 %v13481_v47 }
 0x7f2   :  { %5501 = vmatmul.bf16.gmra.mxu3 %v13557_v63 }
 0x7f3   :  { %v7430_v58 = vunpack.c.l.bf16 %v6969_v52  ;;  %v7431_v1 = vunpack.c.h.bf16 %v6969_v52 }
 0x7f4   :  { %v5373_v44 = vpop.f32.mrf.mxu2  ;;  %v5197_v7 = vpop.f32.mrf.mxu0 }
 0x7f5   :  { %v5374_v33 = vadd.f32 %v5373_v44, %v5285_v56  ;;  %v5462_v3 = vpop.f32.mrf.mxu3  ;;  %v7718_v9 = vadd.f32 %v13559_v28, %v7430_v58  ;;  %v7719_v4 = vadd.f32 %v13559_v28, %v7431_v1  ;;  %v5286_v21 = vpop.f32.mrf.mxu1 }
 0x7f6   :  { %v5287_v23 = vadd.f32 %v5286_v21, %v5197_v7  ;;  %v13565_v7 = vld [vmem:[#allocation208_spill] sm:$0xff] }
 0x7f7   :  { %v5463_v34 = vadd.f32 %v5462_v3, %v5374_v33  ;;  %v8358_v16 = vmax.f32 %v7718_v9, 0.0  ;;  %v8359_v0 = vmax.f32 %v7719_v4, 0.0  ;;  %v13564_v3 = vld [vmem:[#allocation206_spill] sm:$0xff] }
 0x7f9   :  { %v6973_v8 = vpack.c.bf16 %v5463_v34, %v13560_v30  ;;  %v11637_v60 = vpack.c.bf16 %v8358_v16, %v8350_v48  ;;  %v11639_v52 = vpack.c.bf16 %v8359_v0, %v8351_v36  ;;  %v13566_v0 = vld [vmem:[#allocation231_spill] sm:$0xff]  ;;  %v13567_v34 = vld [vmem:[#allocation205_spill] sm:$0xff] }
 0x7fb   :  { %13561 = vst [vmem:[#allocation24_spill] sm:$0xff] %v11637_v60  ;;  %v7438_v58 = vunpack.c.l.bf16 %v6973_v8  ;;  %v7439_v47 = vunpack.c.h.bf16 %v6973_v8 }
 0x7fc   :  { %13562 = vst [vmem:[#allocation23_spill] sm:$0xff] %v11639_v52  ;;  %v5375_v56 = vpop.f32.mrf.mxu2  ;;  %v5200_v63 = vpop.f32.mrf.mxu0 }
 0x7fd   :  { %v5376_v44 = vadd.f32 %v5375_v56, %v5287_v23  ;;  %v5464_v13 = vpop.f32.mrf.mxu3  ;;  %v5289_v1 = vpop.f32.mrf.mxu1  ;;  %v7726_v9 = vadd.f32 %v13566_v0, %v7438_v58  ;;  %v7727_v4 = vadd.f32 %v13566_v0, %v7439_v47  ;;  %v13568_v58 = vld [vmem:[#allocation40_spill] sm:$0xff] }
 0x7fe   :  { %v5290_v38 = vadd.f32 %v5289_v1, %v5200_v63 }
 0x7ff   :  { %v5465_v28 = vadd.f32 %v5464_v13, %v5376_v44  ;;  %5239 = vmatmul.bf16.gmra.mxu0 %v13318_v35  ;;  %v8366_v30 = vmax.f32 %v7726_v9, 0.0  ;;  %v8367_v56 = vmax.f32 %v7727_v4, 0.0  ;;  %v13571_v4 = vld [vmem:[#allocation36_spill] sm:$0xff] }
 0x800   :  { %5328 = vmatmul.bf16.gmra.mxu1 %v13564_v3 }
 0x801   :  { %v6977_v33 = vpack.c.bf16 %v5465_v28, %v13563_v61  ;;  %5417 = vmatmul.bf16.gmra.mxu2 %v13485_v31 }
 0x802   :  { %5506 = vmatmul.bf16.gmra.mxu3 %v13565_v7 }
 0x803   :  { %v7446_v21 = vunpack.c.l.bf16 %v6977_v33  ;;  %v7447_v48 = vunpack.c.h.bf16 %v6977_v33 }
 0x804   :  { %v5378_v8 = vpop.f32.mrf.mxu2  ;;  %v5202_v63 = vpop.f32.mrf.mxu0 }
 0x805   :  { %v5379_v36 = vadd.f32 %v5378_v8, %v5290_v38  ;;  %v5467_v13 = vpop.f32.mrf.mxu3  ;;  %v7734_v23 = vadd.f32 %v13567_v34, %v7446_v21  ;;  %v7735_v28 = vadd.f32 %v13567_v34, %v7447_v48  ;;  %v5291_v16 = vpop.f32.mrf.mxu1 }
 0x806   :  { %v5292_v1 = vadd.f32 %v5291_v16, %v5202_v63 }
 0x807   :  { %v5468_v44 = vadd.f32 %v5467_v13, %v5379_v36  ;;  %v8374_v61 = vmax.f32 %v7734_v23, 0.0  ;;  %v8375_v52 = vmax.f32 %v7735_v28, 0.0  ;;  %v13572_v13 = vld [vmem:[#allocation212_spill] sm:$0xff] }
 0x809   :  { %v6981_v60 = vpack.c.bf16 %v5468_v44, %v13568_v58  ;;  %v11651_v47 = vpack.c.bf16 %v8374_v61, %v8366_v30  ;;  %v11653_v33 = vpack.c.bf16 %v8375_v52, %v8367_v56  ;;  %v13573_v52 = vld [vmem:[#allocation232_spill] sm:$0xff]  ;;  %v13574_v56 = vld [vmem:[#allocation211_spill] sm:$0xff] }
 0x80b   :  { %13569 = vst [vmem:[#allocation26_spill] sm:$0xff] %v11651_v47  ;;  %v7454_v21 = vunpack.c.l.bf16 %v6981_v60  ;;  %v7455_v31 = vunpack.c.h.bf16 %v6981_v60 }
 0x80c   :  { %13570 = vst [vmem:[#allocation224_spill] sm:$0xff] %v11653_v33  ;;  %v5380_v38 = vpop.f32.mrf.mxu2  ;;  %v5205_v7 = vpop.f32.mrf.mxu0 }
 0x80d   :  { %v5381_v8 = vadd.f32 %v5380_v38, %v5292_v1  ;;  %v5469_v0 = vpop.f32.mrf.mxu3  ;;  %v5294_v48 = vpop.f32.mrf.mxu1  ;;  %v7742_v63 = vadd.f32 %v13573_v52, %v7454_v21  ;;  %v7743_v23 = vadd.f32 %v13573_v52, %v7455_v31  ;;  %v13575_v21 = vld [vmem:[#allocation39_spill] sm:$0xff] }
 0x80e   :  { %v5295_v9 = vadd.f32 %v5294_v48, %v5205_v7 }
 0x80f   :  { %v5470_v34 = vadd.f32 %v5469_v0, %v5381_v8  ;;  %5244 = vmatmul.bf16.gmra.mxu0 %v13328_v57  ;;  %v8382_v61 = vmax.f32 %v7742_v63, 0.0  ;;  %v8383_v58 = vmax.f32 %v7743_v23, 0.0  ;;  %v13578_v23 = vld [vmem:[#allocation30_spill] sm:$0xff] }
 0x810   :  { %5333 = vmatmul.bf16.gmra.mxu1 %v13572_v13 }
 0x811   :  { %v6985_v36 = vpack.c.bf16 %v5470_v34, %v13571_v4  ;;  %5422 = vmatmul.bf16.gmra.mxu2 %v13489_v50 }
 0x812   :  { %5511 = vmatmul.bf16.gmra.mxu3 %v13490_v15 }
 0x813   :  { %v7462_v28 = vunpack.c.l.bf16 %v6985_v36  ;;  %v7463_v16 = vunpack.c.h.bf16 %v6985_v36 }
 0x814   :  { %v5383_v60 = vpop.f32.mrf.mxu2  ;;  %v5207_v7 = vpop.f32.mrf.mxu0 }
 0x815   :  { %v5384_v30 = vadd.f32 %v5383_v60, %v5295_v9  ;;  %v5472_v0 = vpop.f32.mrf.mxu3  ;;  %v7750_v44 = vadd.f32 %v13574_v56, %v7462_v28  ;;  %v7751_v34 = vadd.f32 %v13574_v56, %v7463_v16  ;;  %v5296_v1 = vpop.f32.mrf.mxu1 }
 0x816   :  { %v5297_v8 = vadd.f32 %v5296_v1, %v5207_v7  ;;  %v13580_v7 = vld [vmem:[#allocation220_spill] sm:$0xff] }
 0x817   :  { %v5473_v38 = vadd.f32 %v5472_v0, %v5384_v30  ;;  %v8390_v48 = vmax.f32 %v7750_v44, 0.0  ;;  %v8391_v4 = vmax.f32 %v7751_v34, 0.0  ;;  %v13579_v0 = vld [vmem:[#allocation218_spill] sm:$0xff]  ;;  %v13581_v44 = vld [vmem:[#allocation233_spill] sm:$0xff] }
 0x819   :  { %v6989_v33 = vpack.c.bf16 %v5473_v38, %v13575_v21  ;;  %v11665_v31 = vpack.c.bf16 %v8390_v48, %v8382_v61  ;;  %v11667_v36 = vpack.c.bf16 %v8391_v4, %v8383_v58 }
 0x81b   :  { %13576 = vst [vmem:[#allocation225_spill] sm:$0xff] %v11665_v31  ;;  %v7470_v28 = vunpack.c.l.bf16 %v6989_v33  ;;  %v7471_v15 = vunpack.c.h.bf16 %v6989_v33 }
 0x81c   :  { %13577 = vst [vmem:[#allocation79_spill] sm:$0xff] %v11667_v36  ;;  %v5385_v9 = vpop.f32.mrf.mxu2  ;;  %v5210_v52 = vpop.f32.mrf.mxu0 }
 0x81d   :  { %v5386_v60 = vadd.f32 %v5385_v9, %v5297_v8  ;;  %v5474_v47 = vpop.f32.mrf.mxu3  ;;  %v5299_v16 = vpop.f32.mrf.mxu1  ;;  %v7758_v34 = vadd.f32 %v13581_v44, %v7470_v28  ;;  %v7759_v1 = vadd.f32 %v13581_v44, %v7471_v15  ;;  %v13582_v8 = vld [vmem:[#allocation217_spill] sm:$0xff]  ;;  %v13583_v28 = vld [vmem:[#allocation154_spill] sm:$0xff] }
 0x81e   :  { %v5300_v63 = vadd.f32 %v5299_v16, %v5210_v52 }
 0x81f   :  { %v5475_v56 = vadd.f32 %v5474_v47, %v5386_v60  ;;  %5249 = vmatmul.bf16.gmra.mxu0 %v13338_v37  ;;  %v8398_v21 = vmax.f32 %v7758_v34, 0.0  ;;  %v8399_v9 = vmax.f32 %v7759_v1, 0.0  ;;  %v13586_v1 = vld [vmem:[#allocation49_spill] sm:$0xff] }
 0x820   :  { %5338 = vmatmul.bf16.gmra.mxu1 %v13579_v0 }
 0x821   :  { %v6993_v30 = vpack.c.bf16 %v5475_v56, %v13578_v23  ;;  %5427 = vmatmul.bf16.gmra.mxu2 %v13342_v42 }
 0x822   :  { %5516 = vmatmul.bf16.gmra.mxu3 %v13580_v7 }
 0x823   :  { %v7478_v61 = vunpack.c.l.bf16 %v6993_v30  ;;  %v7479_v58 = vunpack.c.h.bf16 %v6993_v30 }
 0x824   :  { %v5388_v33 = vpop.f32.mrf.mxu2  ;;  %v5212_v52 = vpop.f32.mrf.mxu0 }
 0x825   :  { %v5389_v38 = vadd.f32 %v5388_v33, %v5300_v63  ;;  %v5477_v47 = vpop.f32.mrf.mxu3  ;;  %v7766_v48 = vadd.f32 %v13582_v8, %v7478_v61  ;;  %v7767_v56 = vadd.f32 %v13582_v8, %v7479_v58  ;;  %v5301_v4 = vpop.f32.mrf.mxu1 }
 0x826   :  { %v5302_v16 = vadd.f32 %v5301_v4, %v5212_v52 }
 0x827   :  { %v5478_v60 = vadd.f32 %v5477_v47, %v5389_v38  ;;  %v8406_v23 = vmax.f32 %v7766_v48, 0.0  ;;  %v8407_v36 = vmax.f32 %v7767_v56, 0.0  ;;  %v13587_v47 = vld [vmem:[#allocation223_spill] sm:$0xff] }
 0x829   :  { %v6997_v31 = vpack.c.bf16 %v5478_v60, %v13583_v28  ;;  %v11679_v15 = vpack.c.bf16 %v8406_v23, %v8398_v21  ;;  %v11681_v30 = vpack.c.bf16 %v8407_v36, %v8399_v9  ;;  %v13588_v36 = vld [vmem:[#allocation235_spill] sm:$0xff]  ;;  %v13589_v9 = vld [vmem:[#allocation222_spill] sm:$0xff] }
 0x82b   :  { %13584 = vst [vmem:[#allocation111_spill] sm:$0xff] %v11679_v15  ;;  %v7486_v61 = vunpack.c.l.bf16 %v6997_v31  ;;  %v7487_v42 = vunpack.c.h.bf16 %v6997_v31 }
 0x82c   :  { %13585 = vst [vmem:[#allocation143_spill] sm:$0xff] %v11681_v30  ;;  %v5390_v63 = vpop.f32.mrf.mxu2  ;;  %v5215_v7 = vpop.f32.mrf.mxu0 }
 0x82d   :  { %v5391_v33 = vadd.f32 %v5390_v63, %v5302_v16  ;;  %v5479_v44 = vpop.f32.mrf.mxu3  ;;  %v5304_v58 = vpop.f32.mrf.mxu1  ;;  %v7774_v52 = vadd.f32 %v13588_v36, %v7486_v61  ;;  %v7775_v48 = vadd.f32 %v13588_v36, %v7487_v42 }
 0x82e   :  { %v5305_v34 = vadd.f32 %v5304_v58, %v5215_v7 }
 0x82f   :  { %v5480_v8 = vadd.f32 %v5479_v44, %v5391_v33  ;;  %5254 = vmatmul.bf16.gmra.mxu0 %v13347_v62  ;;  %v8414_v23 = vmax.f32 %v7774_v52, 0.0  ;;  %v8415_v28 = vmax.f32 %v7775_v48, 0.0  ;;  %v13592_v48 = vld [vmem:[#allocation35_spill] sm:$0xff] }
 0x830   :  { %5343 = vmatmul.bf16.gmra.mxu1 %v13587_v47 }
 0x831   :  { %v7001_v38 = vpack.c.bf16 %v5480_v8, %v13586_v1  ;;  %5432 = vmatmul.bf16.gmra.mxu2 %v13496_v53 }
 0x832   :  { %5521 = vmatmul.bf16.gmra.mxu3 %v13497_v55 }
 0x833   :  { %v7494_v56 = vunpack.c.l.bf16 %v7001_v38  ;;  %v7495_v4 = vunpack.c.h.bf16 %v7001_v38 }
 0x834   :  { %v5393_v31 = vpop.f32.mrf.mxu2  ;;  %v5217_v7 = vpop.f32.mrf.mxu0 }
 0x835   :  { %v5394_v21 = vadd.f32 %v5393_v31, %v5305_v34  ;;  %v5482_v44 = vpop.f32.mrf.mxu3  ;;  %v7782_v60 = vadd.f32 %v13589_v9, %v7494_v56  ;;  %v7783_v8 = vadd.f32 %v13589_v9, %v7495_v4  ;;  %v5306_v16 = vpop.f32.mrf.mxu1 }
 0x836   :  { %v5307_v33 = vadd.f32 %v5306_v16, %v5217_v7 }
 0x837   :  { %v5483_v63 = vadd.f32 %v5482_v44, %v5394_v21  ;;  %v8422_v58 = vmax.f32 %v7782_v60, 0.0  ;;  %v8423_v1 = vmax.f32 %v7783_v8, 0.0  ;;  %v13593_v44 = vld [vmem:[#allocation228_spill] sm:$0xff] }
 0x839   :  { %v7005_v61 = vpack.c.bf16 %v5483_v63, %v11500_v51  ;;  %v11693_v42 = vpack.c.bf16 %v8422_v58, %v8414_v23  ;;  %v11695_v38 = vpack.c.bf16 %v8423_v1, %v8415_v28  ;;  %v13594_v51 = vld [vmem:[#allocation236_spill] sm:$0xff]  ;;  %v13595_v63 = vld [vmem:[#allocation237_spill] sm:$0xff] }
 0x83b   :  { %13590 = vst [vmem:[#allocation185_spill] sm:$0xff] %v11693_v42  ;;  %v7502_v56 = vunpack.c.l.bf16 %v7005_v61  ;;  %v7503_v36 = vunpack.c.h.bf16 %v7005_v61 }
 0x83c   :  { %13591 = vst [vmem:[#allocation75_spill] sm:$0xff] %v11695_v38  ;;  %v5395_v34 = vpop.f32.mrf.mxu2  ;;  %v5220_v15 = vpop.f32.mrf.mxu0 }
 0x83d   :  { %v5396_v31 = vadd.f32 %v5395_v34, %v5307_v33  ;;  %v5484_v30 = vpop.f32.mrf.mxu3  ;;  %v5309_v4 = vpop.f32.mrf.mxu1  ;;  %v7790_v7 = vadd.f32 %v13594_v51, %v7502_v56  ;;  %v7791_v60 = vadd.f32 %v13594_v51, %v7503_v36 }
 0x83e   :  { %v5310_v52 = vadd.f32 %v5309_v4, %v5220_v15 }
 0x83f   :  { %v5485_v9 = vadd.f32 %v5484_v30, %v5396_v31  ;;  %5259 = vmatmul.bf16.gmra.mxu0 %v10854_v6  ;;  %v8430_v1 = vmax.f32 %v7790_v7, 0.0  ;;  %v8431_v61 = vmax.f32 %v7791_v60, 0.0  ;;  %v13598_v60 = vld [vmem:[#allocation19_spill] sm:$0xff] }
 0x840   :  { %5348 = vmatmul.bf16.gmra.mxu1 %v13593_v44 }
 0x841   :  { %v7009_v21 = vpack.c.bf16 %v5485_v9, %v13592_v48  ;;  %5437 = vmatmul.bf16.gmra.mxu2 %v10858_v27 }
 0x842   :  { %5526 = vmatmul.bf16.gmra.mxu3 %v10860_v5 }
 0x843   :  { %v7510_v8 = vunpack.c.l.bf16 %v7009_v21  ;;  %v7511_v16 = vunpack.c.h.bf16 %v7009_v21 }
 0x844   :  { %v5398_v23 = vpop.f32.mrf.mxu2  ;;  %v5222_v15 = vpop.f32.mrf.mxu0 }
 0x845   :  { %v5399_v28 = vadd.f32 %v5398_v23, %v5310_v52  ;;  %v5487_v30 = vpop.f32.mrf.mxu3  ;;  %v7798_v33 = vadd.f32 %v13595_v63, %v7510_v8  ;;  %v7799_v9 = vadd.f32 %v13595_v63, %v7511_v16  ;;  %v5311_v58 = vpop.f32.mrf.mxu1 }
 0x846   :  { %v5312_v31 = vadd.f32 %v5311_v58, %v5222_v15  ;;  %v13601_v15 = vld [vmem:[#allocation240_spill] sm:$0xff]  ;;  %v13602_v58 = vld [vmem:[#allocation146_spill] sm:$0xff] }
 0x847   :  { %v5488_v34 = vadd.f32 %v5487_v30, %v5399_v28  ;;  %v8438_v4 = vmax.f32 %v7798_v33, 0.0  ;;  %v8439_v48 = vmax.f32 %v7799_v9, 0.0  ;;  %v13599_v30 = vld [vmem:[#allocation144_spill] sm:$0xff] }
 0x849   :  { %v7013_v56 = vpack.c.bf16 %v5488_v34, %v11508_v18  ;;  %v11707_v36 = vpack.c.bf16 %v8438_v4, %v8430_v1  ;;  %v11709_v21 = vpack.c.bf16 %v8439_v48, %v8431_v61  ;;  %v13600_v18 = vld [vmem:[#allocation145_spill] sm:$0xff]  ;;  %v13603_v1 = vld [vmem:[#allocation80_spill] sm:$0xff] }
 0x84a   :  { %v13607_v4 = vld [vmem:[#allocation241_spill] sm:$0xff] }
 0x84b   :  { %13596 = vst [vmem:[#allocation107_spill] sm:$0xff] %v11707_v36  ;;  %v7518_v8 = vunpack.c.l.bf16 %v7013_v56  ;;  %v7519_v51 = vunpack.c.h.bf16 %v7013_v56 }
 0x84c   :  { %13597 = vst [vmem:[#allocation139_spill] sm:$0xff] %v11709_v21  ;;  %v5400_v52 = vpop.f32.mrf.mxu2  ;;  %v5225_v42 = vpop.f32.mrf.mxu0 }
 0x84d   :  { %v5401_v23 = vadd.f32 %v5400_v52, %v5312_v31  ;;  %v5489_v38 = vpop.f32.mrf.mxu3  ;;  %v5314_v16 = vpop.f32.mrf.mxu1  ;;  %v7806_v33 = vadd.f32 %v13601_v15, %v7518_v8  ;;  %v7807_v9 = vadd.f32 %v13601_v15, %v7519_v51  ;;  %v13606_v31 = vld [vmem:[#allocation190_spill] sm:$0xff] }
 0x84e   :  { %v5315_v7 = vadd.f32 %v5314_v16, %v5225_v42  ;;  %v13605_v42 = vld [vmem:[#allocation147_spill] sm:$0xff]  ;;  %v13611_v15 = vld [vmem:[#allocation182_spill] sm:$0xff] }
 0x84f   :  { %v5490_v63 = vadd.f32 %v5489_v38, %v5401_v23  ;;  %5540 = vmatmul.bf16.vlgmr.msra.gmra.mxu0 %v10497_v59  ;;  %v13604_v38 = vld [vmem:[#allocation112_spill] sm:$0xff]  ;;  %v8446_v8 = vmax.f32 %v7806_v33, 0.0  ;;  %v8447_v16 = vmax.f32 %v7807_v9, 0.0 }
 0x850   :  { %5629 = vmatmul.bf16.vlgmr.msra.gmra.mxu1 %v13599_v30  ;;  %6244 = vmatpush.bf16.msra.mxu0 %v13603_v1  ;;  %v13614_v33 = vld [vmem:[#allocation72_spill] sm:$0xff] }
 0x851   :  { %v7017_v28 = vpack.c.bf16 %v5490_v63, %v13598_v60  ;;  %5718 = vmatmul.bf16.vlgmr.msra.gmra.mxu2 %v13600_v18  ;;  %6333 = vmatpush.bf16.msra.mxu1 %v13604_v38  ;;  %v13608_v60 = vld [vmem:[#allocation76_spill] sm:$0xff] }
 0x852   :  { %5807 = vmatmul.bf16.vlgmr.msra.gmra.mxu3 %v13602_v58  ;;  %6422 = vmatpush.bf16.msra.mxu2 %v13605_v42  ;;  %v13609_v38 = vld [vmem:[#allocation108_spill] sm:$0xff] }
 0x853   :  { %v7526_v61 = vunpack.c.l.bf16 %v7017_v28  ;;  %v7527_v34 = vunpack.c.h.bf16 %v7017_v28  ;;  %6511 = vmatpush.bf16.msra.mxu3 %v13606_v31  ;;  %v13610_v42 = vld [vmem:[#allocation140_spill] sm:$0xff] }
 0x854   :  { %v5403_v63 = vpop.f32.mrf.mxu2  ;;  %v5227_v51 = vpop.f32.mrf.mxu0  ;;  %6245 = vmatpush.bf16.msra.mxu0 %v13608_v60  ;;  %v13615_v9 = vld [vmem:[#allocation104_spill] sm:$0xff] }
 0x855   :  { %v7814_v48 = vadd.f32 %v13607_v4, %v7526_v61  ;;  %v7815_v56 = vadd.f32 %v13607_v4, %v7527_v34  ;;  %v5404_v52 = vadd.f32 %v5403_v63, %v5315_v7  ;;  %v5492_v23 = vpop.f32.mrf.mxu3  ;;  %v5316_v1 = vpop.f32.mrf.mxu1  ;;  %6334 = vmatpush.bf16.msra.mxu1 %v13609_v38  ;;  %v13616_v63 = vld [vmem:[#allocation136_spill] sm:$0xff]  ;;  %v13621_v38 = vld [vmem:[#allocation166_spill] sm:$0xff] }
 0x856   :  { %6423 = vmatpush.bf16.msra.mxu2 %v13610_v42  ;;  %v5317_v36 = vadd.f32 %v5316_v1, %v5227_v51  ;;  %v13618_v1 = vld [vmem:[#allocation68_spill] sm:$0xff] }
 0x857   :  { %v8454_v28 = vmax.f32 %v7814_v48, 0.0  ;;  %v8455_v21 = vmax.f32 %v7815_v56, 0.0  ;;  %v5493_v31 = vadd.f32 %v5492_v23, %v5404_v52  ;;  %6512 = vmatpush.bf16.msra.mxu3 %v13611_v15  ;;  %v13617_v48 = vld [vmem:[#allocation174_spill] sm:$0xff] }
 0x858   :  { %6246 = vmatpush.bf16.msra.mxu0 %v13614_v33  ;;  %v13625_v33 = vld [vmem:[#allocation142_spill] sm:$0xff] }
 0x859   :  { %v7021_v61 = vpack.c.bf16 %v5493_v31, %v11523_v19  ;;  %v11729_v7 = vpack.c.bf16 %v8454_v28, %v8446_v8  ;;  %v11731_v34 = vpack.c.bf16 %v8455_v21, %v8447_v16  ;;  %6335 = vmatpush.bf16.msra.mxu1 %v13615_v9  ;;  %v13619_v8 = vld [vmem:[#allocation100_spill] sm:$0xff] }
 0x85a   :  { %6424 = vmatpush.bf16.msra.mxu2 %v13616_v63  ;;  %v13620_v21 = vld [vmem:[#allocation132_spill] sm:$0xff] }
 0x85b   :  { %13612 = vst [vmem:[#allocation177_spill] sm:$0xff] %v11729_v7  ;;  %6513 = vmatpush.bf16.msra.mxu3 %v13617_v48  ;;  %v7534_v51 = vunpack.c.l.bf16 %v7021_v61  ;;  %v7535_v15 = vunpack.c.h.bf16 %v7021_v61  ;;  %v13623_v31 = vld [vmem:[#allocation20_spill] sm:$0xff] }
 0x85c   :  { %13613 = vst [vmem:[#allocation71_spill] sm:$0xff] %v11731_v34  ;;  %v5405_v56 = vpop.f32.mrf.mxu2  ;;  %v5230_v23 = vpop.f32.mrf.mxu0  ;;  %6247 = vmatpush.bf16.msra.mxu0 %v13618_v1  ;;  %v13624_v61 = vld [vmem:[#allocation64_spill] sm:$0xff] }
 0x85d   :  { %v5406_v60 = vadd.f32 %v5405_v56, %v5317_v36  ;;  %v5494_v52 = vpop.f32.mrf.mxu3  ;;  %v5319_v19 = vpop.f32.mrf.mxu1  ;;  %6336 = vmatpush.bf16.msra.mxu1 %v13619_v8  ;;  %v13622_v36 = vld [vmem:[#allocation151_spill] sm:$0xff]  ;;  %v7822_v9 = vadd.f32 %v13625_v33, %v7534_v51  ;;  %v7823_v63 = vadd.f32 %v13625_v33, %v7535_v15 }
 0x85e   :  { %6425 = vmatpush.bf16.msra.mxu2 %v13620_v21  ;;  %v5320_v28 = vadd.f32 %v5319_v19, %v5230_v23  ;;  %v13628_v23 = vld [vmem:[#allocation158_spill] sm:$0xff]  ;;  %v13629_v21 = vld [vmem:[#allocation184_spill] sm:$0xff] }
 0x85f   :  { %v5495_v16 = vadd.f32 %v5494_v52, %v5406_v60  ;;  %6514 = vmatpush.bf16.msra.mxu3 %v13621_v38  ;;  %5545 = vmatmul.bf16.gmra.mxu0 %v10529_v11  ;;  %v13626_v60 = vld [vmem:[#allocation96_spill] sm:$0xff]  ;;  %v8462_v15 = vmax.f32 %v7822_v9, 0.0  ;;  %v8463_v34 = vmax.f32 %v7823_v63, 0.0 }
 0x860   :  { %5634 = vmatmul.bf16.gmra.mxu1 %v10531_v20  ;;  %6248 = vmatpush.bf16.msra.mxu0 %v13624_v61  ;;  %v13627_v52 = vld [vmem:[#allocation128_spill] sm:$0xff] }
 0x861   :  { %v7025_v42 = vpack.c.bf16 %v5495_v16, %v11533_v22  ;;  %5723 = vmatmul.bf16.gmra.mxu2 %v13622_v36  ;;  %6337 = vmatpush.bf16.msra.mxu1 %v13626_v60  ;;  %v13630_v61 = vld [vmem:[#allocation60_spill] sm:$0xff] }
 0x862   :  { %5812 = vmatmul.bf16.gmra.mxu3 %v13623_v31  ;;  %6426 = vmatpush.bf16.msra.mxu2 %v13627_v52  ;;  %v13632_v60 = vld [vmem:[#allocation124_spill] sm:$0xff] }
 0x863   :  { %v7542_v48 = vunpack.c.l.bf16 %v7025_v42  ;;  %v7543_v56 = vunpack.c.h.bf16 %v7025_v42  ;;  %6515 = vmatpush.bf16.msra.mxu3 %v13628_v23  ;;  %v13631_v42 = vld [vmem:[#allocation92_spill] sm:$0xff] }
 0x864   :  { %v5408_v22 = vpop.f32.mrf.mxu2  ;;  %v5232_v8 = vpop.f32.mrf.mxu0  ;;  %6249 = vmatpush.bf16.msra.mxu0 %v13630_v61  ;;  %v13636_v61 = vld [vmem:[#allocation56_spill] sm:$0xff] }
 0x865   :  { %v5409_v1 = vadd.f32 %v5408_v22, %v5320_v28  ;;  %v5497_v19 = vpop.f32.mrf.mxu3  ;;  %v7830_v16 = vadd.f32 %v13629_v21, %v7542_v48  ;;  %v7831_v38 = vadd.f32 %v13629_v21, %v7543_v56  ;;  %v5321_v51 = vpop.f32.mrf.mxu1  ;;  %6338 = vmatpush.bf16.msra.mxu1 %v13631_v42  ;;  %v13633_v28 = vld [vmem:[#allocation12_spill] sm:$0xff]  ;;  %v13639_v42 = vld [vmem:[#allocation31_spill] sm:$0xff] }
 0x866   :  { %6427 = vmatpush.bf16.msra.mxu2 %v13632_v60  ;;  %v5322_v7 = vadd.f32 %v5321_v51, %v5232_v8  ;;  %v13637_v9 = vld [vmem:[#allocation88_spill] sm:$0xff] }
 0x867   :  { %v5498_v52 = vadd.f32 %v5497_v19, %v5409_v1  ;;  %v8470_v23 = vmax.f32 %v7830_v16, 0.0  ;;  %v8471_v33 = vmax.f32 %v7831_v38, 0.0  ;;  %6516 = vmatpush.bf16.msra.mxu3 %v13633_v28  ;;  %v13638_v63 = vld [vmem:[#allocation120_spill] sm:$0xff] }
 0x868   :  { %6250 = vmatpush.bf16.msra.mxu0 %v13636_v61  ;;  %v13640_v60 = vld [vmem:[#allocation52_spill] sm:$0xff] }
 0x869   :  { %v7029_v22 = vpack.c.bf16 %v5498_v52, %v11547_v10  ;;  %v11759_v48 = vpack.c.bf16 %v8470_v23, %v8462_v15  ;;  %v11761_v56 = vpack.c.bf16 %v8471_v33, %v8463_v34  ;;  %6339 = vmatpush.bf16.msra.mxu1 %v13637_v9  ;;  %v13641_v15 = vld [vmem:[#allocation84_spill] sm:$0xff] }
 0x86a   :  { %6428 = vmatpush.bf16.msra.mxu2 %v13638_v63  ;;  %v13642_v34 = vld [vmem:[#allocation116_spill] sm:$0xff] }
 0x86b   :  { %13634 = vst [vmem:[#allocation103_spill] sm:$0xff] %v11759_v48  ;;  %6517 = vmatpush.bf16.msra.mxu3 %v13639_v42  ;;  %v7550_v38 = vunpack.c.l.bf16 %v7029_v22  ;;  %v7551_v51 = vunpack.c.h.bf16 %v7029_v22  ;;  %v13643_v23 = vld [vmem:[#allocation152_spill] sm:$0xff] }
 0x86c   :  { %13635 = vst [vmem:[#allocation135_spill] sm:$0xff] %v11761_v56  ;;  %v5410_v1 = vpop.f32.mrf.mxu2  ;;  %v5235_v16 = vpop.f32.mrf.mxu0  ;;  %6251 = vmatpush.bf16.msra.mxu0 %v13640_v60 }
 0x86d   :  { %v5411_v19 = vadd.f32 %v5410_v1, %v5322_v7  ;;  %v5499_v8 = vpop.f32.mrf.mxu3  ;;  %v5324_v10 = vpop.f32.mrf.mxu1  ;;  %6340 = vmatpush.bf16.msra.mxu1 %v13641_v15  ;;  %v13644_v7 = vld [vmem:[#allocation138_spill] sm:$0xff] }
 0x86e   :  { %6429 = vmatpush.bf16.msra.mxu2 %v13642_v34  ;;  %v5325_v52 = vadd.f32 %v5324_v10, %v5235_v16  ;;  %v7838_v22 = vadd.f32 %v13644_v7, %v7550_v38  ;;  %v7839_v61 = vadd.f32 %v13644_v7, %v7551_v51  ;;  %v13645_v16 = vld [vmem:[#allocation176_spill] sm:$0xff] }
 0x86f   :  { %v5500_v33 = vadd.f32 %v5499_v8, %v5411_v19  ;;  %6518 = vmatpush.bf16.msra.mxu3 %v13643_v23  ;;  %5550 = vmatmul.bf16.gmra.mxu0 %v10565_v45 }
 0x870   :  { %5639 = vmatmul.bf16.gmra.mxu1 %v10567_v43  ;;  %v8478_v15 = vmax.f32 %v7838_v22, 0.0  ;;  %v8479_v34 = vmax.f32 %v7839_v61, 0.0  ;;  %v13648_v61 = vld [vmem:[#allocation13_spill] sm:$0xff] }
 0x871   :  { %v7033_v28 = vpack.c.bf16 %v5500_v33, %v11557_v26  ;;  %5728 = vmatmul.bf16.gmra.mxu2 %v10569_v49 }
 0x872   :  { %5817 = vmatmul.bf16.gmra.mxu3 %v10572_v14 }
 0x873   :  { %v7558_v9 = vunpack.c.l.bf16 %v7033_v28  ;;  %v7559_v63 = vunpack.c.h.bf16 %v7033_v28 }
 0x874   :  { %v5413_v42 = vpop.f32.mrf.mxu2  ;;  %v5237_v8 = vpop.f32.mrf.mxu0 }
 0x875   :  { %v5414_v1 = vadd.f32 %v5413_v42, %v5325_v52  ;;  %v5502_v19 = vpop.f32.mrf.mxu3  ;;  %v7846_v60 = vadd.f32 %v13645_v16, %v7558_v9  ;;  %v7847_v26 = vadd.f32 %v13645_v16, %v7559_v63  ;;  %v5326_v10 = vpop.f32.mrf.mxu1 }
 0x876   :  { %v5327_v23 = vadd.f32 %v5326_v10, %v5237_v8 }
 0x877   :  { %v5503_v33 = vadd.f32 %v5502_v19, %v5414_v1  ;;  %v8486_v56 = vmax.f32 %v7846_v60, 0.0  ;;  %v8487_v48 = vmax.f32 %v7847_v26, 0.0  ;;  %v13649_v19 = vld [vmem:[#allocation14_spill] sm:$0xff] }
 0x879   :  { %v7037_v38 = vpack.c.bf16 %v5503_v33, %v11564_v24  ;;  %v11781_v51 = vpack.c.bf16 %v8486_v56, %v8478_v15  ;;  %v11783_v28 = vpack.c.bf16 %v8487_v48, %v8479_v34  ;;  %v13650_v24 = vld [vmem:[#allocation134_spill] sm:$0xff]  ;;  %v13651_v15 = vld [vmem:[#allocation168_spill] sm:$0xff] }
 0x87b   :  { %13646 = vst [vmem:[#allocation169_spill] sm:$0xff] %v11781_v51  ;;  %v7566_v9 = vunpack.c.l.bf16 %v7037_v38  ;;  %v7567_v4 = vunpack.c.h.bf16 %v7037_v38 }
 0x87c   :  { %13647 = vst [vmem:[#allocation67_spill] sm:$0xff] %v11783_v28  ;;  %v5415_v52 = vpop.f32.mrf.mxu2  ;;  %v5240_v21 = vpop.f32.mrf.mxu0 }
 0x87d   :  { %v5416_v42 = vadd.f32 %v5415_v52, %v5327_v23  ;;  %v5504_v7 = vpop.f32.mrf.mxu3  ;;  %v5329_v63 = vpop.f32.mrf.mxu1  ;;  %v7854_v48 = vadd.f32 %v13650_v24, %v7566_v9  ;;  %v7855_v56 = vadd.f32 %v13650_v24, %v7567_v4 }
 0x87e   :  { %v5330_v22 = vadd.f32 %v5329_v63, %v5240_v21 }
 0x87f   :  { %v5505_v16 = vadd.f32 %v5504_v7, %v5416_v42  ;;  %5555 = vmatmul.bf16.gmra.mxu0 %v13407_v41  ;;  %v8494_v23 = vmax.f32 %v7854_v48, 0.0  ;;  %v8495_v38 = vmax.f32 %v7855_v56, 0.0  ;;  %v13654_v56 = vld [vmem:[#allocation34_spill] sm:$0xff] }
 0x880   :  { %5644 = vmatmul.bf16.gmra.mxu1 %v13649_v19 }
 0x881   :  { %v7041_v1 = vpack.c.bf16 %v5505_v16, %v13648_v61  ;;  %5733 = vmatmul.bf16.gmra.mxu2 %v13411_v12 }
 0x882   :  { %5822 = vmatmul.bf16.gmra.mxu3 %v13412_v29 }
 0x883   :  { %v7574_v8 = vunpack.c.l.bf16 %v7041_v1  ;;  %v7575_v60 = vunpack.c.h.bf16 %v7041_v1 }
 0x884   :  { %v5418_v26 = vpop.f32.mrf.mxu2  ;;  %v5242_v21 = vpop.f32.mrf.mxu0 }
 0x885   :  { %v5419_v10 = vadd.f32 %v5418_v26, %v5330_v22  ;;  %v5507_v7 = vpop.f32.mrf.mxu3  ;;  %v7862_v34 = vadd.f32 %v13651_v15, %v7574_v8  ;;  %v7863_v16 = vadd.f32 %v13651_v15, %v7575_v60  ;;  %v5331_v33 = vpop.f32.mrf.mxu1 }
 0x886   :  { %v5332_v42 = vadd.f32 %v5331_v33, %v5242_v21 }
 0x887   :  { %v5508_v52 = vadd.f32 %v5507_v7, %v5419_v10  ;;  %v8502_v63 = vmax.f32 %v7862_v34, 0.0  ;;  %v8503_v61 = vmax.f32 %v7863_v16, 0.0  ;;  %v13655_v7 = vld [vmem:[#allocation155_spill] sm:$0xff] }
 0x889   :  { %v7045_v9 = vpack.c.bf16 %v5508_v52, %v11572_v2  ;;  %v11795_v4 = vpack.c.bf16 %v8502_v63, %v8494_v23  ;;  %v11797_v1 = vpack.c.bf16 %v8503_v61, %v8495_v38  ;;  %v13656_v2 = vld [vmem:[#allocation130_spill] sm:$0xff]  ;;  %v13657_v52 = vld [vmem:[#allocation160_spill] sm:$0xff] }
 0x88b   :  { %13652 = vst [vmem:[#allocation99_spill] sm:$0xff] %v11795_v4  ;;  %v7582_v8 = vunpack.c.l.bf16 %v7045_v9  ;;  %v7583_v24 = vunpack.c.h.bf16 %v7045_v9 }
 0x88c   :  { %13653 = vst [vmem:[#allocation131_spill] sm:$0xff] %v11797_v1  ;;  %v5420_v22 = vpop.f32.mrf.mxu2  ;;  %v5245_v51 = vpop.f32.mrf.mxu0 }
 0x88d   :  { %v5421_v26 = vadd.f32 %v5420_v22, %v5332_v42  ;;  %v5509_v28 = vpop.f32.mrf.mxu3  ;;  %v5334_v60 = vpop.f32.mrf.mxu1  ;;  %v7870_v21 = vadd.f32 %v13656_v2, %v7582_v8  ;;  %v7871_v34 = vadd.f32 %v13656_v2, %v7583_v24 }
 0x88e   :  { %v5335_v48 = vadd.f32 %v5334_v60, %v5245_v51 }
 0x88f   :  { %v5510_v15 = vadd.f32 %v5509_v28, %v5421_v26  ;;  %5560 = vmatmul.bf16.gmra.mxu0 %v13419_v40  ;;  %v8510_v61 = vmax.f32 %v7870_v21, 0.0  ;;  %v8511_v9 = vmax.f32 %v7871_v34, 0.0  ;;  %v13660_v34 = vld [vmem:[#allocation47_spill] sm:$0xff] }
 0x890   :  { %5649 = vmatmul.bf16.gmra.mxu1 %v13655_v7 }
 0x891   :  { %v7049_v10 = vpack.c.bf16 %v5510_v15, %v13654_v56  ;;  %5738 = vmatmul.bf16.gmra.mxu2 %v13423_v46 }
 0x892   :  { %5827 = vmatmul.bf16.gmra.mxu3 %v13424_v54 }
 0x893   :  { %v7590_v16 = vunpack.c.l.bf16 %v7049_v10  ;;  %v7591_v33 = vunpack.c.h.bf16 %v7049_v10 }
 0x894   :  { %v5423_v23 = vpop.f32.mrf.mxu2  ;;  %v5247_v51 = vpop.f32.mrf.mxu0 }
 0x895   :  { %v5424_v38 = vadd.f32 %v5423_v23, %v5335_v48  ;;  %v5512_v28 = vpop.f32.mrf.mxu3  ;;  %v7878_v42 = vadd.f32 %v13657_v52, %v7590_v16  ;;  %v7879_v15 = vadd.f32 %v13657_v52, %v7591_v33  ;;  %v5336_v63 = vpop.f32.mrf.mxu1 }
 0x896   :  { %v5337_v26 = vadd.f32 %v5336_v63, %v5247_v51  ;;  %v13663_v51 = vld [vmem:[#allocation165_spill] sm:$0xff] }
 0x897   :  { %v5513_v22 = vadd.f32 %v5512_v28, %v5424_v38  ;;  %v8518_v60 = vmax.f32 %v7878_v42, 0.0  ;;  %v8519_v56 = vmax.f32 %v7879_v15, 0.0  ;;  %v13661_v28 = vld [vmem:[#allocation163_spill] sm:$0xff]  ;;  %v13664_v42 = vld [vmem:[#allocation126_spill] sm:$0xff] }
 0x899   :  { %v7053_v8 = vpack.c.bf16 %v5513_v22, %v11580_v17  ;;  %v11809_v24 = vpack.c.bf16 %v8518_v60, %v8510_v61  ;;  %v11811_v10 = vpack.c.bf16 %v8519_v56, %v8511_v9  ;;  %v13662_v17 = vld [vmem:[#allocation164_spill] sm:$0xff]  ;;  %v13665_v60 = vld [vmem:[#allocation38_spill] sm:$0xff] }
 0x89b   :  { %13658 = vst [vmem:[#allocation161_spill] sm:$0xff] %v11809_v24  ;;  %v7598_v16 = vunpack.c.l.bf16 %v7053_v8  ;;  %v7599_v2 = vunpack.c.h.bf16 %v7053_v8 }
 0x89c   :  { %13659 = vst [vmem:[#allocation63_spill] sm:$0xff] %v11811_v10  ;;  %v5425_v48 = vpop.f32.mrf.mxu2  ;;  %v5250_v4 = vpop.f32.mrf.mxu0 }
 0x89d   :  { %v5426_v23 = vadd.f32 %v5425_v48, %v5337_v26  ;;  %v5514_v1 = vpop.f32.mrf.mxu3  ;;  %v5339_v33 = vpop.f32.mrf.mxu1  ;;  %v7886_v15 = vadd.f32 %v13664_v42, %v7598_v16  ;;  %v7887_v63 = vadd.f32 %v13664_v42, %v7599_v2  ;;  %v13666_v16 = vld [vmem:[#allocation48_spill] sm:$0xff] }
 0x89e   :  { %v5340_v21 = vadd.f32 %v5339_v33, %v5250_v4 }
 0x89f   :  { %v5515_v52 = vadd.f32 %v5514_v1, %v5426_v23  ;;  %5565 = vmatmul.bf16.gmra.mxu0 %v13431_v25  ;;  %v8526_v48 = vmax.f32 %v7886_v15, 0.0  ;;  %v8527_v23 = vmax.f32 %v7887_v63, 0.0  ;;  %v13669_v63 = vld [vmem:[#allocation170_spill] sm:$0xff] }
 0x8a0   :  { %5654 = vmatmul.bf16.gmra.mxu1 %v13661_v28 }
 0x8a1   :  { %v7057_v38 = vpack.c.bf16 %v5515_v52, %v13660_v34  ;;  %5743 = vmatmul.bf16.gmra.mxu2 %v13662_v17 }
 0x8a2   :  { %5832 = vmatmul.bf16.gmra.mxu3 %v13663_v51 }
 0x8a3   :  { %v7606_v61 = vunpack.c.l.bf16 %v7057_v38  ;;  %v7607_v9 = vunpack.c.h.bf16 %v7057_v38 }
 0x8a4   :  { %v5428_v22 = vpop.f32.mrf.mxu2  ;;  %v5252_v4 = vpop.f32.mrf.mxu0 }
 0x8a5   :  { %v5429_v26 = vadd.f32 %v5428_v22, %v5340_v21  ;;  %v5517_v1 = vpop.f32.mrf.mxu3  ;;  %v7894_v56 = vadd.f32 %v13665_v60, %v7606_v61  ;;  %v7895_v52 = vadd.f32 %v13665_v60, %v7607_v9  ;;  %v5341_v8 = vpop.f32.mrf.mxu1 }
 0x8a6   :  { %v5342_v34 = vadd.f32 %v5341_v8, %v5252_v4  ;;  %v13671_v4 = vld [vmem:[#allocation171_spill] sm:$0xff] }
 0x8a7   :  { %v5518_v33 = vadd.f32 %v5517_v1, %v5429_v26  ;;  %v8534_v10 = vmax.f32 %v7894_v56, 0.0  ;;  %v8535_v24 = vmax.f32 %v7895_v52, 0.0  ;;  %v13670_v26 = vld [vmem:[#allocation21_spill] sm:$0xff]  ;;  %v13672_v56 = vld [vmem:[#allocation172_spill] sm:$0xff] }
 0x8a9   :  { %v7061_v51 = vpack.c.bf16 %v5518_v33, %v13666_v16  ;;  %v11823_v2 = vpack.c.bf16 %v8534_v10, %v8526_v48  ;;  %v11825_v38 = vpack.c.bf16 %v8535_v24, %v8527_v23  ;;  %v13673_v10 = vld [vmem:[#allocation173_spill] sm:$0xff]  ;;  %v13674_v24 = vld [vmem:[#allocation122_spill] sm:$0xff] }
 0x8ab   :  { %13667 = vst [vmem:[#allocation95_spill] sm:$0xff] %v11823_v2  ;;  %v7614_v61 = vunpack.c.l.bf16 %v7061_v51  ;;  %v7615_v28 = vunpack.c.h.bf16 %v7061_v51 }
 0x8ac   :  { %13668 = vst [vmem:[#allocation127_spill] sm:$0xff] %v11825_v38  ;;  %v5430_v21 = vpop.f32.mrf.mxu2  ;;  %v5255_v17 = vpop.f32.mrf.mxu0 }
 0x8ad   :  { %v5431_v22 = vadd.f32 %v5430_v21, %v5342_v34  ;;  %v5519_v42 = vpop.f32.mrf.mxu3  ;;  %v5344_v9 = vpop.f32.mrf.mxu1  ;;  %v7902_v52 = vadd.f32 %v13674_v24, %v7614_v61  ;;  %v7903_v8 = vadd.f32 %v13674_v24, %v7615_v28  ;;  %v13675_v34 = vld [vmem:[#allocation16_spill] sm:$0xff]  ;;  %v13676_v61 = vld [vmem:[#allocation45_spill] sm:$0xff] }
 0x8ae   :  { %v5345_v15 = vadd.f32 %v5344_v9, %v5255_v17 }
 0x8af   :  { %v5520_v60 = vadd.f32 %v5519_v42, %v5431_v22  ;;  %5570 = vmatmul.bf16.gmra.mxu0 %v13669_v63  ;;  %v8542_v22 = vmax.f32 %v7902_v52, 0.0  ;;  %v8543_v9 = vmax.f32 %v7903_v8, 0.0  ;;  %v13679_v8 = vld [vmem:[#allocation178_spill] sm:$0xff] }
 0x8b0   :  { %5659 = vmatmul.bf16.gmra.mxu1 %v13671_v4 }
 0x8b1   :  { %v7065_v1 = vpack.c.bf16 %v5520_v60, %v13670_v26  ;;  %5748 = vmatmul.bf16.gmra.mxu2 %v13672_v56 }
 0x8b2   :  { %5837 = vmatmul.bf16.gmra.mxu3 %v13673_v10 }
 0x8b3   :  { %v7622_v48 = vunpack.c.l.bf16 %v7065_v1  ;;  %v7623_v23 = vunpack.c.h.bf16 %v7065_v1 }
 0x8b4   :  { %v5433_v51 = vpop.f32.mrf.mxu2  ;;  %v5257_v17 = vpop.f32.mrf.mxu0 }
 0x8b5   :  { %v5434_v33 = vadd.f32 %v5433_v51, %v5345_v15  ;;  %v5522_v42 = vpop.f32.mrf.mxu3  ;;  %v7910_v16 = vadd.f32 %v13675_v34, %v7622_v48  ;;  %v7911_v60 = vadd.f32 %v13675_v34, %v7623_v23  ;;  %v5346_v21 = vpop.f32.mrf.mxu1 }
 0x8b6   :  { %v5347_v38 = vadd.f32 %v5346_v21, %v5257_v17  ;;  %v13681_v17 = vld [vmem:[#allocation179_spill] sm:$0xff] }
 0x8b7   :  { %v5523_v26 = vadd.f32 %v5522_v42, %v5434_v33  ;;  %v8550_v2 = vmax.f32 %v7910_v16, 0.0  ;;  %v8551_v10 = vmax.f32 %v7911_v60, 0.0  ;;  %v13680_v33 = vld [vmem:[#allocation17_spill] sm:$0xff]  ;;  %v13682_v16 = vld [vmem:[#allocation180_spill] sm:$0xff] }
 0x8b9   :  { %v7069_v56 = vpack.c.bf16 %v5523_v26, %v13676_v61  ;;  %v11837_v28 = vpack.c.bf16 %v8550_v2, %v8542_v22  ;;  %v11839_v1 = vpack.c.bf16 %v8551_v10, %v8543_v9  ;;  %v13683_v2 = vld [vmem:[#allocation181_spill] sm:$0xff]  ;;  %v13684_v10 = vld [vmem:[#allocation118_spill] sm:$0xff] }
 0x8ba   :  { %v13685_v26 = vld [vmem:[#allocation46_spill] sm:$0xff] }
 0x8bb   :  { %13677 = vst [vmem:[#allocation153_spill] sm:$0xff] %v11837_v28  ;;  %v7630_v48 = vunpack.c.l.bf16 %v7069_v56  ;;  %v7631_v63 = vunpack.c.h.bf16 %v7069_v56 }
 0x8bc   :  { %13678 = vst [vmem:[#allocation59_spill] sm:$0xff] %v11839_v1  ;;  %v5435_v15 = vpop.f32.mrf.mxu2  ;;  %v5260_v4 = vpop.f32.mrf.mxu0 }
 0x8bd   :  { %v5436_v51 = vadd.f32 %v5435_v15, %v5347_v38  ;;  %v5524_v24 = vpop.f32.mrf.mxu3  ;;  %v5349_v23 = vpop.f32.mrf.mxu1  ;;  %v7918_v60 = vadd.f32 %v13684_v10, %v7630_v48  ;;  %v7919_v38 = vadd.f32 %v13684_v10, %v7631_v63  ;;  %v13686_v48 = vld [vmem:[#allocation32_spill] sm:$0xff] }
 0x8be   :  { %v5350_v52 = vadd.f32 %v5349_v23, %v5260_v4 }
 0x8bf   :  { %v5525_v34 = vadd.f32 %v5524_v24, %v5436_v51  ;;  %5575 = vmatmul.bf16.gmra.mxu0 %v13679_v8  ;;  %v8558_v51 = vmax.f32 %v7918_v60, 0.0  ;;  %v8559_v23 = vmax.f32 %v7919_v38, 0.0  ;;  %v13689_v38 = vld [vmem:[#allocation186_spill] sm:$0xff] }
 0x8c0   :  { %5664 = vmatmul.bf16.gmra.mxu1 %v13681_v17 }
 0x8c1   :  { %v7073_v42 = vpack.c.bf16 %v5525_v34, %v13680_v33  ;;  %5753 = vmatmul.bf16.gmra.mxu2 %v13682_v16 }
 0x8c2   :  { %5842 = vmatmul.bf16.gmra.mxu3 %v13683_v2 }
 0x8c3   :  { %v7638_v21 = vunpack.c.l.bf16 %v7073_v42  ;;  %v7639_v22 = vunpack.c.h.bf16 %v7073_v42 }
 0x8c4   :  { %v5438_v56 = vpop.f32.mrf.mxu2  ;;  %v5262_v4 = vpop.f32.mrf.mxu0 }
 0x8c5   :  { %v5439_v9 = vadd.f32 %v5438_v56, %v5350_v52  ;;  %v5527_v24 = vpop.f32.mrf.mxu3  ;;  %v7926_v61 = vadd.f32 %v13685_v26, %v7638_v21  ;;  %v7927_v34 = vadd.f32 %v13685_v26, %v7639_v22  ;;  %v5351_v15 = vpop.f32.mrf.mxu1 }
 0x8c6   :  { %v5352_v1 = vadd.f32 %v5351_v15, %v5262_v4  ;;  %v13691_v4 = vld [vmem:[#allocation187_spill] sm:$0xff] }
 0x8c7   :  { %v5528_v33 = vadd.f32 %v5527_v24, %v5439_v9  ;;  %v8566_v28 = vmax.f32 %v7926_v61, 0.0  ;;  %v8567_v2 = vmax.f32 %v7927_v34, 0.0  ;;  %v13690_v9 = vld [vmem:[#allocation22_spill] sm:$0xff]  ;;  %v13692_v61 = vld [vmem:[#allocation188_spill] sm:$0xff] }
 0x8c9   :  { %v7077_v16 = vpack.c.bf16 %v5528_v33, %v13686_v48  ;;  %v11851_v63 = vpack.c.bf16 %v8566_v28, %v8558_v51  ;;  %v11853_v42 = vpack.c.bf16 %v8567_v2, %v8559_v23  ;;  %v13693_v28 = vld [vmem:[#allocation114_spill] sm:$0xff]  ;;  %v13695_v23 = vld [vmem:[#allocation149_spill] sm:$0xff] }
 0x8cb   :  { %13687 = vst [vmem:[#allocation91_spill] sm:$0xff] %v11851_v63  ;;  %v7646_v21 = vunpack.c.l.bf16 %v7077_v16  ;;  %v7647_v8 = vunpack.c.h.bf16 %v7077_v16 }
 0x8cc   :  { %13688 = vst [vmem:[#allocation123_spill] sm:$0xff] %v11853_v42  ;;  %v5440_v52 = vpop.f32.mrf.mxu2  ;;  %v5541_v17 = vpop.f32.mrf.mxu0 }
 0x8cd   :  { %v5441_v56 = vadd.f32 %v5440_v52, %v5352_v1  ;;  %v5529_v10 = vpop.f32.mrf.mxu3  ;;  %v5630_v22 = vpop.f32.mrf.mxu1  ;;  %v7934_v2 = vadd.f32 %v13693_v28, %v7646_v21  ;;  %v7935_v34 = vadd.f32 %v13693_v28, %v7647_v8  ;;  %v13694_v1 = vld [vmem:[#allocation189_spill] sm:$0xff] }
 0x8ce   :  { %v5631_v60 = vadd.f32 %v5630_v22, %v5541_v17 }
 0x8cf   :  { %v5530_v26 = vadd.f32 %v5529_v10, %v5441_v56  ;;  %5580 = vmatmul.bf16.gmra.mxu0 %v13689_v38  ;;  %v8574_v52 = vmax.f32 %v7934_v2, 0.0  ;;  %v8575_v56 = vmax.f32 %v7935_v34, 0.0  ;;  %v13698_v2 = vld [vmem:[#allocation193_spill] sm:$0xff]  ;;  %v13699_v34 = vld [vmem:[#allocation194_spill] sm:$0xff] }
 0x8d0   :  { %5669 = vmatmul.bf16.gmra.mxu1 %v13691_v4 }
 0x8d1   :  { %v7081_v24 = vpack.c.bf16 %v5530_v26, %v13690_v9  ;;  %5758 = vmatmul.bf16.gmra.mxu2 %v13692_v61 }
 0x8d2   :  { %5847 = vmatmul.bf16.gmra.mxu3 %v13694_v1 }
 0x8d3   :  { %v7654_v15 = vunpack.c.l.bf16 %v7081_v24  ;;  %v7655_v51 = vunpack.c.h.bf16 %v7081_v24 }
 0x8d4   :  { %v5719_v16 = vpop.f32.mrf.mxu2  ;;  %v5543_v26 = vpop.f32.mrf.mxu0 }
 0x8d5   :  { %v7942_v10 = vadd.f32 %v13695_v23, %v7654_v15  ;;  %v7943_v17 = vadd.f32 %v13695_v23, %v7655_v51  ;;  %v5720_v33 = vadd.f32 %v5719_v16, %v5631_v60  ;;  %v5808_v48 = vpop.f32.mrf.mxu3  ;;  %v5632_v22 = vpop.f32.mrf.mxu1 }
 0x8d6   :  { %v5633_v8 = vadd.f32 %v5632_v22, %v5543_v26 }
 0x8d7   :  { %v8582_v9 = vmax.f32 %v7942_v10, 0.0  ;;  %v8583_v42 = vmax.f32 %v7943_v17, 0.0  ;;  %v11864_v21 = vadd.f32 %v5808_v48, %v5720_v33  ;;  %v13700_v10 = vld [vmem:[#allocation195_spill] sm:$0xff]  ;;  %v13701_v17 = vld [vmem:[#allocation196_spill] sm:$0xff] }
 0x8d9   :  { %v11866_v63 = vpack.c.bf16 %v8582_v9, %v8574_v52  ;;  %v11868_v28 = vpack.c.bf16 %v8583_v42, %v8575_v56 }
 0x8db   :  { %13696 = vst [vmem:[#allocation29_spill] sm:$0xff] %v11866_v63 }
 0x8dc   :  { %13697 = vst [vmem:[#allocation55_spill] sm:$0xff] %v11868_v28  ;;  %v5721_v24 = vpop.f32.mrf.mxu2  ;;  %v5546_v61 = vpop.f32.mrf.mxu0  ;;  %v13702_v28 = vld [vmem:[#allocation201_spill] sm:$0xff] }
 0x8dd   :  { %v5722_v1 = vadd.f32 %v5721_v24, %v5633_v8  ;;  %v5810_v15 = vpop.f32.mrf.mxu3  ;;  %v5635_v51 = vpop.f32.mrf.mxu1 }
 0x8de   :  { %v5636_v16 = vadd.f32 %v5635_v51, %v5546_v61 }
 0x8df   :  { %v11870_v60 = vadd.f32 %v5810_v15, %v5722_v1  ;;  %5585 = vmatmul.bf16.gmra.mxu0 %v13698_v2 }
 0x8e0   :  { %5674 = vmatmul.bf16.gmra.mxu1 %v13699_v34 }
 0x8e1   :  { %5763 = vmatmul.bf16.gmra.mxu2 %v13700_v10 }
 0x8e2   :  { %5852 = vmatmul.bf16.gmra.mxu3 %v13701_v17 }
 0x8e4   :  { %v5724_v33 = vpop.f32.mrf.mxu2  ;;  %v5548_v26 = vpop.f32.mrf.mxu0 }
 0x8e5   :  { %v5725_v48 = vadd.f32 %v5724_v33, %v5636_v16  ;;  %v5813_v42 = vpop.f32.mrf.mxu3  ;;  %v5637_v52 = vpop.f32.mrf.mxu1  ;;  %v13703_v16 = vld [vmem:[#allocation202_spill] sm:$0xff] }
 0x8e6   :  { %v5638_v22 = vadd.f32 %v5637_v52, %v5548_v26 }
 0x8e7   :  { %v11876_v56 = vadd.f32 %v5813_v42, %v5725_v48 }
 0x8ec   :  { %v5726_v9 = vpop.f32.mrf.mxu2  ;;  %v5551_v61 = vpop.f32.mrf.mxu0 }
 0x8ed   :  { %v5727_v1 = vadd.f32 %v5726_v9, %v5638_v22  ;;  %v5815_v8 = vpop.f32.mrf.mxu3  ;;  %v5640_v24 = vpop.f32.mrf.mxu1 }
 0x8ee   :  { %v5641_v51 = vadd.f32 %v5640_v24, %v5551_v61 }
 0x8ef   :  { %v11878_v15 = vadd.f32 %v5815_v8, %v5727_v1  ;;  %5590 = vmatmul.bf16.gmra.mxu0 %v13308_v39 }
 0x8f0   :  { %5679 = vmatmul.bf16.gmra.mxu1 %v13556_v32 }
 0x8f1   :  { %5768 = vmatmul.bf16.gmra.mxu2 %v13702_v28 }
 0x8f2   :  { %5857 = vmatmul.bf16.gmra.mxu3 %v13703_v16  ;;  %v13706_v16 = vld [vmem:[#allocation207_spill] sm:$0xff] }
 0x8f4   :  { %v5729_v33 = vpop.f32.mrf.mxu2  ;;  %v5553_v26 = vpop.f32.mrf.mxu0 }
 0x8f5   :  { %v5730_v48 = vadd.f32 %v5729_v33, %v5641_v51  ;;  %v5818_v42 = vpop.f32.mrf.mxu3  ;;  %v5642_v52 = vpop.f32.mrf.mxu1  ;;  %v13707_v51 = vld [vmem:[#allocation208_spill] sm:$0xff] }
 0x8f6   :  { %v5643_v9 = vadd.f32 %v5642_v52, %v5553_v26 }
 0x8f7   :  { %v11884_v22 = vadd.f32 %v5818_v42, %v5730_v48 }
 0x8f9   :  { %13704 = vst [vmem:[#allocation87_spill] sm:$0xff] %v11884_v22 }
 0x8fc   :  { %v5731_v63 = vpop.f32.mrf.mxu2  ;;  %v5556_v61 = vpop.f32.mrf.mxu0 }
 0x8fd   :  { %v5732_v1 = vadd.f32 %v5731_v63, %v5643_v9  ;;  %v5820_v8 = vpop.f32.mrf.mxu3  ;;  %v5645_v24 = vpop.f32.mrf.mxu1 }
 0x8fe   :  { %v5646_v32 = vadd.f32 %v5645_v24, %v5556_v61 }
 0x8ff   :  { %v11886_v23 = vadd.f32 %v5820_v8, %v5732_v1  ;;  %5595 = vmatmul.bf16.gmra.mxu0 %v13318_v35 }
 0x900   :  { %5684 = vmatmul.bf16.gmra.mxu1 %v13564_v3 }
 0x901   :  { %13705 = vst [vmem:[#allocation119_spill] sm:$0xff] %v11886_v23  ;;  %5773 = vmatmul.bf16.gmra.mxu2 %v13706_v16 }
 0x902   :  { %5862 = vmatmul.bf16.gmra.mxu3 %v13707_v51 }
 0x904   :  { %v5734_v33 = vpop.f32.mrf.mxu2  ;;  %v5558_v26 = vpop.f32.mrf.mxu0 }
 0x905   :  { %v5735_v48 = vadd.f32 %v5734_v33, %v5646_v32  ;;  %v5823_v42 = vpop.f32.mrf.mxu3  ;;  %v5647_v52 = vpop.f32.mrf.mxu1  ;;  %v13710_v32 = vld [vmem:[#allocation214_spill] sm:$0xff] }
 0x906   :  { %v5648_v9 = vadd.f32 %v5647_v52, %v5558_v26 }
 0x907   :  { %v11892_v63 = vadd.f32 %v5823_v42, %v5735_v48 }
 0x909   :  { %13708 = vst [vmem:[#allocation18_spill] sm:$0xff] %v11892_v63 }
 0x90c   :  { %v5736_v22 = vpop.f32.mrf.mxu2  ;;  %v5561_v61 = vpop.f32.mrf.mxu0 }
 0x90d   :  { %v5737_v1 = vadd.f32 %v5736_v22, %v5648_v9  ;;  %v5825_v8 = vpop.f32.mrf.mxu3  ;;  %v5650_v24 = vpop.f32.mrf.mxu1 }
 0x90e   :  { %v5651_v3 = vadd.f32 %v5650_v24, %v5561_v61 }
 0x90f   :  { %v11894_v23 = vadd.f32 %v5825_v8, %v5737_v1  ;;  %5600 = vmatmul.bf16.gmra.mxu0 %v13328_v57 }
 0x910   :  { %5689 = vmatmul.bf16.gmra.mxu1 %v13572_v13 }
 0x911   :  { %13709 = vst [vmem:[#allocation51_spill] sm:$0xff] %v11894_v23  ;;  %5778 = vmatmul.bf16.gmra.mxu2 %v13489_v50 }
 0x912   :  { %5867 = vmatmul.bf16.gmra.mxu3 %v13710_v32  ;;  %v13713_v32 = vld [vmem:[#allocation219_spill] sm:$0xff] }
 0x914   :  { %v5739_v33 = vpop.f32.mrf.mxu2  ;;  %v5563_v26 = vpop.f32.mrf.mxu0 }
 0x915   :  { %v5740_v48 = vadd.f32 %v5739_v33, %v5651_v3  ;;  %v5828_v42 = vpop.f32.mrf.mxu3  ;;  %v5652_v52 = vpop.f32.mrf.mxu1  ;;  %v13714_v3 = vld [vmem:[#allocation220_spill] sm:$0xff] }
 0x916   :  { %v5653_v9 = vadd.f32 %v5652_v52, %v5563_v26 }
 0x917   :  { %v11900_v22 = vadd.f32 %v5828_v42, %v5740_v48 }
 0x919   :  { %13711 = vst [vmem:[#allocation83_spill] sm:$0xff] %v11900_v22 }
 0x91c   :  { %v5741_v63 = vpop.f32.mrf.mxu2  ;;  %v5566_v61 = vpop.f32.mrf.mxu0 }
 0x91d   :  { %v5742_v1 = vadd.f32 %v5741_v63, %v5653_v9  ;;  %v5830_v8 = vpop.f32.mrf.mxu3  ;;  %v5655_v24 = vpop.f32.mrf.mxu1 }
 0x91e   :  { %v5656_v13 = vadd.f32 %v5655_v24, %v5566_v61 }
 0x91f   :  { %v11902_v23 = vadd.f32 %v5830_v8, %v5742_v1  ;;  %5605 = vmatmul.bf16.gmra.mxu0 %v13338_v37 }
 0x920   :  { %5694 = vmatmul.bf16.gmra.mxu1 %v13579_v0 }
 0x921   :  { %13712 = vst [vmem:[#allocation115_spill] sm:$0xff] %v11902_v23  ;;  %5783 = vmatmul.bf16.gmra.mxu2 %v13713_v32 }
 0x922   :  { %5872 = vmatmul.bf16.gmra.mxu3 %v13714_v3 }
 0x924   :  { %v5744_v33 = vpop.f32.mrf.mxu2  ;;  %v5568_v26 = vpop.f32.mrf.mxu0 }
 0x925   :  { %v5745_v48 = vadd.f32 %v5744_v33, %v5656_v13  ;;  %v5833_v42 = vpop.f32.mrf.mxu3  ;;  %v5657_v52 = vpop.f32.mrf.mxu1 }
 0x926   :  { %v5658_v9 = vadd.f32 %v5657_v52, %v5568_v26 }
 0x927   :  { %v11908_v63 = vadd.f32 %v5833_v42, %v5745_v48 }
 0x92c   :  { %v5746_v22 = vpop.f32.mrf.mxu2  ;;  %v5571_v61 = vpop.f32.mrf.mxu0 }
 0x92d   :  { %v5747_v1 = vadd.f32 %v5746_v22, %v5658_v9  ;;  %v5835_v8 = vpop.f32.mrf.mxu3  ;;  %v5660_v24 = vpop.f32.mrf.mxu1 }
 0x92e   :  { %v5661_v0 = vadd.f32 %v5660_v24, %v5571_v61 }
 0x92f   :  { %v11910_v23 = vadd.f32 %v5835_v8, %v5747_v1  ;;  %5610 = vmatmul.bf16.gmra.mxu0 %v13347_v62 }
 0x930   :  { %5699 = vmatmul.bf16.gmra.mxu1 %v13587_v47 }
 0x931   :  { %13715 = vst [vmem:[#allocation150_spill] sm:$0xff] %v11910_v23  ;;  %5788 = vmatmul.bf16.gmra.mxu2 %v13496_v53 }
 0x932   :  { %5877 = vmatmul.bf16.gmra.mxu3 %v13497_v55 }
 0x934   :  { %v5749_v13 = vpop.f32.mrf.mxu2  ;;  %v5573_v42 = vpop.f32.mrf.mxu0 }
 0x935   :  { %v5750_v33 = vadd.f32 %v5749_v13, %v5661_v0  ;;  %v5838_v48 = vpop.f32.mrf.mxu3  ;;  %v5662_v26 = vpop.f32.mrf.mxu1 }
 0x936   :  { %v5663_v52 = vadd.f32 %v5662_v26, %v5573_v42 }
 0x937   :  { %v11916_v22 = vadd.f32 %v5838_v48, %v5750_v33 }
 0x93c   :  { %v5751_v9 = vpop.f32.mrf.mxu2  ;;  %v5576_v61 = vpop.f32.mrf.mxu0 }
 0x93d   :  { %v5752_v1 = vadd.f32 %v5751_v9, %v5663_v52  ;;  %v5840_v8 = vpop.f32.mrf.mxu3  ;;  %v5665_v24 = vpop.f32.mrf.mxu1 }
 0x93e   :  { %v5666_v47 = vadd.f32 %v5665_v24, %v5576_v61 }
 0x93f   :  { %v11918_v23 = vadd.f32 %v5840_v8, %v5752_v1  ;;  %5615 = vmatmul.bf16.gmra.mxu0 %v10854_v6 }
 0x940   :  { %5704 = vmatmul.bf16.gmra.mxu1 %v13593_v44 }
 0x941   :  { %13716 = vst [vmem:[#allocation42_spill] sm:$0xff] %v11918_v23  ;;  %5793 = vmatmul.bf16.gmra.mxu2 %v10858_v27 }
 0x942   :  { %5882 = vmatmul.bf16.gmra.mxu3 %v10860_v5 }
 0x944   :  { %v5754_v0 = vpop.f32.mrf.mxu2  ;;  %v5578_v48 = vpop.f32.mrf.mxu0 }
 0x945   :  { %v5755_v13 = vadd.f32 %v5754_v0, %v5666_v47  ;;  %v5843_v33 = vpop.f32.mrf.mxu3  ;;  %v5667_v42 = vpop.f32.mrf.mxu1  ;;  %v13718_v47 = vld [vmem:[#allocation81_spill] sm:$0xff] }
 0x946   :  { %v5668_v52 = vadd.f32 %v5667_v42, %v5578_v48  ;;  %v13719_v0 = vld [vmem:[#allocation113_spill] sm:$0xff] }
 0x947   :  { %v11924_v26 = vadd.f32 %v5843_v33, %v5755_v13  ;;  %v13720_v13 = vld [vmem:[#allocation148_spill] sm:$0xff]  ;;  %v13721_v33 = vld [vmem:[#allocation191_spill] sm:$0xff] }
 0x94c   :  { %v5756_v9 = vpop.f32.mrf.mxu2  ;;  %v5581_v61 = vpop.f32.mrf.mxu0 }
 0x94d   :  { %v5757_v1 = vadd.f32 %v5756_v9, %v5668_v52  ;;  %v5845_v8 = vpop.f32.mrf.mxu3  ;;  %v5670_v24 = vpop.f32.mrf.mxu1 }
 0x94e   :  { %v5671_v44 = vadd.f32 %v5670_v24, %v5581_v61  ;;  %v13723_v61 = vld [vmem:[#allocation109_spill] sm:$0xff] }
 0x94f   :  { %v11926_v23 = vadd.f32 %v5845_v8, %v5757_v1  ;;  %5896 = vmatmul.bf16.vlgmr.msrb.gmra.mxu0 %v10497_v59  ;;  %v13722_v1 = vld [vmem:[#allocation77_spill] sm:$0xff] }
 0x950   :  { %5985 = vmatmul.bf16.vlgmr.msrb.gmra.mxu1 %v13599_v30  ;;  %6600 = vmatpush.bf16.msrb.mxu0 %v13718_v47  ;;  %v13724_v24 = vld [vmem:[#allocation141_spill] sm:$0xff] }
 0x951   :  { %13717 = vst [vmem:[#allocation37_spill] sm:$0xff] %v11926_v23  ;;  %6074 = vmatmul.bf16.vlgmr.msrb.gmra.mxu2 %v13600_v18  ;;  %6689 = vmatpush.bf16.msrb.mxu1 %v13719_v0  ;;  %v13725_v18 = vld [vmem:[#allocation183_spill] sm:$0xff]  ;;  %v13726_v0 = vld [vmem:[#allocation73_spill] sm:$0xff] }
 0x952   :  { %6163 = vmatmul.bf16.vlgmr.msrb.gmra.mxu3 %v13602_v58  ;;  %6778 = vmatpush.bf16.msrb.mxu2 %v13720_v13  ;;  %v13727_v13 = vld [vmem:[#allocation105_spill] sm:$0xff] }
 0x953   :  { %6867 = vmatpush.bf16.msrb.mxu3 %v13721_v33  ;;  %v13728_v33 = vld [vmem:[#allocation137_spill] sm:$0xff] }
 0x954   :  { %v5759_v48 = vpop.f32.mrf.mxu2  ;;  %v5583_v9 = vpop.f32.mrf.mxu0  ;;  %6601 = vmatpush.bf16.msrb.mxu0 %v13722_v1 }
 0x955   :  { %v5760_v42 = vadd.f32 %v5759_v48, %v5671_v44  ;;  %v5848_v52 = vpop.f32.mrf.mxu3  ;;  %v5672_v8 = vpop.f32.mrf.mxu1  ;;  %6690 = vmatpush.bf16.msrb.mxu1 %v13723_v61  ;;  %v13729_v44 = vld [vmem:[#allocation175_spill] sm:$0xff]  ;;  %v13730_v61 = vld [vmem:[#allocation69_spill] sm:$0xff] }
 0x956   :  { %6779 = vmatpush.bf16.msrb.mxu2 %v13724_v24  ;;  %v5673_v47 = vadd.f32 %v5672_v8, %v5583_v9  ;;  %v13733_v8 = vld [vmem:[#allocation167_spill] sm:$0xff] }
 0x957   :  { %v11939_v58 = vadd.f32 %v5848_v52, %v5760_v42  ;;  %6868 = vmatpush.bf16.msrb.mxu3 %v13725_v18  ;;  %v13731_v42 = vld [vmem:[#allocation101_spill] sm:$0xff] }
 0x958   :  { %6602 = vmatpush.bf16.msrb.mxu0 %v13726_v0  ;;  %v13732_v52 = vld [vmem:[#allocation133_spill] sm:$0xff] }
 0x959   :  { %6691 = vmatpush.bf16.msrb.mxu1 %v13727_v13  ;;  %v13735_v0 = vld [vmem:[#allocation97_spill] sm:$0xff] }
 0x95a   :  { %6780 = vmatpush.bf16.msrb.mxu2 %v13728_v33  ;;  %v13736_v13 = vld [vmem:[#allocation129_spill] sm:$0xff]  ;;  %v13737_v33 = vld [vmem:[#allocation159_spill] sm:$0xff] }
 0x95b   :  { %6869 = vmatpush.bf16.msrb.mxu3 %v13729_v44 }
 0x95c   :  { %v5761_v48 = vpop.f32.mrf.mxu2  ;;  %v5586_v23 = vpop.f32.mrf.mxu0  ;;  %6603 = vmatpush.bf16.msrb.mxu0 %v13730_v61 }
 0x95d   :  { %v5762_v1 = vadd.f32 %v5761_v48, %v5673_v47  ;;  %v5850_v30 = vpop.f32.mrf.mxu3  ;;  %v5675_v24 = vpop.f32.mrf.mxu1  ;;  %6692 = vmatpush.bf16.msrb.mxu1 %v13731_v42  ;;  %v13734_v47 = vld [vmem:[#allocation65_spill] sm:$0xff] }
 0x95e   :  { %6781 = vmatpush.bf16.msrb.mxu2 %v13732_v52  ;;  %v5676_v9 = vadd.f32 %v5675_v24, %v5586_v23  ;;  %v13739_v24 = vld [vmem:[#allocation93_spill] sm:$0xff] }
 0x95f   :  { %v11949_v18 = vadd.f32 %v5850_v30, %v5762_v1  ;;  %6870 = vmatpush.bf16.msrb.mxu3 %v13733_v8  ;;  %5901 = vmatmul.bf16.gmra.mxu0 %v10529_v11  ;;  %v13738_v1 = vld [vmem:[#allocation61_spill] sm:$0xff] }
 0x960   :  { %5990 = vmatmul.bf16.gmra.mxu1 %v10531_v20  ;;  %6604 = vmatpush.bf16.msrb.mxu0 %v13734_v47  ;;  %v13740_v42 = vld [vmem:[#allocation125_spill] sm:$0xff] }
 0x961   :  { %6079 = vmatmul.bf16.gmra.mxu2 %v13622_v36  ;;  %6693 = vmatpush.bf16.msrb.mxu1 %v13735_v0  ;;  %v13741_v47 = vld [vmem:[#allocation25_spill] sm:$0xff] }
 0x962   :  { %6168 = vmatmul.bf16.gmra.mxu3 %v13623_v31  ;;  %6782 = vmatpush.bf16.msrb.mxu2 %v13736_v13  ;;  %v13742_v0 = vld [vmem:[#allocation57_spill] sm:$0xff] }
 0x963   :  { %6871 = vmatpush.bf16.msrb.mxu3 %v13737_v33  ;;  %v13743_v13 = vld [vmem:[#allocation89_spill] sm:$0xff] }
 0x964   :  { %v5764_v30 = vpop.f32.mrf.mxu2  ;;  %v5588_v48 = vpop.f32.mrf.mxu0  ;;  %6605 = vmatpush.bf16.msrb.mxu0 %v13738_v1  ;;  %v13744_v33 = vld [vmem:[#allocation121_spill] sm:$0xff] }
 0x965   :  { %v5765_v23 = vadd.f32 %v5764_v30, %v5676_v9  ;;  %v5853_v44 = vpop.f32.mrf.mxu3  ;;  %v5677_v61 = vpop.f32.mrf.mxu1  ;;  %6694 = vmatpush.bf16.msrb.mxu1 %v13739_v24  ;;  %v13745_v9 = vld [vmem:[#allocation44_spill] sm:$0xff]  ;;  %v13746_v24 = vld [vmem:[#allocation53_spill] sm:$0xff] }
 0x966   :  { %6783 = vmatpush.bf16.msrb.mxu2 %v13740_v42  ;;  %v5678_v8 = vadd.f32 %v5677_v61, %v5588_v48 }
 0x967   :  { %v11963_v52 = vadd.f32 %v5853_v44, %v5765_v23  ;;  %6872 = vmatpush.bf16.msrb.mxu3 %v13741_v47  ;;  %v13747_v23 = vld [vmem:[#allocation85_spill] sm:$0xff] }
 0x968   :  { %6606 = vmatpush.bf16.msrb.mxu0 %v13742_v0  ;;  %v13748_v44 = vld [vmem:[#allocation117_spill] sm:$0xff] }
 0x969   :  { %6695 = vmatpush.bf16.msrb.mxu1 %v13743_v13  ;;  %v13749_v47 = vld [vmem:[#allocation33_spill] sm:$0xff] }
 0x96a   :  { %6784 = vmatpush.bf16.msrb.mxu2 %v13744_v33 }
 0x96b   :  { %6873 = vmatpush.bf16.msrb.mxu3 %v13745_v9 }
 0x96c   :  { %v5766_v30 = vpop.f32.mrf.mxu2  ;;  %v5591_v36 = vpop.f32.mrf.mxu0  ;;  %6607 = vmatpush.bf16.msrb.mxu0 %v13746_v24 }
 0x96d   :  { %v5767_v1 = vadd.f32 %v5766_v30, %v5678_v8  ;;  %v5855_v31 = vpop.f32.mrf.mxu3  ;;  %v5680_v42 = vpop.f32.mrf.mxu1  ;;  %6696 = vmatpush.bf16.msrb.mxu1 %v13747_v23 }
 0x96e   :  { %6785 = vmatpush.bf16.msrb.mxu2 %v13748_v44  ;;  %v5681_v61 = vadd.f32 %v5680_v42, %v5591_v36 }
 0x96f   :  { %v11973_v48 = vadd.f32 %v5855_v31, %v5767_v1  ;;  %6874 = vmatpush.bf16.msrb.mxu3 %v13749_v47  ;;  %5906 = vmatmul.bf16.gmra.mxu0 %v10565_v45 }
 0x970   :  { %5995 = vmatmul.bf16.gmra.mxu1 %v10567_v43 }
 0x971   :  { %6084 = vmatmul.bf16.gmra.mxu2 %v10569_v49 }
 0x972   :  { %6173 = vmatmul.bf16.gmra.mxu3 %v10572_v14 }
 0x974   :  { %v5769_v8 = vpop.f32.mrf.mxu2  ;;  %v5593_v33 = vpop.f32.mrf.mxu0 }
 0x975   :  { %v5770_v0 = vadd.f32 %v5769_v8, %v5681_v61  ;;  %v5858_v13 = vpop.f32.mrf.mxu3  ;;  %v5682_v9 = vpop.f32.mrf.mxu1 }
 0x976   :  { %v5683_v31 = vadd.f32 %v5682_v9, %v5593_v33 }
 0x977   :  { %v11980_v30 = vadd.f32 %v5858_v13, %v5770_v0 }
 0x97c   :  { %v5771_v1 = vpop.f32.mrf.mxu2  ;;  %v5596_v42 = vpop.f32.mrf.mxu0 }
 0x97d   :  { %v5772_v36 = vadd.f32 %v5771_v1, %v5683_v31  ;;  %v5860_v24 = vpop.f32.mrf.mxu3  ;;  %v5685_v23 = vpop.f32.mrf.mxu1 }
 0x97e   :  { %v5686_v47 = vadd.f32 %v5685_v23, %v5596_v42 }
 0x97f   :  { %v11982_v44 = vadd.f32 %v5860_v24, %v5772_v36  ;;  %5911 = vmatmul.bf16.gmra.mxu0 %v13407_v41 }
 0x980   :  { %6000 = vmatmul.bf16.gmra.mxu1 %v13649_v19 }
 0x981   :  { %13750 = vst [vmem:[#allocation27_spill] sm:$0xff] %v11982_v44  ;;  %6089 = vmatmul.bf16.gmra.mxu2 %v13411_v12 }
 0x982   :  { %6178 = vmatmul.bf16.gmra.mxu3 %v13412_v29 }
 0x984   :  { %v5774_v61 = vpop.f32.mrf.mxu2  ;;  %v5598_v13 = vpop.f32.mrf.mxu0 }
 0x985   :  { %v5775_v8 = vadd.f32 %v5774_v61, %v5686_v47  ;;  %v5863_v0 = vpop.f32.mrf.mxu3  ;;  %v5687_v33 = vpop.f32.mrf.mxu1 }
 0x986   :  { %v5688_v31 = vadd.f32 %v5687_v33, %v5598_v13 }
 0x987   :  { %v11988_v9 = vadd.f32 %v5863_v0, %v5775_v8 }
 0x98c   :  { %v5776_v1 = vpop.f32.mrf.mxu2  ;;  %v5601_v42 = vpop.f32.mrf.mxu0 }
 0x98d   :  { %v5777_v36 = vadd.f32 %v5776_v1, %v5688_v31  ;;  %v5865_v24 = vpop.f32.mrf.mxu3  ;;  %v5690_v23 = vpop.f32.mrf.mxu1 }
 0x98e   :  { %v5691_v19 = vadd.f32 %v5690_v23, %v5601_v42 }
 0x98f   :  { %v11990_v44 = vadd.f32 %v5865_v24, %v5777_v36  ;;  %5916 = vmatmul.bf16.gmra.mxu0 %v13419_v40 }
 0x990   :  { %6005 = vmatmul.bf16.gmra.mxu1 %v13655_v7 }
 0x991   :  { %13751 = vst [vmem:[#allocation40_spill] sm:$0xff] %v11990_v44  ;;  %6094 = vmatmul.bf16.gmra.mxu2 %v13423_v46  ;;  %v13754_v46 = vld [vmem:[#allocation163_spill] sm:$0xff] }
 0x992   :  { %6183 = vmatmul.bf16.gmra.mxu3 %v13424_v54  ;;  %v13755_v54 = vld [vmem:[#allocation164_spill] sm:$0xff] }
 0x994   :  { %v5779_v47 = vpop.f32.mrf.mxu2  ;;  %v5603_v0 = vpop.f32.mrf.mxu0 }
 0x995   :  { %v5780_v61 = vadd.f32 %v5779_v47, %v5691_v19  ;;  %v5868_v8 = vpop.f32.mrf.mxu3  ;;  %v5692_v13 = vpop.f32.mrf.mxu1  ;;  %v13756_v19 = vld [vmem:[#allocation165_spill] sm:$0xff] }
 0x996   :  { %v5693_v31 = vadd.f32 %v5692_v13, %v5603_v0 }
 0x997   :  { %v11996_v33 = vadd.f32 %v5868_v8, %v5780_v61 }
 0x999   :  { %13752 = vst [vmem:[#allocation36_spill] sm:$0xff] %v11996_v33 }
 0x99c   :  { %v5781_v1 = vpop.f32.mrf.mxu2  ;;  %v5606_v42 = vpop.f32.mrf.mxu0 }
 0x99d   :  { %v5782_v36 = vadd.f32 %v5781_v1, %v5693_v31  ;;  %v5870_v24 = vpop.f32.mrf.mxu3  ;;  %v5695_v23 = vpop.f32.mrf.mxu1 }
 0x99e   :  { %v5696_v7 = vadd.f32 %v5695_v23, %v5606_v42 }
 0x99f   :  { %v11998_v44 = vadd.f32 %v5870_v24, %v5782_v36  ;;  %5921 = vmatmul.bf16.gmra.mxu0 %v13431_v25  ;;  %v13759_v25 = vld [vmem:[#allocation170_spill] sm:$0xff] }
 0x9a0   :  { %6010 = vmatmul.bf16.gmra.mxu1 %v13754_v46 }
 0x9a1   :  { %13753 = vst [vmem:[#allocation39_spill] sm:$0xff] %v11998_v44  ;;  %6099 = vmatmul.bf16.gmra.mxu2 %v13755_v54  ;;  %v13760_v54 = vld [vmem:[#allocation171_spill] sm:$0xff] }
 0x9a2   :  { %6188 = vmatmul.bf16.gmra.mxu3 %v13756_v19  ;;  %v13761_v19 = vld [vmem:[#allocation172_spill] sm:$0xff] }
 0x9a4   :  { %v5784_v47 = vpop.f32.mrf.mxu2  ;;  %v5608_v0 = vpop.f32.mrf.mxu0 }
 0x9a5   :  { %v5785_v61 = vadd.f32 %v5784_v47, %v5696_v7  ;;  %v5873_v8 = vpop.f32.mrf.mxu3  ;;  %v5697_v13 = vpop.f32.mrf.mxu1  ;;  %v13762_v7 = vld [vmem:[#allocation173_spill] sm:$0xff] }
 0x9a6   :  { %v5698_v1 = vadd.f32 %v5697_v13, %v5608_v0 }
 0x9a7   :  { %v12004_v31 = vadd.f32 %v5873_v8, %v5785_v61 }
 0x9a9   :  { %13757 = vst [vmem:[#allocation30_spill] sm:$0xff] %v12004_v31 }
 0x9ac   :  { %v5786_v33 = vpop.f32.mrf.mxu2  ;;  %v5611_v42 = vpop.f32.mrf.mxu0 }
 0x9ad   :  { %v5787_v36 = vadd.f32 %v5786_v33, %v5698_v1  ;;  %v5875_v24 = vpop.f32.mrf.mxu3  ;;  %v5700_v23 = vpop.f32.mrf.mxu1 }
 0x9ae   :  { %v5701_v46 = vadd.f32 %v5700_v23, %v5611_v42 }
 0x9af   :  { %v12006_v44 = vadd.f32 %v5875_v24, %v5787_v36  ;;  %5926 = vmatmul.bf16.gmra.mxu0 %v13759_v25  ;;  %v13765_v25 = vld [vmem:[#allocation178_spill] sm:$0xff] }
 0x9b0   :  { %6015 = vmatmul.bf16.gmra.mxu1 %v13760_v54 }
 0x9b1   :  { %13758 = vst [vmem:[#allocation154_spill] sm:$0xff] %v12006_v44  ;;  %6104 = vmatmul.bf16.gmra.mxu2 %v13761_v19  ;;  %v13766_v19 = vld [vmem:[#allocation179_spill] sm:$0xff] }
 0x9b2   :  { %6193 = vmatmul.bf16.gmra.mxu3 %v13762_v7  ;;  %v13767_v7 = vld [vmem:[#allocation180_spill] sm:$0xff] }
 0x9b4   :  { %v5789_v47 = vpop.f32.mrf.mxu2  ;;  %v5613_v0 = vpop.f32.mrf.mxu0 }
 0x9b5   :  { %v5790_v61 = vadd.f32 %v5789_v47, %v5701_v46  ;;  %v5878_v8 = vpop.f32.mrf.mxu3  ;;  %v5702_v13 = vpop.f32.mrf.mxu1  ;;  %v13768_v46 = vld [vmem:[#allocation181_spill] sm:$0xff] }
 0x9b6   :  { %v5703_v1 = vadd.f32 %v5702_v13, %v5613_v0 }
 0x9b7   :  { %v12012_v33 = vadd.f32 %v5878_v8, %v5790_v61 }
 0x9b9   :  { %13763 = vst [vmem:[#allocation49_spill] sm:$0xff] %v12012_v33 }
 0x9bc   :  { %v5791_v31 = vpop.f32.mrf.mxu2  ;;  %v5616_v42 = vpop.f32.mrf.mxu0 }
 0x9bd   :  { %v5792_v36 = vadd.f32 %v5791_v31, %v5703_v1  ;;  %v5880_v24 = vpop.f32.mrf.mxu3  ;;  %v5705_v23 = vpop.f32.mrf.mxu1 }
 0x9be   :  { %v5706_v54 = vadd.f32 %v5705_v23, %v5616_v42 }
 0x9bf   :  { %v12014_v44 = vadd.f32 %v5880_v24, %v5792_v36  ;;  %5931 = vmatmul.bf16.gmra.mxu0 %v13765_v25 }
 0x9c0   :  { %6020 = vmatmul.bf16.gmra.mxu1 %v13766_v19 }
 0x9c1   :  { %13764 = vst [vmem:[#allocation35_spill] sm:$0xff] %v12014_v44  ;;  %6109 = vmatmul.bf16.gmra.mxu2 %v13767_v7 }
 0x9c2   :  { %6198 = vmatmul.bf16.gmra.mxu3 %v13768_v46  ;;  %v13771_v46 = vld [vmem:[#allocation188_spill] sm:$0xff] }
 0x9c4   :  { %v5794_v47 = vpop.f32.mrf.mxu2  ;;  %v5618_v0 = vpop.f32.mrf.mxu0 }
 0x9c5   :  { %v5795_v61 = vadd.f32 %v5794_v47, %v5706_v54  ;;  %v5883_v8 = vpop.f32.mrf.mxu3  ;;  %v5707_v13 = vpop.f32.mrf.mxu1  ;;  %v13772_v54 = vld [vmem:[#allocation189_spill] sm:$0xff] }
 0x9c6   :  { %v5708_v1 = vadd.f32 %v5707_v13, %v5618_v0 }
 0x9c7   :  { %v12020_v31 = vadd.f32 %v5883_v8, %v5795_v61 }
 0x9c9   :  { %13769 = vst [vmem:[#allocation19_spill] sm:$0xff] %v12020_v31 }
 0x9cc   :  { %v5796_v33 = vpop.f32.mrf.mxu2  ;;  %v5897_v42 = vpop.f32.mrf.mxu0 }
 0x9cd   :  { %v5797_v36 = vadd.f32 %v5796_v33, %v5708_v1  ;;  %v5885_v24 = vpop.f32.mrf.mxu3  ;;  %v5986_v23 = vpop.f32.mrf.mxu1 }
 0x9ce   :  { %v5987_v19 = vadd.f32 %v5986_v23, %v5897_v42 }
 0x9cf   :  { %v12022_v44 = vadd.f32 %v5885_v24, %v5797_v36  ;;  %5936 = vmatmul.bf16.gmra.mxu0 %v13689_v38 }
 0x9d0   :  { %6025 = vmatmul.bf16.gmra.mxu1 %v13691_v4 }
 0x9d1   :  { %13770 = vst [vmem:[#allocation80_spill] sm:$0xff] %v12022_v44  ;;  %6114 = vmatmul.bf16.gmra.mxu2 %v13771_v46 }
 0x9d2   :  { %6203 = vmatmul.bf16.gmra.mxu3 %v13772_v54 }
 0x9d4   :  { %v6075_v47 = vpop.f32.mrf.mxu2  ;;  %v5899_v0 = vpop.f32.mrf.mxu0 }
 0x9d5   :  { %v6076_v61 = vadd.f32 %v6075_v47, %v5987_v19  ;;  %v6164_v8 = vpop.f32.mrf.mxu3  ;;  %v5988_v13 = vpop.f32.mrf.mxu1 }
 0x9d6   :  { %v5989_v1 = vadd.f32 %v5988_v13, %v5899_v0 }
 0x9d7   :  { %v6165_v33 = vadd.f32 %v6164_v8, %v6076_v61 }
 0x9d9   :  { %v6958_v31 = vpack.c.bf16 %v6165_v33, %v11864_v21  ;;  %v13773_v21 = vld [vmem:[#allocation192_spill] sm:$0xff] }
 0x9db   :  { %v7408_v44 = vunpack.c.l.bf16 %v6958_v31  ;;  %v7409_v38 = vunpack.c.h.bf16 %v6958_v31 }
 0x9dc   :  { %v6077_v36 = vpop.f32.mrf.mxu2  ;;  %v5902_v23 = vpop.f32.mrf.mxu0 }
 0x9dd   :  { %v6078_v24 = vadd.f32 %v6077_v36, %v5989_v1  ;;  %v6166_v42 = vpop.f32.mrf.mxu3  ;;  %v5991_v4 = vpop.f32.mrf.mxu1  ;;  %v7696_v47 = vadd.f32 %v13773_v21, %v7408_v44  ;;  %v7697_v61 = vadd.f32 %v13773_v21, %v7409_v38  ;;  %v13774_v1 = vld [vmem:[#allocation197_spill] sm:$0xff] }
 0x9de   :  { %v5992_v46 = vadd.f32 %v5991_v4, %v5902_v23 }
 0x9df   :  { %v6167_v7 = vadd.f32 %v6166_v42, %v6078_v24  ;;  %5941 = vmatmul.bf16.gmra.mxu0 %v13698_v2  ;;  %v8336_v24 = vmax.f32 %v7696_v47, 0.0  ;;  %v8337_v42 = vmax.f32 %v7697_v61, 0.0 }
 0x9e0   :  { %6030 = vmatmul.bf16.gmra.mxu1 %v13699_v34 }
 0x9e1   :  { %v6962_v19 = vpack.c.bf16 %v6167_v7, %v11870_v60  ;;  %6119 = vmatmul.bf16.gmra.mxu2 %v13700_v10 }
 0x9e2   :  { %6208 = vmatmul.bf16.gmra.mxu3 %v13701_v17 }
 0x9e3   :  { %v7416_v8 = vunpack.c.l.bf16 %v6962_v19  ;;  %v7417_v0 = vunpack.c.h.bf16 %v6962_v19 }
 0x9e4   :  { %v6080_v31 = vpop.f32.mrf.mxu2  ;;  %v5904_v4 = vpop.f32.mrf.mxu0 }
 0x9e5   :  { %v6081_v13 = vadd.f32 %v6080_v31, %v5992_v46  ;;  %v6169_v33 = vpop.f32.mrf.mxu3  ;;  %v7704_v36 = vadd.f32 %v13774_v1, %v7416_v8  ;;  %v7705_v60 = vadd.f32 %v13774_v1, %v7417_v0  ;;  %v5993_v7 = vpop.f32.mrf.mxu1 }
 0x9e6   :  { %v5994_v10 = vadd.f32 %v5993_v7, %v5904_v4  ;;  %v13780_v7 = vld [vmem:[#allocation199_spill] sm:$0xff] }
 0x9e7   :  { %v6170_v23 = vadd.f32 %v6169_v33, %v6081_v13  ;;  %v8344_v17 = vmax.f32 %v7704_v36, 0.0  ;;  %v8345_v34 = vmax.f32 %v7705_v60, 0.0  ;;  %v13777_v13 = vld [vmem:[#allocation200_spill] sm:$0xff] }
 0x9e9   :  { %v6966_v44 = vpack.c.bf16 %v6170_v23, %v11876_v56  ;;  %v12039_v38 = vpack.c.bf16 %v8344_v17, %v8336_v24  ;;  %v12041_v19 = vpack.c.bf16 %v8345_v34, %v8337_v42  ;;  %v13778_v17 = vld [vmem:[#allocation202_spill] sm:$0xff] }
 0x9ea   :  { %v13779_v34 = vld [vmem:[#allocation230_spill] sm:$0xff] }
 0x9eb   :  { %13775 = vst [vmem:[#allocation112_spill] sm:$0xff] %v12039_v38  ;;  %v7424_v8 = vunpack.c.l.bf16 %v6966_v44  ;;  %v7425_v54 = vunpack.c.h.bf16 %v6966_v44 }
 0x9ec   :  { %13776 = vst [vmem:[#allocation147_spill] sm:$0xff] %v12041_v19  ;;  %v6082_v46 = vpop.f32.mrf.mxu2  ;;  %v5907_v2 = vpop.f32.mrf.mxu0 }
 0x9ed   :  { %v6083_v31 = vadd.f32 %v6082_v46, %v5994_v10  ;;  %v6171_v21 = vpop.f32.mrf.mxu3  ;;  %v5996_v0 = vpop.f32.mrf.mxu1  ;;  %v7712_v56 = vadd.f32 %v13779_v34, %v7424_v8  ;;  %v7713_v10 = vadd.f32 %v13779_v34, %v7425_v54  ;;  %v13781_v8 = vld [vmem:[#allocation87_spill] sm:$0xff] }
 0x9ee   :  { %v5997_v47 = vadd.f32 %v5996_v0, %v5907_v2 }
 0x9ef   :  { %v6172_v1 = vadd.f32 %v6171_v21, %v6083_v31  ;;  %5946 = vmatmul.bf16.gmra.mxu0 %v13308_v39  ;;  %v8352_v42 = vmax.f32 %v7712_v56, 0.0  ;;  %v8353_v23 = vmax.f32 %v7713_v10, 0.0  ;;  %v13784_v10 = vld [vmem:[#allocation119_spill] sm:$0xff] }
 0x9f0   :  { %6035 = vmatmul.bf16.gmra.mxu1 %v13777_v13 }
 0x9f1   :  { %v6970_v61 = vpack.c.bf16 %v6172_v1, %v11878_v15  ;;  %6124 = vmatmul.bf16.gmra.mxu2 %v13702_v28 }
 0x9f2   :  { %6213 = vmatmul.bf16.gmra.mxu3 %v13778_v17 }
 0x9f3   :  { %v7432_v33 = vunpack.c.l.bf16 %v6970_v61  ;;  %v7433_v4 = vunpack.c.h.bf16 %v6970_v61 }
 0x9f4   :  { %v6085_v36 = vpop.f32.mrf.mxu2  ;;  %v5909_v2 = vpop.f32.mrf.mxu0 }
 0x9f5   :  { %v6086_v60 = vadd.f32 %v6085_v36, %v5997_v47  ;;  %v6174_v21 = vpop.f32.mrf.mxu3  ;;  %v7720_v24 = vadd.f32 %v13780_v7, %v7432_v33  ;;  %v7721_v15 = vadd.f32 %v13780_v7, %v7433_v4  ;;  %v5998_v1 = vpop.f32.mrf.mxu1 }
 0x9f6   :  { %v5999_v46 = vadd.f32 %v5998_v1, %v5909_v2  ;;  %v13786_v2 = vld [vmem:[#allocation231_spill] sm:$0xff] }
 0x9f7   :  { %v6175_v44 = vadd.f32 %v6174_v21, %v6086_v60  ;;  %v8360_v31 = vmax.f32 %v7720_v24, 0.0  ;;  %v8361_v0 = vmax.f32 %v7721_v15, 0.0  ;;  %v13785_v21 = vld [vmem:[#allocation206_spill] sm:$0xff] }
 0x9f9   :  { %v6974_v19 = vpack.c.bf16 %v6175_v44, %v13781_v8  ;;  %v12053_v54 = vpack.c.bf16 %v8360_v31, %v8352_v42  ;;  %v12055_v61 = vpack.c.bf16 %v8361_v0, %v8353_v23  ;;  %v13787_v44 = vld [vmem:[#allocation205_spill] sm:$0xff] }
 0x9fb   :  { %13782 = vst [vmem:[#allocation190_spill] sm:$0xff] %v12053_v54  ;;  %v7440_v33 = vunpack.c.l.bf16 %v6974_v19  ;;  %v7441_v17 = vunpack.c.h.bf16 %v6974_v19 }
 0x9fc   :  { %13783 = vst [vmem:[#allocation76_spill] sm:$0xff] %v12055_v61  ;;  %v6087_v47 = vpop.f32.mrf.mxu2  ;;  %v5912_v34 = vpop.f32.mrf.mxu0 }
 0x9fd   :  { %v6088_v36 = vadd.f32 %v6087_v47, %v5999_v46  ;;  %v6176_v38 = vpop.f32.mrf.mxu3  ;;  %v6001_v4 = vpop.f32.mrf.mxu1  ;;  %v7728_v24 = vadd.f32 %v13786_v2, %v7440_v33  ;;  %v7729_v15 = vadd.f32 %v13786_v2, %v7441_v17  ;;  %v13788_v33 = vld [vmem:[#allocation18_spill] sm:$0xff] }
 0x9fe   :  { %v6002_v56 = vadd.f32 %v6001_v4, %v5912_v34 }
 0x9ff   :  { %v6177_v7 = vadd.f32 %v6176_v38, %v6088_v36  ;;  %5951 = vmatmul.bf16.gmra.mxu0 %v13318_v35  ;;  %v8368_v0 = vmax.f32 %v7728_v24, 0.0  ;;  %v8369_v8 = vmax.f32 %v7729_v15, 0.0  ;;  %v13791_v15 = vld [vmem:[#allocation51_spill] sm:$0xff] }
 0xa00   :  { %6040 = vmatmul.bf16.gmra.mxu1 %v13785_v21 }
 0xa01   :  { %v6978_v60 = vpack.c.bf16 %v6177_v7, %v13784_v10  ;;  %6129 = vmatmul.bf16.gmra.mxu2 %v13706_v16 }
 0xa02   :  { %6218 = vmatmul.bf16.gmra.mxu3 %v13707_v51 }
 0xa03   :  { %v7448_v1 = vunpack.c.l.bf16 %v6978_v60  ;;  %v7449_v42 = vunpack.c.h.bf16 %v6978_v60 }
 0xa04   :  { %v6090_v19 = vpop.f32.mrf.mxu2  ;;  %v5914_v34 = vpop.f32.mrf.mxu0 }
 0xa05   :  { %v6091_v23 = vadd.f32 %v6090_v19, %v6002_v56  ;;  %v6179_v38 = vpop.f32.mrf.mxu3  ;;  %v7736_v46 = vadd.f32 %v13787_v44, %v7448_v1  ;;  %v7737_v7 = vadd.f32 %v13787_v44, %v7449_v42  ;;  %v6003_v31 = vpop.f32.mrf.mxu1 }
 0xa06   :  { %v6004_v36 = vadd.f32 %v6003_v31, %v5914_v34  ;;  %v13793_v34 = vld [vmem:[#allocation214_spill] sm:$0xff] }
 0xa07   :  { %v6180_v47 = vadd.f32 %v6179_v38, %v6091_v23  ;;  %v8376_v4 = vmax.f32 %v7736_v46, 0.0  ;;  %v8377_v10 = vmax.f32 %v7737_v7, 0.0  ;;  %v13792_v38 = vld [vmem:[#allocation212_spill] sm:$0xff] }
 0xa08   :  { %v13794_v46 = vld [vmem:[#allocation232_spill] sm:$0xff] }
 0xa09   :  { %v6982_v61 = vpack.c.bf16 %v6180_v47, %v13788_v33  ;;  %v12067_v17 = vpack.c.bf16 %v8376_v4, %v8368_v0  ;;  %v12069_v60 = vpack.c.bf16 %v8377_v10, %v8369_v8 }
 0xa0b   :  { %13789 = vst [vmem:[#allocation108_spill] sm:$0xff] %v12067_v17  ;;  %v7456_v1 = vunpack.c.l.bf16 %v6982_v61  ;;  %v7457_v51 = vunpack.c.h.bf16 %v6982_v61 }
 0xa0c   :  { %13790 = vst [vmem:[#allocation140_spill] sm:$0xff] %v12069_v60  ;;  %v6092_v56 = vpop.f32.mrf.mxu2  ;;  %v5917_v2 = vpop.f32.mrf.mxu0 }
 0xa0d   :  { %v6093_v19 = vadd.f32 %v6092_v56, %v6004_v36  ;;  %v6181_v54 = vpop.f32.mrf.mxu3  ;;  %v6006_v42 = vpop.f32.mrf.mxu1  ;;  %v7744_v7 = vadd.f32 %v13794_v46, %v7456_v1  ;;  %v7745_v31 = vadd.f32 %v13794_v46, %v7457_v51  ;;  %v13795_v36 = vld [vmem:[#allocation211_spill] sm:$0xff] }
 0xa0e   :  { %v6007_v24 = vadd.f32 %v6006_v42, %v5917_v2  ;;  %v13796_v1 = vld [vmem:[#allocation83_spill] sm:$0xff] }
 0xa0f   :  { %v6182_v44 = vadd.f32 %v6181_v54, %v6093_v19  ;;  %5956 = vmatmul.bf16.gmra.mxu0 %v13328_v57  ;;  %v8384_v33 = vmax.f32 %v7744_v7, 0.0  ;;  %v8385_v56 = vmax.f32 %v7745_v31, 0.0  ;;  %v13799_v31 = vld [vmem:[#allocation115_spill] sm:$0xff] }
 0xa10   :  { %6045 = vmatmul.bf16.gmra.mxu1 %v13792_v38 }
 0xa11   :  { %v6986_v23 = vpack.c.bf16 %v6182_v44, %v13791_v15  ;;  %6134 = vmatmul.bf16.gmra.mxu2 %v13489_v50 }
 0xa12   :  { %6223 = vmatmul.bf16.gmra.mxu3 %v13793_v34 }
 0xa13   :  { %v7464_v0 = vunpack.c.l.bf16 %v6986_v23  ;;  %v7465_v8 = vunpack.c.h.bf16 %v6986_v23 }
 0xa14   :  { %v6095_v61 = vpop.f32.mrf.mxu2  ;;  %v5919_v2 = vpop.f32.mrf.mxu0 }
 0xa15   :  { %v6096_v47 = vadd.f32 %v6095_v61, %v6007_v24  ;;  %v6184_v54 = vpop.f32.mrf.mxu3  ;;  %v7752_v4 = vadd.f32 %v13795_v36, %v7464_v0  ;;  %v7753_v44 = vadd.f32 %v13795_v36, %v7465_v8  ;;  %v6008_v10 = vpop.f32.mrf.mxu1 }
 0xa16   :  { %v6009_v42 = vadd.f32 %v6008_v10, %v5919_v2 }
 0xa17   :  { %v6185_v19 = vadd.f32 %v6184_v54, %v6096_v47  ;;  %v8392_v15 = vmax.f32 %v7752_v4, 0.0  ;;  %v8393_v60 = vmax.f32 %v7753_v44, 0.0  ;;  %v13800_v54 = vld [vmem:[#allocation218_spill] sm:$0xff] }
 0xa19   :  { %v6990_v17 = vpack.c.bf16 %v6185_v19, %v13796_v1  ;;  %v12081_v51 = vpack.c.bf16 %v8392_v15, %v8384_v33  ;;  %v12083_v23 = vpack.c.bf16 %v8393_v60, %v8385_v56  ;;  %v13801_v60 = vld [vmem:[#allocation233_spill] sm:$0xff] }
 0xa1a   :  { %v13802_v56 = vld [vmem:[#allocation217_spill] sm:$0xff] }
 0xa1b   :  { %13797 = vst [vmem:[#allocation182_spill] sm:$0xff] %v12081_v51  ;;  %v7472_v0 = vunpack.c.l.bf16 %v6990_v17  ;;  %v7473_v50 = vunpack.c.h.bf16 %v6990_v17 }
 0xa1c   :  { %13798 = vst [vmem:[#allocation72_spill] sm:$0xff] %v12083_v23  ;;  %v6097_v24 = vpop.f32.mrf.mxu2  ;;  %v5922_v34 = vpop.f32.mrf.mxu0 }
 0xa1d   :  { %v6098_v61 = vadd.f32 %v6097_v24, %v6009_v42  ;;  %v6186_v46 = vpop.f32.mrf.mxu3  ;;  %v6011_v8 = vpop.f32.mrf.mxu1  ;;  %v7760_v2 = vadd.f32 %v13801_v60, %v7472_v0  ;;  %v7761_v4 = vadd.f32 %v13801_v60, %v7473_v50 }
 0xa1e   :  { %v6012_v7 = vadd.f32 %v6011_v8, %v5922_v34 }
 0xa1f   :  { %v6187_v36 = vadd.f32 %v6186_v46, %v6098_v61  ;;  %5961 = vmatmul.bf16.gmra.mxu0 %v13338_v37  ;;  %v8400_v15 = vmax.f32 %v7760_v2, 0.0  ;;  %v8401_v1 = vmax.f32 %v7761_v4, 0.0  ;;  %v13805_v4 = vld [vmem:[#allocation150_spill] sm:$0xff] }
 0xa20   :  { %6050 = vmatmul.bf16.gmra.mxu1 %v13800_v54 }
 0xa21   :  { %v6994_v47 = vpack.c.bf16 %v6187_v36, %v13799_v31  ;;  %6139 = vmatmul.bf16.gmra.mxu2 %v13713_v32 }
 0xa22   :  { %6228 = vmatmul.bf16.gmra.mxu3 %v13714_v3 }
 0xa23   :  { %v7480_v44 = vunpack.c.l.bf16 %v6994_v47  ;;  %v7481_v10 = vunpack.c.h.bf16 %v6994_v47 }
 0xa24   :  { %v6100_v17 = vpop.f32.mrf.mxu2  ;;  %v5924_v34 = vpop.f32.mrf.mxu0 }
 0xa25   :  { %v6101_v33 = vadd.f32 %v6100_v17, %v6012_v7  ;;  %v6189_v46 = vpop.f32.mrf.mxu3  ;;  %v7768_v19 = vadd.f32 %v13802_v56, %v7480_v44  ;;  %v7769_v36 = vadd.f32 %v13802_v56, %v7481_v10  ;;  %v6013_v42 = vpop.f32.mrf.mxu1 }
 0xa26   :  { %v6014_v61 = vadd.f32 %v6013_v42, %v5924_v34 }
 0xa27   :  { %v6190_v24 = vadd.f32 %v6189_v46, %v6101_v33  ;;  %v8408_v8 = vmax.f32 %v7768_v19, 0.0  ;;  %v8409_v31 = vmax.f32 %v7769_v36, 0.0  ;;  %v13806_v46 = vld [vmem:[#allocation223_spill] sm:$0xff] }
 0xa29   :  { %v6998_v0 = vpack.c.bf16 %v6190_v24, %v11908_v63  ;;  %v12095_v50 = vpack.c.bf16 %v8408_v8, %v8400_v15  ;;  %v12097_v47 = vpack.c.bf16 %v8409_v31, %v8401_v1  ;;  %v13807_v63 = vld [vmem:[#allocation235_spill] sm:$0xff]  ;;  %v13808_v24 = vld [vmem:[#allocation222_spill] sm:$0xff] }
 0xa2b   :  { %13803 = vst [vmem:[#allocation104_spill] sm:$0xff] %v12095_v50  ;;  %v7488_v44 = vunpack.c.l.bf16 %v6998_v0  ;;  %v7489_v60 = vunpack.c.h.bf16 %v6998_v0 }
 0xa2c   :  { %13804 = vst [vmem:[#allocation136_spill] sm:$0xff] %v12097_v47  ;;  %v6102_v7 = vpop.f32.mrf.mxu2  ;;  %v5927_v51 = vpop.f32.mrf.mxu0 }
 0xa2d   :  { %v6103_v17 = vadd.f32 %v6102_v7, %v6014_v61  ;;  %v6191_v23 = vpop.f32.mrf.mxu3  ;;  %v6016_v10 = vpop.f32.mrf.mxu1  ;;  %v7776_v34 = vadd.f32 %v13807_v63, %v7488_v44  ;;  %v7777_v19 = vadd.f32 %v13807_v63, %v7489_v60 }
 0xa2e   :  { %v6017_v2 = vadd.f32 %v6016_v10, %v5927_v51 }
 0xa2f   :  { %v6192_v56 = vadd.f32 %v6191_v23, %v6103_v17  ;;  %5966 = vmatmul.bf16.gmra.mxu0 %v13347_v62  ;;  %v8416_v31 = vmax.f32 %v7776_v34, 0.0  ;;  %v8417_v0 = vmax.f32 %v7777_v19, 0.0  ;;  %v13811_v19 = vld [vmem:[#allocation42_spill] sm:$0xff] }
 0xa30   :  { %6055 = vmatmul.bf16.gmra.mxu1 %v13806_v46 }
 0xa31   :  { %v7002_v33 = vpack.c.bf16 %v6192_v56, %v13805_v4  ;;  %6144 = vmatmul.bf16.gmra.mxu2 %v13496_v53 }
 0xa32   :  { %6233 = vmatmul.bf16.gmra.mxu3 %v13497_v55 }
 0xa33   :  { %v7496_v36 = vunpack.c.l.bf16 %v7002_v33  ;;  %v7497_v42 = vunpack.c.h.bf16 %v7002_v33 }
 0xa34   :  { %v6105_v15 = vpop.f32.mrf.mxu2  ;;  %v5929_v51 = vpop.f32.mrf.mxu0 }
 0xa35   :  { %v6106_v1 = vadd.f32 %v6105_v15, %v6017_v2  ;;  %v6194_v23 = vpop.f32.mrf.mxu3  ;;  %v7784_v61 = vadd.f32 %v13808_v24, %v7496_v36  ;;  %v7785_v56 = vadd.f32 %v13808_v24, %v7497_v42  ;;  %v6018_v8 = vpop.f32.mrf.mxu1 }
 0xa36   :  { %v6019_v17 = vadd.f32 %v6018_v8, %v5929_v51 }
 0xa37   :  { %v6195_v7 = vadd.f32 %v6194_v23, %v6106_v1  ;;  %v8424_v10 = vmax.f32 %v7784_v61, 0.0  ;;  %v8425_v4 = vmax.f32 %v7785_v56, 0.0  ;;  %v13812_v23 = vld [vmem:[#allocation228_spill] sm:$0xff] }
 0xa39   :  { %v7006_v44 = vpack.c.bf16 %v6195_v7, %v11916_v22  ;;  %v12109_v60 = vpack.c.bf16 %v8424_v10, %v8416_v31  ;;  %v12111_v33 = vpack.c.bf16 %v8425_v4, %v8417_v0  ;;  %v13813_v22 = vld [vmem:[#allocation236_spill] sm:$0xff]  ;;  %v13814_v7 = vld [vmem:[#allocation237_spill] sm:$0xff] }
 0xa3b   :  { %13809 = vst [vmem:[#allocation174_spill] sm:$0xff] %v12109_v60  ;;  %v7504_v36 = vunpack.c.l.bf16 %v7006_v44  ;;  %v7505_v63 = vunpack.c.h.bf16 %v7006_v44 }
 0xa3c   :  { %13810 = vst [vmem:[#allocation68_spill] sm:$0xff] %v12111_v33  ;;  %v6107_v2 = vpop.f32.mrf.mxu2  ;;  %v5932_v50 = vpop.f32.mrf.mxu0 }
 0xa3d   :  { %v6108_v15 = vadd.f32 %v6107_v2, %v6019_v17  ;;  %v6196_v47 = vpop.f32.mrf.mxu3  ;;  %v6021_v42 = vpop.f32.mrf.mxu1  ;;  %v7792_v51 = vadd.f32 %v13813_v22, %v7504_v36  ;;  %v7793_v61 = vadd.f32 %v13813_v22, %v7505_v63 }
 0xa3e   :  { %v6022_v34 = vadd.f32 %v6021_v42, %v5932_v50 }
 0xa3f   :  { %v6197_v24 = vadd.f32 %v6196_v47, %v6108_v15  ;;  %5971 = vmatmul.bf16.gmra.mxu0 %v10854_v6  ;;  %v8432_v4 = vmax.f32 %v7792_v51, 0.0  ;;  %v8433_v44 = vmax.f32 %v7793_v61, 0.0  ;;  %v13817_v61 = vld [vmem:[#allocation37_spill] sm:$0xff] }
 0xa40   :  { %6060 = vmatmul.bf16.gmra.mxu1 %v13812_v23 }
 0xa41   :  { %v7010_v1 = vpack.c.bf16 %v6197_v24, %v13811_v19  ;;  %6149 = vmatmul.bf16.gmra.mxu2 %v10858_v27 }
 0xa42   :  { %6238 = vmatmul.bf16.gmra.mxu3 %v10860_v5 }
 0xa43   :  { %v7512_v56 = vunpack.c.l.bf16 %v7010_v1  ;;  %v7513_v8 = vunpack.c.h.bf16 %v7010_v1 }
 0xa44   :  { %v6110_v31 = vpop.f32.mrf.mxu2  ;;  %v5934_v50 = vpop.f32.mrf.mxu0 }
 0xa45   :  { %v6111_v0 = vadd.f32 %v6110_v31, %v6022_v34  ;;  %v6199_v47 = vpop.f32.mrf.mxu3  ;;  %v7800_v17 = vadd.f32 %v13814_v7, %v7512_v56  ;;  %v7801_v24 = vadd.f32 %v13814_v7, %v7513_v8  ;;  %v6023_v10 = vpop.f32.mrf.mxu1 }
 0xa46   :  { %v6024_v15 = vadd.f32 %v6023_v10, %v5934_v50  ;;  %v13820_v50 = vld [vmem:[#allocation240_spill] sm:$0xff]  ;;  %v13821_v10 = vld [vmem:[#allocation146_spill] sm:$0xff] }
 0xa47   :  { %v6200_v2 = vadd.f32 %v6199_v47, %v6111_v0  ;;  %v8440_v42 = vmax.f32 %v7800_v17, 0.0  ;;  %v8441_v19 = vmax.f32 %v7801_v24, 0.0  ;;  %v13818_v47 = vld [vmem:[#allocation144_spill] sm:$0xff] }
 0xa49   :  { %v7014_v36 = vpack.c.bf16 %v6200_v2, %v11924_v26  ;;  %v12123_v63 = vpack.c.bf16 %v8440_v42, %v8432_v4  ;;  %v12125_v1 = vpack.c.bf16 %v8441_v19, %v8433_v44  ;;  %v13819_v26 = vld [vmem:[#allocation145_spill] sm:$0xff]  ;;  %v13822_v4 = vld [vmem:[#allocation78_spill] sm:$0xff] }
 0xa4a   :  { %v13826_v42 = vld [vmem:[#allocation241_spill] sm:$0xff] }
 0xa4b   :  { %13815 = vst [vmem:[#allocation100_spill] sm:$0xff] %v12123_v63  ;;  %v7520_v56 = vunpack.c.l.bf16 %v7014_v36  ;;  %v7521_v22 = vunpack.c.h.bf16 %v7014_v36 }
 0xa4c   :  { %13816 = vst [vmem:[#allocation132_spill] sm:$0xff] %v12125_v1  ;;  %v6112_v34 = vpop.f32.mrf.mxu2  ;;  %v5937_v60 = vpop.f32.mrf.mxu0 }
 0xa4d   :  { %v6113_v31 = vadd.f32 %v6112_v34, %v6024_v15  ;;  %v6201_v33 = vpop.f32.mrf.mxu3  ;;  %v6026_v8 = vpop.f32.mrf.mxu1  ;;  %v7808_v17 = vadd.f32 %v13820_v50, %v7520_v56  ;;  %v7809_v24 = vadd.f32 %v13820_v50, %v7521_v22  ;;  %v13825_v15 = vld [vmem:[#allocation28_spill] sm:$0xff]  ;;  %v13830_v50 = vld [vmem:[#allocation82_spill] sm:$0xff] }
 0xa4e   :  { %v6027_v51 = vadd.f32 %v6026_v8, %v5937_v60  ;;  %v13824_v60 = vld [vmem:[#allocation110_spill] sm:$0xff] }
 0xa4f   :  { %v6202_v7 = vadd.f32 %v6201_v33, %v6113_v31  ;;  %6252 = vmatmul.bf16.vlgmr.msra.gmra.mxu0 %v10497_v59  ;;  %v13823_v33 = vld [vmem:[#allocation15_spill] sm:$0xff]  ;;  %v8448_v56 = vmax.f32 %v7808_v17, 0.0  ;;  %v8449_v8 = vmax.f32 %v7809_v24, 0.0  ;;  %v13833_v17 = vld [vmem:[#allocation226_spill] sm:$0xff] }
 0xa50   :  { %6341 = vmatmul.bf16.vlgmr.msra.gmra.mxu1 %v13818_v47  ;;  %8724 = vmatpush.bf16.msra.mxu0 %v13822_v4  ;;  %v13834_v24 = vld [vmem:[#allocation54_spill] sm:$0xff] }
 0xa51   :  { %v7018_v0 = vpack.c.bf16 %v6202_v7, %v13817_v61  ;;  %6430 = vmatmul.bf16.vlgmr.msra.gmra.mxu2 %v13819_v26  ;;  %8737 = vmatpush.bf16.msra.mxu1 %v13823_v33  ;;  %v13827_v61 = vld [vmem:[#allocation238_spill] sm:$0xff] }
 0xa52   :  { %6519 = vmatmul.bf16.vlgmr.msra.gmra.mxu3 %v13821_v10  ;;  %8750 = vmatpush.bf16.msra.mxu2 %v13824_v60  ;;  %v13828_v33 = vld [vmem:[#allocation50_spill] sm:$0xff]  ;;  %v13829_v60 = vld [vmem:[#allocation239_spill] sm:$0xff] }
 0xa53   :  { %v7528_v44 = vunpack.c.l.bf16 %v7018_v0  ;;  %v7529_v2 = vunpack.c.h.bf16 %v7018_v0  ;;  %8763 = vmatpush.bf16.msra.mxu3 %v13825_v15 }
 0xa54   :  { %v6115_v7 = vpop.f32.mrf.mxu2  ;;  %v5939_v22 = vpop.f32.mrf.mxu0  ;;  %8725 = vmatpush.bf16.msra.mxu0 %v13827_v61 }
 0xa55   :  { %v7816_v19 = vadd.f32 %v13826_v42, %v7528_v44  ;;  %v7817_v36 = vadd.f32 %v13826_v42, %v7529_v2  ;;  %v6116_v34 = vadd.f32 %v6115_v7, %v6027_v51  ;;  %v6204_v31 = vpop.f32.mrf.mxu3  ;;  %v6028_v4 = vpop.f32.mrf.mxu1  ;;  %8738 = vmatpush.bf16.msra.mxu1 %v13828_v33  ;;  %v13835_v7 = vld [vmem:[#allocation227_spill] sm:$0xff]  ;;  %v13840_v33 = vld [vmem:[#allocation90_spill] sm:$0xff] }
 0xa56   :  { %8751 = vmatpush.bf16.msra.mxu2 %v13829_v60  ;;  %v6029_v63 = vadd.f32 %v6028_v4, %v5939_v22  ;;  %v13837_v4 = vld [vmem:[#allocation221_spill] sm:$0xff] }
 0xa57   :  { %v8456_v0 = vmax.f32 %v7816_v19, 0.0  ;;  %v8457_v1 = vmax.f32 %v7817_v36, 0.0  ;;  %v6205_v15 = vadd.f32 %v6204_v31, %v6116_v34  ;;  %8764 = vmatpush.bf16.msra.mxu3 %v13830_v50  ;;  %v13836_v19 = vld [vmem:[#allocation86_spill] sm:$0xff] }
 0xa58   :  { %8726 = vmatpush.bf16.msra.mxu0 %v13833_v17  ;;  %v13844_v17 = vld [vmem:[#allocation142_spill] sm:$0xff] }
 0xa59   :  { %v7022_v44 = vpack.c.bf16 %v6205_v15, %v11939_v58  ;;  %v12145_v51 = vpack.c.bf16 %v8456_v0, %v8448_v56  ;;  %v12147_v2 = vpack.c.bf16 %v8457_v1, %v8449_v8  ;;  %8739 = vmatpush.bf16.msra.mxu1 %v13834_v24  ;;  %v13838_v56 = vld [vmem:[#allocation58_spill] sm:$0xff]  ;;  %v13842_v15 = vld [vmem:[#allocation20_spill] sm:$0xff] }
 0xa5a   :  { %8752 = vmatpush.bf16.msra.mxu2 %v13835_v7  ;;  %v13839_v1 = vld [vmem:[#allocation234_spill] sm:$0xff] }
 0xa5b   :  { %13831 = vst [vmem:[#allocation166_spill] sm:$0xff] %v12145_v51  ;;  %8765 = vmatpush.bf16.msra.mxu3 %v13836_v19  ;;  %v7536_v22 = vunpack.c.l.bf16 %v7022_v44  ;;  %v7537_v50 = vunpack.c.h.bf16 %v7022_v44  ;;  %v13843_v44 = vld [vmem:[#allocation215_spill] sm:$0xff] }
 0xa5c   :  { %13832 = vst [vmem:[#allocation64_spill] sm:$0xff] %v12147_v2  ;;  %v6117_v36 = vpop.f32.mrf.mxu2  ;;  %v5942_v31 = vpop.f32.mrf.mxu0  ;;  %8727 = vmatpush.bf16.msra.mxu0 %v13837_v4 }
 0xa5d   :  { %v6118_v61 = vadd.f32 %v6117_v36, %v6029_v63  ;;  %v6206_v34 = vpop.f32.mrf.mxu3  ;;  %v6031_v58 = vpop.f32.mrf.mxu1  ;;  %8740 = vmatpush.bf16.msra.mxu1 %v13838_v56  ;;  %v13841_v63 = vld [vmem:[#allocation151_spill] sm:$0xff]  ;;  %v7824_v24 = vadd.f32 %v13844_v17, %v7536_v22  ;;  %v7825_v7 = vadd.f32 %v13844_v17, %v7537_v50 }
 0xa5e   :  { %8753 = vmatpush.bf16.msra.mxu2 %v13839_v1  ;;  %v6032_v0 = vadd.f32 %v6031_v58, %v5942_v31  ;;  %v13847_v31 = vld [vmem:[#allocation94_spill] sm:$0xff]  ;;  %v13848_v1 = vld [vmem:[#allocation184_spill] sm:$0xff] }
 0xa5f   :  { %v6207_v8 = vadd.f32 %v6206_v34, %v6118_v61  ;;  %8766 = vmatpush.bf16.msra.mxu3 %v13840_v33  ;;  %6257 = vmatmul.bf16.gmra.mxu0 %v10529_v11  ;;  %v13845_v61 = vld [vmem:[#allocation62_spill] sm:$0xff]  ;;  %v13846_v34 = vld [vmem:[#allocation216_spill] sm:$0xff]  ;;  %v8464_v50 = vmax.f32 %v7824_v24, 0.0  ;;  %v8465_v17 = vmax.f32 %v7825_v7, 0.0 }
 0xa60   :  { %6346 = vmatmul.bf16.gmra.mxu1 %v10531_v20  ;;  %8728 = vmatpush.bf16.msra.mxu0 %v13843_v44  ;;  %v13849_v44 = vld [vmem:[#allocation209_spill] sm:$0xff]  ;;  %v13856_v24 = vld [vmem:[#allocation70_spill] sm:$0xff]  ;;  %v13857_v7 = vld [vmem:[#allocation204_spill] sm:$0xff] }
 0xa61   :  { %v7026_v60 = vpack.c.bf16 %v6207_v8, %v11949_v18  ;;  %6435 = vmatmul.bf16.gmra.mxu2 %v13841_v63  ;;  %8741 = vmatpush.bf16.msra.mxu1 %v13845_v61  ;;  %v13851_v61 = vld [vmem:[#allocation210_spill] sm:$0xff] }
 0xa62   :  { %6524 = vmatmul.bf16.gmra.mxu3 %v13842_v15  ;;  %8754 = vmatpush.bf16.msra.mxu2 %v13846_v34 }
 0xa63   :  { %v7544_v19 = vunpack.c.l.bf16 %v7026_v60  ;;  %v7545_v36 = vunpack.c.h.bf16 %v7026_v60  ;;  %8767 = vmatpush.bf16.msra.mxu3 %v13847_v31  ;;  %v13850_v60 = vld [vmem:[#allocation66_spill] sm:$0xff] }
 0xa64   :  { %v6120_v18 = vpop.f32.mrf.mxu2  ;;  %v5944_v56 = vpop.f32.mrf.mxu0  ;;  %8729 = vmatpush.bf16.msra.mxu0 %v13849_v44  ;;  %v13855_v44 = vld [vmem:[#allocation203_spill] sm:$0xff] }
 0xa65   :  { %v6121_v4 = vadd.f32 %v6120_v18, %v6032_v0  ;;  %v6209_v58 = vpop.f32.mrf.mxu3  ;;  %v7832_v8 = vadd.f32 %v13848_v1, %v7544_v19  ;;  %v7833_v33 = vadd.f32 %v13848_v1, %v7545_v36  ;;  %v6033_v22 = vpop.f32.mrf.mxu1  ;;  %8742 = vmatpush.bf16.msra.mxu1 %v13850_v60  ;;  %v13852_v0 = vld [vmem:[#allocation98_spill] sm:$0xff] }
 0xa66   :  { %8755 = vmatpush.bf16.msra.mxu2 %v13851_v61  ;;  %v6034_v42 = vadd.f32 %v6033_v22, %v5944_v56  ;;  %v13858_v60 = vld [vmem:[#allocation102_spill] sm:$0xff] }
 0xa67   :  { %v6210_v34 = vadd.f32 %v6209_v58, %v6121_v4  ;;  %v8472_v31 = vmax.f32 %v7832_v8, 0.0  ;;  %v8473_v2 = vmax.f32 %v7833_v33, 0.0  ;;  %8768 = vmatpush.bf16.msra.mxu3 %v13852_v0  ;;  %v13859_v61 = vld [vmem:[#allocation198_spill] sm:$0xff] }
 0xa68   :  { %8730 = vmatpush.bf16.msra.mxu0 %v13855_v44 }
 0xa69   :  { %v7030_v18 = vpack.c.bf16 %v6210_v34, %v11963_v52  ;;  %v12175_v19 = vpack.c.bf16 %v8472_v31, %v8464_v50  ;;  %v12177_v36 = vpack.c.bf16 %v8473_v2, %v8465_v17  ;;  %8743 = vmatpush.bf16.msra.mxu1 %v13856_v24  ;;  %v13860_v50 = vld [vmem:[#allocation74_spill] sm:$0xff]  ;;  %v13861_v2 = vld [vmem:[#allocation229_spill] sm:$0xff] }
 0xa6a   :  { %8756 = vmatpush.bf16.msra.mxu2 %v13857_v7  ;;  %v13862_v31 = vld [vmem:[#allocation106_spill] sm:$0xff] }
 0xa6b   :  { %13853 = vst [vmem:[#allocation96_spill] sm:$0xff] %v12175_v19  ;;  %8769 = vmatpush.bf16.msra.mxu3 %v13858_v60  ;;  %v7552_v33 = vunpack.c.l.bf16 %v7030_v18  ;;  %v7553_v22 = vunpack.c.h.bf16 %v7030_v18 }
 0xa6c   :  { %13854 = vst [vmem:[#allocation128_spill] sm:$0xff] %v12177_v36  ;;  %v6122_v4 = vpop.f32.mrf.mxu2  ;;  %v5947_v8 = vpop.f32.mrf.mxu0  ;;  %8731 = vmatpush.bf16.msra.mxu0 %v13859_v61 }
 0xa6d   :  { %v6123_v58 = vadd.f32 %v6122_v4, %v6034_v42  ;;  %v6211_v56 = vpop.f32.mrf.mxu3  ;;  %v6036_v52 = vpop.f32.mrf.mxu1  ;;  %8744 = vmatpush.bf16.msra.mxu1 %v13860_v50  ;;  %v13863_v42 = vld [vmem:[#allocation138_spill] sm:$0xff] }
 0xa6e   :  { %8757 = vmatpush.bf16.msra.mxu2 %v13861_v2  ;;  %v6037_v34 = vadd.f32 %v6036_v52, %v5947_v8  ;;  %v7840_v18 = vadd.f32 %v13863_v42, %v7552_v33  ;;  %v7841_v44 = vadd.f32 %v13863_v42, %v7553_v22  ;;  %v13864_v8 = vld [vmem:[#allocation176_spill] sm:$0xff] }
 0xa6f   :  { %v6212_v17 = vadd.f32 %v6211_v56, %v6123_v58  ;;  %8770 = vmatpush.bf16.msra.mxu3 %v13862_v31  ;;  %6262 = vmatmul.bf16.gmra.mxu0 %v10565_v45 }
 0xa70   :  { %6351 = vmatmul.bf16.gmra.mxu1 %v10567_v43  ;;  %v8480_v50 = vmax.f32 %v7840_v18, 0.0  ;;  %v8481_v2 = vmax.f32 %v7841_v44, 0.0  ;;  %v13867_v44 = vld [vmem:[#allocation27_spill] sm:$0xff] }
 0xa71   :  { %v7034_v0 = vpack.c.bf16 %v6212_v17, %v11973_v48  ;;  %6440 = vmatmul.bf16.gmra.mxu2 %v10569_v49 }
 0xa72   :  { %6529 = vmatmul.bf16.gmra.mxu3 %v10572_v14 }
 0xa73   :  { %v7560_v24 = vunpack.c.l.bf16 %v7034_v0  ;;  %v7561_v7 = vunpack.c.h.bf16 %v7034_v0 }
 0xa74   :  { %v6125_v60 = vpop.f32.mrf.mxu2  ;;  %v5949_v56 = vpop.f32.mrf.mxu0 }
 0xa75   :  { %v6126_v4 = vadd.f32 %v6125_v60, %v6037_v34  ;;  %v6214_v58 = vpop.f32.mrf.mxu3  ;;  %v7848_v61 = vadd.f32 %v13864_v8, %v7560_v24  ;;  %v7849_v48 = vadd.f32 %v13864_v8, %v7561_v7  ;;  %v6038_v52 = vpop.f32.mrf.mxu1 }
 0xa76   :  { %v6039_v31 = vadd.f32 %v6038_v52, %v5949_v56 }
 0xa77   :  { %v6215_v17 = vadd.f32 %v6214_v58, %v6126_v4  ;;  %v8488_v36 = vmax.f32 %v7848_v61, 0.0  ;;  %v8489_v19 = vmax.f32 %v7849_v48, 0.0  ;;  %v13868_v58 = vld [vmem:[#allocation14_spill] sm:$0xff] }
 0xa79   :  { %v7038_v33 = vpack.c.bf16 %v6215_v17, %v11980_v30  ;;  %v12197_v22 = vpack.c.bf16 %v8488_v36, %v8480_v50  ;;  %v12199_v0 = vpack.c.bf16 %v8489_v19, %v8481_v2  ;;  %v13869_v30 = vld [vmem:[#allocation134_spill] sm:$0xff]  ;;  %v13870_v50 = vld [vmem:[#allocation168_spill] sm:$0xff] }
 0xa7b   :  { %13865 = vst [vmem:[#allocation158_spill] sm:$0xff] %v12197_v22  ;;  %v7568_v24 = vunpack.c.l.bf16 %v7038_v33  ;;  %v7569_v51 = vunpack.c.h.bf16 %v7038_v33 }
 0xa7c   :  { %13866 = vst [vmem:[#allocation60_spill] sm:$0xff] %v12199_v0  ;;  %v6127_v34 = vpop.f32.mrf.mxu2  ;;  %v5952_v1 = vpop.f32.mrf.mxu0 }
 0xa7d   :  { %v6128_v60 = vadd.f32 %v6127_v34, %v6039_v31  ;;  %v6216_v42 = vpop.f32.mrf.mxu3  ;;  %v6041_v7 = vpop.f32.mrf.mxu1  ;;  %v7856_v19 = vadd.f32 %v13869_v30, %v7568_v24  ;;  %v7857_v36 = vadd.f32 %v13869_v30, %v7569_v51 }
 0xa7e   :  { %v6042_v18 = vadd.f32 %v6041_v7, %v5952_v1 }
 0xa7f   :  { %v6217_v8 = vadd.f32 %v6216_v42, %v6128_v60  ;;  %6267 = vmatmul.bf16.gmra.mxu0 %v13407_v41  ;;  %v8496_v31 = vmax.f32 %v7856_v19, 0.0  ;;  %v8497_v33 = vmax.f32 %v7857_v36, 0.0  ;;  %v13873_v36 = vld [vmem:[#allocation40_spill] sm:$0xff] }
 0xa80   :  { %6356 = vmatmul.bf16.gmra.mxu1 %v13868_v58 }
 0xa81   :  { %v7042_v4 = vpack.c.bf16 %v6217_v8, %v13867_v44  ;;  %6445 = vmatmul.bf16.gmra.mxu2 %v13411_v12 }
 0xa82   :  { %6534 = vmatmul.bf16.gmra.mxu3 %v13412_v29 }
 0xa83   :  { %v7576_v56 = vunpack.c.l.bf16 %v7042_v4  ;;  %v7577_v61 = vunpack.c.h.bf16 %v7042_v4 }
 0xa84   :  { %v6130_v48 = vpop.f32.mrf.mxu2  ;;  %v5954_v1 = vpop.f32.mrf.mxu0 }
 0xa85   :  { %v6131_v52 = vadd.f32 %v6130_v48, %v6042_v18  ;;  %v6219_v42 = vpop.f32.mrf.mxu3  ;;  %v7864_v2 = vadd.f32 %v13870_v50, %v7576_v56  ;;  %v7865_v8 = vadd.f32 %v13870_v50, %v7577_v61  ;;  %v6043_v17 = vpop.f32.mrf.mxu1 }
 0xa86   :  { %v6044_v60 = vadd.f32 %v6043_v17, %v5954_v1  ;;  %v13876_v1 = vld [vmem:[#allocation157_spill] sm:$0xff] }
 0xa87   :  { %v6220_v34 = vadd.f32 %v6219_v42, %v6131_v52  ;;  %v8504_v7 = vmax.f32 %v7864_v2, 0.0  ;;  %v8505_v44 = vmax.f32 %v7865_v8, 0.0  ;;  %v13874_v42 = vld [vmem:[#allocation155_spill] sm:$0xff]  ;;  %v13877_v2 = vld [vmem:[#allocation130_spill] sm:$0xff] }
 0xa89   :  { %v7046_v24 = vpack.c.bf16 %v6220_v34, %v11988_v9  ;;  %v12211_v51 = vpack.c.bf16 %v8504_v7, %v8496_v31  ;;  %v12213_v4 = vpack.c.bf16 %v8505_v44, %v8497_v33  ;;  %v13875_v9 = vld [vmem:[#allocation156_spill] sm:$0xff] }
 0xa8a   :  { %v13878_v7 = vld [vmem:[#allocation160_spill] sm:$0xff] }
 0xa8b   :  { %13871 = vst [vmem:[#allocation92_spill] sm:$0xff] %v12211_v51  ;;  %v7584_v56 = vunpack.c.l.bf16 %v7046_v24  ;;  %v7585_v22 = vunpack.c.h.bf16 %v7046_v24 }
 0xa8c   :  { %13872 = vst [vmem:[#allocation124_spill] sm:$0xff] %v12213_v4  ;;  %v6132_v18 = vpop.f32.mrf.mxu2  ;;  %v5957_v0 = vpop.f32.mrf.mxu0 }
 0xa8d   :  { %v6133_v48 = vadd.f32 %v6132_v18, %v6044_v60  ;;  %v6221_v30 = vpop.f32.mrf.mxu3  ;;  %v6046_v61 = vpop.f32.mrf.mxu1  ;;  %v7872_v8 = vadd.f32 %v13877_v2, %v7584_v56  ;;  %v7873_v17 = vadd.f32 %v13877_v2, %v7585_v22  ;;  %v13879_v56 = vld [vmem:[#allocation36_spill] sm:$0xff] }
 0xa8e   :  { %v6047_v19 = vadd.f32 %v6046_v61, %v5957_v0 }
 0xa8f   :  { %v6222_v50 = vadd.f32 %v6221_v30, %v6133_v48  ;;  %6272 = vmatmul.bf16.gmra.mxu0 %v13419_v40  ;;  %v8512_v18 = vmax.f32 %v7872_v8, 0.0  ;;  %v8513_v48 = vmax.f32 %v7873_v17, 0.0  ;;  %v13882_v17 = vld [vmem:[#allocation162_spill] sm:$0xff] }
 0xa90   :  { %6361 = vmatmul.bf16.gmra.mxu1 %v13874_v42 }
 0xa91   :  { %v7050_v52 = vpack.c.bf16 %v6222_v50, %v13873_v36  ;;  %6450 = vmatmul.bf16.gmra.mxu2 %v13875_v9 }
 0xa92   :  { %6539 = vmatmul.bf16.gmra.mxu3 %v13876_v1 }
 0xa93   :  { %v7592_v31 = vunpack.c.l.bf16 %v7050_v52  ;;  %v7593_v33 = vunpack.c.h.bf16 %v7050_v52 }
 0xa94   :  { %v6135_v34 = vpop.f32.mrf.mxu2  ;;  %v5959_v0 = vpop.f32.mrf.mxu0 }
 0xa95   :  { %v6136_v60 = vadd.f32 %v6135_v34, %v6047_v19  ;;  %v6224_v30 = vpop.f32.mrf.mxu3  ;;  %v7880_v44 = vadd.f32 %v13878_v7, %v7592_v31  ;;  %v7881_v50 = vadd.f32 %v13878_v7, %v7593_v33  ;;  %v6048_v24 = vpop.f32.mrf.mxu1 }
 0xa96   :  { %v6049_v36 = vadd.f32 %v6048_v24, %v5959_v0  ;;  %v13884_v0 = vld [vmem:[#allocation163_spill] sm:$0xff] }
 0xa97   :  { %v6225_v61 = vadd.f32 %v6224_v30, %v6136_v60  ;;  %v8520_v4 = vmax.f32 %v7880_v44, 0.0  ;;  %v8521_v51 = vmax.f32 %v7881_v50, 0.0  ;;  %v13883_v60 = vld [vmem:[#allocation39_spill] sm:$0xff]  ;;  %v13885_v44 = vld [vmem:[#allocation164_spill] sm:$0xff] }
 0xa99   :  { %v7054_v1 = vpack.c.bf16 %v6225_v61, %v13879_v56  ;;  %v12225_v22 = vpack.c.bf16 %v8520_v4, %v8512_v18  ;;  %v12227_v52 = vpack.c.bf16 %v8521_v51, %v8513_v48  ;;  %v13886_v4 = vld [vmem:[#allocation165_spill] sm:$0xff]  ;;  %v13887_v51 = vld [vmem:[#allocation126_spill] sm:$0xff] }
 0xa9b   :  { %13880 = vst [vmem:[#allocation12_spill] sm:$0xff] %v12225_v22  ;;  %v7600_v31 = vunpack.c.l.bf16 %v7054_v1  ;;  %v7601_v42 = vunpack.c.h.bf16 %v7054_v1 }
 0xa9c   :  { %13881 = vst [vmem:[#allocation56_spill] sm:$0xff] %v12227_v52  ;;  %v6137_v19 = vpop.f32.mrf.mxu2  ;;  %v5962_v9 = vpop.f32.mrf.mxu0 }
 0xa9d   :  { %v6138_v34 = vadd.f32 %v6137_v19, %v6049_v36  ;;  %v6226_v2 = vpop.f32.mrf.mxu3  ;;  %v6051_v33 = vpop.f32.mrf.mxu1  ;;  %v7888_v50 = vadd.f32 %v13887_v51, %v7600_v31  ;;  %v7889_v24 = vadd.f32 %v13887_v51, %v7601_v42  ;;  %v13888_v36 = vld [vmem:[#allocation38_spill] sm:$0xff] }
 0xa9e   :  { %v6052_v8 = vadd.f32 %v6051_v33, %v5962_v9  ;;  %v13889_v31 = vld [vmem:[#allocation30_spill] sm:$0xff] }
 0xa9f   :  { %v6227_v7 = vadd.f32 %v6226_v2, %v6138_v34  ;;  %6277 = vmatmul.bf16.gmra.mxu0 %v13882_v17  ;;  %v8528_v34 = vmax.f32 %v7888_v50, 0.0  ;;  %v8529_v33 = vmax.f32 %v7889_v24, 0.0  ;;  %v13892_v24 = vld [vmem:[#allocation170_spill] sm:$0xff] }
 0xaa0   :  { %6366 = vmatmul.bf16.gmra.mxu1 %v13884_v0 }
 0xaa1   :  { %v7058_v30 = vpack.c.bf16 %v6227_v7, %v13883_v60  ;;  %6455 = vmatmul.bf16.gmra.mxu2 %v13885_v44 }
 0xaa2   :  { %6544 = vmatmul.bf16.gmra.mxu3 %v13886_v4 }
 0xaa3   :  { %v7608_v18 = vunpack.c.l.bf16 %v7058_v30  ;;  %v7609_v48 = vunpack.c.h.bf16 %v7058_v30 }
 0xaa4   :  { %v6140_v1 = vpop.f32.mrf.mxu2  ;;  %v5964_v9 = vpop.f32.mrf.mxu0 }
 0xaa5   :  { %v6141_v61 = vadd.f32 %v6140_v1, %v6052_v8  ;;  %v6229_v2 = vpop.f32.mrf.mxu3  ;;  %v7896_v56 = vadd.f32 %v13888_v36, %v7608_v18  ;;  %v7897_v7 = vadd.f32 %v13888_v36, %v7609_v48  ;;  %v6053_v19 = vpop.f32.mrf.mxu1 }
 0xaa6   :  { %v6054_v52 = vadd.f32 %v6053_v19, %v5964_v9  ;;  %v13894_v9 = vld [vmem:[#allocation171_spill] sm:$0xff] }
 0xaa7   :  { %v6230_v60 = vadd.f32 %v6229_v2, %v6141_v61  ;;  %v8536_v22 = vmax.f32 %v7896_v56, 0.0  ;;  %v8537_v4 = vmax.f32 %v7897_v7, 0.0  ;;  %v13893_v61 = vld [vmem:[#allocation154_spill] sm:$0xff]  ;;  %v13895_v56 = vld [vmem:[#allocation172_spill] sm:$0xff] }
 0xaa9   :  { %v7062_v44 = vpack.c.bf16 %v6230_v60, %v13889_v31  ;;  %v12239_v42 = vpack.c.bf16 %v8536_v22, %v8528_v34  ;;  %v12241_v30 = vpack.c.bf16 %v8537_v4, %v8529_v33  ;;  %v13896_v22 = vld [vmem:[#allocation173_spill] sm:$0xff]  ;;  %v13897_v4 = vld [vmem:[#allocation122_spill] sm:$0xff]  ;;  %v13898_v60 = vld [vmem:[#allocation16_spill] sm:$0xff] }
 0xaab   :  { %13890 = vst [vmem:[#allocation88_spill] sm:$0xff] %v12239_v42  ;;  %v7616_v18 = vunpack.c.l.bf16 %v7062_v44  ;;  %v7617_v17 = vunpack.c.h.bf16 %v7062_v44 }
 0xaac   :  { %13891 = vst [vmem:[#allocation120_spill] sm:$0xff] %v12241_v30  ;;  %v6142_v8 = vpop.f32.mrf.mxu2  ;;  %v5967_v0 = vpop.f32.mrf.mxu0 }
 0xaad   :  { %v6143_v1 = vadd.f32 %v6142_v8, %v6054_v52  ;;  %v6231_v51 = vpop.f32.mrf.mxu3  ;;  %v6056_v48 = vpop.f32.mrf.mxu1  ;;  %v7904_v7 = vadd.f32 %v13897_v4, %v7616_v18  ;;  %v7905_v52 = vadd.f32 %v13897_v4, %v7617_v17  ;;  %v13899_v18 = vld [vmem:[#allocation49_spill] sm:$0xff] }
 0xaae   :  { %v6057_v50 = vadd.f32 %v6056_v48, %v5967_v0 }
 0xaaf   :  { %v6232_v36 = vadd.f32 %v6231_v51, %v6143_v1  ;;  %6282 = vmatmul.bf16.gmra.mxu0 %v13892_v24  ;;  %v8544_v1 = vmax.f32 %v7904_v7, 0.0  ;;  %v8545_v48 = vmax.f32 %v7905_v52, 0.0  ;;  %v13902_v52 = vld [vmem:[#allocation35_spill] sm:$0xff] }
 0xab0   :  { %6371 = vmatmul.bf16.gmra.mxu1 %v13894_v9 }
 0xab1   :  { %v7066_v2 = vpack.c.bf16 %v6232_v36, %v13893_v61  ;;  %6460 = vmatmul.bf16.gmra.mxu2 %v13895_v56 }
 0xab2   :  { %6549 = vmatmul.bf16.gmra.mxu3 %v13896_v22 }
 0xab3   :  { %v7624_v19 = vunpack.c.l.bf16 %v7066_v2  ;;  %v7625_v34 = vunpack.c.h.bf16 %v7066_v2 }
 0xab4   :  { %v6145_v44 = vpop.f32.mrf.mxu2  ;;  %v5969_v0 = vpop.f32.mrf.mxu0 }
 0xab5   :  { %v6146_v33 = vadd.f32 %v6145_v44, %v6057_v50  ;;  %v6234_v51 = vpop.f32.mrf.mxu3  ;;  %v7912_v31 = vadd.f32 %v13898_v60, %v7624_v19  ;;  %v7913_v36 = vadd.f32 %v13898_v60, %v7625_v34  ;;  %v6058_v8 = vpop.f32.mrf.mxu1 }
 0xab6   :  { %v6059_v30 = vadd.f32 %v6058_v8, %v5969_v0  ;;  %v13904_v0 = vld [vmem:[#allocation180_spill] sm:$0xff] }
 0xab7   :  { %v6235_v61 = vadd.f32 %v6234_v51, %v6146_v33  ;;  %v8552_v42 = vmax.f32 %v7912_v31, 0.0  ;;  %v8553_v22 = vmax.f32 %v7913_v36, 0.0  ;;  %v13903_v51 = vld [vmem:[#allocation179_spill] sm:$0xff] }
 0xab9   :  { %v7070_v56 = vpack.c.bf16 %v6235_v61, %v13899_v18  ;;  %v12253_v17 = vpack.c.bf16 %v8552_v42, %v8544_v1  ;;  %v12255_v2 = vpack.c.bf16 %v8553_v22, %v8545_v48  ;;  %v13905_v42 = vld [vmem:[#allocation181_spill] sm:$0xff]  ;;  %v13906_v22 = vld [vmem:[#allocation118_spill] sm:$0xff] }
 0xaba   :  { %v13907_v48 = vld [vmem:[#allocation46_spill] sm:$0xff] }
 0xabb   :  { %13900 = vst [vmem:[#allocation31_spill] sm:$0xff] %v12253_v17  ;;  %v7632_v19 = vunpack.c.l.bf16 %v7070_v56  ;;  %v7633_v24 = vunpack.c.h.bf16 %v7070_v56 }
 0xabc   :  { %13901 = vst [vmem:[#allocation52_spill] sm:$0xff] %v12255_v2  ;;  %v6147_v50 = vpop.f32.mrf.mxu2  ;;  %v5972_v9 = vpop.f32.mrf.mxu0 }
 0xabd   :  { %v6148_v44 = vadd.f32 %v6147_v50, %v6059_v30  ;;  %v6236_v4 = vpop.f32.mrf.mxu3  ;;  %v6061_v34 = vpop.f32.mrf.mxu1  ;;  %v7920_v31 = vadd.f32 %v13906_v22, %v7632_v19  ;;  %v7921_v30 = vadd.f32 %v13906_v22, %v7633_v24  ;;  %v13908_v19 = vld [vmem:[#allocation19_spill] sm:$0xff] }
 0xabe   :  { %v6062_v7 = vadd.f32 %v6061_v34, %v5972_v9 }
 0xabf   :  { %v6237_v60 = vadd.f32 %v6236_v4, %v6148_v44  ;;  %6287 = vmatmul.bf16.gmra.mxu0 %v13765_v25  ;;  %v8560_v50 = vmax.f32 %v7920_v31, 0.0  ;;  %v8561_v44 = vmax.f32 %v7921_v30, 0.0  ;;  %v13911_v30 = vld [vmem:[#allocation186_spill] sm:$0xff] }
 0xac0   :  { %6376 = vmatmul.bf16.gmra.mxu1 %v13903_v51 }
 0xac1   :  { %v7074_v33 = vpack.c.bf16 %v6237_v60, %v13902_v52  ;;  %6465 = vmatmul.bf16.gmra.mxu2 %v13904_v0 }
 0xac2   :  { %6554 = vmatmul.bf16.gmra.mxu3 %v13905_v42 }
 0xac3   :  { %v7640_v36 = vunpack.c.l.bf16 %v7074_v33  ;;  %v7641_v8 = vunpack.c.h.bf16 %v7074_v33 }
 0xac4   :  { %v6150_v56 = vpop.f32.mrf.mxu2  ;;  %v5974_v9 = vpop.f32.mrf.mxu0 }
 0xac5   :  { %v6151_v1 = vadd.f32 %v6150_v56, %v6062_v7  ;;  %v6239_v4 = vpop.f32.mrf.mxu3  ;;  %v7928_v61 = vadd.f32 %v13907_v48, %v7640_v36  ;;  %v7929_v60 = vadd.f32 %v13907_v48, %v7641_v8  ;;  %v6063_v18 = vpop.f32.mrf.mxu1 }
 0xac6   :  { %v6064_v52 = vadd.f32 %v6063_v18, %v5974_v9  ;;  %v13913_v9 = vld [vmem:[#allocation187_spill] sm:$0xff]  ;;  %v13916_v18 = vld [vmem:[#allocation189_spill] sm:$0xff] }
 0xac7   :  { %v6240_v34 = vadd.f32 %v6239_v4, %v6151_v1  ;;  %v8568_v2 = vmax.f32 %v7928_v61, 0.0  ;;  %v8569_v17 = vmax.f32 %v7929_v60, 0.0  ;;  %v13912_v1 = vld [vmem:[#allocation80_spill] sm:$0xff] }
 0xac8   :  { %v13914_v61 = vld [vmem:[#allocation188_spill] sm:$0xff] }
 0xac9   :  { %v7078_v42 = vpack.c.bf16 %v6240_v34, %v13908_v19  ;;  %v12267_v24 = vpack.c.bf16 %v8568_v2, %v8560_v50  ;;  %v12269_v33 = vpack.c.bf16 %v8569_v17, %v8561_v44  ;;  %v13915_v2 = vld [vmem:[#allocation114_spill] sm:$0xff]  ;;  %v13917_v34 = vld [vmem:[#allocation149_spill] sm:$0xff] }
 0xacb   :  { %13909 = vst [vmem:[#allocation84_spill] sm:$0xff] %v12267_v24  ;;  %v7648_v36 = vunpack.c.l.bf16 %v7078_v42  ;;  %v7649_v51 = vunpack.c.h.bf16 %v7078_v42 }
 0xacc   :  { %13910 = vst [vmem:[#allocation116_spill] sm:$0xff] %v12269_v33  ;;  %v6152_v7 = vpop.f32.mrf.mxu2  ;;  %v6253_v0 = vpop.f32.mrf.mxu0 }
 0xacd   :  { %v6153_v56 = vadd.f32 %v6152_v7, %v6064_v52  ;;  %v6241_v22 = vpop.f32.mrf.mxu3  ;;  %v6342_v8 = vpop.f32.mrf.mxu1  ;;  %v7936_v17 = vadd.f32 %v13915_v2, %v7648_v36  ;;  %v7937_v60 = vadd.f32 %v13915_v2, %v7649_v51 }
 0xace   :  { %v6343_v31 = vadd.f32 %v6342_v8, %v6253_v0 }
 0xacf   :  { %v6242_v48 = vadd.f32 %v6241_v22, %v6153_v56  ;;  %6292 = vmatmul.bf16.gmra.mxu0 %v13911_v30  ;;  %v8576_v7 = vmax.f32 %v7936_v17, 0.0  ;;  %v8577_v56 = vmax.f32 %v7937_v60, 0.0  ;;  %v13920_v17 = vld [vmem:[#allocation193_spill] sm:$0xff]  ;;  %v13921_v60 = vld [vmem:[#allocation194_spill] sm:$0xff] }
 0xad0   :  { %6381 = vmatmul.bf16.gmra.mxu1 %v13913_v9 }
 0xad1   :  { %v7082_v4 = vpack.c.bf16 %v6242_v48, %v13912_v1  ;;  %6470 = vmatmul.bf16.gmra.mxu2 %v13914_v61 }
 0xad2   :  { %6559 = vmatmul.bf16.gmra.mxu3 %v13916_v18 }
 0xad3   :  { %v7656_v50 = vunpack.c.l.bf16 %v7082_v4  ;;  %v7657_v44 = vunpack.c.h.bf16 %v7082_v4 }
 0xad4   :  { %v6431_v42 = vpop.f32.mrf.mxu2  ;;  %v6255_v48 = vpop.f32.mrf.mxu0 }
 0xad5   :  { %v7944_v22 = vadd.f32 %v13917_v34, %v7656_v50  ;;  %v7945_v0 = vadd.f32 %v13917_v34, %v7657_v44  ;;  %v6432_v52 = vadd.f32 %v6431_v42, %v6343_v31  ;;  %v6520_v19 = vpop.f32.mrf.mxu3  ;;  %v6344_v8 = vpop.f32.mrf.mxu1 }
 0xad6   :  { %v6345_v51 = vadd.f32 %v6344_v8, %v6255_v48 }
 0xad7   :  { %v8584_v1 = vmax.f32 %v7944_v22, 0.0  ;;  %v8585_v33 = vmax.f32 %v7945_v0, 0.0  ;;  %v12280_v36 = vadd.f32 %v6520_v19, %v6432_v52  ;;  %v13922_v22 = vld [vmem:[#allocation195_spill] sm:$0xff]  ;;  %v13923_v0 = vld [vmem:[#allocation196_spill] sm:$0xff] }
 0xad9   :  { %v12282_v2 = vpack.c.bf16 %v8584_v1, %v8576_v7  ;;  %v12284_v24 = vpack.c.bf16 %v8585_v33, %v8577_v56 }
 0xadb   :  { %13918 = vst [vmem:[#allocation152_spill] sm:$0xff] %v12282_v2 }
 0xadc   :  { %13919 = vst [vmem:[#allocation13_spill] sm:$0xff] %v12284_v24  ;;  %v6433_v4 = vpop.f32.mrf.mxu2  ;;  %v6258_v61 = vpop.f32.mrf.mxu0 }
 0xadd   :  { %v6434_v18 = vadd.f32 %v6433_v4, %v6345_v51  ;;  %v6522_v50 = vpop.f32.mrf.mxu3  ;;  %v6347_v44 = vpop.f32.mrf.mxu1 }
 0xade   :  { %v6348_v42 = vadd.f32 %v6347_v44, %v6258_v61 }
 0xadf   :  { %v12286_v31 = vadd.f32 %v6522_v50, %v6434_v18  ;;  %6297 = vmatmul.bf16.gmra.mxu0 %v13920_v17 }
 0xae0   :  { %6386 = vmatmul.bf16.gmra.mxu1 %v13921_v60 }
 0xae1   :  { %6475 = vmatmul.bf16.gmra.mxu2 %v13922_v22 }
 0xae2   :  { %6564 = vmatmul.bf16.gmra.mxu3 %v13923_v0 }
 0xae4   :  { %v6436_v52 = vpop.f32.mrf.mxu2  ;;  %v6260_v48 = vpop.f32.mrf.mxu0 }
 0xae5   :  { %v6437_v19 = vadd.f32 %v6436_v52, %v6348_v42  ;;  %v6525_v33 = vpop.f32.mrf.mxu3  ;;  %v6349_v7 = vpop.f32.mrf.mxu1  ;;  %v13924_v42 = vld [vmem:[#allocation202_spill] sm:$0xff] }
 0xae6   :  { %v6350_v8 = vadd.f32 %v6349_v7, %v6260_v48 }
 0xae7   :  { %v12292_v56 = vadd.f32 %v6525_v33, %v6437_v19 }
 0xaec   :  { %v6438_v1 = vpop.f32.mrf.mxu2  ;;  %v6263_v61 = vpop.f32.mrf.mxu0 }
 0xaed   :  { %v6439_v18 = vadd.f32 %v6438_v1, %v6350_v8  ;;  %v6527_v51 = vpop.f32.mrf.mxu3  ;;  %v6352_v4 = vpop.f32.mrf.mxu1 }
 0xaee   :  { %v6353_v44 = vadd.f32 %v6352_v4, %v6263_v61 }
 0xaef   :  { %v12294_v50 = vadd.f32 %v6527_v51, %v6439_v18  ;;  %6302 = vmatmul.bf16.gmra.mxu0 %v13308_v39 }
 0xaf0   :  { %6391 = vmatmul.bf16.gmra.mxu1 %v13777_v13 }
 0xaf1   :  { %6480 = vmatmul.bf16.gmra.mxu2 %v13702_v28 }
 0xaf2   :  { %6569 = vmatmul.bf16.gmra.mxu3 %v13924_v42 }
 0xaf4   :  { %v6441_v52 = vpop.f32.mrf.mxu2  ;;  %v6265_v48 = vpop.f32.mrf.mxu0 }
 0xaf5   :  { %v6442_v19 = vadd.f32 %v6441_v52, %v6353_v44  ;;  %v6530_v33 = vpop.f32.mrf.mxu3  ;;  %v6354_v7 = vpop.f32.mrf.mxu1  ;;  %v13927_v44 = vld [vmem:[#allocation208_spill] sm:$0xff] }
 0xaf6   :  { %v6355_v1 = vadd.f32 %v6354_v7, %v6265_v48 }
 0xaf7   :  { %v12300_v8 = vadd.f32 %v6530_v33, %v6442_v19 }
 0xaf9   :  { %13925 = vst [vmem:[#allocation34_spill] sm:$0xff] %v12300_v8 }
 0xafc   :  { %v6443_v34 = vpop.f32.mrf.mxu2  ;;  %v6268_v61 = vpop.f32.mrf.mxu0 }
 0xafd   :  { %v6444_v18 = vadd.f32 %v6443_v34, %v6355_v1  ;;  %v6532_v51 = vpop.f32.mrf.mxu3  ;;  %v6357_v4 = vpop.f32.mrf.mxu1 }
 0xafe   :  { %v6358_v2 = vadd.f32 %v6357_v4, %v6268_v61 }
 0xaff   :  { %v12302_v24 = vadd.f32 %v6532_v51, %v6444_v18  ;;  %6307 = vmatmul.bf16.gmra.mxu0 %v13318_v35 }
 0xb00   :  { %6396 = vmatmul.bf16.gmra.mxu1 %v13785_v21 }
 0xb01   :  { %13926 = vst [vmem:[#allocation47_spill] sm:$0xff] %v12302_v24  ;;  %6485 = vmatmul.bf16.gmra.mxu2 %v13706_v16 }
 0xb02   :  { %6574 = vmatmul.bf16.gmra.mxu3 %v13927_v44  ;;  %v13930_v44 = vld [vmem:[#allocation213_spill] sm:$0xff] }
 0xb04   :  { %v6446_v52 = vpop.f32.mrf.mxu2  ;;  %v6270_v48 = vpop.f32.mrf.mxu0 }
 0xb05   :  { %v6447_v19 = vadd.f32 %v6446_v52, %v6358_v2  ;;  %v6535_v33 = vpop.f32.mrf.mxu3  ;;  %v6359_v7 = vpop.f32.mrf.mxu1  ;;  %v13931_v2 = vld [vmem:[#allocation214_spill] sm:$0xff] }
 0xb06   :  { %v6360_v1 = vadd.f32 %v6359_v7, %v6270_v48 }
 0xb07   :  { %v12308_v34 = vadd.f32 %v6535_v33, %v6447_v19 }
 0xb09   :  { %13928 = vst [vmem:[#allocation48_spill] sm:$0xff] %v12308_v34 }
 0xb0c   :  { %v6448_v8 = vpop.f32.mrf.mxu2  ;;  %v6273_v61 = vpop.f32.mrf.mxu0 }
 0xb0d   :  { %v6449_v18 = vadd.f32 %v6448_v8, %v6360_v1  ;;  %v6537_v51 = vpop.f32.mrf.mxu3  ;;  %v6362_v4 = vpop.f32.mrf.mxu1 }
 0xb0e   :  { %v6363_v21 = vadd.f32 %v6362_v4, %v6273_v61 }
 0xb0f   :  { %v12310_v24 = vadd.f32 %v6537_v51, %v6449_v18  ;;  %6312 = vmatmul.bf16.gmra.mxu0 %v13328_v57 }
 0xb10   :  { %6401 = vmatmul.bf16.gmra.mxu1 %v13792_v38 }
 0xb11   :  { %13929 = vst [vmem:[#allocation21_spill] sm:$0xff] %v12310_v24  ;;  %6490 = vmatmul.bf16.gmra.mxu2 %v13930_v44 }
 0xb12   :  { %6579 = vmatmul.bf16.gmra.mxu3 %v13931_v2 }
 0xb14   :  { %v6451_v52 = vpop.f32.mrf.mxu2  ;;  %v6275_v48 = vpop.f32.mrf.mxu0 }
 0xb15   :  { %v6452_v19 = vadd.f32 %v6451_v52, %v6363_v21  ;;  %v6540_v33 = vpop.f32.mrf.mxu3  ;;  %v6364_v7 = vpop.f32.mrf.mxu1 }
 0xb16   :  { %v6365_v1 = vadd.f32 %v6364_v7, %v6275_v48 }
 0xb17   :  { %v12316_v8 = vadd.f32 %v6540_v33, %v6452_v19 }
 0xb1c   :  { %v6453_v34 = vpop.f32.mrf.mxu2  ;;  %v6278_v61 = vpop.f32.mrf.mxu0 }
 0xb1d   :  { %v6454_v18 = vadd.f32 %v6453_v34, %v6365_v1  ;;  %v6542_v51 = vpop.f32.mrf.mxu3  ;;  %v6367_v4 = vpop.f32.mrf.mxu1 }
 0xb1e   :  { %v6368_v38 = vadd.f32 %v6367_v4, %v6278_v61 }
 0xb1f   :  { %v12318_v24 = vadd.f32 %v6542_v51, %v6454_v18  ;;  %6317 = vmatmul.bf16.gmra.mxu0 %v13338_v37 }
 0xb20   :  { %6406 = vmatmul.bf16.gmra.mxu1 %v13800_v54 }
 0xb21   :  { %13932 = vst [vmem:[#allocation45_spill] sm:$0xff] %v12318_v24  ;;  %6495 = vmatmul.bf16.gmra.mxu2 %v13713_v32 }
 0xb22   :  { %6584 = vmatmul.bf16.gmra.mxu3 %v13714_v3 }
 0xb24   :  { %v6456_v21 = vpop.f32.mrf.mxu2  ;;  %v6280_v33 = vpop.f32.mrf.mxu0 }
 0xb25   :  { %v6457_v52 = vadd.f32 %v6456_v21, %v6368_v38  ;;  %v6545_v19 = vpop.f32.mrf.mxu3  ;;  %v6369_v48 = vpop.f32.mrf.mxu1 }
 0xb26   :  { %v6370_v7 = vadd.f32 %v6369_v48, %v6280_v33 }
 0xb27   :  { %v12324_v34 = vadd.f32 %v6545_v19, %v6457_v52 }
 0xb2c   :  { %v6458_v1 = vpop.f32.mrf.mxu2  ;;  %v6283_v61 = vpop.f32.mrf.mxu0 }
 0xb2d   :  { %v6459_v18 = vadd.f32 %v6458_v1, %v6370_v7  ;;  %v6547_v51 = vpop.f32.mrf.mxu3  ;;  %v6372_v4 = vpop.f32.mrf.mxu1 }
 0xb2e   :  { %v6373_v54 = vadd.f32 %v6372_v4, %v6283_v61 }
 0xb2f   :  { %v12326_v24 = vadd.f32 %v6547_v51, %v6459_v18  ;;  %6322 = vmatmul.bf16.gmra.mxu0 %v13347_v62 }
 0xb30   :  { %6411 = vmatmul.bf16.gmra.mxu1 %v13806_v46 }
 0xb31   :  { %13933 = vst [vmem:[#allocation17_spill] sm:$0xff] %v12326_v24  ;;  %6500 = vmatmul.bf16.gmra.mxu2 %v13496_v53 }
 0xb32   :  { %6589 = vmatmul.bf16.gmra.mxu3 %v13497_v55 }
 0xb34   :  { %v6461_v38 = vpop.f32.mrf.mxu2  ;;  %v6285_v19 = vpop.f32.mrf.mxu0 }
 0xb35   :  { %v6462_v21 = vadd.f32 %v6461_v38, %v6373_v54  ;;  %v6550_v52 = vpop.f32.mrf.mxu3  ;;  %v6374_v33 = vpop.f32.mrf.mxu1 }
 0xb36   :  { %v6375_v7 = vadd.f32 %v6374_v33, %v6285_v19 }
 0xb37   :  { %v12332_v48 = vadd.f32 %v6550_v52, %v6462_v21 }
 0xb3c   :  { %v6463_v1 = vpop.f32.mrf.mxu2  ;;  %v6288_v61 = vpop.f32.mrf.mxu0 }
 0xb3d   :  { %v6464_v18 = vadd.f32 %v6463_v1, %v6375_v7  ;;  %v6552_v51 = vpop.f32.mrf.mxu3  ;;  %v6377_v4 = vpop.f32.mrf.mxu1 }
 0xb3e   :  { %v6378_v46 = vadd.f32 %v6377_v4, %v6288_v61 }
 0xb3f   :  { %v12334_v24 = vadd.f32 %v6552_v51, %v6464_v18  ;;  %6327 = vmatmul.bf16.gmra.mxu0 %v10854_v6 }
 0xb40   :  { %6416 = vmatmul.bf16.gmra.mxu1 %v13812_v23 }
 0xb41   :  { %13934 = vst [vmem:[#allocation32_spill] sm:$0xff] %v12334_v24  ;;  %6505 = vmatmul.bf16.gmra.mxu2 %v10858_v27 }
 0xb42   :  { %6594 = vmatmul.bf16.gmra.mxu3 %v10860_v5 }
 0xb44   :  { %v6466_v54 = vpop.f32.mrf.mxu2  ;;  %v6290_v52 = vpop.f32.mrf.mxu0 }
 0xb45   :  { %v6467_v38 = vadd.f32 %v6466_v54, %v6378_v46  ;;  %v6555_v21 = vpop.f32.mrf.mxu3  ;;  %v6379_v19 = vpop.f32.mrf.mxu1  ;;  %v13935_v46 = vld [vmem:[#allocation177_spill] sm:$0xff] }
 0xb46   :  { %v6380_v7 = vadd.f32 %v6379_v19, %v6290_v52  ;;  %v13936_v54 = vld [vmem:[#allocation29_spill] sm:$0xff] }
 0xb47   :  { %v12340_v33 = vadd.f32 %v6555_v21, %v6467_v38  ;;  %v13937_v38 = vld [vmem:[#allocation71_spill] sm:$0xff] }
 0xb48   :  { %v13938_v21 = vld [vmem:[#allocation55_spill] sm:$0xff] }
 0xb4c   :  { %v6468_v1 = vpop.f32.mrf.mxu2  ;;  %v6293_v61 = vpop.f32.mrf.mxu0 }
 0xb4d   :  { %v6469_v18 = vadd.f32 %v6468_v1, %v6380_v7  ;;  %v6557_v51 = vpop.f32.mrf.mxu3  ;;  %v6382_v4 = vpop.f32.mrf.mxu1 }
 0xb4e   :  { %v6383_v23 = vadd.f32 %v6382_v4, %v6293_v61  ;;  %v13942_v61 = vld [vmem:[#allocation123_spill] sm:$0xff]  ;;  %v13943_v4 = vld [vmem:[#allocation185_spill] sm:$0xff] }
 0xb4f   :  { %v12342_v24 = vadd.f32 %v6557_v51, %v6469_v18  ;;  %6608 = vmatmul.bf16.vlgmr.msrb.gmra.mxu0 %v10497_v59  ;;  %v13939_v18 = vld [vmem:[#allocation107_spill] sm:$0xff] }
 0xb50   :  { %6697 = vmatmul.bf16.vlgmr.msrb.gmra.mxu1 %v13818_v47  ;;  %8776 = vmatpush.bf16.msrb.mxu0 %v13935_v46  ;;  %v13940_v47 = vld [vmem:[#allocation91_spill] sm:$0xff]  ;;  %v13944_v46 = vld [vmem:[#allocation153_spill] sm:$0xff] }
 0xb51   :  { %6786 = vmatmul.bf16.vlgmr.msrb.gmra.mxu2 %v13819_v26  ;;  %8789 = vmatpush.bf16.msrb.mxu1 %v13936_v54  ;;  %v13941_v26 = vld [vmem:[#allocation139_spill] sm:$0xff] }
 0xb52   :  { %6875 = vmatmul.bf16.vlgmr.msrb.gmra.mxu3 %v13821_v10  ;;  %8802 = vmatpush.bf16.msrb.mxu2 %v13937_v38  ;;  %v13945_v54 = vld [vmem:[#allocation75_spill] sm:$0xff] }
 0xb53   :  { %8815 = vmatpush.bf16.msrb.mxu3 %v13938_v21 }
 0xb54   :  { %v6471_v52 = vpop.f32.mrf.mxu2  ;;  %v6295_v1 = vpop.f32.mrf.mxu0  ;;  %8777 = vmatpush.bf16.msrb.mxu0 %v13939_v18 }
 0xb55   :  { %v6472_v19 = vadd.f32 %v6471_v52, %v6383_v23  ;;  %v6560_v7 = vpop.f32.mrf.mxu3  ;;  %v6384_v59 = vpop.f32.mrf.mxu1  ;;  %8790 = vmatpush.bf16.msrb.mxu1 %v13940_v47  ;;  %v13946_v23 = vld [vmem:[#allocation59_spill] sm:$0xff] }
 0xb56   :  { %8803 = vmatpush.bf16.msrb.mxu2 %v13941_v26  ;;  %v6385_v51 = vadd.f32 %v6384_v59, %v6295_v1  ;;  %v13947_v47 = vld [vmem:[#allocation111_spill] sm:$0xff] }
 0xb57   :  { %v12355_v10 = vadd.f32 %v6560_v7, %v6472_v19  ;;  %8816 = vmatpush.bf16.msrb.mxu3 %v13942_v61  ;;  %v13948_v19 = vld [vmem:[#allocation95_spill] sm:$0xff] }
 0xb58   :  { %8778 = vmatpush.bf16.msrb.mxu0 %v13943_v4  ;;  %v13949_v7 = vld [vmem:[#allocation143_spill] sm:$0xff]  ;;  %v13952_v4 = vld [vmem:[#allocation161_spill] sm:$0xff] }
 0xb59   :  { %8791 = vmatpush.bf16.msrb.mxu1 %v13944_v46  ;;  %v13950_v61 = vld [vmem:[#allocation127_spill] sm:$0xff] }
 0xb5a   :  { %8804 = vmatpush.bf16.msrb.mxu2 %v13945_v54  ;;  %v13953_v46 = vld [vmem:[#allocation79_spill] sm:$0xff] }
 0xb5b   :  { %8817 = vmatpush.bf16.msrb.mxu3 %v13946_v23  ;;  %v13954_v54 = vld [vmem:[#allocation63_spill] sm:$0xff] }
 0xb5c   :  { %v6473_v38 = vpop.f32.mrf.mxu2  ;;  %v6298_v18 = vpop.f32.mrf.mxu0  ;;  %8779 = vmatpush.bf16.msrb.mxu0 %v13947_v47 }
 0xb5d   :  { %v6474_v21 = vadd.f32 %v6473_v38, %v6385_v51  ;;  %v6562_v52 = vpop.f32.mrf.mxu3  ;;  %v6387_v26 = vpop.f32.mrf.mxu1  ;;  %8792 = vmatpush.bf16.msrb.mxu1 %v13948_v19  ;;  %v13951_v51 = vld [vmem:[#allocation225_spill] sm:$0xff]  ;;  %v13959_v19 = vld [vmem:[#allocation24_spill] sm:$0xff] }
 0xb5e   :  { %8805 = vmatpush.bf16.msrb.mxu2 %v13949_v7  ;;  %v6388_v59 = vadd.f32 %v6387_v26, %v6298_v18  ;;  %v13955_v18 = vld [vmem:[#allocation26_spill] sm:$0xff]  ;;  %v13958_v26 = vld [vmem:[#allocation131_spill] sm:$0xff]  ;;  %v13960_v7 = vld [vmem:[#allocation169_spill] sm:$0xff] }
 0xb5f   :  { %v12365_v1 = vadd.f32 %v6562_v52, %v6474_v21  ;;  %8818 = vmatpush.bf16.msrb.mxu3 %v13950_v61  ;;  %6613 = vmatmul.bf16.gmra.mxu0 %v10529_v11  ;;  %v13961_v61 = vld [vmem:[#allocation23_spill] sm:$0xff] }
 0xb60   :  { %6702 = vmatmul.bf16.gmra.mxu1 %v10531_v20  ;;  %8780 = vmatpush.bf16.msrb.mxu0 %v13951_v51  ;;  %v13956_v20 = vld [vmem:[#allocation99_spill] sm:$0xff] }
 0xb61   :  { %6791 = vmatmul.bf16.gmra.mxu2 %v13841_v63  ;;  %8793 = vmatpush.bf16.msrb.mxu1 %v13952_v4  ;;  %v13957_v63 = vld [vmem:[#allocation224_spill] sm:$0xff] }
 0xb62   :  { %6880 = vmatmul.bf16.gmra.mxu3 %v13842_v15  ;;  %8806 = vmatpush.bf16.msrb.mxu2 %v13953_v46 }
 0xb63   :  { %8819 = vmatpush.bf16.msrb.mxu3 %v13954_v54 }
 0xb64   :  { %v6476_v23 = vpop.f32.mrf.mxu2  ;;  %v6300_v52 = vpop.f32.mrf.mxu0  ;;  %8781 = vmatpush.bf16.msrb.mxu0 %v13955_v18 }
 0xb65   :  { %v6477_v38 = vadd.f32 %v6476_v23, %v6388_v59  ;;  %v6565_v21 = vpop.f32.mrf.mxu3  ;;  %v6389_v11 = vpop.f32.mrf.mxu1  ;;  %8794 = vmatpush.bf16.msrb.mxu1 %v13956_v20  ;;  %v13962_v59 = vld [vmem:[#allocation67_spill] sm:$0xff] }
 0xb66   :  { %8807 = vmatpush.bf16.msrb.mxu2 %v13957_v63  ;;  %v6390_v47 = vadd.f32 %v6389_v11, %v6300_v52  ;;  %v13963_v23 = vld [vmem:[#allocation43_spill] sm:$0xff] }
 0xb67   :  { %v12379_v15 = vadd.f32 %v6565_v21, %v6477_v38  ;;  %8820 = vmatpush.bf16.msrb.mxu3 %v13958_v26  ;;  %v13964_v38 = vld [vmem:[#allocation103_spill] sm:$0xff]  ;;  %v13965_v21 = vld [vmem:[#allocation41_spill] sm:$0xff] }
 0xb68   :  { %8782 = vmatpush.bf16.msrb.mxu0 %v13959_v19  ;;  %v13966_v20 = vld [vmem:[#allocation135_spill] sm:$0xff] }
 0xb69   :  { %8795 = vmatpush.bf16.msrb.mxu1 %v13960_v7 }
 0xb6a   :  { %8808 = vmatpush.bf16.msrb.mxu2 %v13961_v61 }
 0xb6b   :  { %8821 = vmatpush.bf16.msrb.mxu3 %v13962_v59 }
 0xb6c   :  { %v6478_v51 = vpop.f32.mrf.mxu2  ;;  %v6303_v54 = vpop.f32.mrf.mxu0  ;;  %8783 = vmatpush.bf16.msrb.mxu0 %v13963_v23 }
 0xb6d   :  { %v6479_v4 = vadd.f32 %v6478_v51, %v6390_v47  ;;  %v6567_v46 = vpop.f32.mrf.mxu3  ;;  %v6392_v18 = vpop.f32.mrf.mxu1  ;;  %8796 = vmatpush.bf16.msrb.mxu1 %v13964_v38 }
 0xb6e   :  { %8809 = vmatpush.bf16.msrb.mxu2 %v13965_v21  ;;  %v6393_v11 = vadd.f32 %v6392_v18, %v6303_v54 }
 0xb6f   :  { %v12389_v52 = vadd.f32 %v6567_v46, %v6479_v4  ;;  %8822 = vmatpush.bf16.msrb.mxu3 %v13966_v20  ;;  %6618 = vmatmul.bf16.gmra.mxu0 %v10565_v45 }
 0xb70   :  { %6707 = vmatmul.bf16.gmra.mxu1 %v10567_v43 }
 0xb71   :  { %6796 = vmatmul.bf16.gmra.mxu2 %v10569_v49 }
 0xb72   :  { %6885 = vmatmul.bf16.gmra.mxu3 %v10572_v14 }
 0xb74   :  { %v6481_v63 = vpop.f32.mrf.mxu2  ;;  %v6305_v19 = vpop.f32.mrf.mxu0 }
 0xb75   :  { %v6482_v47 = vadd.f32 %v6481_v63, %v6393_v11  ;;  %v6570_v26 = vpop.f32.mrf.mxu3  ;;  %v6394_v7 = vpop.f32.mrf.mxu1 }
 0xb76   :  { %v6395_v59 = vadd.f32 %v6394_v7, %v6305_v19 }
 0xb77   :  { %v12396_v61 = vadd.f32 %v6570_v26, %v6482_v47 }
 0xb7c   :  { %v6483_v51 = vpop.f32.mrf.mxu2  ;;  %v6308_v54 = vpop.f32.mrf.mxu0 }
 0xb7d   :  { %v6484_v4 = vadd.f32 %v6483_v51, %v6395_v59  ;;  %v6572_v46 = vpop.f32.mrf.mxu3  ;;  %v6397_v23 = vpop.f32.mrf.mxu1  ;;  %v13969_v59 = vld [vmem:[#allocation157_spill] sm:$0xff] }
 0xb7e   :  { %v6398_v43 = vadd.f32 %v6397_v23, %v6308_v54 }
 0xb7f   :  { %v12398_v45 = vadd.f32 %v6572_v46, %v6484_v4  ;;  %6623 = vmatmul.bf16.gmra.mxu0 %v13407_v41 }
 0xb80   :  { %6712 = vmatmul.bf16.gmra.mxu1 %v13868_v58 }
 0xb81   :  { %6801 = vmatmul.bf16.gmra.mxu2 %v13411_v12  ;;  %v13967_v12 = vld [vmem:[#allocation155_spill] sm:$0xff] }
 0xb82   :  { %6890 = vmatmul.bf16.gmra.mxu3 %v13412_v29  ;;  %v13968_v29 = vld [vmem:[#allocation156_spill] sm:$0xff] }
 0xb84   :  { %v6486_v49 = vpop.f32.mrf.mxu2  ;;  %v6310_v38 = vpop.f32.mrf.mxu0 }
 0xb85   :  { %v6487_v14 = vadd.f32 %v6486_v49, %v6398_v43  ;;  %v6575_v18 = vpop.f32.mrf.mxu3  ;;  %v6399_v21 = vpop.f32.mrf.mxu1 }
 0xb86   :  { %v6400_v20 = vadd.f32 %v6399_v21, %v6310_v38 }
 0xb87   :  { %v12404_v11 = vadd.f32 %v6575_v18, %v6487_v14 }
 0xb8c   :  { %v6488_v63 = vpop.f32.mrf.mxu2  ;;  %v6313_v19 = vpop.f32.mrf.mxu0 }
 0xb8d   :  { %v6489_v47 = vadd.f32 %v6488_v63, %v6400_v20  ;;  %v6577_v26 = vpop.f32.mrf.mxu3  ;;  %v6402_v7 = vpop.f32.mrf.mxu1 }
 0xb8e   :  { %v6403_v58 = vadd.f32 %v6402_v7, %v6313_v19  ;;  %v13972_v19 = vld [vmem:[#allocation164_spill] sm:$0xff]  ;;  %v13973_v7 = vld [vmem:[#allocation165_spill] sm:$0xff] }
 0xb8f   :  { %v12406_v41 = vadd.f32 %v6577_v26, %v6489_v47  ;;  %6628 = vmatmul.bf16.gmra.mxu0 %v13419_v40  ;;  %v13970_v47 = vld [vmem:[#allocation162_spill] sm:$0xff]  ;;  %v13971_v26 = vld [vmem:[#allocation163_spill] sm:$0xff] }
 0xb90   :  { %6717 = vmatmul.bf16.gmra.mxu1 %v13967_v12 }
 0xb91   :  { %6806 = vmatmul.bf16.gmra.mxu2 %v13968_v29 }
 0xb92   :  { %6895 = vmatmul.bf16.gmra.mxu3 %v13969_v59 }
 0xb94   :  { %v6491_v51 = vpop.f32.mrf.mxu2  ;;  %v6315_v54 = vpop.f32.mrf.mxu0 }
 0xb95   :  { %v6492_v4 = vadd.f32 %v6491_v51, %v6403_v58  ;;  %v6580_v46 = vpop.f32.mrf.mxu3  ;;  %v6404_v23 = vpop.f32.mrf.mxu1 }
 0xb96   :  { %v6405_v49 = vadd.f32 %v6404_v23, %v6315_v54 }
 0xb97   :  { %v12412_v43 = vadd.f32 %v6580_v46, %v6492_v4 }
 0xb9c   :  { %v6493_v14 = vpop.f32.mrf.mxu2  ;;  %v6318_v21 = vpop.f32.mrf.mxu0 }
 0xb9d   :  { %v6494_v18 = vadd.f32 %v6493_v14, %v6405_v49  ;;  %v6582_v38 = vpop.f32.mrf.mxu3  ;;  %v6407_v20 = vpop.f32.mrf.mxu1 }
 0xb9e   :  { %v6408_v63 = vadd.f32 %v6407_v20, %v6318_v21  ;;  %v13974_v20 = vld [vmem:[#allocation170_spill] sm:$0xff] }
 0xb9f   :  { %v12414_v40 = vadd.f32 %v6582_v38, %v6494_v18  ;;  %6633 = vmatmul.bf16.gmra.mxu0 %v13970_v47  ;;  %v13975_v47 = vld [vmem:[#allocation171_spill] sm:$0xff] }
 0xba0   :  { %6722 = vmatmul.bf16.gmra.mxu1 %v13971_v26  ;;  %v13976_v26 = vld [vmem:[#allocation172_spill] sm:$0xff] }
 0xba1   :  { %6811 = vmatmul.bf16.gmra.mxu2 %v13972_v19 }
 0xba2   :  { %6900 = vmatmul.bf16.gmra.mxu3 %v13973_v7 }
 0xba4   :  { %v6496_v58 = vpop.f32.mrf.mxu2  ;;  %v6320_v59 = vpop.f32.mrf.mxu0 }
 0xba5   :  { %v6497_v12 = vadd.f32 %v6496_v58, %v6408_v63  ;;  %v6585_v29 = vpop.f32.mrf.mxu3  ;;  %v6409_v51 = vpop.f32.mrf.mxu1  ;;  %v13977_v63 = vld [vmem:[#allocation173_spill] sm:$0xff] }
 0xba6   :  { %v6410_v46 = vadd.f32 %v6409_v51, %v6320_v59 }
 0xba7   :  { %v12420_v4 = vadd.f32 %v6585_v29, %v6497_v12 }
 0xbac   :  { %v6498_v54 = vpop.f32.mrf.mxu2  ;;  %v6323_v14 = vpop.f32.mrf.mxu0 }
 0xbad   :  { %v6499_v23 = vadd.f32 %v6498_v54, %v6410_v46  ;;  %v6587_v49 = vpop.f32.mrf.mxu3  ;;  %v6412_v18 = vpop.f32.mrf.mxu1 }
 0xbae   :  { %v6413_v21 = vadd.f32 %v6412_v18, %v6323_v14 }
 0xbaf   :  { %v12422_v38 = vadd.f32 %v6587_v49, %v6499_v23  ;;  %6638 = vmatmul.bf16.gmra.mxu0 %v13974_v20 }
 0xbb0   :  { %6727 = vmatmul.bf16.gmra.mxu1 %v13975_v47  ;;  %v13978_v47 = vld [vmem:[#allocation179_spill] sm:$0xff] }
 0xbb1   :  { %6816 = vmatmul.bf16.gmra.mxu2 %v13976_v26  ;;  %v13979_v26 = vld [vmem:[#allocation180_spill] sm:$0xff] }
 0xbb2   :  { %6905 = vmatmul.bf16.gmra.mxu3 %v13977_v63 }
 0xbb4   :  { %v6501_v19 = vpop.f32.mrf.mxu2  ;;  %v6325_v12 = vpop.f32.mrf.mxu0 }
 0xbb5   :  { %v6502_v7 = vadd.f32 %v6501_v19, %v6413_v21  ;;  %v6590_v58 = vpop.f32.mrf.mxu3  ;;  %v6414_v29 = vpop.f32.mrf.mxu1  ;;  %v13980_v21 = vld [vmem:[#allocation181_spill] sm:$0xff] }
 0xbb6   :  { %v6415_v51 = vadd.f32 %v6414_v29, %v6325_v12 }
 0xbb7   :  { %v12428_v59 = vadd.f32 %v6590_v58, %v6502_v7 }
 0xbbc   :  { %v6503_v46 = vpop.f32.mrf.mxu2  ;;  %v6328_v49 = vpop.f32.mrf.mxu0 }
 0xbbd   :  { %v6504_v54 = vadd.f32 %v6503_v46, %v6415_v51  ;;  %v6592_v23 = vpop.f32.mrf.mxu3  ;;  %v6417_v14 = vpop.f32.mrf.mxu1 }
 0xbbe   :  { %v6418_v20 = vadd.f32 %v6417_v14, %v6328_v49 }
 0xbbf   :  { %v12430_v18 = vadd.f32 %v6592_v23, %v6504_v54  ;;  %6643 = vmatmul.bf16.gmra.mxu0 %v13765_v25 }
 0xbc0   :  { %6732 = vmatmul.bf16.gmra.mxu1 %v13978_v47 }
 0xbc1   :  { %6821 = vmatmul.bf16.gmra.mxu2 %v13979_v26  ;;  %v13983_v26 = vld [vmem:[#allocation188_spill] sm:$0xff] }
 0xbc2   :  { %6910 = vmatmul.bf16.gmra.mxu3 %v13980_v21 }
 0xbc4   :  { %v6506_v63 = vpop.f32.mrf.mxu2  ;;  %v6330_v58 = vpop.f32.mrf.mxu0 }
 0xbc5   :  { %v6507_v19 = vadd.f32 %v6506_v63, %v6418_v20  ;;  %v6595_v7 = vpop.f32.mrf.mxu3  ;;  %v6419_v12 = vpop.f32.mrf.mxu1  ;;  %v13984_v20 = vld [vmem:[#allocation189_spill] sm:$0xff] }
 0xbc6   :  { %v6420_v51 = vadd.f32 %v6419_v12, %v6330_v58 }
 0xbc7   :  { %v12436_v29 = vadd.f32 %v6595_v7, %v6507_v19 }
 0xbc9   :  { %13981 = vst [vmem:[#allocation22_spill] sm:$0xff] %v12436_v29 }
 0xbcc   :  { %v6508_v46 = vpop.f32.mrf.mxu2  ;;  %v6609_v49 = vpop.f32.mrf.mxu0 }
 0xbcd   :  { %v6509_v54 = vadd.f32 %v6508_v46, %v6420_v51  ;;  %v6597_v23 = vpop.f32.mrf.mxu3  ;;  %v6698_v14 = vpop.f32.mrf.mxu1 }
 0xbce   :  { %v6699_v47 = vadd.f32 %v6698_v14, %v6609_v49 }
 0xbcf   :  { %v12438_v25 = vadd.f32 %v6597_v23, %v6509_v54  ;;  %6648 = vmatmul.bf16.gmra.mxu0 %v13911_v30 }
 0xbd0   :  { %6737 = vmatmul.bf16.gmra.mxu1 %v13913_v9 }
 0xbd1   :  { %13982 = vst [vmem:[#allocation201_spill] sm:$0xff] %v12438_v25  ;;  %6826 = vmatmul.bf16.gmra.mxu2 %v13983_v26 }
 0xbd2   :  { %6915 = vmatmul.bf16.gmra.mxu3 %v13984_v20 }
 0xbd4   :  { %v6787_v21 = vpop.f32.mrf.mxu2  ;;  %v6611_v7 = vpop.f32.mrf.mxu0 }
 0xbd5   :  { %v6788_v63 = vadd.f32 %v6787_v21, %v6699_v47  ;;  %v6876_v19 = vpop.f32.mrf.mxu3  ;;  %v6700_v58 = vpop.f32.mrf.mxu1 }
 0xbd6   :  { %v6701_v51 = vadd.f32 %v6700_v58, %v6611_v7 }
 0xbd7   :  { %v6877_v12 = vadd.f32 %v6876_v19, %v6788_v63 }
 0xbd9   :  { %v6959_v46 = vpack.c.bf16 %v6877_v12, %v12280_v36  ;;  %v13985_v36 = vld [vmem:[#allocation192_spill] sm:$0xff] }
 0xbdb   :  { %v7410_v30 = vunpack.c.l.bf16 %v6959_v46  ;;  %v7411_v25 = vunpack.c.h.bf16 %v6959_v46  ;;  %v13986_v46 = vld [vmem:[#allocation197_spill] sm:$0xff] }
 0xbdc   :  { %v6789_v54 = vpop.f32.mrf.mxu2  ;;  %v6614_v14 = vpop.f32.mrf.mxu0 }
 0xbdd   :  { %v6790_v23 = vadd.f32 %v6789_v54, %v6701_v51  ;;  %v6878_v49 = vpop.f32.mrf.mxu3  ;;  %v6703_v9 = vpop.f32.mrf.mxu1  ;;  %v7698_v20 = vadd.f32 %v13985_v36, %v7410_v30  ;;  %v7699_v21 = vadd.f32 %v13985_v36, %v7411_v25 }
 0xbde   :  { %v6704_v26 = vadd.f32 %v6703_v9, %v6614_v14 }
 0xbdf   :  { %v6879_v29 = vadd.f32 %v6878_v49, %v6790_v23  ;;  %6653 = vmatmul.bf16.gmra.mxu0 %v13920_v17  ;;  %v8339_v54 = vmax.f32 %v7699_v21, 0.0 }
 0xbe0   :  { %6742 = vmatmul.bf16.gmra.mxu1 %v13921_v60  ;;  %v8338_v60 = vmax.f32 %v7698_v20, 0.0 }
 0xbe1   :  { %v6963_v47 = vpack.c.bf16 %v6879_v29, %v12286_v31  ;;  %6831 = vmatmul.bf16.gmra.mxu2 %v13922_v22 }
 0xbe2   :  { %6920 = vmatmul.bf16.gmra.mxu3 %v13923_v0 }
 0xbe3   :  { %v7418_v63 = vunpack.c.l.bf16 %v6963_v47  ;;  %v7419_v19 = vunpack.c.h.bf16 %v6963_v47 }
 0xbe4   :  { %v6792_v7 = vpop.f32.mrf.mxu2  ;;  %v6616_v51 = vpop.f32.mrf.mxu0 }
 0xbe5   :  { %v6793_v58 = vadd.f32 %v6792_v7, %v6704_v26  ;;  %v6881_v12 = vpop.f32.mrf.mxu3  ;;  %v7706_v17 = vadd.f32 %v13986_v46, %v7418_v63  ;;  %v7707_v31 = vadd.f32 %v13986_v46, %v7419_v19  ;;  %v6705_v29 = vpop.f32.mrf.mxu1 }
 0xbe6   :  { %v6706_v23 = vadd.f32 %v6705_v29, %v6616_v51 }
 0xbe7   :  { %v6882_v22 = vadd.f32 %v6881_v12, %v6793_v58  ;;  %v8346_v0 = vmax.f32 %v7706_v17, 0.0  ;;  %v8347_v49 = vmax.f32 %v7707_v31, 0.0 }
 0xbe9   :  { %v6967_v14 = vpack.c.bf16 %v6882_v22, %v12292_v56  ;;  %v12455_v25 = vpack.c.bf16 %v8346_v0, %v8338_v60  ;;  %v12457_v30 = vpack.c.bf16 %v8347_v49, %v8339_v54  ;;  %v13987_v56 = vld [vmem:[#allocation230_spill] sm:$0xff]  ;;  %v13988_v22 = vld [vmem:[#allocation199_spill] sm:$0xff] }
 0xbeb   :  { %v7426_v63 = vunpack.c.l.bf16 %v6967_v14  ;;  %v7427_v7 = vunpack.c.h.bf16 %v6967_v14 }
 0xbec   :  { %v6794_v9 = vpop.f32.mrf.mxu2  ;;  %v6619_v36 = vpop.f32.mrf.mxu0 }
 0xbed   :  { %v6795_v26 = vadd.f32 %v6794_v9, %v6706_v23  ;;  %v6883_v47 = vpop.f32.mrf.mxu3  ;;  %v6708_v19 = vpop.f32.mrf.mxu1  ;;  %v7714_v58 = vadd.f32 %v13987_v56, %v7426_v63  ;;  %v7715_v12 = vadd.f32 %v13987_v56, %v7427_v7  ;;  %v13989_v9 = vld [vmem:[#allocation34_spill] sm:$0xff] }
 0xbee   :  { %v6709_v20 = vadd.f32 %v6708_v19, %v6619_v36 }
 0xbef   :  { %v6884_v46 = vadd.f32 %v6883_v47, %v6795_v26  ;;  %6658 = vmatmul.bf16.gmra.mxu0 %v13308_v39  ;;  %v8355_v0 = vmax.f32 %v7715_v12, 0.0  ;;  %v13990_v12 = vld [vmem:[#allocation47_spill] sm:$0xff] }
 0xbf0   :  { %6747 = vmatmul.bf16.gmra.mxu1 %v13777_v13  ;;  %v8354_v13 = vmax.f32 %v7714_v58, 0.0 }
 0xbf1   :  { %v6971_v21 = vpack.c.bf16 %v6884_v46, %v12294_v50  ;;  %6836 = vmatmul.bf16.gmra.mxu2 %v13702_v28 }
 0xbf2   :  { %6925 = vmatmul.bf16.gmra.mxu3 %v13924_v42 }
 0xbf3   :  { %v7434_v51 = vunpack.c.l.bf16 %v6971_v21  ;;  %v7435_v17 = vunpack.c.h.bf16 %v6971_v21 }
 0xbf4   :  { %v6797_v31 = vpop.f32.mrf.mxu2  ;;  %v6621_v54 = vpop.f32.mrf.mxu0 }
 0xbf5   :  { %v6798_v29 = vadd.f32 %v6797_v31, %v6709_v20  ;;  %v6886_v60 = vpop.f32.mrf.mxu3  ;;  %v7722_v39 = vadd.f32 %v13988_v22, %v7434_v51  ;;  %v7723_v50 = vadd.f32 %v13988_v22, %v7435_v17  ;;  %v6710_v23 = vpop.f32.mrf.mxu1  ;;  %v13991_v31 = vld [vmem:[#allocation206_spill] sm:$0xff] }
 0xbf6   :  { %v6711_v49 = vadd.f32 %v6710_v23, %v6621_v54 }
 0xbf7   :  { %v6887_v28 = vadd.f32 %v6886_v60, %v6798_v29  ;;  %v8362_v42 = vmax.f32 %v7722_v39, 0.0  ;;  %v8363_v14 = vmax.f32 %v7723_v50, 0.0  ;;  %v13992_v29 = vld [vmem:[#allocation208_spill] sm:$0xff]  ;;  %v13993_v60 = vld [vmem:[#allocation231_spill] sm:$0xff] }
 0xbf9   :  { %v6975_v26 = vpack.c.bf16 %v6887_v28, %v13989_v9  ;;  %v12469_v47 = vpack.c.bf16 %v8362_v42, %v8354_v13  ;;  %v12471_v36 = vpack.c.bf16 %v8363_v14, %v8355_v0 }
 0xbfb   :  { %v7442_v20 = vunpack.c.l.bf16 %v6975_v26  ;;  %v7443_v21 = vunpack.c.h.bf16 %v6975_v26 }
 0xbfc   :  { %v6799_v63 = vpop.f32.mrf.mxu2  ;;  %v6624_v46 = vpop.f32.mrf.mxu0 }
 0xbfd   :  { %v6800_v7 = vadd.f32 %v6799_v63, %v6711_v49  ;;  %v6888_v19 = vpop.f32.mrf.mxu3  ;;  %v6713_v56 = vpop.f32.mrf.mxu1  ;;  %v7730_v54 = vadd.f32 %v13993_v60, %v7442_v20  ;;  %v7731_v22 = vadd.f32 %v13993_v60, %v7443_v21  ;;  %v13994_v49 = vld [vmem:[#allocation205_spill] sm:$0xff] }
 0xbfe   :  { %v6714_v58 = vadd.f32 %v6713_v56, %v6624_v46  ;;  %v13995_v46 = vld [vmem:[#allocation48_spill] sm:$0xff] }
 0xbff   :  { %v6889_v51 = vadd.f32 %v6888_v19, %v6800_v7  ;;  %6663 = vmatmul.bf16.gmra.mxu0 %v13318_v35  ;;  %v8370_v9 = vmax.f32 %v7730_v54, 0.0  ;;  %v8371_v26 = vmax.f32 %v7731_v22, 0.0  ;;  %v13996_v22 = vld [vmem:[#allocation21_spill] sm:$0xff] }
 0xc00   :  { %6752 = vmatmul.bf16.gmra.mxu1 %v13991_v31 }
 0xc01   :  { %v6979_v17 = vpack.c.bf16 %v6889_v51, %v13990_v12  ;;  %6841 = vmatmul.bf16.gmra.mxu2 %v13706_v16 }
 0xc02   :  { %6930 = vmatmul.bf16.gmra.mxu3 %v13992_v29 }
 0xc03   :  { %v7450_v39 = vunpack.c.l.bf16 %v6979_v17  ;;  %v7451_v50 = vunpack.c.h.bf16 %v6979_v17 }
 0xc04   :  { %v6802_v23 = vpop.f32.mrf.mxu2  ;;  %v6626_v28 = vpop.f32.mrf.mxu0 }
 0xc05   :  { %v6803_v13 = vadd.f32 %v6802_v23, %v6714_v58  ;;  %v6891_v0 = vpop.f32.mrf.mxu3  ;;  %v7738_v35 = vadd.f32 %v13994_v49, %v7450_v39  ;;  %v7739_v42 = vadd.f32 %v13994_v49, %v7451_v50  ;;  %v6715_v14 = vpop.f32.mrf.mxu1  ;;  %v13997_v23 = vld [vmem:[#allocation212_spill] sm:$0xff] }
 0xc06   :  { %v6716_v63 = vadd.f32 %v6715_v14, %v6626_v28 }
 0xc07   :  { %v6892_v16 = vadd.f32 %v6891_v0, %v6803_v13  ;;  %v8378_v7 = vmax.f32 %v7738_v35, 0.0  ;;  %v8379_v19 = vmax.f32 %v7739_v42, 0.0  ;;  %v13998_v13 = vld [vmem:[#allocation232_spill] sm:$0xff] }
 0xc09   :  { %v6983_v20 = vpack.c.bf16 %v6892_v16, %v13995_v46  ;;  %v12483_v21 = vpack.c.bf16 %v8378_v7, %v8370_v9  ;;  %v12485_v56 = vpack.c.bf16 %v8379_v19, %v8371_v26  ;;  %v13999_v16 = vld [vmem:[#allocation211_spill] sm:$0xff] }
 0xc0b   :  { %v7458_v31 = vunpack.c.l.bf16 %v6983_v20  ;;  %v7459_v29 = vunpack.c.h.bf16 %v6983_v20 }
 0xc0c   :  { %v6804_v51 = vpop.f32.mrf.mxu2  ;;  %v6629_v17 = vpop.f32.mrf.mxu0 }
 0xc0d   :  { %v6805_v58 = vadd.f32 %v6804_v51, %v6716_v63  ;;  %v6893_v12 = vpop.f32.mrf.mxu3  ;;  %v6718_v60 = vpop.f32.mrf.mxu1  ;;  %v7746_v0 = vadd.f32 %v13998_v13, %v7458_v31  ;;  %v7747_v28 = vadd.f32 %v13998_v13, %v7459_v29 }
 0xc0e   :  { %v6719_v54 = vadd.f32 %v6718_v60, %v6629_v17 }
 0xc0f   :  { %v6894_v39 = vadd.f32 %v6893_v12, %v6805_v58  ;;  %6668 = vmatmul.bf16.gmra.mxu0 %v13328_v57  ;;  %v8386_v19 = vmax.f32 %v7746_v0, 0.0  ;;  %v8387_v46 = vmax.f32 %v7747_v28, 0.0  ;;  %v14000_v0 = vld [vmem:[#allocation45_spill] sm:$0xff] }
 0xc10   :  { %6757 = vmatmul.bf16.gmra.mxu1 %v13997_v23 }
 0xc11   :  { %v6987_v50 = vpack.c.bf16 %v6894_v39, %v13996_v22  ;;  %6846 = vmatmul.bf16.gmra.mxu2 %v13930_v44 }
 0xc12   :  { %6935 = vmatmul.bf16.gmra.mxu3 %v13931_v2 }
 0xc13   :  { %v7466_v49 = vunpack.c.l.bf16 %v6987_v50  ;;  %v7467_v35 = vunpack.c.h.bf16 %v6987_v50 }
 0xc14   :  { %v6807_v42 = vpop.f32.mrf.mxu2  ;;  %v6631_v26 = vpop.f32.mrf.mxu0 }
 0xc15   :  { %v6808_v14 = vadd.f32 %v6807_v42, %v6719_v54  ;;  %v6896_v9 = vpop.f32.mrf.mxu3  ;;  %v7754_v57 = vadd.f32 %v13999_v16, %v7466_v49  ;;  %v7755_v63 = vadd.f32 %v13999_v16, %v7467_v35  ;;  %v6720_v7 = vpop.f32.mrf.mxu1  ;;  %v14001_v49 = vld [vmem:[#allocation218_spill] sm:$0xff] }
 0xc16   :  { %v6721_v20 = vadd.f32 %v6720_v7, %v6631_v26  ;;  %v14003_v7 = vld [vmem:[#allocation217_spill] sm:$0xff] }
 0xc17   :  { %v6897_v44 = vadd.f32 %v6896_v9, %v6808_v14  ;;  %v8394_v2 = vmax.f32 %v7754_v57, 0.0  ;;  %v8395_v51 = vmax.f32 %v7755_v63, 0.0 }
 0xc19   :  { %v6991_v58 = vpack.c.bf16 %v6897_v44, %v12316_v8  ;;  %v12497_v12 = vpack.c.bf16 %v8394_v2, %v8386_v19  ;;  %v12499_v17 = vpack.c.bf16 %v8395_v51, %v8387_v46  ;;  %v14002_v8 = vld [vmem:[#allocation233_spill] sm:$0xff] }
 0xc1b   :  { %v7474_v54 = vunpack.c.l.bf16 %v6991_v58  ;;  %v7475_v50 = vunpack.c.h.bf16 %v6991_v58 }
 0xc1c   :  { %v6809_v31 = vpop.f32.mrf.mxu2  ;;  %v6634_v39 = vpop.f32.mrf.mxu0 }
 0xc1d   :  { %v6810_v29 = vadd.f32 %v6809_v31, %v6721_v20  ;;  %v6898_v60 = vpop.f32.mrf.mxu3  ;;  %v6723_v22 = vpop.f32.mrf.mxu1  ;;  %v7762_v35 = vadd.f32 %v14002_v8, %v7474_v54  ;;  %v7763_v9 = vadd.f32 %v14002_v8, %v7475_v50  ;;  %v14005_v8 = vld [vmem:[#allocation223_spill] sm:$0xff] }
 0xc1e   :  { %v6724_v13 = vadd.f32 %v6723_v22, %v6634_v39 }
 0xc1f   :  { %v6899_v23 = vadd.f32 %v6898_v60, %v6810_v29  ;;  %6673 = vmatmul.bf16.gmra.mxu0 %v13338_v37  ;;  %v8402_v44 = vmax.f32 %v7762_v35, 0.0  ;;  %v8403_v2 = vmax.f32 %v7763_v9, 0.0  ;;  %v14006_v35 = vld [vmem:[#allocation235_spill] sm:$0xff] }
 0xc20   :  { %6762 = vmatmul.bf16.gmra.mxu1 %v14001_v49 }
 0xc21   :  { %v6995_v28 = vpack.c.bf16 %v6899_v23, %v14000_v0  ;;  %6851 = vmatmul.bf16.gmra.mxu2 %v13713_v32 }
 0xc22   :  { %6940 = vmatmul.bf16.gmra.mxu3 %v13714_v3 }
 0xc23   :  { %v7482_v42 = vunpack.c.l.bf16 %v6995_v28  ;;  %v7483_v14 = vunpack.c.h.bf16 %v6995_v28  ;;  %v14004_v28 = vld [vmem:[#allocation17_spill] sm:$0xff] }
 0xc24   :  { %v6812_v26 = vpop.f32.mrf.mxu2  ;;  %v6636_v63 = vpop.f32.mrf.mxu0 }
 0xc25   :  { %v6813_v16 = vadd.f32 %v6812_v26, %v6724_v13  ;;  %v6901_v57 = vpop.f32.mrf.mxu3  ;;  %v7770_v37 = vadd.f32 %v14003_v7, %v7482_v42  ;;  %v7771_v19 = vadd.f32 %v14003_v7, %v7483_v14  ;;  %v6725_v46 = vpop.f32.mrf.mxu1 }
 0xc26   :  { %v6726_v29 = vadd.f32 %v6725_v46, %v6636_v63 }
 0xc27   :  { %v6902_v20 = vadd.f32 %v6901_v57, %v6813_v16  ;;  %v8410_v32 = vmax.f32 %v7770_v37, 0.0  ;;  %v8411_v3 = vmax.f32 %v7771_v19, 0.0 }
 0xc29   :  { %v6999_v51 = vpack.c.bf16 %v6902_v20, %v12324_v34  ;;  %v12511_v58 = vpack.c.bf16 %v8410_v32, %v8402_v44  ;;  %v12513_v31 = vpack.c.bf16 %v8411_v3, %v8403_v2 }
 0xc2b   :  { %v7490_v50 = vunpack.c.l.bf16 %v6999_v51  ;;  %v7491_v13 = vunpack.c.h.bf16 %v6999_v51 }
 0xc2c   :  { %v6814_v60 = vpop.f32.mrf.mxu2  ;;  %v6639_v22 = vpop.f32.mrf.mxu0 }
 0xc2d   :  { %v6815_v39 = vadd.f32 %v6814_v60, %v6726_v29  ;;  %v6903_v54 = vpop.f32.mrf.mxu3  ;;  %v6728_v23 = vpop.f32.mrf.mxu1  ;;  %v7778_v42 = vadd.f32 %v14006_v35, %v7490_v50  ;;  %v7779_v26 = vadd.f32 %v14006_v35, %v7491_v13 }
 0xc2e   :  { %v6729_v34 = vadd.f32 %v6728_v23, %v6639_v22 }
 0xc2f   :  { %v6904_v0 = vadd.f32 %v6903_v54, %v6815_v39  ;;  %6678 = vmatmul.bf16.gmra.mxu0 %v13347_v62  ;;  %v14007_v62 = vld [vmem:[#allocation222_spill] sm:$0xff]  ;;  %v8418_v44 = vmax.f32 %v7778_v42, 0.0  ;;  %v8419_v32 = vmax.f32 %v7779_v26, 0.0 }
 0xc30   :  { %6767 = vmatmul.bf16.gmra.mxu1 %v14005_v8  ;;  %v14009_v8 = vld [vmem:[#allocation228_spill] sm:$0xff] }
 0xc31   :  { %v7003_v49 = vpack.c.bf16 %v6904_v0, %v14004_v28  ;;  %6856 = vmatmul.bf16.gmra.mxu2 %v13496_v53  ;;  %v14008_v28 = vld [vmem:[#allocation32_spill] sm:$0xff] }
 0xc32   :  { %6945 = vmatmul.bf16.gmra.mxu3 %v13497_v55 }
 0xc33   :  { %v7498_v14 = vunpack.c.l.bf16 %v7003_v49  ;;  %v7499_v9 = vunpack.c.h.bf16 %v7003_v49 }
 0xc34   :  { %v6817_v16 = vpop.f32.mrf.mxu2  ;;  %v6641_v7 = vpop.f32.mrf.mxu0 }
 0xc35   :  { %v6818_v57 = vadd.f32 %v6817_v16, %v6729_v34  ;;  %v6906_v63 = vpop.f32.mrf.mxu3  ;;  %v7786_v37 = vadd.f32 %v14007_v62, %v7498_v14  ;;  %v7787_v19 = vadd.f32 %v14007_v62, %v7499_v9  ;;  %v6730_v46 = vpop.f32.mrf.mxu1 }
 0xc36   :  { %v6731_v29 = vadd.f32 %v6730_v46, %v6641_v7  ;;  %v14011_v7 = vld [vmem:[#allocation237_spill] sm:$0xff] }
 0xc37   :  { %v6907_v53 = vadd.f32 %v6906_v63, %v6818_v57  ;;  %v8426_v20 = vmax.f32 %v7786_v37, 0.0  ;;  %v8427_v55 = vmax.f32 %v7787_v19, 0.0 }
 0xc39   :  { %v12524_v2 = vpack.c.bf16 %v8426_v20, %v8418_v44  ;;  %v12526_v3 = vpack.c.bf16 %v8427_v55, %v8419_v32  ;;  %v7007_v51 = vpack.c.bf16 %v6907_v53, %v12332_v48  ;;  %v14010_v48 = vld [vmem:[#allocation236_spill] sm:$0xff] }
 0xc3b   :  { %v7506_v50 = vunpack.c.l.bf16 %v7007_v51  ;;  %v7507_v13 = vunpack.c.h.bf16 %v7007_v51 }
 0xc3c   :  { %v6819_v60 = vpop.f32.mrf.mxu2  ;;  %v6644_v22 = vpop.f32.mrf.mxu0 }
 0xc3d   :  { %v6820_v39 = vadd.f32 %v6819_v60, %v6731_v29  ;;  %v6908_v54 = vpop.f32.mrf.mxu3  ;;  %v6733_v23 = vpop.f32.mrf.mxu1  ;;  %v7794_v35 = vadd.f32 %v14010_v48, %v7506_v50  ;;  %v7795_v9 = vadd.f32 %v14010_v48, %v7507_v13 }
 0xc3e   :  { %v6734_v34 = vadd.f32 %v6733_v23, %v6644_v22 }
 0xc3f   :  { %v6909_v0 = vadd.f32 %v6908_v54, %v6820_v39  ;;  %6683 = vmatmul.bf16.gmra.mxu0 %v10854_v6  ;;  %v8716_v6 = vld [vmem:[%s12714_s4] sm:$0xff]  ;;  %v8435_v44 = vmax.f32 %v7795_v9, 0.0  ;;  %s9937_s4 = smov [#allocation8]  }
 0xc40   :  { %6772 = vmatmul.bf16.gmra.mxu1 %v14009_v8  ;;  %v8718_v20 = vunpack.c.l.b16 %v8716_v6  ;;  %v8719_v32 = vunpack.c.h.b16 %v8716_v6  ;;  %v14017_v6 = vld [vmem:[#allocation241_spill] sm:$0xff]  ;;  %s8968_s18 = sshll.u32 %s9937_s4, 4  ;;  %s8969_s18 = int_to_ptr.vmem [resolvable:$true] %s8968_s18 }
 0xc41   :  { %v7011_v49 = vpack.c.bf16 %v6909_v0, %v14008_v28  ;;  %6861 = vmatmul.bf16.gmra.mxu2 %v10858_v27 }
 0xc42   :  { %6950 = vmatmul.bf16.gmra.mxu3 %v10860_v5  ;;  %v8434_v5 = vmax.f32 %v7794_v35, 0.0  ;;  %v12546_v54 = vpack.c.b16 %v8718_v20, %v8718_v20  ;;  %v12548_v23 = vpack.c.b16 %v8719_v32, %v8719_v32 }
 0xc43   :  { %v7514_v42 = vunpack.c.l.bf16 %v7011_v49  ;;  %v7515_v14 = vunpack.c.h.bf16 %v7011_v49 }
 0xc44   :  { %v6822_v26 = vpop.f32.mrf.mxu2  ;;  %v6646_v63 = vpop.f32.mrf.mxu0 }
 0xc45   :  { %v6823_v16 = vadd.f32 %v6822_v26, %v6734_v34  ;;  %v6911_v57 = vpop.f32.mrf.mxu3  ;;  %v7802_v62 = vadd.f32 %v14011_v7, %v7514_v42  ;;  %v7803_v27 = vadd.f32 %v14011_v7, %v7515_v14  ;;  %v6735_v37 = vpop.f32.mrf.mxu1  ;;  %v14013_v14 = vld [vmem:[#allocation166_spill] sm:$0xff] }
 0xc46   :  { %v6736_v60 = vadd.f32 %v6735_v37, %v6646_v63  ;;  %v14016_v63 = vld [vmem:[#allocation13_spill] sm:$0xff] }
 0xc47   :  { %v6912_v19 = vadd.f32 %v6911_v57, %v6823_v16  ;;  %v8442_v46 = vmax.f32 %v7802_v62, 0.0  ;;  %v8443_v53 = vmax.f32 %v7803_v27, 0.0  ;;  %v14014_v16 = vld [vmem:[#allocation152_spill] sm:$0xff] }
 0xc48   :  { %v14015_v57 = vld [vmem:[#allocation64_spill] sm:$0xff] }
 0xc49   :  { %v12541_v55 = vpack.c.bf16 %v8442_v46, %v8434_v5  ;;  %v12543_v51 = vpack.c.bf16 %v8443_v53, %v8435_v44  ;;  %v7015_v29 = vpack.c.bf16 %v6912_v19, %v12340_v33  ;;  %v14012_v33 = vld [vmem:[#allocation240_spill] sm:$0xff] }
 0xc4a   :  { %v14018_v44 = vld [vmem:[#allocation100_spill] sm:$0xff] }
 0xc4b   :  { %v7522_v0 = vunpack.c.l.bf16 %v7015_v29  ;;  %v7523_v28 = vunpack.c.h.bf16 %v7015_v29  ;;  %v14019_v29 = vld [vmem:[#allocation84_spill] sm:$0xff] }
 0xc4c   :  { %v6824_v39 = vpop.f32.mrf.mxu2  ;;  %v6649_v13 = vpop.f32.mrf.mxu0 }
 0xc4d   :  { %v6825_v22 = vadd.f32 %v6824_v39, %v6736_v60  ;;  %v6913_v50 = vpop.f32.mrf.mxu3  ;;  %v6738_v49 = vpop.f32.mrf.mxu1  ;;  %v7810_v35 = vadd.f32 %v14012_v33, %v7522_v0  ;;  %v7811_v42 = vadd.f32 %v14012_v33, %v7523_v28  ;;  %v14020_v60 = vld [vmem:[#allocation132_spill] sm:$0xff] }
 0xc4e   :  { %v6739_v34 = vadd.f32 %v6738_v49, %v6649_v13  ;;  %v14022_v49 = vld [vmem:[#allocation174_spill] sm:$0xff] }
 0xc4f   :  { %v6914_v8 = vadd.f32 %v6913_v50, %v6825_v22  ;;  %8732 = vmatmul.bf16.vlgmr.msra.gmra.mxu0 %v12546_v54  ;;  %v8450_v19 = vmax.f32 %v7810_v35, 0.0  ;;  %v8451_v46 = vmax.f32 %v7811_v42, 0.0  ;;  %v14021_v50 = vld [vmem:[#allocation116_spill] sm:$0xff] }
 0xc50   :  { %8745 = vmatmul.bf16.vlgmr.msra.gmra.mxu1 %v12548_v23  ;;  %8828 = vmatpush.bf16.msra.mxu0 %v14013_v14 }
 0xc51   :  { %v7019_v48 = vpack.c.bf16 %v6914_v8, %v12342_v24  ;;  %8758 = vmatmul.bf16.vlgmr.msra.gmra.mxu2 %v12546_v54  ;;  %8841 = vmatpush.bf16.msra.mxu1 %v14014_v16  ;;  %v14023_v8 = vld [vmem:[#allocation31_spill] sm:$0xff]  ;;  %v14026_v16 = vld [vmem:[#allocation104_spill] sm:$0xff] }
 0xc52   :  { %8771 = vmatmul.bf16.vlgmr.msra.gmra.mxu3 %v12548_v23  ;;  %8854 = vmatpush.bf16.msra.mxu2 %v14015_v57  ;;  %v14027_v57 = vld [vmem:[#allocation88_spill] sm:$0xff] }
 0xc53   :  { %v7530_v9 = vunpack.c.l.bf16 %v7019_v48  ;;  %v7531_v26 = vunpack.c.h.bf16 %v7019_v48  ;;  %8867 = vmatpush.bf16.msra.mxu3 %v14016_v63  ;;  %v14025_v48 = vld [vmem:[#allocation52_spill] sm:$0xff] }
 0xc54   :  { %v6827_v24 = vpop.f32.mrf.mxu2  ;;  %v6651_v5 = vpop.f32.mrf.mxu0  ;;  %8829 = vmatpush.bf16.msra.mxu0 %v14018_v44  ;;  %v14028_v63 = vld [vmem:[#allocation136_spill] sm:$0xff] }
 0xc55   :  { %v7818_v7 = vadd.f32 %v14017_v6, %v7530_v9  ;;  %v7819_v62 = vadd.f32 %v14017_v6, %v7531_v26  ;;  %v6828_v27 = vadd.f32 %v6827_v24, %v6739_v34  ;;  %v6916_v37 = vpop.f32.mrf.mxu3  ;;  %v6740_v53 = vpop.f32.mrf.mxu1  ;;  %8842 = vmatpush.bf16.msra.mxu1 %v14019_v29  ;;  %v14024_v34 = vld [vmem:[#allocation68_spill] sm:$0xff] }
 0xc56   :  { %8855 = vmatpush.bf16.msra.mxu2 %v14020_v60  ;;  %v6741_v22 = vadd.f32 %v6740_v53, %v6651_v5  ;;  %v14032_v53 = vld [vmem:[#allocation12_spill] sm:$0xff] }
 0xc57   :  { %v8458_v20 = vmax.f32 %v7818_v7, 0.0  ;;  %v8459_v32 = vmax.f32 %v7819_v62, 0.0  ;;  %v6917_v39 = vadd.f32 %v6916_v37, %v6828_v27  ;;  %8868 = vmatpush.bf16.msra.mxu3 %v14021_v50  ;;  %v14029_v7 = vld [vmem:[#allocation120_spill] sm:$0xff]  ;;  %v14030_v27 = vld [vmem:[#allocation182_spill] sm:$0xff] }
 0xc58   :  { %8830 = vmatpush.bf16.msra.mxu0 %v14022_v49  ;;  %v14031_v37 = vld [vmem:[#allocation142_spill] sm:$0xff]  ;;  %v14036_v49 = vld [vmem:[#allocation108_spill] sm:$0xff] }
 0xc59   :  { %v7023_v13 = vpack.c.bf16 %v6917_v39, %v12355_v10  ;;  %v12568_v0 = vpack.c.bf16 %v8458_v20, %v8450_v19  ;;  %v12570_v28 = vpack.c.bf16 %v8459_v32, %v8451_v46  ;;  %8843 = vmatpush.bf16.msra.mxu1 %v14023_v8  ;;  %v14033_v20 = vld [vmem:[#allocation72_spill] sm:$0xff] }
 0xc5a   :  { %8856 = vmatpush.bf16.msra.mxu2 %v14024_v34  ;;  %v14034_v32 = vld [vmem:[#allocation56_spill] sm:$0xff] }
 0xc5b   :  { %8869 = vmatpush.bf16.msra.mxu3 %v14025_v48  ;;  %v7538_v9 = vunpack.c.l.bf16 %v7023_v13  ;;  %v7539_v26 = vunpack.c.h.bf16 %v7023_v13 }
 0xc5c   :  { %v6829_v33 = vpop.f32.mrf.mxu2  ;;  %v6654_v14 = vpop.f32.mrf.mxu0  ;;  %8831 = vmatpush.bf16.msra.mxu0 %v14026_v16  ;;  %v14039_v16 = vld [vmem:[#allocation124_spill] sm:$0xff] }
 0xc5d   :  { %v6830_v35 = vadd.f32 %v6829_v33, %v6741_v22  ;;  %v6918_v42 = vpop.f32.mrf.mxu3  ;;  %v6743_v10 = vpop.f32.mrf.mxu1  ;;  %8844 = vmatpush.bf16.msra.mxu1 %v14027_v57  ;;  %v7826_v5 = vadd.f32 %v14031_v37, %v7538_v9  ;;  %v7827_v19 = vadd.f32 %v14031_v37, %v7539_v26  ;;  %v14035_v22 = vld [vmem:[#allocation184_spill] sm:$0xff] }
 0xc5e   :  { %8857 = vmatpush.bf16.msra.mxu2 %v14028_v63  ;;  %v6744_v6 = vadd.f32 %v6743_v10, %v6654_v14  ;;  %v14037_v33 = vld [vmem:[#allocation92_spill] sm:$0xff] }
 0xc5f   :  { %v6919_v24 = vadd.f32 %v6918_v42, %v6830_v35  ;;  %8870 = vmatpush.bf16.msra.mxu3 %v14029_v7  ;;  %8784 = vmatmul.bf16.vlgmr.msrb.gmra.mxu0 %v12546_v54  ;;  %v8466_v34 = vmax.f32 %v7826_v5, 0.0  ;;  %v8467_v48 = vmax.f32 %v7827_v19, 0.0  ;;  %v14038_v35 = vld [vmem:[#allocation140_spill] sm:$0xff] }
 0xc60   :  { %8797 = vmatmul.bf16.vlgmr.msrb.gmra.mxu1 %v12548_v23  ;;  %8832 = vmatpush.bf16.msra.mxu0 %v14030_v27  ;;  %v14042_v7 = vld [vmem:[#allocation76_spill] sm:$0xff] }
 0xc61   :  { %v7027_v62 = vpack.c.bf16 %v6919_v24, %v12365_v1  ;;  %8810 = vmatmul.bf16.vlgmr.msrb.gmra.mxu2 %v12546_v54  ;;  %8845 = vmatpush.bf16.msra.mxu1 %v14032_v53  ;;  %v14040_v24 = vld [vmem:[#allocation190_spill] sm:$0xff]  ;;  %v14044_v53 = vld [vmem:[#allocation112_spill] sm:$0xff] }
 0xc62   :  { %8823 = vmatmul.bf16.vlgmr.msrb.gmra.mxu3 %v12548_v23  ;;  %8858 = vmatpush.bf16.msra.mxu2 %v14033_v20  ;;  %v14045_v20 = vld [vmem:[#allocation96_spill] sm:$0xff] }
 0xc63   :  { %v7546_v46 = vunpack.c.l.bf16 %v7027_v62  ;;  %v7547_v44 = vunpack.c.h.bf16 %v7027_v62  ;;  %8871 = vmatpush.bf16.msra.mxu3 %v14034_v32  ;;  %v14043_v62 = vld [vmem:[#allocation60_spill] sm:$0xff]  ;;  %v14046_v32 = vld [vmem:[#allocation147_spill] sm:$0xff] }
 0xc64   :  { %v6832_v1 = vpop.f32.mrf.mxu2  ;;  %v6656_v39 = vpop.f32.mrf.mxu0  ;;  %8833 = vmatpush.bf16.msra.mxu0 %v14036_v49 }
 0xc65   :  { %v6833_v29 = vadd.f32 %v6832_v1, %v6744_v6  ;;  %v6921_v60 = vpop.f32.mrf.mxu3  ;;  %v7834_v50 = vadd.f32 %v14035_v22, %v7546_v46  ;;  %v7835_v13 = vadd.f32 %v14035_v22, %v7547_v44  ;;  %v6745_v8 = vpop.f32.mrf.mxu1  ;;  %8846 = vmatpush.bf16.msra.mxu1 %v14037_v33  ;;  %v14041_v6 = vld [vmem:[#allocation158_spill] sm:$0xff] }
 0xc66   :  { %8859 = vmatpush.bf16.msra.mxu2 %v14038_v35  ;;  %v6746_v14 = vadd.f32 %v6745_v8, %v6656_v39  ;;  %v14048_v22 = vld [vmem:[#allocation138_spill] sm:$0xff] }
 0xc67   :  { %v6922_v42 = vadd.f32 %v6921_v60, %v6833_v29  ;;  %v8474_v9 = vmax.f32 %v7834_v50, 0.0  ;;  %v8475_v26 = vmax.f32 %v7835_v13, 0.0  ;;  %8872 = vmatpush.bf16.msra.mxu3 %v14039_v16  ;;  %v14047_v60 = vld [vmem:[#allocation128_spill] sm:$0xff] }
 0xc68   :  { %8834 = vmatpush.bf16.msra.mxu0 %v14040_v24 }
 0xc69   :  { %v7031_v10 = vpack.c.bf16 %v6922_v42, %v12379_v15  ;;  %v12598_v57 = vpack.c.bf16 %v8474_v9, %v8466_v34  ;;  %v12600_v63 = vpack.c.bf16 %v8475_v26, %v8467_v48  ;;  %8847 = vmatpush.bf16.msra.mxu1 %v14041_v6  ;;  %v14049_v48 = vld [vmem:[#allocation176_spill] sm:$0xff] }
 0xc6a   :  { %8860 = vmatpush.bf16.msra.mxu2 %v14042_v7 }
 0xc6b   :  { %8873 = vmatpush.bf16.msra.mxu3 %v14043_v62  ;;  %v7554_v46 = vunpack.c.l.bf16 %v7031_v10  ;;  %v7555_v44 = vunpack.c.h.bf16 %v7031_v10 }
 0xc6c   :  { %v6834_v27 = vpop.f32.mrf.mxu2  ;;  %v6659_v19 = vpop.f32.mrf.mxu0  ;;  %8835 = vmatpush.bf16.msra.mxu0 %v14044_v53 }
 0xc6d   :  { %v6835_v37 = vadd.f32 %v6834_v27, %v6746_v14  ;;  %v6923_v5 = vpop.f32.mrf.mxu3  ;;  %v6748_v15 = vpop.f32.mrf.mxu1  ;;  %8848 = vmatpush.bf16.msra.mxu1 %v14045_v20  ;;  %v7842_v50 = vadd.f32 %v14048_v22, %v7554_v46  ;;  %v7843_v13 = vadd.f32 %v14048_v22, %v7555_v44 }
 0xc6e   :  { %8861 = vmatpush.bf16.msra.mxu2 %v14046_v32  ;;  %v6749_v29 = vadd.f32 %v6748_v15, %v6659_v19 }
 0xc6f   :  { %v6924_v1 = vadd.f32 %v6923_v5, %v6835_v37  ;;  %8874 = vmatpush.bf16.msra.mxu3 %v14047_v60  ;;  %8836 = vmatmul.bf16.vlgmr.msra.gmra.mxu0 %v12546_v54  ;;  %v8482_v14 = vmax.f32 %v7842_v50, 0.0  ;;  %v8483_v9 = vmax.f32 %v7843_v13, 0.0  ;;  %v14051_v60 = vld [vmem:[#allocation168_spill] sm:$0xff] }
 0xc70   :  { %8880 = vmatpush.bf16.msrb.mxu0 %v12568_v0  ;;  %8849 = vmatmul.bf16.vlgmr.msra.gmra.mxu1 %v12548_v23 }
 0xc71   :  { %v7035_v39 = vpack.c.bf16 %v6924_v1, %v12389_v52  ;;  %8862 = vmatmul.bf16.vlgmr.msra.gmra.mxu2 %v12546_v54 }
 0xc72   :  { %8906 = vmatpush.bf16.msrb.mxu2 %v12570_v28  ;;  %8875 = vmatmul.bf16.vlgmr.msra.gmra.mxu3 %v12548_v23 }
 0xc73   :  { %v7562_v49 = vunpack.c.l.bf16 %v7035_v39  ;;  %v7563_v8 = vunpack.c.h.bf16 %v7035_v39 }
 0xc74   :  { %8881 = vmatpush.bf16.msrb.mxu0 %v12541_v55  ;;  %v6837_v0 = vpop.f32.mrf.mxu2  ;;  %v6661_v34 = vpop.f32.mrf.mxu0 }
 0xc75   :  { %v6838_v52 = vadd.f32 %v6837_v0, %v6749_v29  ;;  %v6926_v28 = vpop.f32.mrf.mxu3  ;;  %v7850_v33 = vadd.f32 %v14049_v48, %v7562_v49  ;;  %v7851_v35 = vadd.f32 %v14049_v48, %v7563_v8  ;;  %v6750_v42 = vpop.f32.mrf.mxu1 }
 0xc76   :  { %8907 = vmatpush.bf16.msrb.mxu2 %v12543_v51  ;;  %v6751_v16 = vadd.f32 %v6750_v42, %v6661_v34 }
 0xc77   :  { %v6927_v26 = vadd.f32 %v6926_v28, %v6838_v52  ;;  %v8490_v10 = vmax.f32 %v7850_v33, 0.0  ;;  %v8491_v24 = vmax.f32 %v7851_v35, 0.0 }
 0xc78   :  { %8882 = vmatpush.bf16.msrb.mxu0 %v12524_v2 }
 0xc79   :  { %v7039_v55 = vpack.c.bf16 %v6927_v26, %v12396_v61  ;;  %v12626_v51 = vpack.c.bf16 %v8490_v10, %v8482_v14  ;;  %v12628_v6 = vpack.c.bf16 %v8491_v24, %v8483_v9 }
 0xc7a   :  { %8908 = vmatpush.bf16.msrb.mxu2 %v12526_v3  ;;  %v14050_v3 = vld [vmem:[#allocation134_spill] sm:$0xff] }
 0xc7b   :  { %v7570_v5 = vunpack.c.l.bf16 %v7039_v55  ;;  %v7571_v19 = vunpack.c.h.bf16 %v7039_v55 }
 0xc7c   :  { %8883 = vmatpush.bf16.msrb.mxu0 %v12511_v58  ;;  %v6839_v7 = vpop.f32.mrf.mxu2  ;;  %v6664_v37 = vpop.f32.mrf.mxu0 }
 0xc7d   :  { %v6840_v62 = vadd.f32 %v6839_v7, %v6751_v16  ;;  %v6928_v27 = vpop.f32.mrf.mxu3  ;;  %v6753_v46 = vpop.f32.mrf.mxu1  ;;  %v7858_v53 = vadd.f32 %v14050_v3, %v7570_v5  ;;  %v7859_v58 = vadd.f32 %v14050_v3, %v7571_v19  ;;  %v14053_v7 = vld [vmem:[#allocation160_spill] sm:$0xff] }
 0xc7e   :  { %8909 = vmatpush.bf16.msrb.mxu2 %v12513_v31  ;;  %v6754_v44 = vadd.f32 %v6753_v46, %v6664_v37 }
 0xc7f   :  { %v6929_v2 = vadd.f32 %v6928_v27, %v6840_v62  ;;  %v8499_v22 = vmax.f32 %v7859_v58, 0.0 }
 0xc80   :  { %8884 = vmatpush.bf16.msrb.mxu0 %v12497_v12 }
 0xc81   :  { %v7043_v61 = vpack.c.bf16 %v6929_v2, %v12398_v45 }
 0xc82   :  { %8910 = vmatpush.bf16.msrb.mxu2 %v12499_v17  ;;  %v8498_v17 = vmax.f32 %v7858_v53, 0.0 }
 0xc83   :  { %v7578_v15 = vunpack.c.l.bf16 %v7043_v61  ;;  %v7579_v31 = vunpack.c.h.bf16 %v7043_v61 }
 0xc84   :  { %8885 = vmatpush.bf16.msrb.mxu0 %v12483_v21  ;;  %v6842_v20 = vpop.f32.mrf.mxu2  ;;  %v6666_v29 = vpop.f32.mrf.mxu0 }
 0xc85   :  { %v6843_v32 = vadd.f32 %v6842_v20, %v6754_v44  ;;  %v6931_v1 = vpop.f32.mrf.mxu3  ;;  %v7866_v12 = vadd.f32 %v14051_v60, %v7578_v15  ;;  %v7867_v45 = vadd.f32 %v14051_v60, %v7579_v31  ;;  %v6755_v39 = vpop.f32.mrf.mxu1 }
 0xc86   :  { %8911 = vmatpush.bf16.msrb.mxu2 %v12485_v56  ;;  %v6756_v13 = vadd.f32 %v6755_v39, %v6666_v29 }
 0xc87   :  { %v6932_v50 = vadd.f32 %v6931_v1, %v6843_v32  ;;  %v8506_v49 = vmax.f32 %v7866_v12, 0.0  ;;  %v8507_v8 = vmax.f32 %v7867_v45, 0.0  ;;  %v14054_v45 = vld [vmem:[#allocation126_spill] sm:$0xff] }
 0xc88   :  { %8886 = vmatpush.bf16.msrb.mxu0 %v12469_v47 }
 0xc89   :  { %v7047_v21 = vpack.c.bf16 %v6932_v50, %v12404_v11  ;;  %v12644_v56 = vpack.c.bf16 %v8506_v49, %v8498_v17  ;;  %v12646_v0 = vpack.c.bf16 %v8507_v8, %v8499_v22 }
 0xc8a   :  { %8912 = vmatpush.bf16.msrb.mxu2 %v12471_v36  ;;  %v14052_v36 = vld [vmem:[#allocation130_spill] sm:$0xff] }
 0xc8b   :  { %v7586_v33 = vunpack.c.l.bf16 %v7047_v21  ;;  %v7587_v42 = vunpack.c.h.bf16 %v7047_v21  ;;  %v14055_v21 = vld [vmem:[#allocation38_spill] sm:$0xff] }
 0xc8c   :  { %8887 = vmatpush.bf16.msrb.mxu0 %v12455_v25  ;;  %v6844_v52 = vpop.f32.mrf.mxu2  ;;  %v6669_v48 = vpop.f32.mrf.mxu0 }
 0xc8d   :  { %v6845_v28 = vadd.f32 %v6844_v52, %v6756_v13  ;;  %v6933_v34 = vpop.f32.mrf.mxu3  ;;  %v6758_v35 = vpop.f32.mrf.mxu1  ;;  %v7874_v9 = vadd.f32 %v14052_v36, %v7586_v33 }
 0xc8e   :  { %8913 = vmatpush.bf16.msrb.mxu2 %v12457_v30  ;;  %v6759_v14 = vadd.f32 %v6758_v35, %v6669_v48  ;;  %v7875_v30 = vadd.f32 %v14052_v36, %v7587_v42 }
 0xc8f   :  { %v6934_v47 = vadd.f32 %v6933_v34, %v6845_v28  ;;  %8888 = vmatmul.bf16.vlgmr.msrb.gmra.mxu0 %v12546_v54  ;;  %v8514_v5 = vmax.f32 %v7874_v9, 0.0 }
 0xc90   :  { %v8515_v46 = vmax.f32 %v7875_v30, 0.0 }
 0xc91   :  { %8914 = vmatmul.bf16.vlgmr.msrb.gmra.mxu2 %v12546_v54  ;;  %v7051_v11 = vpack.c.bf16 %v6934_v47, %v12406_v41 }
 0xc93   :  { %v7594_v25 = vunpack.c.l.bf16 %v7051_v11  ;;  %v7595_v26 = vunpack.c.h.bf16 %v7051_v11 }
 0xc94   :  { %v6847_v16 = vpop.f32.mrf.mxu2  ;;  %v6671_v55 = vpop.f32.mrf.mxu0 }
 0xc95   :  { %v6848_v10 = vadd.f32 %v6847_v16, %v6759_v14  ;;  %v6936_v24 = vpop.f32.mrf.mxu3  ;;  %v7882_v62 = vadd.f32 %v14053_v7, %v7594_v25  ;;  %v7883_v27 = vadd.f32 %v14053_v7, %v7595_v26  ;;  %v6760_v37 = vpop.f32.mrf.mxu1 }
 0xc96   :  { %v6761_v3 = vadd.f32 %v6760_v37, %v6671_v55 }
 0xc97   :  { %v6937_v19 = vadd.f32 %v6936_v24, %v6848_v10  ;;  %v8522_v54 = vmax.f32 %v7882_v62, 0.0  ;;  %v8523_v41 = vmax.f32 %v7883_v27, 0.0  ;;  %v14056_v27 = vld [vmem:[#allocation122_spill] sm:$0xff] }
 0xc99   :  { %v7055_v2 = vpack.c.bf16 %v6937_v19, %v12412_v43  ;;  %v12658_v44 = vpack.c.bf16 %v8522_v54, %v8514_v5  ;;  %v12660_v61 = vpack.c.bf16 %v8523_v41, %v8515_v46 }
 0xc9b   :  { %v7602_v20 = vunpack.c.l.bf16 %v7055_v2  ;;  %v7603_v1 = vunpack.c.h.bf16 %v7055_v2 }
 0xc9c   :  { %v6849_v53 = vpop.f32.mrf.mxu2  ;;  %v6674_v31 = vpop.f32.mrf.mxu0 }
 0xc9d   :  { %v6850_v58 = vadd.f32 %v6849_v53, %v6761_v3  ;;  %v6938_v15 = vpop.f32.mrf.mxu3  ;;  %v6763_v32 = vpop.f32.mrf.mxu1  ;;  %v7890_v39 = vadd.f32 %v14054_v45, %v7602_v20  ;;  %v7891_v22 = vadd.f32 %v14054_v45, %v7603_v1  ;;  %v14057_v3 = vld [vmem:[#allocation16_spill] sm:$0xff] }
 0xc9e   :  { %v6764_v12 = vadd.f32 %v6763_v32, %v6674_v31 }
 0xc9f   :  { %v6939_v29 = vadd.f32 %v6938_v15, %v6850_v58  ;;  %v8530_v48 = vmax.f32 %v7890_v39, 0.0 }
 0xca1   :  { %v7059_v60 = vpack.c.bf16 %v6939_v29, %v12414_v40  ;;  %v8531_v40 = vmax.f32 %v7891_v22, 0.0 }
 0xca3   :  { %v7610_v17 = vunpack.c.l.bf16 %v7059_v60  ;;  %v7611_v43 = vunpack.c.h.bf16 %v7059_v60 }
 0xca4   :  { %v6852_v50 = vpop.f32.mrf.mxu2  ;;  %v6676_v8 = vpop.f32.mrf.mxu0 }
 0xca5   :  { %v6853_v13 = vadd.f32 %v6852_v50, %v6764_v12  ;;  %v6941_v49 = vpop.f32.mrf.mxu3  ;;  %v7898_v52 = vadd.f32 %v14055_v21, %v7610_v17  ;;  %v7899_v28 = vadd.f32 %v14055_v21, %v7611_v43  ;;  %v6765_v34 = vpop.f32.mrf.mxu1 }
 0xca6   :  { %v6766_v36 = vadd.f32 %v6765_v34, %v6676_v8 }
 0xca7   :  { %v6942_v33 = vadd.f32 %v6941_v49, %v6853_v13  ;;  %v8538_v35 = vmax.f32 %v7898_v52, 0.0  ;;  %v8539_v42 = vmax.f32 %v7899_v28, 0.0  ;;  %v14058_v28 = vld [vmem:[#allocation118_spill] sm:$0xff] }
 0xca9   :  { %v12667_v47 = vpack.c.bf16 %v8538_v35, %v8530_v48  ;;  %v12669_v14 = vpack.c.bf16 %v8539_v42, %v8531_v40  ;;  %v7063_v11 = vpack.c.bf16 %v6942_v33, %v12420_v4 }
 0xcab   :  { %v7618_v16 = vunpack.c.l.bf16 %v7063_v11  ;;  %v7619_v24 = vunpack.c.h.bf16 %v7063_v11  ;;  %v14059_v11 = vld [vmem:[#allocation46_spill] sm:$0xff] }
 0xcac   :  { %v6854_v9 = vpop.f32.mrf.mxu2  ;;  %v6679_v30 = vpop.f32.mrf.mxu0 }
 0xcad   :  { %v6855_v25 = vadd.f32 %v6854_v9, %v6766_v36  ;;  %v6943_v26 = vpop.f32.mrf.mxu3  ;;  %v6768_v10 = vpop.f32.mrf.mxu1  ;;  %v7906_v37 = vadd.f32 %v14056_v27, %v7618_v16  ;;  %v7907_v54 = vadd.f32 %v14056_v27, %v7619_v24 }
 0xcae   :  { %v6769_v62 = vadd.f32 %v6768_v10, %v6679_v30 }
 0xcaf   :  { %v6944_v55 = vadd.f32 %v6943_v26, %v6855_v25  ;;  %v8546_v31 = vmax.f32 %v7906_v37, 0.0 }
 0xcb1   :  { %v7067_v7 = vpack.c.bf16 %v6944_v55, %v12422_v38  ;;  %v8547_v38 = vmax.f32 %v7907_v54, 0.0 }
 0xcb3   :  { %v7626_v5 = vunpack.c.l.bf16 %v7067_v7  ;;  %v7627_v19 = vunpack.c.h.bf16 %v7067_v7 }
 0xcb4   :  { %v6857_v46 = vpop.f32.mrf.mxu2  ;;  %v6681_v2 = vpop.f32.mrf.mxu0 }
 0xcb5   :  { %v6858_v4 = vadd.f32 %v6857_v46, %v6769_v62  ;;  %v6946_v41 = vpop.f32.mrf.mxu3  ;;  %v7914_v53 = vadd.f32 %v14057_v3, %v7626_v5  ;;  %v7915_v58 = vadd.f32 %v14057_v3, %v7627_v19  ;;  %v6770_v15 = vpop.f32.mrf.mxu1  ;;  %v14060_v62 = vld [vmem:[#allocation22_spill] sm:$0xff] }
 0xcb6   :  { %v6771_v45 = vadd.f32 %v6770_v15, %v6681_v2  ;;  %v14061_v2 = vld [vmem:[#allocation201_spill] sm:$0xff] }
 0xcb7   :  { %v6947_v20 = vadd.f32 %v6946_v41, %v6858_v4  ;;  %v8554_v32 = vmax.f32 %v7914_v53, 0.0  ;;  %v8555_v1 = vmax.f32 %v7915_v58, 0.0  ;;  %v14062_v53 = vld [vmem:[#allocation114_spill] sm:$0xff] }
 0xcb9   :  { %v12677_v29 = vpack.c.bf16 %v8554_v32, %v8546_v31  ;;  %v12679_v60 = vpack.c.bf16 %v8555_v1, %v8547_v38  ;;  %v7071_v12 = vpack.c.bf16 %v6947_v20, %v12428_v59  ;;  %v14063_v32 = vld [vmem:[#allocation149_spill] sm:$0xff] }
 0xcbb   :  { %v7634_v22 = vunpack.c.l.bf16 %v7071_v12  ;;  %v7635_v49 = vunpack.c.h.bf16 %v7071_v12 }
 0xcbc   :  { %v6859_v39 = vpop.f32.mrf.mxu2  ;;  %v6684_v50 = vpop.f32.mrf.mxu0 }
 0xcbd   :  { %v6860_v17 = vadd.f32 %v6859_v39, %v6771_v45  ;;  %v6948_v43 = vpop.f32.mrf.mxu3  ;;  %v6773_v13 = vpop.f32.mrf.mxu1  ;;  %v7922_v34 = vadd.f32 %v14058_v28, %v7634_v22  ;;  %v7923_v35 = vadd.f32 %v14058_v28, %v7635_v49 }
 0xcbe   :  { %v6774_v52 = vadd.f32 %v6773_v13, %v6684_v50 }
 0xcbf   :  { %v6949_v8 = vadd.f32 %v6948_v43, %v6860_v17  ;;  %v8562_v25 = vmax.f32 %v7922_v34, 0.0  ;;  %v8563_v16 = vmax.f32 %v7923_v35, 0.0 }
 0xcc1   :  { %v7075_v21 = vpack.c.bf16 %v6949_v8, %v12430_v18 }
 0xcc3   :  { %v7642_v48 = vunpack.c.l.bf16 %v7075_v21  ;;  %v7643_v33 = vunpack.c.h.bf16 %v7075_v21 }
 0xcc4   :  { %v6862_v40 = vpop.f32.mrf.mxu2  ;;  %v6686_v18 = vpop.f32.mrf.mxu0 }
 0xcc5   :  { %v6863_v59 = vadd.f32 %v6862_v40, %v6774_v52  ;;  %v6951_v42 = vpop.f32.mrf.mxu3  ;;  %v7930_v36 = vadd.f32 %v14059_v11, %v7642_v48  ;;  %v7931_v9 = vadd.f32 %v14059_v11, %v7643_v33  ;;  %v6775_v24 = vpop.f32.mrf.mxu1 }
 0xcc6   :  { %v6776_v37 = vadd.f32 %v6775_v24, %v6686_v18 }
 0xcc7   :  { %v6952_v26 = vadd.f32 %v6951_v42, %v6863_v59  ;;  %v8570_v30 = vmax.f32 %v7930_v36, 0.0  ;;  %v8571_v10 = vmax.f32 %v7931_v9, 0.0 }
 0xcc9   :  { %v8706_v55 = vpack.c.bf16 %v8570_v30, %v8562_v25  ;;  %v8707_v7 = vpack.c.bf16 %v8571_v10, %v8563_v16  ;;  %v7079_v27 = vpack.c.bf16 %v6952_v26, %v14060_v62 }
 0xccb   :  { %v7650_v46 = vunpack.c.l.bf16 %v7079_v27  ;;  %v7651_v4 = vunpack.c.h.bf16 %v7079_v27 }
 0xccc   :  { %v6864_v5 = vpop.f32.mrf.mxu2  ;;  %v8733_v50 = vpop.f32.mrf.mxu0 }
 0xccd   :  { %v6865_v19 = vadd.f32 %v6864_v5, %v6776_v37  ;;  %v6953_v54 = vpop.f32.mrf.mxu3  ;;  %v7938_v58 = vadd.f32 %v14062_v53, %v7650_v46  ;;  %v7939_v15 = vadd.f32 %v14062_v53, %v7651_v4  ;;  %v8746_v13 = vpop.f32.mrf.mxu1 }
 0xcce   :  { %v8747_v49 = vadd.f32 %v8746_v13, %v8733_v50 }
 0xccf   :  { %v6954_v41 = vadd.f32 %v6953_v54, %v6865_v19  ;;  %v8578_v12 = vmax.f32 %v7938_v58, 0.0  ;;  %v8579_v45 = vmax.f32 %v7939_v15, 0.0 }
 0xcd1   :  { %v7083_v3 = vpack.c.bf16 %v6954_v41, %v14061_v2 }
 0xcd3   :  { %v7658_v31 = vunpack.c.l.bf16 %v7083_v3  ;;  %v7659_v20 = vunpack.c.h.bf16 %v7083_v3 }
 0xcd4   :  { %v8759_v8 = vpop.f32.mrf.mxu2  ;;  %v8735_v48 = vpop.f32.mrf.mxu0 }
 0xcd5   :  { %v7946_v38 = vadd.f32 %v14063_v32, %v7658_v31  ;;  %v7947_v1 = vadd.f32 %v14063_v32, %v7659_v20  ;;  %v8772_v21 = vpop.f32.mrf.mxu3  ;;  %v8748_v33 = vpop.f32.mrf.mxu1 }
 0xcd6   :  { %v8773_v52 = vadd.f32 %v8772_v21, %v8759_v8 }
 0xcd7   :  { %v8586_v39 = vmax.f32 %v7946_v38, 0.0  ;;  %v8587_v17 = vmax.f32 %v7947_v1, 0.0 }
 0xcd8   :  { %v8940_v28 = vrot.slane %v8773_v52, 7 }
 0xcd9   :  { %v8714_v43 = vpack.c.bf16 %v8586_v39, %v8578_v12  ;;  %v8715_v22 = vpack.c.bf16 %v8587_v17, %v8579_v45 }
 0xcda   :  { %v8948_v34 = vsel %vm8947_vm0, %v8747_v49, %v8940_v28 }
 0xcdb   :  { %8893 = vmatpush.bf16.msrb.mxu1 %v8714_v43  ;;  %8919 = vmatpush.bf16.msrb.mxu3 %v8715_v22 }
 0xcdc   :  { %v8761_v35 = vpop.f32.mrf.mxu2  ;;  %v8785_v59 = vpop.f32.mrf.mxu0 }
 0xcdd   :  { %v8774_v40 = vpop.f32.mrf.mxu3  ;;  %v8798_v42 = vpop.f32.mrf.mxu1 }
 0xcde   :  { %v8799_v11 = vadd.f32 %v8798_v42, %v8785_v59 }
 0xcdf   :  { %8894 = vmatpush.bf16.msrb.mxu1 %v8706_v55  ;;  %8920 = vmatpush.bf16.msrb.mxu3 %v8707_v7 }
 0xce0   :  { %v8941_v26 = vrot.slane %v8799_v11, 6 }
 0xce3   :  { %8895 = vmatpush.bf16.msrb.mxu1 %v12677_v29  ;;  %8921 = vmatpush.bf16.msrb.mxu3 %v12679_v60 }
 0xce4   :  { %v8811_v36 = vpop.f32.mrf.mxu2  ;;  %v8787_v60 = vpop.f32.mrf.mxu0 }
 0xce5   :  { %v8824_v9 = vpop.f32.mrf.mxu3 }
 0xce6   :  { %v8825_v25 = vadd.f32 %v8824_v9, %v8811_v36 }
 0xce7   :  { %8896 = vmatpush.bf16.msrb.mxu1 %v12667_v47  ;;  %8922 = vmatpush.bf16.msrb.mxu3 %v12669_v14  ;;  %v8800_v14 = vpop.f32.mrf.mxu1 }
 0xce8   :  { %v8942_v29 = vrot.slane %v8825_v25, 5 }
 0xcea   :  { %v8950_v47 = vsel %vm8949_vm1, %v8941_v26, %v8942_v29 }
 0xceb   :  { %8897 = vmatpush.bf16.msrb.mxu1 %v12658_v44  ;;  %8923 = vmatpush.bf16.msrb.mxu3 %v12660_v61  ;;  %v8952_v37 = vsel %vm8951_vm3, %v8948_v34, %v8950_v47 }
 0xcec   :  { %v8813_v44 = vpop.f32.mrf.mxu2 }
 0xced   :  { %v8826_v61 = vpop.f32.mrf.mxu3 }
 0xcef   :  { %8898 = vmatpush.bf16.msrb.mxu1 %v12644_v56  ;;  %8924 = vmatpush.bf16.msrb.mxu3 %v12646_v0  ;;  %v8837_v56 = vpop.f32.mrf.mxu0  ;;  %v8850_v30 = vpop.f32.mrf.mxu1 }
 0xcf0   :  { %v8851_v0 = vadd.f32 %v8850_v30, %v8837_v56 }
 0xcf2   :  { %v8943_v24 = vrot.slane %v8851_v0, 4 }
 0xcf3   :  { %8899 = vmatpush.bf16.msrb.mxu1 %v12626_v51  ;;  %8925 = vmatpush.bf16.msrb.mxu3 %v12628_v6 }
 0xcf4   :  { %v8863_v16 = vpop.f32.mrf.mxu2 }
 0xcf5   :  { %v8876_v10 = vpop.f32.mrf.mxu3 }
 0xcf6   :  { %v8877_v18 = vadd.f32 %v8876_v10, %v8863_v16 }
 0xcf7   :  { %8900 = vmatpush.bf16.msrb.mxu1 %v12598_v57  ;;  %8926 = vmatpush.bf16.msrb.mxu3 %v12600_v63  ;;  %v8839_v55 = vpop.f32.mrf.mxu0  ;;  %v8852_v7 = vpop.f32.mrf.mxu1 }
 0xcf8   :  { %v8944_v51 = vrot.slane %v8877_v18, 3 }
 0xcfa   :  { %8927 = vmatmul.bf16.vlgmr.msrb.gmra.mxu3 %v12548_v23  ;;  %8901 = vmatmul.bf16.vlgmr.msrb.gmra.mxu1 %v12548_v23  ;;  %v8954_v6 = vsel %vm8953_vm2, %v8943_v24, %v8944_v51 }
 0xcfc   :  { %v8865_v62 = vpop.f32.mrf.mxu2 }
 0xcfd   :  { %v8878_v57 = vpop.f32.mrf.mxu3 }
 0xd0c   :  { %v8889_v27 = vpop.f32.mrf.mxu0 }
 0xd14   :  { %v8891_v63 = vpop.f32.mrf.mxu0  ;;  %v8915_v5 = vpop.f32.mrf.mxu2 }
 0xd1c   :  { %v8917_v23 = vpop.f32.mrf.mxu2 }
 0xd77   :  { %v8902_v19 = vpop.f32.mrf.mxu1 }
 0xd78   :  { %v8903_v54 = vadd.f32 %v8902_v19, %v8889_v27 }
 0xd7a   :  { %v8945_v4 = vrot.slane %v8903_v54, 2 }
 0xd7d   :  { %v8928_v46 = vpop.f32.mrf.mxu3 }
 0xd7e   :  { %v8929_v41 = vadd.f32 %v8928_v46, %v8915_v5 }
 0xd7f   :  { %v8904_v2 = vpop.f32.mrf.mxu1 }
 0xd80   :  { %v8946_v3 = vrot.slane %v8929_v41, 1 }
 0xd82   :  { %v8956_v53 = vsel %vm8955_vm4, %v8945_v4, %v8946_v3 }
 0xd83   :  { %v8958_v58 = vsel %vm8957_vm5, %v8954_v6, %v8956_v53 }
 0xd84   :  { %v8960_v15 = vsel %vm8959_vm6, %v8952_v37, %v8958_v58 }
 0xd85   :  { %v8930_v31 = vpop.f32.mrf.mxu3  ;;  %8962 = vst [vmem:[#allocation8] sm:$0xff] %v8960_v15 }
 0xd86   :  { %8973 = dma.vmem_to_hbm [thread:$0]  %s8969_s18, 128, %s8971_s21, [#allocation4]  }
 0xd87   :  { %9926 = dma.done.wait [#allocation4], 128  }
 0xd88   :  { %9927 = vsyncadd [#allocation4], 4294967168 }
 0xd89   :  { %8978 = vsyncpa [#allocation3], 1 }
 0xd8a   :  { %8979 = vsyncpa [#allocation6], 1 }
 0xd8b   :  { %8980 = vsyncpa [#allocation4], 1 }

</bundles_post_ra>
